<compile_context>
chip_gen: v7x
topology: tpu7x:2x2x1
jax: 0.10.0
libtpu: 0.0.40
codegen_flags: <defaults>
</compile_context>

<pallas_src>
import functools

import jax
import jax.numpy as jnp
import numpy as np
from jax.experimental import pallas as pl
from jax.experimental.pallas import tpu as pltpu

# ----------------------------- static config --------------------------------
DIM = 32            # channels C
NUM_HEADS = 4
NUM_FRAMES = 2      # D (last_blk attends frame0 (q) -> frame1 (kv))
WINDOW = (8, 8)
MLP_RATIO = 4.0
EPS = 1e-5          # nn.LayerNorm default

# vec_slab column layout (channels-major column vectors, broadcast over lanes)
_VEC_G1, _VEC_B1N, _VEC_G2, _VEC_B2N = 0, 1, 2, 3
_VEC_BQ, _VEC_BK, _VEC_BV, _VEC_BP, _VEC_B2M, _VEC_B1M = 4, 5, 6, 7, 8, 9
_NUM_VEC = 10


# ------------------------------ fused kernel --------------------------------
def _fused_kernel(x_ref, bias_ref, w_ref, w2t_ref, vec_ref, out_ref, *,
                  num_heads, n_windows, eps):
    """Whole EncoderLayer02(depth=0) forward for one (B=1) sample in VMEM.

    x_ref    : (2, C, M)       channels-major frames, tokens already in window
                               order (frame 0 = q/shortcut, frame 1 = kv)
    bias_ref : (nh, N, N)      relative-position bias (host-gathered)
    w_ref    : (4C+hid, C)     [Wq^T*scale; Wk^T; Wv^T; Wp^T; W1^T]
    w2t_ref  : (C, hid)        W2^T
    vec_ref  : (max(C,hid),10) packed gammas/betas/biases (column vectors)
    out_ref  : (C, M)          channels-major, window token order (lane-dense)
    """
    C = w_ref.shape[1]
    hid = w2t_ref.shape[1]
    nh = num_heads
    hd = C // nh
    nW = n_windows
    N = bias_ref.shape[-1]

    def col(i, rows=C):                      # (rows, 1) column vector
        return vec_ref[0:rows, i:i + 1]

    g1, b1n = col(_VEC_G1), col(_VEC_B1N)
    g2, b2n = col(_VEC_G2), col(_VEC_B2N)
    bq, bk, bv, bp = col(_VEC_BQ), col(_VEC_BK), col(_VEC_BV), col(_VEC_BP)
    b2m = col(_VEC_B2M)
    b1m = col(_VEC_B1M, rows=hid)

    xq = x_ref[0]      # (C, M) un-normed frame 0 (block shortcut)
    xkv = x_ref[1]     # (C, M) frame 1

    def layer_norm_cm(t, g, b):              # normalize over channels (sublanes)
        mu = jnp.mean(t, axis=0, keepdims=True)
        var = jnp.mean(jnp.square(t - mu), axis=0, keepdims=True)
        return (t - mu) * jax.lax.rsqrt(var + eps) * g + b

    xqn = layer_norm_cm(xq, g1, b1n)         # norm1(frame 0) == q_copy
    xkvn = layer_norm_cm(xkv, g1, b1n)       # norm1(frame 1)

    # ---- lane-dense projection GEMMs (weights pre-transposed on the host) ----
    wq = w_ref[0:C, :]                       # qk scale folded in
    wkv = w_ref[C:3 * C, :]                  # fused [Wk^T; Wv^T]
    wp = w_ref[3 * C:4 * C, :]
    w1 = w_ref[4 * C:4 * C + hid, :]

    q = jnp.dot(wq, xqn, preferred_element_type=jnp.float32) + bq        # (C, M)
    kv = jnp.dot(wkv, xkvn, preferred_element_type=jnp.float32)          # (2C, M)
    k = kv[0:C, :] + bk
    v = kv[C:2 * C, :] + bv

    # ---- per-window attention, heads batched; one stacked softmax ----
    dn_qk = (((1,), (1,)), ((0,), (0,)))     # contract head_dim, batch heads
    dn_pv = (((2,), (2,)), ((0,), (0,)))     # contract keys,     batch heads

    def win(t, w):                           # (C, M) -> (nh, hd, N) window view
        return t[:, w * N:(w + 1) * N].reshape(nh, hd, N)

    s_all = jnp.stack(
        [jax.lax.dot_general(win(q, w), win(k, w), dn_qk,
                             preferred_element_type=jnp.float32)
         for w in range(nW)], axis=0) + bias_ref[...]     # (nW, nh, Nq, Nk)
    s_all = s_all - jnp.max(s_all, axis=-1, keepdims=True)
    p_all = jnp.exp(s_all)
    p_all = p_all / jnp.sum(p_all, axis=-1, keepdims=True)  # exact divide

    ctx = jnp.concatenate(
        [jax.lax.dot_general(win(v, w), p_all[w], dn_pv,
                             preferred_element_type=jnp.float32).reshape(C, N)
         for w in range(nW)], axis=1)                     # (C, M), heads merged

    # ---- output projection + q_copy + shortcut residual (channels-major) ----
    attn_out = jnp.dot(wp, ctx, preferred_element_type=jnp.float32) + bp + xqn
    y = xq + attn_out

    # ---- norm2 + MLP + residual ----
    yn = layer_norm_cm(y, g2, b2n)
    h = jnp.dot(w1, yn, preferred_element_type=jnp.float32) + b1m        # (hid, M)
    # TODO(synk): the module's custom `GELU` act_layer definition is not
    # provided; using tanh-approx GELU (set approximate=False for exact
    # torch nn.GELU / erf parity).
    h = jax.nn.gelu(h, approximate=True)
    out = y + jnp.dot(w2t_ref[...], h, preferred_element_type=jnp.float32) + b2m

    # lane-dense (C, 256) store: 256 lanes, unmasked vst
    out_ref[...] = out.astype(out_ref.dtype)


# ----------------------------- pallas_call wrapper ---------------------------
def _full_spec(shape):
    zeros = (0,) * len(shape)
    return pl.BlockSpec(shape, lambda i: zeros)


def encoder_layer02_forward(x, kp):
    """x: (B, D, C, H, W) -> (B, C, H, W).  B must be 1 (as in the torch code)."""
    B, D, C, H, W = x.shape
    wh, ww = WINDOW
    assert B == 1, "PyTorch broadcast/squeeze path in the block requires B == 1"
    assert D >= 2, "last_blk attends frame 0 (q) -> frame 1 (kv)"
    assert H % wh == 0 and W % ww == 0, "no spatial padding needed at this size"
    nwh, nww = H // wh, W // ww
    nW = nwh * nww
    M = H * W

    # spatial -> window token order (channels-major), done as XLA layout
    # plumbing in the wrapper so the kernel never shuffles tokens.
    x_win = (x[0, :2]
             .reshape(2, C, nwh, wh, nww, ww)
             .transpose(0, 1, 2, 4, 3, 5)
             .reshape(2, C, M))

    kernel = functools.partial(_fused_kernel, num_heads=NUM_HEADS,
                               n_windows=nW, eps=EPS)
    args = (x_win, kp["bias"], kp["w_slab"], kp["w2t"], kp["vec_slab"])

    out_cm = pl.pallas_call(
        kernel,
        out_shape=jax.ShapeDtypeStruct((C, M), jnp.float32),
        # single fused step; TODO(synk): if batch > 1 ever occurs, promote it
        # to a "parallel" grid axis (feeds both v7x TensorCores + pipelines DMA)
        grid=(1,),
        in_specs=[_full_spec(a.shape) for a in args],
        out_specs=_full_spec((C, M)),
        compiler_params=pltpu.CompilerParams(dimension_semantics=("arbitrary",)),
    )(*args)

    # window token order -> spatial; output is already channels-major
    out = (out_cm.reshape(C, nwh, nww, wh, ww)
           .transpose(0, 1, 3, 2, 4)
           .reshape(1, C, H, W))
    return out


# ----------------------------- host-side param prep --------------------------
def relative_position_index(window_size):
    """Same construction as WindowAttention3D02.__init__ for nf_q = nf_kv = 1."""
    ws0, ws1 = window_size
    coords_d_q = np.arange(1)
    coords_d_kv = np.arange(0, 1, (1 + 1) // 1)
    coords_h = np.arange(ws0)
    coords_w = np.arange(ws1)
    cq = np.stack(np.meshgrid(coords_d_q, coords_h, coords_w, indexing="ij"))
    ckv = np.stack(np.meshgrid(coords_d_kv, coords_h, coords_w, indexing="ij"))
    cqf = cq.reshape(3, -1)
    ckvf = ckv.reshape(3, -1)
    rel = cqf[:, :, None] - ckvf[:, None, :]
    rel = rel.transpose(1, 2, 0).astype(np.int64)
    rel[:, :, 0] += 1 - 1
    rel[:, :, 1] += ws0 - 1
    rel[:, :, 2] += ws1 - 1
    rel[:, :, 0] *= (2 * ws0 - 1) * (2 * ws1 - 1)
    rel[:, :, 1] *= 2 * ws1 - 1
    return rel.sum(-1)                  # (N, N)


def init_params(key, dim=DIM, num_heads=NUM_HEADS, window_size=WINDOW,
                mlp_ratio=MLP_RATIO):
    hid = int(dim * mlp_ratio)
    table_len = (2 * 1 - 1) * (2 * window_size[0] - 1) * (2 * window_size[1] - 1)
    keys = jax.random.split(key, 11)

    def lin(k, fan_in, shape):
        lim = 1.0 / np.sqrt(fan_in)
        return jax.random.uniform(k, shape, jnp.float32, -lim, lim)

    return dict(
        norm1_g=jnp.ones((1, dim), jnp.float32),
        norm1_b=jnp.zeros((1, dim), jnp.float32),
        norm2_g=jnp.ones((1, dim), jnp.float32),
        norm2_b=jnp.zeros((1, dim), jnp.float32),
        wq=lin(keys[0], dim, (dim, dim)),   bq=lin(keys[1], dim, (1, dim)),
        wkv=lin(keys[2], dim, (dim, 2 * dim)), bkv=lin(keys[3], dim, (1, 2 * dim)),
        wp=lin(keys[4], dim, (dim, dim)),   bp=lin(keys[5], dim, (1, dim)),
        w1=lin(keys[6], dim, (dim, hid)),   b1=lin(keys[7], dim, (1, hid)),
        w2=lin(keys[8], hid, (hid, dim)),   b2=lin(keys[9], hid, (1, dim)),
        rel_table=(jax.random.normal(keys[10], (table_len, num_heads),
                                     jnp.float32) * 0.02),
    )


def prepare_kernel_params(p, dim=DIM, num_heads=NUM_HEADS, window_size=WINDOW,
                          mlp_ratio=MLP_RATIO):
    """One-time host prep: transpose weights for channels-major left-multiply,
    fold the qk scale into Wq/bq, gather the relative-position bias, and pack
    the small parameters into a few dense DMA slabs."""
    C = dim
    nh = num_heads
    hd = C // nh
    hid = int(C * mlp_ratio)
    N = window_size[0] * window_size[1]
    scale = hd ** (-0.5)

    wq_t = (p["wq"] * scale).T             # (C, C), scale folded in
    wk_t = p["wkv"][:, :C].T
    wv_t = p["wkv"][:, C:].T
    wp_t = p["wp"].T
    w1_t = p["w1"].T                       # (hid, C)
    w2_t = p["w2"].T                       # (C, hid)
    w_slab = jnp.concatenate([wq_t, wk_t, wv_t, wp_t, w1_t], axis=0)  # (4C+hid, C)

    rows = max(C, hid)
    vecs_c = jnp.stack(
        [p["norm1_g"].reshape(-1), p["norm1_b"].reshape(-1),
         p["norm2_g"].reshape(-1), p["norm2_b"].reshape(-1),
         (p["bq"] * scale).reshape(-1),
         p["bkv"][:, :C].reshape(-1), p["bkv"][:, C:].reshape(-1),
         p["bp"].reshape(-1), p["b2"].reshape(-1)], axis=1)          # (C, 9)
    vec_slab = jnp.zeros((rows, _NUM_VEC), jnp.float32)
    vec_slab = vec_slab.at[:C, :_VEC_B1M].set(vecs_c)
    vec_slab = vec_slab.at[:hid, _VEC_B1M].set(p["b1"].reshape(-1))

    idx = relative_position_index(window_size).reshape(-1)
    bias = p["rel_table"][jnp.asarray(idx)].reshape(N, N, nh)
    bias = jnp.transpose(bias, (2, 0, 1))  # (nh, N, N), precomputed once

    return dict(bias=bias, w_slab=w_slab, w2t=w2_t, vec_slab=vec_slab)


# ----------------------------- pure-JAX reference ----------------------------
def reference_forward(x, p):
    B, D, C, H, W = x.shape
    ws = WINDOW
    nh, hd = NUM_HEADS, C // NUM_HEADS
    scale = hd ** (-0.5)
    x = jnp.transpose(x, (0, 1, 3, 4, 2))

    def ln(v, g, b):
        mu = jnp.mean(v, -1, keepdims=True)
        var = jnp.mean((v - mu) ** 2, -1, keepdims=True)
        return (v - mu) / jnp.sqrt(var + EPS) * g.reshape(-1) + b.reshape(-1)

    shortcut = x[:, 0]
    xn = ln(x, p["norm1_g"], p["norm1_b"])
    xw = xn.reshape(B, D, H // ws[0], ws[0], W // ws[1], ws[1], C)
    xw = jnp.transpose(xw, (0, 2, 4, 1, 3, 5, 6)).reshape(-1, D, ws[0], ws[1], C)
    N = ws[0] * ws[1]
    qin = xw[:, 0].reshape(-1, N, C)
    kvin = xw[:, 1].reshape(-1, N, C)
    q = qin @ p["wq"] + p["bq"].reshape(-1)
    kv = kvin @ p["wkv"] + p["bkv"].reshape(-1)
    k, v = kv[..., :C], kv[..., C:]
    Bw = q.shape[0]
    qh = q.reshape(Bw, N, nh, hd).transpose(0, 2, 1, 3) * scale
    kh = k.reshape(Bw, N, nh, hd).transpose(0, 2, 1, 3)
    vh = v.reshape(Bw, N, nh, hd).transpose(0, 2, 1, 3)
    idx = jnp.asarray(relative_position_index(ws).reshape(-1))
    bias = p["rel_table"][idx].reshape(N, N, nh).transpose(2, 0, 1)
    attn = jnp.einsum("bhnd,bhmd->bhnm", qh, kh) + bias[None]
    attn = jax.nn.softmax(attn, axis=-1)
    o = jnp.einsum("bhnm,bhmd->bhnd", attn, vh).transpose(0, 2, 1, 3).reshape(Bw, N, C)
    o = o @ p["wp"] + p["bp"].reshape(-1) + qin
    aw = o.reshape(B, H // ws[0], W // ws[1], 1, ws[0], ws[1], C)
    aw = jnp.transpose(aw, (0, 3, 1, 4, 2, 5, 6)).reshape(B, 1, H, W, C)
    y = shortcut + aw[:, 0]
    yn = ln(y, p["norm2_g"], p["norm2_b"])
    h = jax.nn.gelu(yn @ p["w1"] + p["b1"].reshape(-1), approximate=True)
    y = y + h @ p["w2"] + p["b2"].reshape(-1)
    return jnp.transpose(y, (0, 3, 1, 2))


# ----------------------------------- main ------------------------------------
if __name__ == "__main__":
    key = jax.random.PRNGKey(0)
    kx, kparam = jax.random.split(key)
    B, D, C, H, W = 1, NUM_FRAMES, DIM, 16, 16
    x = jax.random.normal(kx, (B, D, C, H, W), jnp.float32)

    params = init_params(kparam)
    kernel_params = prepare_kernel_params(params)   # host prep, outside the jit

    fwd = jax.jit(encoder_layer02_forward)
    out = jax.block_until_ready(fwd(x, kernel_params))

    ref = reference_forward(x, params)
    assert out.shape == (B, C, H, W)
    # exact softmax divide (no approx reciprocal) -> tighter parity than before
    np.testing.assert_allclose(np.asarray(out), np.asarray(ref),
                               rtol=5e-4, atol=5e-4)
    print("KERNEL_OK")
</pallas_src>

<mosaic_0001>
module attributes {stable_mosaic.version = 11 : i64} {
  func.func @_fused_kernel(%arg0: i32, %arg1: memref<2x32x256xf32, #tpu.memory_space<vmem>>, %arg2: memref<4x64x64xf32, #tpu.memory_space<vmem>>, %arg3: memref<256x32xf32, #tpu.memory_space<vmem>>, %arg4: memref<32x128xf32, #tpu.memory_space<vmem>>, %arg5: memref<128x10xf32, #tpu.memory_space<vmem>>, %arg6: memref<32x256xf32, #tpu.memory_space<vmem>>) attributes {dimension_semantics = [#tpu.dimension_semantics<arbitrary>], iteration_bounds = array<i64: 1>, scalar_prefetch = 0 : i64, scratch_operands = 0 : i64, tpu.core_type = #tpu.core_type<tc>, window_params = [{pipeline_mode = #tpu.pipeline_mode<synchronous>, transform_indices = @transform_0, window_bounds = array<i64: 2, 32, 256>}, {pipeline_mode = #tpu.pipeline_mode<synchronous>, transform_indices = @transform_1, window_bounds = array<i64: 4, 64, 64>}, {pipeline_mode = #tpu.pipeline_mode<synchronous>, transform_indices = @transform_2, window_bounds = array<i64: 256, 32>}, {pipeline_mode = #tpu.pipeline_mode<synchronous>, transform_indices = @transform_3, window_bounds = array<i64: 32, 128>}, {pipeline_mode = #tpu.pipeline_mode<synchronous>, transform_indices = @transform_4, window_bounds = array<i64: 128, 10>}, {pipeline_mode = #tpu.pipeline_mode<synchronous>, transform_indices = @transform_5, window_bounds = array<i64: 32, 256>}]} {
    %c0 = arith.constant 0 : index
    %c0_0 = arith.constant 0 : index
    %0 = vector.load %arg5[%c0, %c0_0] : memref<128x10xf32, #tpu.memory_space<vmem>>, vector<32x1xf32>
    %c0_1 = arith.constant 0 : index
    %c1 = arith.constant 1 : index
    %1 = vector.load %arg5[%c0_1, %c1] : memref<128x10xf32, #tpu.memory_space<vmem>>, vector<32x1xf32>
    %c0_2 = arith.constant 0 : index
    %c2 = arith.constant 2 : index
    %2 = vector.load %arg5[%c0_2, %c2] : memref<128x10xf32, #tpu.memory_space<vmem>>, vector<32x1xf32>
    %c0_3 = arith.constant 0 : index
    %c3 = arith.constant 3 : index
    %3 = vector.load %arg5[%c0_3, %c3] : memref<128x10xf32, #tpu.memory_space<vmem>>, vector<32x1xf32>
    %c0_4 = arith.constant 0 : index
    %c4 = arith.constant 4 : index
    %4 = vector.load %arg5[%c0_4, %c4] : memref<128x10xf32, #tpu.memory_space<vmem>>, vector<32x1xf32>
    %c0_5 = arith.constant 0 : index
    %c5 = arith.constant 5 : index
    %5 = vector.load %arg5[%c0_5, %c5] : memref<128x10xf32, #tpu.memory_space<vmem>>, vector<32x1xf32>
    %c0_6 = arith.constant 0 : index
    %c6 = arith.constant 6 : index
    %6 = vector.load %arg5[%c0_6, %c6] : memref<128x10xf32, #tpu.memory_space<vmem>>, vector<32x1xf32>
    %c0_7 = arith.constant 0 : index
    %c7 = arith.constant 7 : index
    %7 = vector.load %arg5[%c0_7, %c7] : memref<128x10xf32, #tpu.memory_space<vmem>>, vector<32x1xf32>
    %c0_8 = arith.constant 0 : index
    %c8 = arith.constant 8 : index
    %8 = vector.load %arg5[%c0_8, %c8] : memref<128x10xf32, #tpu.memory_space<vmem>>, vector<32x1xf32>
    %c0_9 = arith.constant 0 : index
    %c9 = arith.constant 9 : index
    %9 = vector.load %arg5[%c0_9, %c9] : memref<128x10xf32, #tpu.memory_space<vmem>>, vector<128x1xf32>
    %c0_10 = arith.constant 0 : index
    %c0_11 = arith.constant 0 : index
    %c0_12 = arith.constant 0 : index
    %10 = vector.load %arg1[%c0_10, %c0_11, %c0_12] : memref<2x32x256xf32, #tpu.memory_space<vmem>>, vector<1x32x256xf32>
    %11 = vector.shape_cast %10 : vector<1x32x256xf32> to vector<32x256xf32>
    %c1_13 = arith.constant 1 : index
    %c0_14 = arith.constant 0 : index
    %c0_15 = arith.constant 0 : index
    %12 = vector.load %arg1[%c1_13, %c0_14, %c0_15] : memref<2x32x256xf32, #tpu.memory_space<vmem>>, vector<1x32x256xf32>
    %13 = vector.shape_cast %12 : vector<1x32x256xf32> to vector<32x256xf32>
    %cst = arith.constant dense<0.000000e+00> : vector<256xf32>
    %14 = vector.multi_reduction <add>, %11, %cst [0] : vector<32x256xf32> to vector<256xf32>
    %15 = vector.shape_cast %14 : vector<256xf32> to vector<1x256xf32>
    %cst_16 = arith.constant 3.200000e+01 : f32
    %16 = vector.broadcast %cst_16 : f32 to vector<1x256xf32>
    %17 = arith.divf %15, %16 : vector<1x256xf32>
    %18 = vector.broadcast %17 : vector<1x256xf32> to vector<32x256xf32>
    %19 = arith.subf %11, %18 : vector<32x256xf32>
    %20 = arith.mulf %19, %19 : vector<32x256xf32>
    %cst_17 = arith.constant dense<0.000000e+00> : vector<256xf32>
    %21 = vector.multi_reduction <add>, %20, %cst_17 [0] : vector<32x256xf32> to vector<256xf32>
    %22 = vector.shape_cast %21 : vector<256xf32> to vector<1x256xf32>
    %cst_18 = arith.constant 3.200000e+01 : f32
    %23 = vector.broadcast %cst_18 : f32 to vector<1x256xf32>
    %24 = arith.divf %22, %23 : vector<1x256xf32>
    %25 = vector.broadcast %17 : vector<1x256xf32> to vector<32x256xf32>
    %26 = arith.subf %11, %25 : vector<32x256xf32>
    %cst_19 = arith.constant 9.99999974E-6 : f32
    %27 = vector.broadcast %cst_19 : f32 to vector<1x256xf32>
    %28 = arith.addf %24, %27 : vector<1x256xf32>
    %29 = math.rsqrt %28 : vector<1x256xf32>
    %30 = vector.broadcast %29 : vector<1x256xf32> to vector<32x256xf32>
    %31 = arith.mulf %26, %30 : vector<32x256xf32>
    %32 = vector.broadcast %0 : vector<32x1xf32> to vector<32x256xf32>
    %33 = arith.mulf %31, %32 : vector<32x256xf32>
    %34 = vector.broadcast %1 : vector<32x1xf32> to vector<32x256xf32>
    %35 = arith.addf %33, %34 : vector<32x256xf32>
    %cst_20 = arith.constant dense<0.000000e+00> : vector<256xf32>
    %36 = vector.multi_reduction <add>, %13, %cst_20 [0] : vector<32x256xf32> to vector<256xf32>
    %37 = vector.shape_cast %36 : vector<256xf32> to vector<1x256xf32>
    %cst_21 = arith.constant 3.200000e+01 : f32
    %38 = vector.broadcast %cst_21 : f32 to vector<1x256xf32>
    %39 = arith.divf %37, %38 : vector<1x256xf32>
    %40 = vector.broadcast %39 : vector<1x256xf32> to vector<32x256xf32>
    %41 = arith.subf %13, %40 : vector<32x256xf32>
    %42 = arith.mulf %41, %41 : vector<32x256xf32>
    %cst_22 = arith.constant dense<0.000000e+00> : vector<256xf32>
    %43 = vector.multi_reduction <add>, %42, %cst_22 [0] : vector<32x256xf32> to vector<256xf32>
    %44 = vector.shape_cast %43 : vector<256xf32> to vector<1x256xf32>
    %cst_23 = arith.constant 3.200000e+01 : f32
    %45 = vector.broadcast %cst_23 : f32 to vector<1x256xf32>
    %46 = arith.divf %44, %45 : vector<1x256xf32>
    %47 = vector.broadcast %39 : vector<1x256xf32> to vector<32x256xf32>
    %48 = arith.subf %13, %47 : vector<32x256xf32>
    %cst_24 = arith.constant 9.99999974E-6 : f32
    %49 = vector.broadcast %cst_24 : f32 to vector<1x256xf32>
    %50 = arith.addf %46, %49 : vector<1x256xf32>
    %51 = math.rsqrt %50 : vector<1x256xf32>
    %52 = vector.broadcast %51 : vector<1x256xf32> to vector<32x256xf32>
    %53 = arith.mulf %48, %52 : vector<32x256xf32>
    %54 = vector.broadcast %0 : vector<32x1xf32> to vector<32x256xf32>
    %55 = arith.mulf %53, %54 : vector<32x256xf32>
    %56 = vector.broadcast %1 : vector<32x1xf32> to vector<32x256xf32>
    %57 = arith.addf %55, %56 : vector<32x256xf32>
    %c0_25 = arith.constant 0 : index
    %c0_26 = arith.constant 0 : index
    %58 = vector.load %arg3[%c0_25, %c0_26] : memref<256x32xf32, #tpu.memory_space<vmem>>, vector<32x32xf32>
    %c32 = arith.constant 32 : index
    %c0_27 = arith.constant 0 : index
    %59 = vector.load %arg3[%c32, %c0_27] : memref<256x32xf32, #tpu.memory_space<vmem>>, vector<64x32xf32>
    %c96 = arith.constant 96 : index
    %c0_28 = arith.constant 0 : index
    %60 = vector.load %arg3[%c96, %c0_28] : memref<256x32xf32, #tpu.memory_space<vmem>>, vector<32x32xf32>
    %c128 = arith.constant 128 : index
    %c0_29 = arith.constant 0 : index
    %61 = vector.load %arg3[%c128, %c0_29] : memref<256x32xf32, #tpu.memory_space<vmem>>, vector<128x32xf32>
    %cst_30 = arith.constant dense<0.000000e+00> : vector<32x256xf32>
    %62 = tpu.matmul %58, %35, %cst_30 {dimension_numbers = #tpu.dot_dimension_numbers<[1], [0], [0], [1], [0, 0, 1, 1], [], []>} : vector<32x32xf32>, vector<32x256xf32>, vector<32x256xf32> -> vector<32x256xf32>
    %63 = vector.broadcast %4 : vector<32x1xf32> to vector<32x256xf32>
    %64 = arith.addf %62, %63 : vector<32x256xf32>
    %cst_31 = arith.constant dense<0.000000e+00> : vector<64x256xf32>
    %65 = tpu.matmul %59, %57, %cst_31 {dimension_numbers = #tpu.dot_dimension_numbers<[1], [0], [0], [1], [0, 0, 1, 1], [], []>} : vector<64x32xf32>, vector<32x256xf32>, vector<64x256xf32> -> vector<64x256xf32>
    %66 = vector.extract_strided_slice %65 {offsets = [0, 0], sizes = [32, 256], strides = [1, 1]} : vector<64x256xf32> to vector<32x256xf32>
    %67 = vector.broadcast %5 : vector<32x1xf32> to vector<32x256xf32>
    %68 = arith.addf %66, %67 : vector<32x256xf32>
    %69 = vector.extract_strided_slice %65 {offsets = [32, 0], sizes = [32, 256], strides = [1, 1]} : vector<64x256xf32> to vector<32x256xf32>
    %70 = vector.broadcast %6 : vector<32x1xf32> to vector<32x256xf32>
    %71 = arith.addf %69, %70 : vector<32x256xf32>
    %72 = vector.extract_strided_slice %64 {offsets = [0, 0], sizes = [32, 64], strides = [1, 1]} : vector<32x256xf32> to vector<32x64xf32>
    %73 = vector.shape_cast %72 : vector<32x64xf32> to vector<4x8x64xf32>
    %74 = vector.extract_strided_slice %68 {offsets = [0, 0], sizes = [32, 64], strides = [1, 1]} : vector<32x256xf32> to vector<32x64xf32>
    %75 = vector.shape_cast %74 : vector<32x64xf32> to vector<4x8x64xf32>
    %cst_32 = arith.constant dense<0.000000e+00> : vector<4x64x64xf32>
    %76 = tpu.matmul %73, %75, %cst_32 {dimension_numbers = #tpu.dot_dimension_numbers<[1], [1], [2], [2], [0, 0, 0, 2, 1, 2], [0], [0]>} : vector<4x8x64xf32>, vector<4x8x64xf32>, vector<4x64x64xf32> -> vector<4x64x64xf32>
    %77 = vector.extract_strided_slice %64 {offsets = [0, 64], sizes = [32, 64], strides = [1, 1]} : vector<32x256xf32> to vector<32x64xf32>
    %78 = vector.shape_cast %77 : vector<32x64xf32> to vector<4x8x64xf32>
    %79 = vector.extract_strided_slice %68 {offsets = [0, 64], sizes = [32, 64], strides = [1, 1]} : vector<32x256xf32> to vector<32x64xf32>
    %80 = vector.shape_cast %79 : vector<32x64xf32> to vector<4x8x64xf32>
    %cst_33 = arith.constant dense<0.000000e+00> : vector<4x64x64xf32>
    %81 = tpu.matmul %78, %80, %cst_33 {dimension_numbers = #tpu.dot_dimension_numbers<[1], [1], [2], [2], [0, 0, 0, 2, 1, 2], [0], [0]>} : vector<4x8x64xf32>, vector<4x8x64xf32>, vector<4x64x64xf32> -> vector<4x64x64xf32>
    %82 = vector.extract_strided_slice %64 {offsets = [0, 128], sizes = [32, 64], strides = [1, 1]} : vector<32x256xf32> to vector<32x64xf32>
    %83 = vector.shape_cast %82 : vector<32x64xf32> to vector<4x8x64xf32>
    %84 = vector.extract_strided_slice %68 {offsets = [0, 128], sizes = [32, 64], strides = [1, 1]} : vector<32x256xf32> to vector<32x64xf32>
    %85 = vector.shape_cast %84 : vector<32x64xf32> to vector<4x8x64xf32>
    %cst_34 = arith.constant dense<0.000000e+00> : vector<4x64x64xf32>
    %86 = tpu.matmul %83, %85, %cst_34 {dimension_numbers = #tpu.dot_dimension_numbers<[1], [1], [2], [2], [0, 0, 0, 2, 1, 2], [0], [0]>} : vector<4x8x64xf32>, vector<4x8x64xf32>, vector<4x64x64xf32> -> vector<4x64x64xf32>
    %87 = vector.extract_strided_slice %64 {offsets = [0, 192], sizes = [32, 64], strides = [1, 1]} : vector<32x256xf32> to vector<32x64xf32>
    %88 = vector.shape_cast %87 : vector<32x64xf32> to vector<4x8x64xf32>
    %89 = vector.extract_strided_slice %68 {offsets = [0, 192], sizes = [32, 64], strides = [1, 1]} : vector<32x256xf32> to vector<32x64xf32>
    %90 = vector.shape_cast %89 : vector<32x64xf32> to vector<4x8x64xf32>
    %cst_35 = arith.constant dense<0.000000e+00> : vector<4x64x64xf32>
    %91 = tpu.matmul %88, %90, %cst_35 {dimension_numbers = #tpu.dot_dimension_numbers<[1], [1], [2], [2], [0, 0, 0, 2, 1, 2], [0], [0]>} : vector<4x8x64xf32>, vector<4x8x64xf32>, vector<4x64x64xf32> -> vector<4x64x64xf32>
    %92 = vector.shape_cast %76 : vector<4x64x64xf32> to vector<1x4x64x64xf32>
    %93 = vector.shape_cast %81 : vector<4x64x64xf32> to vector<1x4x64x64xf32>
    %94 = vector.shape_cast %86 : vector<4x64x64xf32> to vector<1x4x64x64xf32>
    %95 = vector.shape_cast %91 : vector<4x64x64xf32> to vector<1x4x64x64xf32>
    %96 = tpu.concatenate %92, %93, %94, %95 in 0 : vector<1x4x64x64xf32>, vector<1x4x64x64xf32>, vector<1x4x64x64xf32>, vector<1x4x64x64xf32> -> vector<4x4x64x64xf32>
    %c0_36 = arith.constant 0 : index
    %c0_37 = arith.constant 0 : index
    %c0_38 = arith.constant 0 : index
    %97 = vector.load %arg2[%c0_36, %c0_37, %c0_38] : memref<4x64x64xf32, #tpu.memory_space<vmem>>, vector<4x64x64xf32>
    %98 = vector.shape_cast %97 : vector<4x64x64xf32> to vector<1x4x64x64xf32>
    %99 = vector.broadcast %98 : vector<1x4x64x64xf32> to vector<4x4x64x64xf32>
    %100 = arith.addf %96, %99 : vector<4x4x64x64xf32>
    %cst_39 = arith.constant dense<0xFF800000> : vector<4x4x64xf32>
    %101 = vector.multi_reduction <maximumf>, %100, %cst_39 [3] : vector<4x4x64x64xf32> to vector<4x4x64xf32>
    %102 = vector.shape_cast %101 : vector<4x4x64xf32> to vector<4x4x64x1xf32>
    %103 = vector.broadcast %102 : vector<4x4x64x1xf32> to vector<4x4x64x64xf32>
    %104 = arith.subf %100, %103 : vector<4x4x64x64xf32>
    %105 = math.exp %104 : vector<4x4x64x64xf32>
    %cst_40 = arith.constant dense<0.000000e+00> : vector<4x4x64xf32>
    %106 = vector.multi_reduction <add>, %105, %cst_40 [3] : vector<4x4x64x64xf32> to vector<4x4x64xf32>
    %107 = vector.shape_cast %106 : vector<4x4x64xf32> to vector<4x4x64x1xf32>
    %108 = vector.broadcast %107 : vector<4x4x64x1xf32> to vector<4x4x64x64xf32>
    %109 = arith.divf %105, %108 : vector<4x4x64x64xf32>
    %110 = vector.extract_strided_slice %71 {offsets = [0, 0], sizes = [32, 64], strides = [1, 1]} : vector<32x256xf32> to vector<32x64xf32>
    %111 = vector.shape_cast %110 : vector<32x64xf32> to vector<4x8x64xf32>
    %112 = vector.extract_strided_slice %109 {offsets = [0, 0, 0, 0], sizes = [1, 4, 64, 64], strides = [1, 1, 1, 1]} : vector<4x4x64x64xf32> to vector<1x4x64x64xf32>
    %113 = vector.shape_cast %112 : vector<1x4x64x64xf32> to vector<4x64x64xf32>
    %cst_41 = arith.constant dense<0.000000e+00> : vector<4x8x64xf32>
    %114 = tpu.matmul %111, %113, %cst_41 {dimension_numbers = #tpu.dot_dimension_numbers<[2], [2], [1], [1], [0, 0, 0, 1, 1, 1], [0], [0]>} : vector<4x8x64xf32>, vector<4x64x64xf32>, vector<4x8x64xf32> -> vector<4x8x64xf32>
    %115 = vector.shape_cast %114 : vector<4x8x64xf32> to vector<32x64xf32>
    %116 = vector.extract_strided_slice %71 {offsets = [0, 64], sizes = [32, 64], strides = [1, 1]} : vector<32x256xf32> to vector<32x64xf32>
    %117 = vector.shape_cast %116 : vector<32x64xf32> to vector<4x8x64xf32>
    %118 = vector.extract_strided_slice %109 {offsets = [1, 0, 0, 0], sizes = [1, 4, 64, 64], strides = [1, 1, 1, 1]} : vector<4x4x64x64xf32> to vector<1x4x64x64xf32>
    %119 = vector.shape_cast %118 : vector<1x4x64x64xf32> to vector<4x64x64xf32>
    %cst_42 = arith.constant dense<0.000000e+00> : vector<4x8x64xf32>
    %120 = tpu.matmul %117, %119, %cst_42 {dimension_numbers = #tpu.dot_dimension_numbers<[2], [2], [1], [1], [0, 0, 0, 1, 1, 1], [0], [0]>} : vector<4x8x64xf32>, vector<4x64x64xf32>, vector<4x8x64xf32> -> vector<4x8x64xf32>
    %121 = vector.shape_cast %120 : vector<4x8x64xf32> to vector<32x64xf32>
    %122 = vector.extract_strided_slice %71 {offsets = [0, 128], sizes = [32, 64], strides = [1, 1]} : vector<32x256xf32> to vector<32x64xf32>
    %123 = vector.shape_cast %122 : vector<32x64xf32> to vector<4x8x64xf32>
    %124 = vector.extract_strided_slice %109 {offsets = [2, 0, 0, 0], sizes = [1, 4, 64, 64], strides = [1, 1, 1, 1]} : vector<4x4x64x64xf32> to vector<1x4x64x64xf32>
    %125 = vector.shape_cast %124 : vector<1x4x64x64xf32> to vector<4x64x64xf32>
    %cst_43 = arith.constant dense<0.000000e+00> : vector<4x8x64xf32>
    %126 = tpu.matmul %123, %125, %cst_43 {dimension_numbers = #tpu.dot_dimension_numbers<[2], [2], [1], [1], [0, 0, 0, 1, 1, 1], [0], [0]>} : vector<4x8x64xf32>, vector<4x64x64xf32>, vector<4x8x64xf32> -> vector<4x8x64xf32>
    %127 = vector.shape_cast %126 : vector<4x8x64xf32> to vector<32x64xf32>
    %128 = vector.extract_strided_slice %71 {offsets = [0, 192], sizes = [32, 64], strides = [1, 1]} : vector<32x256xf32> to vector<32x64xf32>
    %129 = vector.shape_cast %128 : vector<32x64xf32> to vector<4x8x64xf32>
    %130 = vector.extract_strided_slice %109 {offsets = [3, 0, 0, 0], sizes = [1, 4, 64, 64], strides = [1, 1, 1, 1]} : vector<4x4x64x64xf32> to vector<1x4x64x64xf32>
    %131 = vector.shape_cast %130 : vector<1x4x64x64xf32> to vector<4x64x64xf32>
    %cst_44 = arith.constant dense<0.000000e+00> : vector<4x8x64xf32>
    %132 = tpu.matmul %129, %131, %cst_44 {dimension_numbers = #tpu.dot_dimension_numbers<[2], [2], [1], [1], [0, 0, 0, 1, 1, 1], [0], [0]>} : vector<4x8x64xf32>, vector<4x64x64xf32>, vector<4x8x64xf32> -> vector<4x8x64xf32>
    %133 = vector.shape_cast %132 : vector<4x8x64xf32> to vector<32x64xf32>
    %134 = tpu.concatenate %115, %121, %127, %133 in 1 : vector<32x64xf32>, vector<32x64xf32>, vector<32x64xf32>, vector<32x64xf32> -> vector<32x256xf32>
    %cst_45 = arith.constant dense<0.000000e+00> : vector<32x256xf32>
    %135 = tpu.matmul %60, %134, %cst_45 {dimension_numbers = #tpu.dot_dimension_numbers<[1], [0], [0], [1], [0, 0, 1, 1], [], []>} : vector<32x32xf32>, vector<32x256xf32>, vector<32x256xf32> -> vector<32x256xf32>
    %136 = vector.broadcast %7 : vector<32x1xf32> to vector<32x256xf32>
    %137 = arith.addf %135, %136 : vector<32x256xf32>
    %138 = arith.addf %137, %35 : vector<32x256xf32>
    %139 = arith.addf %11, %138 : vector<32x256xf32>
    %cst_46 = arith.constant dense<0.000000e+00> : vector<256xf32>
    %140 = vector.multi_reduction <add>, %139, %cst_46 [0] : vector<32x256xf32> to vector<256xf32>
    %141 = vector.shape_cast %140 : vector<256xf32> to vector<1x256xf32>
    %cst_47 = arith.constant 3.200000e+01 : f32
    %142 = vector.broadcast %cst_47 : f32 to vector<1x256xf32>
    %143 = arith.divf %141, %142 : vector<1x256xf32>
    %144 = vector.broadcast %143 : vector<1x256xf32> to vector<32x256xf32>
    %145 = arith.subf %139, %144 : vector<32x256xf32>
    %146 = arith.mulf %145, %145 : vector<32x256xf32>
    %cst_48 = arith.constant dense<0.000000e+00> : vector<256xf32>
    %147 = vector.multi_reduction <add>, %146, %cst_48 [0] : vector<32x256xf32> to vector<256xf32>
    %148 = vector.shape_cast %147 : vector<256xf32> to vector<1x256xf32>
    %cst_49 = arith.constant 3.200000e+01 : f32
    %149 = vector.broadcast %cst_49 : f32 to vector<1x256xf32>
    %150 = arith.divf %148, %149 : vector<1x256xf32>
    %151 = vector.broadcast %143 : vector<1x256xf32> to vector<32x256xf32>
    %152 = arith.subf %139, %151 : vector<32x256xf32>
    %cst_50 = arith.constant 9.99999974E-6 : f32
    %153 = vector.broadcast %cst_50 : f32 to vector<1x256xf32>
    %154 = arith.addf %150, %153 : vector<1x256xf32>
    %155 = math.rsqrt %154 : vector<1x256xf32>
    %156 = vector.broadcast %155 : vector<1x256xf32> to vector<32x256xf32>
    %157 = arith.mulf %152, %156 : vector<32x256xf32>
    %158 = vector.broadcast %2 : vector<32x1xf32> to vector<32x256xf32>
    %159 = arith.mulf %157, %158 : vector<32x256xf32>
    %160 = vector.broadcast %3 : vector<32x1xf32> to vector<32x256xf32>
    %161 = arith.addf %159, %160 : vector<32x256xf32>
    %cst_51 = arith.constant dense<0.000000e+00> : vector<128x256xf32>
    %162 = tpu.matmul %61, %161, %cst_51 {dimension_numbers = #tpu.dot_dimension_numbers<[1], [0], [0], [1], [0, 0, 1, 1], [], []>} : vector<128x32xf32>, vector<32x256xf32>, vector<128x256xf32> -> vector<128x256xf32>
    %163 = vector.broadcast %9 : vector<128x1xf32> to vector<128x256xf32>
    %164 = arith.addf %162, %163 : vector<128x256xf32>
    %165 = arith.mulf %164, %164 : vector<128x256xf32>
    %166 = arith.mulf %164, %165 : vector<128x256xf32>
    %cst_52 = arith.constant 4.471500e-02 : f32
    %167 = vector.broadcast %cst_52 : f32 to vector<128x256xf32>
    %168 = arith.mulf %167, %166 : vector<128x256xf32>
    %169 = arith.addf %164, %168 : vector<128x256xf32>
    %cst_53 = arith.constant 0.797884583 : f32
    %170 = vector.broadcast %cst_53 : f32 to vector<128x256xf32>
    %171 = arith.mulf %170, %169 : vector<128x256xf32>
    %172 = math.tanh %171 : vector<128x256xf32>
    %cst_54 = arith.constant 1.000000e+00 : f32
    %173 = vector.broadcast %cst_54 : f32 to vector<128x256xf32>
    %174 = arith.addf %173, %172 : vector<128x256xf32>
    %cst_55 = arith.constant 5.000000e-01 : f32
    %175 = vector.broadcast %cst_55 : f32 to vector<128x256xf32>
    %176 = arith.mulf %175, %174 : vector<128x256xf32>
    %177 = arith.mulf %164, %176 : vector<128x256xf32>
    %c0_56 = arith.constant 0 : index
    %c0_57 = arith.constant 0 : index
    %178 = vector.load %arg4[%c0_56, %c0_57] : memref<32x128xf32, #tpu.memory_space<vmem>>, vector<32x128xf32>
    %cst_58 = arith.constant dense<0.000000e+00> : vector<32x256xf32>
    %179 = tpu.matmul %178, %177, %cst_58 {dimension_numbers = #tpu.dot_dimension_numbers<[1], [0], [0], [1], [0, 0, 1, 1], [], []>} : vector<32x128xf32>, vector<128x256xf32>, vector<32x256xf32> -> vector<32x256xf32>
    %180 = arith.addf %139, %179 : vector<32x256xf32>
    %181 = vector.broadcast %8 : vector<32x1xf32> to vector<32x256xf32>
    %182 = arith.addf %180, %181 : vector<32x256xf32>
    %c0_59 = arith.constant 0 : index
    %c0_60 = arith.constant 0 : index
    %183 = vector.load %arg6[%c0_59, %c0_60] : memref<32x256xf32, #tpu.memory_space<vmem>>, vector<32x256xf32>
    tpu.vector_store %arg6[%c0_59, %c0_60], %182 {strides = array<i32>} : memref<32x256xf32, #tpu.memory_space<vmem>>, vector<32x256xf32>,
    return
  }
  func.func @transform_0(%arg0: i32) -> (i32, i32, i32) {
    %c0_i32 = arith.constant 0 : i32
    %c0_i32_0 = arith.constant 0 : i32
    %c0_i32_1 = arith.constant 0 : i32
    %c0_i32_2 = arith.constant 0 : i32
    return %c0_i32, %c0_i32_0, %c0_i32_1 : i32, i32, i32
  }
  func.func @transform_1(%arg0: i32) -> (i32, i32, i32) {
    %c0_i32 = arith.constant 0 : i32
    %c0_i32_0 = arith.constant 0 : i32
    %c0_i32_1 = arith.constant 0 : i32
    %c0_i32_2 = arith.constant 0 : i32
    return %c0_i32, %c0_i32_0, %c0_i32_1 : i32, i32, i32
  }
  func.func @transform_2(%arg0: i32) -> (i32, i32) {
    %c0_i32 = arith.constant 0 : i32
    %c0_i32_0 = arith.constant 0 : i32
    %c0_i32_1 = arith.constant 0 : i32
    return %c0_i32, %c0_i32_0 : i32, i32
  }
  func.func @transform_3(%arg0: i32) -> (i32, i32) {
    %c0_i32 = arith.constant 0 : i32
    %c0_i32_0 = arith.constant 0 : i32
    %c0_i32_1 = arith.constant 0 : i32
    return %c0_i32, %c0_i32_0 : i32, i32
  }
  func.func @transform_4(%arg0: i32) -> (i32, i32) {
    %c0_i32 = arith.constant 0 : i32
    %c0_i32_0 = arith.constant 0 : i32
    %c0_i32_1 = arith.constant 0 : i32
    return %c0_i32, %c0_i32_0 : i32, i32
  }
  func.func @transform_5(%arg0: i32) -> (i32, i32) {
    %c0_i32 = arith.constant 0 : i32
    %c0_i32_0 = arith.constant 0 : i32
    %c0_i32_1 = arith.constant 0 : i32
    return %c0_i32, %c0_i32_0 : i32, i32
  }
}

</mosaic_0001>

<bundles_post_ra>
// kernel: encoder_layer02_forward.1
= control target key start
LH: loop header
LB: loop body
LE: loop exit
PB: predicated region body
PF: predicated region fallthrough
CT: control target
= control target key end

     0   :  { %v9520_v0 = vmov 1   ;;  %v9521_v1 = vmov 0   ;;  %v13551_v10 = vmov 0.0   ;;  %v9523_v50 = vmov 4   ;;  %s9525_s24 = smov 64   ;;  %s13545_s4 = inlined_call_operand.vmem [shape: f32[128,10], index: 4, kind: input, shape index: {}]   ;;  %s13546_s0 = inlined_call_operand.vmem [shape: f32[2,32,256], index: 0, kind: input, shape index: {}]   ;;  %s13547_s2 = inlined_call_operand.vmem [shape: f32[256,32], index: 2, kind: input, shape index: {}]   ;;  %s13548_s1 = inlined_call_operand.vmem [shape: f32[4,64,64], index: 1, kind: input, shape index: {}]   ;;  %s13549_s3 = inlined_call_operand.vmem [shape: f32[32,128], index: 3, kind: input, shape index: {}]   ;;  %s13550_s5 = inlined_call_operand.vmem [shape: f32[32,256], index: 5, kind: output, shape index: {}]  }
   0x1   :  { %8825 = vset.pattern.permute.xlu1 %v9520_v0  ;;  %8824 = vset.pattern.permute.xlu0 %v9521_v1  ;;  %v9567_v2 = vld [vmem:[%s13545_s4] sm:$0xff]  ;;  %v9574_v3 = vld [vmem:[%s13545_s4 + $0x8] sm:$0xff]  ;;  %v9581_v4 = vld [vmem:[%s13545_s4 + $0x10] sm:$0xff]  ;;  %v9524_v55 = vmov 5   ;;  %vm306_vm0 = vcmask 261120   ;;  %vm625_vm1 = vcmask 64512  }
   0x2   :  { %151 = vperm.xlu1 %8825, %v9567_v2   ;;  %124 = vperm.xlu0 %8824, %v9567_v2   ;;  %v9586_v5 = vld [vmem:[%s13545_s4 + $0x18] sm:$0xff]  ;;  %v9595_v6 = vld [vmem:[%s13546_s0] sm:$0xff]  ;;  %v9600_v7 = vld [vmem:[%s13546_s0 + $0x10] sm:$0xff]  ;;  %vm3394_vm2 = vcmask 523264   ;;  %vm9528_vm4 = vmmov 0  }
   0x3   :  { %v9605_v8 = vld [vmem:[%s13546_s0 + $0x8] sm:$0xff]  ;;  %v9610_v9 = vld [vmem:[%s13546_s0 + $0x18] sm:$0xff]  ;;  %383 = vmatprep.mubr.f32.mxu1 %v13551_v10  ;;  %v53_v11 = vadd.f32 %v9600_v7, %v9595_v6  ;;  %v9618_v12 = vld [vmem:[%s13546_s0 + $0x20] sm:$0xff] }
   0x4   :  { %v62_v13 = vadd.f32 %v9610_v9, %v9605_v8  ;;  %v9625_v14 = vld [vmem:[%s13546_s0 + $0x28] sm:$0xff]  ;;  %v9635_v16 = vld [vmem:[%s13546_s0 + $0x58] sm:$0xff]  ;;  %v9641_v18 = vld [vmem:[%s13546_s0 + $0x30] sm:$0xff] }
   0x5   :  { %v9630_v15 = vld [vmem:[%s13546_s0 + $0x48] sm:$0xff]  ;;  %v54_v17 = vadd.f32 %v53_v11, %v9618_v12  ;;  %v9647_v20 = vld [vmem:[%s13546_s0 + $0x38] sm:$0xff]  ;;  %v9654_v22 = vld [vmem:[%s13546_s0 + $0x40] sm:$0xff] }
   0x6   :  { %155 = vperm.xlu1 %8825, %v9574_v3   ;;  %129 = vperm.xlu0 %8824, %v9574_v3   ;;  %v63_v19 = vadd.f32 %v62_v13, %v9625_v14  ;;  %v183_v21 = vadd.f32 %v9635_v16, %v9630_v15  ;;  %v9659_v23 = vld [vmem:[%s13546_s0 + $0x50] sm:$0xff]  ;;  %v9664_v24 = vld [vmem:[%s13546_s0 + $0x68] sm:$0xff]  ;;  %v9674_v29 = vld [vmem:[%s13546_s0 + $0x60] sm:$0xff] }
   0x7   :  { %v55_v25 = vadd.f32 %v54_v17, %v9641_v18  ;;  %v174_v27 = vadd.f32 %v9659_v23, %v9654_v22  ;;  %v9679_v30 = vld [vmem:[%s13546_s0 + $0x78] sm:$0xff]  ;;  %v9686_v35 = vld [vmem:[%s13546_s0 + $0x70] sm:$0xff]  ;;  %vm11328_vm3 = vmpackc.low %vm3394_vm2, %vm3394_vm2 }
   0x8   :  { %v64_v26 = vadd.f32 %v63_v19, %v9647_v20  ;;  %v184_v28 = vadd.f32 %v9664_v24, %v183_v21 }
   0x9   :  { %v56_v31 = vrot.slane %v55_v25, 4  ;;  %v175_v33 = vadd.f32 %v9674_v29, %v174_v27 }
   0xa   :  { %8826 = vset.pattern.permute.xlu1 %v9521_v1  ;;  %134 = vperm.xlu0 %8824, %v9581_v4   ;;  %v65_v32 = vrot.slane %v64_v26, 4  ;;  %v185_v34 = vadd.f32 %v9679_v30, %v184_v28 }
   0xb   :  { %139 = vperm.xlu1 %8826, %v9586_v5   ;;  %v57_v36 = vadd.f32 %v56_v31, %v55_v25  ;;  %v176_v38 = vadd.f32 %v9686_v35, %v175_v33 }
   0xc   :  { %v66_v37 = vadd.f32 %v65_v32, %v64_v26  ;;  %v186_v39 = vrot.slane %v185_v34, 4 }
   0xd   :  { %v58_v40 = vrot.slane %v57_v36, 2  ;;  %v177_v42 = vrot.slane %v176_v38, 4 }
   0xe   :  { %8827 = vset.pattern.permute.xlu0 %v9520_v0  ;;  %v67_v41 = vrot.slane %v66_v37, 2  ;;  %v187_v43 = vadd.f32 %v186_v39, %v185_v34 }
   0xf   :  { %8828 = vset.pattern.permute.xlu1 %v9520_v0  ;;  %159 = vperm.xlu0 %8827, %v9581_v4   ;;  %v59_v44 = vadd.f32 %v58_v40, %v57_v36  ;;  %v178_v46 = vadd.f32 %v177_v42, %v176_v38 }
  0x10   :  { %163 = vperm.xlu1 %8828, %v9586_v5   ;;  %v68_v45 = vadd.f32 %v67_v41, %v66_v37  ;;  %v188_v47 = vrot.slane %v187_v43, 2 }
  0x11   :  { %v60_v48 = vrot.slane %v59_v44, 1  ;;  %v179_v51 = vrot.slane %v178_v46, 2 }
  0x12   :  { %v69_v49 = vrot.slane %v68_v45, 1  ;;  %v189_v52 = vadd.f32 %v188_v47, %v187_v43 }
  0x13   :  { %8830 = vset.pattern.permute.xlu0 %v9523_v50  ;;  %v61_v53 = vadd.f32 %v60_v48, %v59_v44  ;;  %v180_v56 = vadd.f32 %v179_v51, %v178_v46 }
  0x14   :  { %8829 = vset.pattern.permute.xlu1 %v9523_v50  ;;  %295 = vperm.xlu0 %8830, %v9574_v3   ;;  %v70_v54 = vadd.f32 %v69_v49, %v68_v45  ;;  %v190_v57 = vrot.slane %v189_v52, 1 }
  0x15   :  { %291 = vperm.xlu1 %8829, %v9567_v2   ;;  %v72_v58 = vmul.f32 0.03125, %v61_v53  ;;  %v181_v60 = vrot.slane %v180_v56, 1 }
  0x16   :  { %v73_v59 = vmul.f32 0.03125, %v70_v54  ;;  %v191_v61 = vadd.f32 %v190_v57, %v189_v52 }
  0x17   :  { %v9694_v62 = vsub.f32 %v9595_v6, %v72_v58  ;;  %v9697_v63 = vsub.f32 %v9600_v7, %v72_v58  ;;  %v9707_v13 = vsub.f32 %v9618_v12, %v72_v58  ;;  %v9728_v25 = vsub.f32 %v9641_v18, %v72_v58 }
  0x18   :  { %303 = vperm.xlu0 %8830, %v9586_v5   ;;  %v9701_v0 = vsub.f32 %v9605_v8, %v73_v59  ;;  %v9704_v1 = vsub.f32 %v9610_v9, %v73_v59  ;;  %v193_v11 = vmul.f32 0.03125, %v191_v61  ;;  %v9714_v17 = vsub.f32 %v9625_v14, %v73_v59 }
  0x19   :  { %8831 = vset.pattern.permute.xlu1 %v9524_v55  ;;  %v82_v6 = vmul.f32 %v9694_v62, %v9694_v62  ;;  %v84_v7 = vmul.f32 %v9697_v63, %v9697_v63  ;;  %v86_v14 = vmul.f32 %v9707_v13, %v9707_v13  ;;  %v9733_v27 = vsub.f32 %v9647_v20, %v73_v59 }
  0x1a   :  { %546 = vperm.xlu1 %8831, %v9567_v2   ;;  %v182_v2 = vadd.f32 %v181_v60, %v180_v56  ;;  %v83_v8 = vmul.f32 %v9701_v0, %v9701_v0  ;;  %v85_v9 = vmul.f32 %v9704_v1, %v9704_v1  ;;  %v9722_v19 = vsub.f32 %v9630_v15, %v193_v11 }
  0x1b   :  { %v9725_v21 = vsub.f32 %v9635_v16, %v193_v11  ;;  %v90_v26 = vadd.f32 %v84_v7, %v82_v6  ;;  %v9745_v18 = vsub.f32 %v9664_v24, %v193_v11  ;;  %v88_v32 = vmul.f32 %v9728_v25, %v9728_v25 }
  0x1c   :  { %v192_v12 = vmul.f32 0.03125, %v182_v2  ;;  %v99_v28 = vadd.f32 %v85_v9, %v83_v8  ;;  %v203_v31 = vmul.f32 %v9722_v19, %v9722_v19  ;;  %v9760_v24 = vsub.f32 %v9679_v30, %v193_v11 }
  0x1d   :  { %v205_v20 = vmul.f32 %v9725_v21, %v9725_v21  ;;  %v91_v33 = vadd.f32 %v90_v26, %v86_v14  ;;  %v207_v37 = vmul.f32 %v9745_v18, %v9745_v18 }
  0x1e   :  { %8832 = vset.pattern.permute.xlu1 %v9523_v50  ;;  %v9739_v15 = vsub.f32 %v9654_v22, %v192_v12  ;;  %v9742_v16 = vsub.f32 %v9659_v23, %v192_v12  ;;  %v9757_v23 = vsub.f32 %v9674_v29, %v192_v12  ;;  %v209_v30 = vmul.f32 %v9760_v24, %v9760_v24 }
  0x1f   :  { %299 = vperm.xlu1 %8832, %v9581_v4   ;;  %v219_v38 = vadd.f32 %v205_v20, %v203_v31  ;;  %v92_v39 = vadd.f32 %v91_v33, %v88_v32 }
  0x20   :  { %v202_v34 = vmul.f32 %v9739_v15, %v9739_v15  ;;  %v204_v36 = vmul.f32 %v9742_v16, %v9742_v16  ;;  %v206_v29 = vmul.f32 %v9757_v23, %v9757_v23 }
  0x21   :  { %v220_v42 = vadd.f32 %v219_v38, %v207_v37  ;;  %v93_v43 = vrot.slane %v92_v39, 4 }
  0x22   :  { %v210_v41 = vadd.f32 %v204_v36, %v202_v34 }
  0x23   :  { %8833 = vset.pattern.permute.xlu1 %v9524_v55  ;;  %v221_v47 = vadd.f32 %v220_v42, %v209_v30  ;;  %v94_v48 = vadd.f32 %v93_v43, %v92_v39 }
  0x24   :  { %550 = vperm.xlu1 %8833, %v9574_v3   ;;  %v87_v3 = vmul.f32 %v9714_v17, %v9714_v17  ;;  %v211_v46 = vadd.f32 %v210_v41, %v206_v29 }
  0x25   :  { %v95_v51 = vrot.slane %v94_v48, 2 }
  0x26   :  { %v100_v22 = vadd.f32 %v99_v28, %v87_v3 }
  0x27   :  { %v96_v55 = vadd.f32 %v95_v51, %v94_v48 }
  0x28   :  { %554 = vperm.xlu1 %8833, %v9581_v4   ;;  %v89_v4 = vmul.f32 %v9733_v27, %v9733_v27 }
  0x29   :  { %v97_v59 = vrot.slane %v96_v55, 1 }
  0x2a   :  { %v101_v40 = vadd.f32 %v100_v22, %v89_v4 }
  0x2b   :  { %v98_v11 = vadd.f32 %v97_v59, %v96_v55 }
  0x2c   :  { %558 = vperm.xlu1 %8833, %v9586_v5   ;;  %v9769_v5 = vsub.f32 %v9686_v35, %v192_v12  ;;  %v102_v44 = vrot.slane %v101_v40, 4  ;;  %v222_v35 = vrot.slane %v221_v47, 4 }
  0x2d   :  { %v108_v9 = vmul.f32 0.03125, %v98_v11 }
  0x2e   :  { %v208_v45 = vmul.f32 %v9769_v5, %v9769_v5  ;;  %v103_v49 = vadd.f32 %v102_v44, %v101_v40  ;;  %v223_v54 = vadd.f32 %v222_v35, %v221_v47 }
  0x2f   :  { %v110_v3 = vadd.f32 1e-05, %v108_v9 }
  0x30   :  { %v212_v50 = vadd.f32 %v211_v46, %v208_v45  ;;  %v104_v52 = vrot.slane %v103_v49, 2  ;;  %v224_v58 = vrot.slane %v223_v54, 2 }
  0x31   :  { %8868 = vrsqrt.f32 %v110_v3 }
  0x32   :  { %v213_v53 = vrot.slane %v212_v50, 4  ;;  %v105_v56 = vadd.f32 %v104_v52, %v103_v49  ;;  %v225_v2 = vadd.f32 %v224_v58, %v223_v54 }
  0x34   :  { %v214_v57 = vadd.f32 %v213_v53, %v212_v50  ;;  %v106_v60 = vrot.slane %v105_v56, 1  ;;  %v226_v8 = vrot.slane %v225_v2, 1 }
  0x36   :  { %v215_v61 = vrot.slane %v214_v57, 2  ;;  %v107_v6 = vadd.f32 %v106_v60, %v105_v56  ;;  %v227_v26 = vadd.f32 %v226_v8, %v225_v2 }
  0x38   :  { %v216_v7 = vadd.f32 %v215_v61, %v214_v57  ;;  %v109_v12 = vmul.f32 0.03125, %v107_v6  ;;  %v229_v20 = vmul.f32 0.03125, %v227_v26 }
  0x3a   :  { %v217_v14 = vrot.slane %v216_v7, 1  ;;  %v111_v28 = vadd.f32 1e-05, %v109_v12  ;;  %v231_v33 = vadd.f32 1e-05, %v229_v20 }
  0x3b   :  { %v8869_v22 = vpop.eup %8868 }
  0x3c   :  { %v218_v31 = vadd.f32 %v217_v14, %v216_v7  ;;  %8870 = vrsqrt.f32 %v111_v28  ;;  %v114_v40 = vmul.f32 %v8869_v22, %v9694_v62  ;;  %v116_v29 = vmul.f32 %v8869_v22, %v9697_v63 }
  0x3d   :  { %8872 = vrsqrt.f32 %v231_v33  ;;  %v118_v62 = vmul.f32 %v8869_v22, %v9707_v13  ;;  %v120_v51 = vmul.f32 %v8869_v22, %v9728_v25 }
  0x3e   :  { %v228_v32 = vmul.f32 0.03125, %v218_v31 }
  0x40   :  { %v230_v4 = vadd.f32 1e-05, %v228_v32 }
  0x42   :  { %8874 = vrsqrt.f32 %v230_v4 }
  0x46   :  { %v8871_v34 = vpop.eup %8870 }
  0x47   :  { %v115_v38 = vmul.f32 %v8871_v34, %v9701_v0  ;;  %v117_v39 = vmul.f32 %v8871_v34, %v9704_v1  ;;  %v8873_v42 = vpop.eup %8872  ;;  %v119_v63 = vmul.f32 %v8871_v34, %v9714_v17  ;;  %v121_v52 = vmul.f32 %v8871_v34, %v9733_v27 }
  0x48   :  { %v237_v47 = vmul.f32 %v8873_v42, %v9725_v21  ;;  %v235_v0 = vmul.f32 %v8873_v42, %v9722_v19  ;;  %v239_v27 = vmul.f32 %v8873_v42, %v9745_v18  ;;  %v241_v60 = vmul.f32 %v8873_v42, %v9760_v24  ;;  %v263_v42 = vld [vmem:[%s13547_s2 + $0x28] sm:$0xff] }
  0x4c   :  { %v8875_v50 = vpop.eup %8874 }
  0x4d   :  { %v236_v54 = vmul.f32 %v8875_v50, %v9742_v16  ;;  %v234_v17 = vmul.f32 %v8875_v50, %v9739_v15  ;;  %v238_v18 = vmul.f32 %v8875_v50, %v9757_v23  ;;  %v240_v12 = vmul.f32 %v8875_v50, %v9769_v5  ;;  %v258_v23 = vld [vmem:[%s13547_s2] sm:$0xff] }
  0x81   :  { %v152_v36 = vpop.permute.xlu1 %151  ;;  %v125_v37 = vpop.permute.xlu0 %124 }
  0x82   :  { %v143_v43 = vmul.f32 %v125_v37, %v115_v38  ;;  %v142_v45 = vmul.f32 %v125_v37, %v114_v40  ;;  %v243_v56 = vmul.f32 %v235_v0, %v125_v37  ;;  %v242_v9 = vmul.f32 %v234_v17, %v125_v37 }
  0x84   :  { %v9791_v53 = vadd.f32 %v152_v36, %v143_v43  ;;  %v9793_v21 = vadd.f32 %v152_v36, %v142_v45  ;;  %v251_v24 = vadd.f32 %v243_v56, %v152_v36  ;;  %v250_v4 = vadd.f32 %v242_v9, %v152_v36  ;;  %v259_v36 = vld [vmem:[%s13547_s2 + $0x8] sm:$0xff]  ;;  %v264_v43 = vld [vmem:[%s13547_s2 + $0x30] sm:$0xff] }
  0x85   :  { %v156_v30 = vpop.permute.xlu1 %155  ;;  %v130_v41 = vpop.permute.xlu0 %129 }
  0x86   :  { %v145_v44 = vmul.f32 %v130_v41, %v117_v39  ;;  %v144_v46 = vmul.f32 %v130_v41, %v116_v29  ;;  %13736 = vst [vmem:[#allocation4_spill] sm:$0xff] %v9791_v53  ;;  %13737 = vst [vmem:[#allocation5_spill] sm:$0xff] %v9793_v21  ;;  %v245_v55 = vmul.f32 %v237_v47, %v130_v41  ;;  %v260_v29 = vld [vmem:[%s13547_s2 + $0x10] sm:$0xff] }
  0x87   :  { %v244_v61 = vmul.f32 %v236_v54, %v130_v41  ;;  %v262_v41 = vld [vmem:[%s13547_s2 + $0x20] sm:$0xff] }
  0x88   :  { %v9782_v48 = vadd.f32 %v156_v30, %v145_v44  ;;  %v9784_v49 = vadd.f32 %v156_v30, %v144_v46  ;;  %v253_v8 = vadd.f32 %v245_v55, %v156_v30  ;;  %v265_v44 = vld [vmem:[%s13547_s2 + $0x38] sm:$0xff] }
  0x89   :  { %v135_v1 = vpop.permute.xlu0 %134  ;;  %v252_v31 = vadd.f32 %v244_v61, %v156_v30  ;;  %v261_v30 = vld [vmem:[%s13547_s2 + $0x18] sm:$0xff] }
  0x8a   :  { %13734 = vst [vmem:[#allocation2_spill] sm:$0xff] %v9782_v48  ;;  %13735 = vst [vmem:[#allocation3_spill] sm:$0xff] %v9784_v49  ;;  %v140_v35 = vpop.permute.xlu1 %139  ;;  %v8490_v19 = vpack.c.bf16 %v9782_v48, %v9791_v53  ;;  %v8492_v13 = vpack.c.bf16 %v9784_v49, %v9793_v21  ;;  %v146_v57 = vmul.f32 %v135_v1, %v118_v62 }
  0x8b   :  { %v147_v25 = vmul.f32 %v135_v1, %v119_v63  ;;  %v148_v58 = vmul.f32 %v140_v35, %v120_v51  ;;  %v149_v59 = vmul.f32 %v140_v35, %v121_v52  ;;  %v247_v14 = vmul.f32 %v239_v27, %v135_v1 }
  0x8c   :  { %8491 = vmatprep.subr.bf16.mxu1 %v8490_v19  ;;  %v249_v26 = vmul.f32 %v241_v60, %v140_v35  ;;  %v8498_v32 = vpack.c.bf16 %v253_v8, %v251_v24  ;;  %v246_v22 = vmul.f32 %v238_v18, %v135_v1  ;;  %v248_v34 = vmul.f32 %v240_v12, %v140_v35 }
  0x8d   :  { %8493 = vmatpush1.bf16.msra.mxu1 %v8492_v13  ;;  %v8500_v38 = vpack.c.bf16 %v252_v31, %v250_v4  ;;  %v269_v4 = vld [vmem:[%s13547_s2 + $0x58] sm:$0xff] }
  0x8e   :  { %v160_v16 = vpop.permute.xlu0 %159 }
  0x8f   :  { %v164_v2 = vpop.permute.xlu1 %163  ;;  %v9803_v11 = vadd.f32 %v160_v16, %v147_v25  ;;  %v9805_v6 = vadd.f32 %v160_v16, %v146_v57  ;;  %v255_v33 = vadd.f32 %v247_v14, %v160_v16  ;;  %v254_v5 = vadd.f32 %v246_v22, %v160_v16 }
  0x90   :  { %v9807_v7 = vadd.f32 %v164_v2, %v148_v58  ;;  %v9809_v15 = vadd.f32 %v164_v2, %v149_v59  ;;  %v257_v20 = vadd.f32 %v249_v26, %v164_v2  ;;  %v256_v37 = vadd.f32 %v248_v34, %v164_v2 }
  0x91   :  { %13738 = vst [vmem:[#allocation6_spill] sm:$0xff] %v9803_v11  ;;  %13739 = vst [vmem:[#allocation7_spill] sm:$0xff] %v9805_v6 }
  0x92   :  { %13740 = vst [vmem:[#allocation8_spill] sm:$0xff] %v9807_v7  ;;  %13741 = vst [vmem:[#allocation9_spill] sm:$0xff] %v9809_v15  ;;  %v8494_v3 = vpack.c.bf16 %v9809_v15, %v9803_v11  ;;  %v8496_v28 = vpack.c.bf16 %v9807_v7, %v9805_v6  ;;  %v8502_v39 = vpack.c.bf16 %v257_v20, %v255_v33  ;;  %v266_v20 = vld [vmem:[%s13547_s2 + $0x40] sm:$0xff]  ;;  %v268_v33 = vld [vmem:[%s13547_s2 + $0x50] sm:$0xff] }
  0x93   :  { %v8504_v40 = vpack.c.bf16 %v256_v37, %v254_v5  ;;  %v296_v62 = vpop.permute.xlu0 %295  ;;  %v10220_v7 = vld [vmem:[%s13548_s1 + $0x60] sm:$0xff] }
  0x94   :  { %8495 = vmatprep.subr.bf16.mxu1 %v8494_v3  ;;  %v292_v45 = vpop.permute.xlu1 %291 }
  0x95   :  { %8497 = vmatpush1.bf16.msra.mxu1 %v8496_v28 }
  0x96   :  { %8499 = vmatprep.subr.bf16.mxu1 %v8498_v32  ;;  %v267_v32 = vld [vmem:[%s13547_s2 + $0x48] sm:$0xff] }
  0x97   :  { %v304_v17 = vpop.permute.xlu0 %303 }
  0x98   :  { %7370 = vmatmul.mubr.msk.f32.vlgmr.msra.gmra.mrb[0].mxu1 %vm306_vm0, %v258_v23 }
  0x99   :  { %8501 = vmatpush1.bf16.msra.mxu1 %v8500_v38  ;;  %389 = vmatprep.mubr.f32.mxu1 %v13551_v10  ;;  %v9857_v47 = vpop.permute.xlu1 %546 }
  0x9a   :  { %8503 = vmatprep.subr.bf16.mxu1 %v8502_v39 }
  0x9c   :  { %7371 = vmatmul.mubr.msk.f32.gmra.mrb[2].mxu1 %vm306_vm0, %v259_v36 }
  0x9d   :  { %8505 = vmatpush1.bf16.msra.mxu1 %v8504_v40  ;;  %395 = vmatprep.mubr.f32.mxu1 %v13551_v10 }
  0x9e   :  { %v300_v52 = vpop.permute.xlu1 %299 }
  0xa0   :  { %7372 = vmatmul.mubr.msk.f32.gmra.mrb[4].mxu1 %vm306_vm0, %v260_v29 }
  0xa1   :  { %401 = vmatprep.mubr.f32.mxu1 %v13551_v10 }
  0xa3   :  { %v9875_v58 = vpop.permute.xlu1 %550 }
  0xa4   :  { %7373 = vmatmul.mubr.msk.f32.gmra.mrb[6].mxu1 %vm306_vm0, %v261_v30 }
  0xa5   :  { %496 = vmatprep.mubr.f32.mxu1 %v13551_v10 }
  0xa7   :  { %v9884_v9 = vpop.permute.xlu1 %554 }
  0xa8   :  { %7374 = vmatmul.mubr.msk.f32.vlgmr.msra.gmra.mrb[8].mxu1 %vm306_vm0, %v262_v41 }
  0xa9   :  { %502 = vmatprep.mubr.f32.mxu1 %v13551_v10 }
  0xab   :  { %v9891_v14 = vpop.permute.xlu1 %558 }
  0xac   :  { %7375 = vmatmul.mubr.msk.f32.gmra.mrb[10].mxu1 %vm306_vm0, %v263_v42 }
  0xad   :  { %508 = vmatprep.mubr.f32.mxu1 %v13551_v10 }
  0xb0   :  { %7376 = vmatmul.mubr.msk.f32.gmra.mrb[12].mxu1 %vm306_vm0, %v264_v43 }
  0xb1   :  { %514 = vmatprep.mubr.f32.mxu1 %v13551_v10 }
  0xb4   :  { %7377 = vmatmul.mubr.msk.f32.gmra.mrb[14].mxu1 %vm306_vm0, %v265_v44 }
  0xb5   :  { %520 = vmatprep.mubr.f32.mxu1 %v13551_v10 }
  0xb8   :  { %7378 = vmatmul.mubr.msk.f32.gmra.mrb[16].mxu1 %vm306_vm0, %v266_v20 }
  0xb9   :  { %526 = vmatprep.mubr.f32.mxu1 %v13551_v10 }
  0xbc   :  { %7379 = vmatmul.mubr.msk.f32.gmra.mrb[18].mxu1 %vm306_vm0, %v267_v32 }
  0xbd   :  { %532 = vmatprep.mubr.f32.mxu1 %v13551_v10 }
  0xc0   :  { %7380 = vmatmul.mubr.msk.f32.gmra.mrb[20].mxu1 %vm306_vm0, %v268_v33 }
  0xc1   :  { %538 = vmatprep.mubr.f32.mxu1 %v13551_v10  ;;  %v10213_v10 = vld [vmem:[%s13548_s1 + $0x58] sm:$0xff] }
  0xc4   :  { %7381 = vmatmul.mubr.msk.f32.gmra.mrb[22].mxu1 %vm306_vm0, %v269_v4 }
 0x16b   :  { %v385_v46 = vpop.f32.mrb[0].mxu1 }
 0x16c   :  { %v386_v0 = vadd.f32 %v385_v46, %v292_v45  ;;  %v387_v1 = vpop.f32.mrb[1].mxu1 }
 0x16d   :  { %v9860_v50 = vadd.f32 %v387_v1, %v292_v45 }
 0x16e   :  { %1239 = vrot.lane.b32.xlu0 %v386_v0, %s9525_s24 }
 0x16f   :  { %v391_v63 = vpop.f32.mrb[2].mxu1 }
 0x170   :  { %v392_v35 = vadd.f32 %v391_v63, %v296_v62  ;;  %v393_v51 = vpop.f32.mrb[3].mxu1 }
 0x171   :  { %v9865_v55 = vadd.f32 %v393_v51, %v296_v62 }
 0x172   :  { %1408 = vrot.lane.b32.xlu1 %v392_v35, %s9525_s24  ;;  %2559 = vrot.lane.b32.xlu0 %v9860_v50, %s9525_s24 }
 0x173   :  { %v397_v54 = vpop.f32.mrb[4].mxu1 }
 0x174   :  { %v398_v19 = vadd.f32 %v397_v54, %v300_v52  ;;  %v399_v13 = vpop.f32.mrb[5].mxu1 }
 0x175   :  { %v9870_v57 = vadd.f32 %v399_v13, %v300_v52 }
 0x176   :  { %2728 = vrot.lane.b32.xlu1 %v9865_v55, %s9525_s24  ;;  %1577 = vrot.lane.b32.xlu0 %v398_v19, %s9525_s24 }
 0x177   :  { %v403_v56 = vpop.f32.mrb[6].mxu1 }
 0x178   :  { %v404_v25 = vadd.f32 %v403_v56, %v304_v17  ;;  %v405_v27 = vpop.f32.mrb[7].mxu1 }
 0x179   :  { %v9900_v31 = vadd.f32 %v405_v27, %v304_v17 }
 0x17a   :  { %2897 = vrot.lane.b32.xlu0 %v9870_v57, %s9525_s24  ;;  %1746 = vrot.lane.b32.xlu1 %v404_v25, %s9525_s24 }
 0x17b   :  { %v498_v59 = vpop.f32.mrb[8].mxu1 }
 0x17c   :  { %v561_v60 = vadd.f32 %v9857_v47, %v498_v59  ;;  %v9878_v16 = vpop.f32.mrb[9].mxu1 }
 0x17d   :  { %v9981_v20 = vadd.f32 %v9857_v47, %v9878_v16 }
 0x17e   :  { %7962 = vmatprep.subr.mxu0 %v561_v60  ;;  %1275 = vrot.lane.b32.xlu0 %v561_v60, %s9525_s24 }
 0x17f   :  { %v504_v61 = vpop.f32.mrb[10].mxu1  ;;  %7963 = vmatpush3.msra.mxu0 %v561_v60 }
 0x180   :  { %v563_v2 = vadd.f32 %v9875_v58, %v504_v61  ;;  %v9882_v8 = vpop.f32.mrb[11].mxu1 }
 0x182   :  { %1444 = vrot.lane.b32.xlu0 %v563_v2, %s9525_s24  ;;  %7976 = vmatprep.subr.mxu0 %v563_v2 }
 0x183   :  { %v510_v18 = vpop.f32.mrb[12].mxu1 }
 0x184   :  { %v565_v12 = vadd.f32 %v9884_v9, %v510_v18  ;;  %v9888_v24 = vpop.f32.mrb[13].mxu1 }
 0x186   :  { %7990 = vmatprep.subr.mxu1 %v565_v12  ;;  %1613 = vrot.lane.b32.xlu0 %v565_v12, %s9525_s24 }
 0x187   :  { %v516_v26 = vpop.f32.mrb[14].mxu1  ;;  %7991 = vmatpush3.msra.mxu1 %v565_v12 }
 0x188   :  { %v9894_v3 = vadd.f32 %v9891_v14, %v516_v26  ;;  %v9896_v28 = vpop.f32.mrb[15].mxu1 }
 0x18a   :  { %1782 = vrot.lane.b32.xlu1 %v9894_v3, %s9525_s24 }
 0x18e   :  { %3066 = vrot.lane.b32.xlu1 %v9900_v31, %s9525_s24 }
 0x1a4   :  { %593 = vxpose.xlu0.b32.start.end [1/1] (short) (narrow) %v386_v0, 64 }
 0x1b7   :  { %755 = vxpose.xlu1.b32.start.end [1/1] (short) (narrow) %v392_v35, 64 }
 0x1c1   :  { %916 = vxpose.xlu0.b32.start.end [1/1] (short) (narrow) %v398_v19, 64 }
 0x1d4   :  { %1077 = vxpose.xlu1.b32.start.end [1/1] (short) (narrow) %v404_v25, 64 }
 0x1e0   :  { %v1240_v22 = vpop.permute.xlu0 %1239 }
 0x1e1   :  { %1242 = vxpose.xlu0.b32.start.end [1/1] (short) (narrow) %v1240_v22, 64 }
 0x1e4   :  { %v9923_v34 = vpop.permute.xlu0 %2559  ;;  %v1409_v37 = vpop.permute.xlu1 %1408 }
 0x1e8   :  { %v1578_v23 = vpop.permute.xlu0 %1577  ;;  %v9927_v39 = vpop.permute.xlu1 %2728 }
 0x1ec   :  { %v9925_v5 = vpop.permute.xlu0 %2897  ;;  %v1747_v36 = vpop.permute.xlu1 %1746 }
 0x1f0   :  { %v1276_v38 = vpop.permute.xlu0 %1275 }
 0x1f1   :  { %1411 = vxpose.xlu1.b32.start.end [1/1] (short) (narrow) %v1409_v37, 64  ;;  %8018 = vmatprep.subr.mxu1 %v1276_v38 }
 0x1f4   :  { %v9929_v40 = vpop.permute.xlu0 %1444 }
 0x1f8   :  { %v9932_v29 = vpop.permute.xlu0 %1613 }
 0x1fc   :  { %v9938_v43 = vpop.permute.xlu1 %1782 }
 0x1fe   :  { %1580 = vxpose.xlu0.b32.start.end [1/1] (short) (narrow) %v1578_v23, 64 }
 0x200   :  { %v9942_v45 = vpop.permute.xlu1 %3066 }
 0x20e   :  { %1749 = vxpose.xlu1.b32.start.end [1/1] (short) (narrow) %v1747_v36, 64 }
 0x21b   :  { %1914 = vxpose.xlu0.b32.start.end [1/1] (short) (narrow) %v9860_v50, 64 }
 0x224   :  { %v609_v30 = vpop.trf.xlu0 }
 0x225   :  { %7964 = vmatprep.mubr.msk.f32.mxu0 %vm625_vm1, %v609_v30  ;;  %v10011_v30 = vadd.f32 %v9884_v9, %v9888_v24 }
 0x228   :  { %v610_v41 = vpop.trf.xlu0 }
 0x229   :  { %7965 = vmatmul.mubr.msk.f32.vlgmr.msra.gmra.mrb[0].mxu0 %vm625_vm1, %v610_v41 }
 0x22a   :  { %7977 = vmatpush3.msra.mxu0 %v563_v2 }
 0x22b   :  { %8004 = vmatprep.subr.mxu0 %v9894_v3  ;;  %2075 = vxpose.xlu1.b32.start.end [1/1] (short) (narrow) %v9865_v55, 64 }
 0x22c   :  { %v611_v42 = vpop.trf.xlu0 }
 0x22d   :  { %7967 = vmatprep.mubr.msk.f32.mxu0 %vm625_vm1, %v611_v42 }
 0x230   :  { %v612_v44 = vpop.trf.xlu0 }
 0x231   :  { %7968 = vmatmul.mubr.msk.f32.gmra.mrb[2].mxu0 %vm625_vm1, %v612_v44 }
 0x234   :  { %v613_v46 = vpop.trf.xlu0 }
 0x235   :  { %7970 = vmatprep.mubr.msk.f32.mxu0 %vm625_vm1, %v613_v46 }
 0x237   :  { %v771_v0 = vpop.trf.xlu1 }
 0x238   :  { %2236 = vxpose.xlu0.b32.start.end [1/1] (short) (narrow) %v9870_v57, 64  ;;  %v614_v1 = vpop.trf.xlu0 }
 0x239   :  { %7971 = vmatmul.mubr.msk.f32.gmra.mrb[4].mxu0 %vm625_vm1, %v614_v1  ;;  %v568_v1 = vadd.f32 %v9891_v14, %v9896_v28  ;;  %v10033_v28 = vpop.f32.mrb[16].mxu1 }
 0x23a   :  { %13742 = vst [vmem:[#allocation10_spill] sm:$0xff] %v10033_v28 }
 0x23b   :  { %v772_v62 = vpop.trf.xlu1 }
 0x23c   :  { %v615_v63 = vpop.trf.xlu0 }
 0x23d   :  { %7973 = vmatprep.mubr.msk.f32.mxu0 %vm625_vm1, %v615_v63 }
 0x23f   :  { %v773_v50 = vpop.trf.xlu1 }
 0x240   :  { %v616_v35 = vpop.trf.xlu0 }
 0x241   :  { %7974 = vmatmul.mubr.msk.f32.gmra.mrb[6].mxu0 %vm625_vm1, %v616_v35 }
 0x242   :  { %7978 = vmatprep.mubr.msk.f32.mxu0 %vm625_vm1, %v771_v0 }
 0x243   :  { %v774_v51 = vpop.trf.xlu1 }
 0x244   :  { %v932_v52 = vpop.trf.xlu0 }
 0x245   :  { %7979 = vmatmul.mubr.msk.f32.vlgmr.msra.gmra.mrb[8].mxu0 %vm625_vm1, %v772_v62  ;;  %7992 = vmatprep.mubr.msk.f32.mxu1 %vm625_vm1, %v932_v52 }
 0x246   :  { %8005 = vmatpush3.msra.mxu0 %v9894_v3  ;;  %7981 = vmatprep.mubr.msk.f32.mxu0 %vm625_vm1, %v773_v50 }
 0x247   :  { %8032 = vmatprep.subr.mxu0 %v9929_v40  ;;  %v775_v54 = vpop.trf.xlu1 }
 0x248   :  { %2397 = vxpose.xlu1.b32.start.end [1/1] (short) (narrow) %v9900_v31, 64  ;;  %v933_v55 = vpop.trf.xlu0 }
 0x249   :  { %7982 = vmatmul.mubr.msk.f32.gmra.mrb[10].mxu0 %vm625_vm1, %v774_v51  ;;  %7993 = vmatmul.mubr.msk.f32.vlgmr.msra.gmra.mrb[24].mxu1 %vm625_vm1, %v933_v55 }
 0x24a   :  { %8019 = vmatpush3.msra.mxu1 %v1276_v38  ;;  %7984 = vmatprep.mubr.msk.f32.mxu0 %vm625_vm1, %v775_v54  ;;  %v9997_v38 = vadd.f32 %v9875_v58, %v9882_v8  ;;  %v10036_v54 = vpop.f32.mrb[17].mxu1 }
 0x24b   :  { %8046 = vmatprep.subr.mxu1 %v9932_v29  ;;  %v776_v19 = vpop.trf.xlu1  ;;  %13743 = vst [vmem:[#allocation11_spill] sm:$0xff] %v10036_v54  ;;  %v10039_v55 = vpop.f32.mrb[18].mxu1 }
 0x24c   :  { %v934_v13 = vpop.trf.xlu0  ;;  %13744 = vst [vmem:[#allocation12_spill] sm:$0xff] %v10039_v55 }
 0x24d   :  { %7985 = vmatmul.mubr.msk.f32.gmra.mrb[12].mxu0 %vm625_vm1, %v776_v19  ;;  %7995 = vmatprep.mubr.msk.f32.mxu1 %vm625_vm1, %v934_v13  ;;  %v10042_v19 = vpop.f32.mrb[19].mxu1 }
 0x24e   :  { %13745 = vst [vmem:[#allocation13_spill] sm:$0xff] %v10042_v19 }
 0x24f   :  { %v777_v17 = vpop.trf.xlu1 }
 0x250   :  { %v935_v56 = vpop.trf.xlu0  ;;  %7987 = vmatprep.mubr.msk.f32.mxu0 %vm625_vm1, %v777_v17  ;;  %v10044_v17 = vpop.f32.mrb[20].mxu1 }
 0x251   :  { %7996 = vmatmul.mubr.msk.f32.gmra.mrb[26].mxu1 %vm625_vm1, %v935_v56  ;;  %13746 = vst [vmem:[#allocation14_spill] sm:$0xff] %v10044_v17  ;;  %v10265_v17 = vld [vmem:[%s13548_s1 + $0x68] sm:$0xff] }
 0x253   :  { %v778_v57 = vpop.trf.xlu1 }
 0x254   :  { %v936_v25 = vpop.trf.xlu0  ;;  %7988 = vmatmul.mubr.msk.f32.gmra.mrb[14].mxu0 %vm625_vm1, %v778_v57  ;;  %v10047_v57 = vpop.f32.mrb[21].mxu1 }
 0x255   :  { %2562 = vxpose.xlu0.b32.start.end [1/1] (short) (narrow) %v9923_v34, 64  ;;  %7998 = vmatprep.mubr.msk.f32.mxu1 %vm625_vm1, %v936_v25  ;;  %13747 = vst [vmem:[#allocation15_spill] sm:$0xff] %v10047_v57  ;;  %v10050_v25 = vpop.f32.mrb[22].mxu1 }
 0x256   :  { %13748 = vst [vmem:[#allocation16_spill] sm:$0xff] %v10050_v25 }
 0x257   :  { %v1093_v27 = vpop.trf.xlu1 }
 0x258   :  { %v937_v59 = vpop.trf.xlu0  ;;  %8006 = vmatprep.mubr.msk.f32.mxu0 %vm625_vm1, %v1093_v27  ;;  %v10052_v27 = vpop.f32.mrb[23].mxu1 }
 0x259   :  { %7999 = vmatmul.mubr.msk.f32.gmra.mrb[28].mxu1 %vm625_vm1, %v937_v59  ;;  %13749 = vst [vmem:[#allocation17_spill] sm:$0xff] %v10052_v27 }
 0x25b   :  { %v1094_v60 = vpop.trf.xlu1 }
 0x25c   :  { %8007 = vmatmul.mubr.msk.f32.vlgmr.msra.gmra.mrb[16].mxu0 %vm625_vm1, %v1094_v60  ;;  %v938_v61 = vpop.trf.xlu0 }
 0x25d   :  { %8033 = vmatpush3.msra.mxu0 %v9929_v40  ;;  %8001 = vmatprep.mubr.msk.f32.mxu1 %vm625_vm1, %v938_v61 }
 0x25e   :  { %8060 = vmatprep.subr.mxu0 %v9938_v43 }
 0x25f   :  { %v1095_v2 = vpop.trf.xlu1 }
 0x260   :  { %v939_v18 = vpop.trf.xlu0  ;;  %8009 = vmatprep.mubr.msk.f32.mxu0 %vm625_vm1, %v1095_v2 }
 0x261   :  { %8002 = vmatmul.mubr.msk.f32.gmra.mrb[30].mxu1 %vm625_vm1, %v939_v18 }
 0x263   :  { %v1096_v12 = vpop.trf.xlu1 }
 0x264   :  { %v1258_v26 = vpop.trf.xlu0  ;;  %8010 = vmatmul.mubr.msk.f32.gmra.mrb[18].mxu0 %vm625_vm1, %v1096_v12 }
 0x265   :  { %2731 = vxpose.xlu1.b32.start.end [1/1] (short) (narrow) %v9927_v39, 64  ;;  %8020 = vmatprep.mubr.msk.f32.mxu1 %vm625_vm1, %v1258_v26 }
 0x267   :  { %v1097_v3 = vpop.trf.xlu1 }
 0x268   :  { %v1259_v31 = vpop.trf.xlu0  ;;  %8012 = vmatprep.mubr.msk.f32.mxu0 %vm625_vm1, %v1097_v3 }
 0x269   :  { %8021 = vmatmul.mubr.msk.f32.vlgmr.msra.gmra.mrb[32].mxu1 %vm625_vm1, %v1259_v31 }
 0x26a   :  { %8047 = vmatpush3.msra.mxu1 %v9932_v29 }
 0x26b   :  { %8074 = vmatprep.subr.mxu1 %v9981_v20  ;;  %v1098_v32 = vpop.trf.xlu1 }
 0x26c   :  { %v1260_v33 = vpop.trf.xlu0  ;;  %8013 = vmatmul.mubr.msk.f32.gmra.mrb[20].mxu0 %vm625_vm1, %v1098_v32 }
 0x26d   :  { %8023 = vmatprep.mubr.msk.f32.mxu1 %vm625_vm1, %v1260_v33 }
 0x26f   :  { %v1099_v4 = vpop.trf.xlu1 }
 0x270   :  { %v1261_v22 = vpop.trf.xlu0  ;;  %8015 = vmatprep.mubr.msk.f32.mxu0 %vm625_vm1, %v1099_v4 }
 0x271   :  { %8024 = vmatmul.mubr.msk.f32.gmra.mrb[34].mxu1 %vm625_vm1, %v1261_v22 }
 0x272   :  { %2900 = vxpose.xlu0.b32.start.end [1/1] (short) (narrow) %v9925_v5, 64 }
 0x273   :  { %v1100_v47 = vpop.trf.xlu1 }
 0x274   :  { %v1262_v16 = vpop.trf.xlu0  ;;  %8016 = vmatmul.mubr.msk.f32.gmra.mrb[22].mxu0 %vm625_vm1, %v1100_v47 }
 0x275   :  { %8026 = vmatprep.mubr.msk.f32.mxu1 %vm625_vm1, %v1262_v16 }
 0x277   :  { %v1427_v34 = vpop.trf.xlu1 }
 0x278   :  { %v1263_v23 = vpop.trf.xlu0  ;;  %8034 = vmatprep.mubr.msk.f32.mxu0 %vm625_vm1, %v1427_v34 }
 0x279   :  { %8027 = vmatmul.mubr.msk.f32.gmra.mrb[36].mxu1 %vm625_vm1, %v1263_v23 }
 0x27b   :  { %v1428_v37 = vpop.trf.xlu1 }
 0x27c   :  { %8035 = vmatmul.mubr.msk.f32.vlgmr.msra.gmra.mrb[24].mxu0 %vm625_vm1, %v1428_v37  ;;  %v1264_v5 = vpop.trf.xlu0 }
 0x27d   :  { %8061 = vmatpush3.msra.mxu0 %v9938_v43  ;;  %8029 = vmatprep.mubr.msk.f32.mxu1 %vm625_vm1, %v1264_v5 }
 0x27e   :  { %8088 = vmatprep.subr.mxu0 %v9997_v38 }
 0x27f   :  { %v1429_v39 = vpop.trf.xlu1 }
 0x280   :  { %v1265_v36 = vpop.trf.xlu0  ;;  %8037 = vmatprep.mubr.msk.f32.mxu0 %vm625_vm1, %v1429_v39 }
 0x281   :  { %8030 = vmatmul.mubr.msk.f32.gmra.mrb[38].mxu1 %vm625_vm1, %v1265_v36 }
 0x282   :  { %3069 = vxpose.xlu1.b32.start.end [1/1] (short) (narrow) %v9942_v45, 64 }
 0x283   :  { %v1430_v40 = vpop.trf.xlu1 }
 0x284   :  { %v1596_v58 = vpop.trf.xlu0  ;;  %8038 = vmatmul.mubr.msk.f32.gmra.mrb[26].mxu0 %vm625_vm1, %v1430_v40 }
 0x285   :  { %8048 = vmatprep.mubr.msk.f32.mxu1 %vm625_vm1, %v1596_v58 }
 0x287   :  { %v1431_v8 = vpop.trf.xlu1 }
 0x288   :  { %v1597_v29 = vpop.trf.xlu0  ;;  %8040 = vmatprep.mubr.msk.f32.mxu0 %vm625_vm1, %v1431_v8 }
 0x289   :  { %8049 = vmatmul.mubr.msk.f32.vlgmr.msra.gmra.mrb[40].mxu1 %vm625_vm1, %v1597_v29 }
 0x28a   :  { %8075 = vmatpush3.msra.mxu1 %v9981_v20 }
 0x28b   :  { %8102 = vmatprep.subr.mxu1 %v10011_v30  ;;  %v1432_v41 = vpop.trf.xlu1 }
 0x28c   :  { %v1598_v42 = vpop.trf.xlu0  ;;  %8041 = vmatmul.mubr.msk.f32.gmra.mrb[28].mxu0 %vm625_vm1, %v1432_v41 }
 0x28d   :  { %8051 = vmatprep.mubr.msk.f32.mxu1 %vm625_vm1, %v1598_v42 }
 0x28f   :  { %v1433_v43 = vpop.trf.xlu1 }
 0x290   :  { %v1599_v44 = vpop.trf.xlu0  ;;  %8043 = vmatprep.mubr.msk.f32.mxu0 %vm625_vm1, %v1433_v43 }
 0x291   :  { %8052 = vmatmul.mubr.msk.f32.gmra.mrb[42].mxu1 %vm625_vm1, %v1599_v44 }
 0x293   :  { %v1434_v9 = vpop.trf.xlu1 }
 0x294   :  { %v1600_v24 = vpop.trf.xlu0  ;;  %8044 = vmatmul.mubr.msk.f32.gmra.mrb[30].mxu0 %vm625_vm1, %v1434_v9 }
 0x295   :  { %8054 = vmatprep.mubr.msk.f32.mxu1 %vm625_vm1, %v1600_v24 }
 0x297   :  { %v1765_v45 = vpop.trf.xlu1 }
 0x298   :  { %v1601_v46 = vpop.trf.xlu0  ;;  %8062 = vmatprep.mubr.msk.f32.mxu0 %vm625_vm1, %v1765_v45 }
 0x299   :  { %8055 = vmatmul.mubr.msk.f32.gmra.mrb[44].mxu1 %vm625_vm1, %v1601_v46 }
 0x29b   :  { %v1766_v0 = vpop.trf.xlu1 }
 0x29c   :  { %8063 = vmatmul.mubr.msk.f32.vlgmr.msra.gmra.mrb[32].mxu0 %vm625_vm1, %v1766_v0  ;;  %v1602_v62 = vpop.trf.xlu0 }
 0x29d   :  { %8089 = vmatpush3.msra.mxu0 %v9997_v38  ;;  %8057 = vmatprep.mubr.msk.f32.mxu1 %vm625_vm1, %v1602_v62  ;;  %v10107_v62 = vld [vmem:[%s13548_s1 + $0x8] sm:$0xff] }
 0x29e   :  { %8116 = vmatprep.subr.mxu0 %v568_v1 }
 0x29f   :  { %v1767_v63 = vpop.trf.xlu1 }
 0x2a0   :  { %v1603_v50 = vpop.trf.xlu0  ;;  %8065 = vmatprep.mubr.msk.f32.mxu0 %vm625_vm1, %v1767_v63 }
 0x2a1   :  { %8058 = vmatmul.mubr.msk.f32.gmra.mrb[46].mxu1 %vm625_vm1, %v1603_v50  ;;  %v10114_v50 = vld [vmem:[%s13548_s1] sm:$0xff] }
 0x2a3   :  { %v1768_v35 = vpop.trf.xlu1 }
 0x2a4   :  { %v1930_v51 = vpop.trf.xlu0  ;;  %8066 = vmatmul.mubr.msk.f32.gmra.mrb[34].mxu0 %vm625_vm1, %v1768_v35 }
 0x2a5   :  { %8076 = vmatprep.mubr.msk.f32.mxu1 %vm625_vm1, %v1930_v51 }
 0x2a7   :  { %v1769_v14 = vpop.trf.xlu1 }
 0x2a8   :  { %v1931_v52 = vpop.trf.xlu0  ;;  %8068 = vmatprep.mubr.msk.f32.mxu0 %vm625_vm1, %v1769_v14 }
 0x2a9   :  { %8077 = vmatmul.mubr.msk.f32.vlgmr.msra.gmra.mrb[48].mxu1 %vm625_vm1, %v1931_v52 }
 0x2aa   :  { %8103 = vmatpush3.msra.mxu1 %v10011_v30 }
 0x2ab   :  { %v1770_v13 = vpop.trf.xlu1 }
 0x2ac   :  { %v1932_v56 = vpop.trf.xlu0  ;;  %8069 = vmatmul.mubr.msk.f32.gmra.mrb[36].mxu0 %vm625_vm1, %v1770_v13 }
 0x2ad   :  { %8079 = vmatprep.mubr.msk.f32.mxu1 %vm625_vm1, %v1932_v56 }
 0x2af   :  { %v1771_v59 = vpop.trf.xlu1 }
 0x2b0   :  { %v1933_v60 = vpop.trf.xlu0  ;;  %8071 = vmatprep.mubr.msk.f32.mxu0 %vm625_vm1, %v1771_v59 }
 0x2b1   :  { %8080 = vmatmul.mubr.msk.f32.gmra.mrb[50].mxu1 %vm625_vm1, %v1933_v60 }
 0x2b3   :  { %v1772_v61 = vpop.trf.xlu1 }
 0x2b4   :  { %8072 = vmatmul.mubr.msk.f32.gmra.mrb[38].mxu0 %vm625_vm1, %v1772_v61  ;;  %v1934_v2 = vpop.trf.xlu0 }
 0x2b5   :  { %8082 = vmatprep.mubr.msk.f32.mxu1 %vm625_vm1, %v1934_v2 }
 0x2b7   :  { %v2091_v18 = vpop.trf.xlu1  ;;  %2595 = vrot.lane.b32.xlu0 %v9981_v20, %s9525_s24 }
 0x2b8   :  { %8090 = vmatprep.mubr.msk.f32.mxu0 %vm625_vm1, %v2091_v18  ;;  %v1935_v12 = vpop.trf.xlu0  ;;  %v10137_v18 = vld [vmem:[%s13548_s1 + $0x10] sm:$0xff] }
 0x2b9   :  { %8083 = vmatmul.mubr.msk.f32.gmra.mrb[52].mxu1 %vm625_vm1, %v1935_v12 }
 0x2bb   :  { %v2092_v26 = vpop.trf.xlu1  ;;  %2933 = vrot.lane.b32.xlu0 %v10011_v30, %s9525_s24 }
 0x2bc   :  { %2764 = vrot.lane.b32.xlu1 %v9997_v38, %s9525_s24  ;;  %8091 = vmatmul.mubr.msk.f32.vlgmr.msra.gmra.mrb[40].mxu0 %vm625_vm1, %v2092_v26  ;;  %v1936_v3 = vpop.trf.xlu0 }
 0x2bd   :  { %8117 = vmatpush3.msra.mxu0 %v568_v1  ;;  %8085 = vmatprep.mubr.msk.f32.mxu1 %vm625_vm1, %v1936_v3 }
 0x2bf   :  { %v2093_v31 = vpop.trf.xlu1 }
 0x2c0   :  { %3102 = vrot.lane.b32.xlu1 %v568_v1, %s9525_s24  ;;  %v1937_v20 = vpop.trf.xlu0  ;;  %8093 = vmatprep.mubr.msk.f32.mxu0 %vm625_vm1, %v2093_v31 }
 0x2c1   :  { %8086 = vmatmul.mubr.msk.f32.gmra.mrb[54].mxu1 %vm625_vm1, %v1937_v20 }
 0x2c3   :  { %v2094_v32 = vpop.trf.xlu1 }
 0x2c4   :  { %v2252_v33 = vpop.trf.xlu0  ;;  %8094 = vmatmul.mubr.msk.f32.gmra.mrb[42].mxu0 %vm625_vm1, %v2094_v32 }
 0x2c5   :  { %8104 = vmatprep.mubr.msk.f32.mxu1 %vm625_vm1, %v2252_v33 }
 0x2c7   :  { %v2095_v4 = vpop.trf.xlu1 }
 0x2c8   :  { %v2253_v22 = vpop.trf.xlu0  ;;  %8096 = vmatprep.mubr.msk.f32.mxu0 %vm625_vm1, %v2095_v4 }
 0x2c9   :  { %8105 = vmatmul.mubr.msk.f32.vlgmr.msra.gmra.mrb[56].mxu1 %vm625_vm1, %v2253_v22 }
 0x2cb   :  { %v2096_v47 = vpop.trf.xlu1 }
 0x2cc   :  { %v2254_v16 = vpop.trf.xlu0  ;;  %8097 = vmatmul.mubr.msk.f32.gmra.mrb[44].mxu0 %vm625_vm1, %v2096_v47 }
 0x2cd   :  { %8107 = vmatprep.mubr.msk.f32.mxu1 %vm625_vm1, %v2254_v16 }
 0x2cf   :  { %v2097_v34 = vpop.trf.xlu1 }
 0x2d0   :  { %v2255_v23 = vpop.trf.xlu0  ;;  %8099 = vmatprep.mubr.msk.f32.mxu0 %vm625_vm1, %v2097_v34 }
 0x2d1   :  { %8108 = vmatmul.mubr.msk.f32.gmra.mrb[58].mxu1 %vm625_vm1, %v2255_v23 }
 0x2d3   :  { %v2098_v37 = vpop.trf.xlu1 }
 0x2d4   :  { %v2256_v38 = vpop.trf.xlu0  ;;  %8100 = vmatmul.mubr.msk.f32.gmra.mrb[46].mxu0 %vm625_vm1, %v2098_v37 }
 0x2d5   :  { %8110 = vmatprep.mubr.msk.f32.mxu1 %vm625_vm1, %v2256_v38 }
 0x2d7   :  { %v2413_v5 = vpop.trf.xlu1 }
 0x2d8   :  { %v2257_v39 = vpop.trf.xlu0  ;;  %8118 = vmatprep.mubr.msk.f32.mxu0 %vm625_vm1, %v2413_v5 }
 0x2d9   :  { %8111 = vmatmul.mubr.msk.f32.gmra.mrb[60].mxu1 %vm625_vm1, %v2257_v39 }
 0x2db   :  { %v2414_v36 = vpop.trf.xlu1 }
 0x2dc   :  { %v2258_v40 = vpop.trf.xlu0  ;;  %8119 = vmatmul.mubr.msk.f32.vlgmr.msra.gmra.mrb[48].mxu0 %vm625_vm1, %v2414_v36 }
 0x2dd   :  { %8113 = vmatprep.mubr.msk.f32.mxu1 %vm625_vm1, %v2258_v40  ;;  %v10169_v40 = vld [vmem:[%s13548_s1 + $0x40] sm:$0xff] }
 0x2df   :  { %v2415_v58 = vpop.trf.xlu1 }
 0x2e0   :  { %v2259_v8 = vpop.trf.xlu0  ;;  %8121 = vmatprep.mubr.msk.f32.mxu0 %vm625_vm1, %v2415_v58 }
 0x2e1   :  { %8114 = vmatmul.mubr.msk.f32.gmra.mrb[62].mxu1 %vm625_vm1, %v2259_v8 }
 0x2e3   :  { %v2416_v29 = vpop.trf.xlu1 }
 0x2e4   :  { %v2578_v30 = vpop.trf.xlu0  ;;  %8122 = vmatmul.mubr.msk.f32.gmra.mrb[50].mxu0 %vm625_vm1, %v2416_v29  ;;  %v10176_v29 = vld [vmem:[%s13548_s1 + $0x48] sm:$0xff] }
 0x2e5   :  { %8132 = vmatprep.mubr.msk.f32.mxu1 %vm625_vm1, %v2578_v30 }
 0x2e7   :  { %v2417_v41 = vpop.trf.xlu1 }
 0x2e8   :  { %v10089_v42 = vpop.trf.xlu0  ;;  %8124 = vmatprep.mubr.msk.f32.mxu0 %vm625_vm1, %v2417_v41 }
 0x2eb   :  { %v2418_v43 = vpop.trf.xlu1 }
 0x2ec   :  { %v10092_v44 = vpop.trf.xlu0  ;;  %8125 = vmatmul.mubr.msk.f32.gmra.mrb[52].mxu0 %vm625_vm1, %v2418_v43 }
 0x2ef   :  { %v2419_v9 = vpop.trf.xlu1 }
 0x2f0   :  { %v10095_v24 = vpop.trf.xlu0  ;;  %8127 = vmatprep.mubr.msk.f32.mxu0 %vm625_vm1, %v2419_v9  ;;  %v10186_v9 = vld [vmem:[%s13548_s1 + $0x50] sm:$0xff] }
 0x2f3   :  { %v2420_v45 = vpop.trf.xlu1 }
 0x2f4   :  { %v10098_v46 = vpop.trf.xlu0  ;;  %8128 = vmatmul.mubr.msk.f32.gmra.mrb[54].mxu0 %vm625_vm1, %v2420_v45 }
 0x2f7   :  { %v2747_v0 = vpop.trf.xlu1 }
 0x2f8   :  { %v10101_v1 = vpop.trf.xlu0  ;;  %8146 = vmatprep.mubr.msk.f32.mxu0 %vm625_vm1, %v2747_v0 }
 0x2fb   :  { %v10109_v63 = vpop.trf.xlu1 }
 0x2fc   :  { %v7966_v35 = vpop.f32.mrb[0].mxu0  ;;  %v10116_v51 = vpop.trf.xlu0 }
 0x2fd   :  { %v10119_v14 = vadd.f32 %v7966_v35, %v10107_v62  ;;  %v716_v52 = vpop.f32.mrb[1].mxu0 }
 0x2fe   :  { %v10122_v13 = vadd.f32 %v10114_v50, %v716_v52 }
 0x2ff   :  { %v10124_v56 = vpop.trf.xlu1  ;;  %v3398_v59 = vsel %vm3394_vm2, %v10119_v14, -inf }
 0x300   :  { %3399 = vmax.xlane.f32.xlu1 %v3398_v59  ;;  %v3395_v60 = vsel %vm3394_vm2, %v10122_v13, -inf  ;;  %v10130_v61 = vpop.trf.xlu0  ;;  %v10198_v59 = vld [vmem:[%s13548_s1 + $0x18] sm:$0xff] }
 0x301   :  { %3396 = vmax.xlane.f32.xlu0 %v3395_v60  ;;  %v10203_v60 = vld [vmem:[%s13548_s1 + $0x20] sm:$0xff] }
 0x303   :  { %v10132_v2 = vpop.trf.xlu1 }
 0x304   :  { %v7969_v12 = vpop.f32.mrb[2].mxu0  ;;  %v10139_v26 = vpop.trf.xlu0 }
 0x305   :  { %v726_v3 = vpop.f32.mrb[3].mxu0 }
 0x306   :  { %v10142_v31 = vadd.f32 %v10137_v18, %v726_v3 }
 0x307   :  { %v10144_v20 = vpop.trf.xlu1 }
 0x308   :  { %13750 = vst [vmem:[#allocation18_spill] sm:$0xff] %v10142_v31  ;;  %v3401_v32 = vsel %vm3394_vm2, %v10142_v31, -inf  ;;  %v10148_v33 = vpop.trf.xlu0 }
 0x309   :  { %3402 = vmax.xlane.f32.xlu1 %v3401_v32 }
 0x30b   :  { %v10150_v4 = vpop.trf.xlu1 }
 0x30c   :  { %v7972_v22 = vpop.f32.mrb[4].mxu0  ;;  %v10152_v47 = vpop.trf.xlu0 }
 0x30d   :  { %v736_v16 = vpop.f32.mrb[5].mxu0 }
 0x30e   :  { %v10226_v11 = vadd.f32 %v10203_v60, %v736_v16 }
 0x30f   :  { %v10154_v34 = vpop.trf.xlu1 }
 0x310   :  { %v10156_v23 = vpop.trf.xlu0  ;;  %13753 = vst [vmem:[#allocation21_spill] sm:$0xff] %v10226_v11  ;;  %v3407_v27 = vsel %vm3394_vm2, %v10226_v11, -inf }
 0x313   :  { %v10158_v37 = vpop.trf.xlu1 }
 0x314   :  { %v10160_v38 = vpop.f32.mrb[6].mxu0  ;;  %v10162_v5 = vpop.trf.xlu0 }
 0x315   :  { %v746_v39 = vpop.f32.mrb[7].mxu0 }
 0x317   :  { %v10164_v36 = vpop.trf.xlu1 }
 0x318   :  { %v7980_v58 = vpop.f32.mrb[8].mxu0  ;;  %v10171_v8 = vpop.trf.xlu0 }
 0x319   :  { %v877_v30 = vpop.f32.mrb[9].mxu0  ;;  %v10189_v45 = vadd.f32 %v7980_v58, %v10176_v29 }
 0x31a   :  { %v10179_v41 = vadd.f32 %v10169_v40, %v877_v30 }
 0x31b   :  { %v10181_v43 = vpop.trf.xlu1  ;;  %v3422_v6 = vsel %vm3394_vm2, %v10189_v45, -inf }
 0x31c   :  { %v7983_v0 = vpop.f32.mrb[10].mxu0  ;;  %v3419_v35 = vsel %vm3394_vm2, %v10179_v41, -inf  ;;  %v10193_v52 = vpop.trf.xlu0 }
 0x31d   :  { %v887_v3 = vpop.f32.mrb[11].mxu0  ;;  %3420 = vmax.xlane.f32.xlu0 %v3419_v35  ;;  %v10205_v32 = vpop.f32.mrb[24].mxu1  ;;  %v10223_v35 = vadd.f32 %v7969_v12, %v10198_v59  ;;  %v10233_v48 = vadd.f32 %v7983_v0, %v10213_v10 }
 0x31e   :  { %v10208_v58 = vadd.f32 %v10186_v9, %v887_v3  ;;  %v1038_v30 = vpop.f32.mrb[25].mxu1 }
 0x31f   :  { %v10215_v15 = vpop.trf.xlu1  ;;  %13752 = vst [vmem:[#allocation20_spill] sm:$0xff] %v10223_v35  ;;  %13754 = vst [vmem:[#allocation22_spill] sm:$0xff] %v10233_v48  ;;  %v3404_v57 = vsel %vm3394_vm2, %v10223_v35, -inf  ;;  %v3428_v19 = vsel %vm3394_vm2, %v10233_v48, -inf }
 0x320   :  { %13751 = vst [vmem:[#allocation19_spill] sm:$0xff] %v10208_v58  ;;  %v3425_v3 = vsel %vm3394_vm2, %v10208_v58, -inf  ;;  %v7986_v53 = vpop.f32.mrb[12].mxu0  ;;  %v10240_v16 = vpop.trf.xlu0 }
 0x321   :  { %3426 = vmax.xlane.f32.xlu1 %v3425_v3  ;;  %3423 = vmax.xlane.f32.xlu0 %v3422_v6  ;;  %v897_v21 = vpop.f32.mrb[13].mxu0  ;;  %v10251_v6 = vld [vmem:[%s13548_s1 + $0x28] sm:$0xff]  ;;  %v10281_v48 = vadd.f32 %v7986_v53, %v10265_v17 }
 0x322   :  { %v10236_v49 = vadd.f32 %v10220_v7, %v897_v21  ;;  %v10256_v21 = vld [vmem:[%s13548_s1 + $0x30] sm:$0xff] }
 0x323   :  { %v10238_v12 = vpop.trf.xlu1  ;;  %v10278_v55 = vadd.f32 %v10256_v21, %v746_v39  ;;  %13758 = vst [vmem:[#allocation26_spill] sm:$0xff] %v10281_v48 }
 0x324   :  { %13755 = vst [vmem:[#allocation23_spill] sm:$0xff] %v10236_v49  ;;  %v10246_v54 = vpop.f32.mrb[26].mxu1  ;;  %v3431_v3 = vsel %vm3394_vm2, %v10236_v49, -inf }
 0x325   :  { %3408 = vmax.xlane.f32.xlu1 %v3407_v27  ;;  %3405 = vmax.xlane.f32.xlu0 %v3404_v57  ;;  %v1048_v0 = vpop.f32.mrb[27].mxu1  ;;  %v10272_v27 = vld [vmem:[%s13548_s1 + $0x70] sm:$0xff]  ;;  %v10275_v57 = vadd.f32 %v7972_v22, %v10251_v6  ;;  %13757 = vst [vmem:[#allocation25_spill] sm:$0xff] %v10278_v55  ;;  %v10291_v22 = vld [vmem:[%s13548_s1 + $0x80] sm:$0xff]  ;;  %v3413_v39 = vsel %vm3394_vm2, %v10278_v55, -inf }
 0x326   :  { %13760 = vst [vmem:[#allocation28_spill] sm:$0xff] %v10291_v22 }
 0x327   :  { %v10267_v25 = vpop.trf.xlu1  ;;  %v7989_v28 = vpop.f32.mrb[14].mxu0  ;;  %13756 = vst [vmem:[#allocation24_spill] sm:$0xff] %v10275_v57 }
 0x328   :  { %v907_v49 = vpop.f32.mrb[15].mxu0 }
 0x329   :  { %3432 = vmax.xlane.f32.xlu1 %v3431_v3  ;;  %3429 = vmax.xlane.f32.xlu0 %v3428_v19  ;;  %v2596_v11 = vpop.permute.xlu0 %2595  ;;  %v10284_v35 = vadd.f32 %v10272_v27, %v907_v49  ;;  %v3410_v19 = vsel %vm3394_vm2, %v10275_v57, -inf  ;;  %v10304_v49 = vld [vmem:[%s13548_s1 + $0x38] sm:$0xff]  ;;  %v10309_v57 = vadd.f32 %v10291_v22, %v1038_v30 }
 0x32a   :  { %8130 = vmatprep.subr.mxu1 %v2596_v11  ;;  %v10329_v30 = vld [vmem:[%s13548_s1 + $0x78] sm:$0xff] }
 0x32b   :  { %13759 = vst [vmem:[#allocation27_spill] sm:$0xff] %v10284_v35  ;;  %v10286_v58 = vpop.trf.xlu1  ;;  %8131 = vmatpush3.msra.mxu1 %v2596_v11  ;;  %v3437_v55 = vsel %vm3394_vm2, %v10284_v35, -inf  ;;  %13761 = vst [vmem:[#allocation29_spill] sm:$0xff] %v10309_v57  ;;  %v10324_v35 = vadd.f32 %v10160_v38, %v10304_v49  ;;  %v10341_v38 = vadd.f32 %v7989_v28, %v10329_v30 }
 0x32c   :  { %8133 = vmatmul.mubr.msk.f32.vlgmr.msra.gmra.mrb[64].mxu1 %vm625_vm1, %v10089_v42  ;;  %v10299_v53 = vpop.f32.mrb[28].mxu1  ;;  %v3434_v42 = vsel %vm3394_vm2, %v10281_v48, -inf }
 0x32d   :  { %3414 = vmax.xlane.f32.xlu1 %v3413_v39  ;;  %3411 = vmax.xlane.f32.xlu0 %v3410_v19  ;;  %v2934_v11 = vpop.permute.xlu0 %2933  ;;  %v1058_v3 = vpop.f32.mrb[29].mxu1  ;;  %v10320_v19 = vld [vmem:[%s13548_s1 + $0xc0] sm:$0xff]  ;;  %13763 = vst [vmem:[#allocation31_spill] sm:$0xff] %v10324_v35  ;;  %13765 = vst [vmem:[#allocation33_spill] sm:$0xff] %v10341_v38 }
 0x32e   :  { %8158 = vmatprep.subr.mxu1 %v2934_v11  ;;  %8135 = vmatprep.mubr.msk.f32.mxu1 %vm625_vm1, %v10092_v44  ;;  %13762 = vst [vmem:[#allocation30_spill] sm:$0xff] %v10320_v19 }
 0x32f   :  { %v10315_v31 = vpop.trf.xlu1  ;;  %8159 = vmatpush3.msra.mxu1 %v2934_v11  ;;  %v8008_v39 = vpop.f32.mrb[16].mxu0  ;;  %v3443_v11 = vsel %vm3394_vm2, %v10309_v57, -inf }
 0x330   :  { %v1199_v48 = vpop.f32.mrb[17].mxu0  ;;  %8136 = vmatmul.mubr.msk.f32.gmra.mrb[66].mxu1 %vm625_vm1, %v10095_v24  ;;  %v10348_v24 = vld [vmem:[%s13548_s1 + $0x90] sm:$0xff] }
 0x331   :  { %3438 = vmax.xlane.f32.xlu1 %v3437_v55  ;;  %3435 = vmax.xlane.f32.xlu0 %v3434_v42  ;;  %v10334_v44 = vadd.f32 %v10320_v19, %v1199_v48  ;;  %13766 = vst [vmem:[#allocation34_spill] sm:$0xff] %v10348_v24  ;;  %v10353_v48 = vld [vmem:[%s13548_s1 + $0x88] sm:$0xff]  ;;  %v3416_v55 = vsel %vm3394_vm2, %v10324_v35, -inf  ;;  %v10366_v57 = vadd.f32 %v10348_v24, %v1048_v0 }
 0x332   :  { %8138 = vmatprep.mubr.msk.f32.mxu1 %vm625_vm1, %v10098_v46  ;;  %13767 = vst [vmem:[#allocation35_spill] sm:$0xff] %v10353_v48  ;;  %v10372_v35 = vadd.f32 %v10205_v32, %v10353_v48  ;;  %v10384_v0 = vld [vmem:[%s13548_s1 + $0xc8] sm:$0xff] }
 0x333   :  { %13764 = vst [vmem:[#allocation32_spill] sm:$0xff] %v10334_v44  ;;  %v10343_v22 = vpop.trf.xlu1  ;;  %v3467_v46 = vsel %vm3394_vm2, %v10334_v44, -inf  ;;  %v3449_v44 = vsel %vm3394_vm2, %v10366_v57, -inf }
 0x334   :  { %v10357_v42 = vpop.f32.mrb[30].mxu1  ;;  %8139 = vmatmul.mubr.msk.f32.gmra.mrb[68].mxu1 %vm625_vm1, %v10101_v1  ;;  %v3440_v1 = vsel %vm3394_vm2, %v10341_v38, -inf  ;;  %v10396_v38 = vadd.f32 %v8008_v39, %v10384_v0  ;;  %v3446_v48 = vsel %vm3394_vm2, %v10372_v35, -inf }
 0x335   :  { %3444 = vmax.xlane.f32.xlu1 %v3443_v11  ;;  %3417 = vmax.xlane.f32.xlu0 %v3416_v55  ;;  %v10361_v28 = vpop.f32.mrb[31].mxu1  ;;  %v10379_v55 = vld [vmem:[%s13548_s1 + $0xd0] sm:$0xff] }
 0x336   :  { %8141 = vmatprep.mubr.msk.f32.mxu1 %vm625_vm1, %v10116_v51 }
 0x337   :  { %v2765_v19 = vpop.permute.xlu1 %2764  ;;  %v8011_v11 = vpop.f32.mrb[18].mxu0 }
 0x338   :  { %8144 = vmatprep.subr.mxu0 %v2765_v19  ;;  %v1209_v51 = vpop.f32.mrb[19].mxu0  ;;  %8142 = vmatmul.mubr.msk.f32.gmra.mrb[70].mxu1 %vm625_vm1, %v10130_v61  ;;  %v10403_v61 = vld [vmem:[%s13548_s1 + $0xa0] sm:$0xff] }
 0x339   :  { %8145 = vmatpush3.msra.mxu0 %v2765_v19  ;;  %3468 = vmax.xlane.f32.xlu1 %v3467_v46  ;;  %v10389_v32 = vadd.f32 %v10379_v55, %v1209_v51 }
 0x33a   :  { %3441 = vmax.xlane.f32.xlu0 %v3440_v1  ;;  %8147 = vmatmul.mubr.msk.f32.vlgmr.msra.gmra.mrb[56].mxu0 %vm625_vm1, %v10109_v63  ;;  %v10412_v63 = vld [vmem:[%s13548_s1 + $0x98] sm:$0xff] }
 0x33b   :  { %v3103_v24 = vpop.permute.xlu1 %3102  ;;  %8149 = vmatprep.mubr.msk.f32.mxu0 %vm625_vm1, %v10124_v56  ;;  %8160 = vmatprep.mubr.msk.f32.mxu1 %vm625_vm1, %v10139_v26  ;;  %v3473_v56 = vsel %vm3394_vm2, %v10389_v32, -inf  ;;  %v10421_v26 = vadd.f32 %v10403_v61, %v1058_v3  ;;  %v10427_v46 = vadd.f32 %v10246_v54, %v10412_v63  ;;  %v10443_v54 = vld [vmem:[%s13548_s1 + $0xd8] sm:$0xff] }
 0x33c   :  { %8172 = vmatprep.subr.mxu0 %v3103_v24  ;;  %v10414_v39 = vpop.f32.mrb[32].mxu1  ;;  %8161 = vmatmul.mubr.msk.f32.vlgmr.msra.gmra.mrb[72].mxu1 %vm625_vm1, %v10148_v33  ;;  %v3470_v33 = vsel %vm3394_vm2, %v10396_v38, -inf }
 0x33d   :  { %8173 = vmatpush3.msra.mxu0 %v3103_v24  ;;  %3450 = vmax.xlane.f32.xlu1 %v3449_v44  ;;  %v1368_v19 = vpop.f32.mrb[33].mxu1  ;;  %v10434_v44 = vld [vmem:[%s13548_s1 + $0xe0] sm:$0xff] }
 0x33e   :  { %3447 = vmax.xlane.f32.xlu0 %v3446_v48  ;;  %8150 = vmatmul.mubr.msk.f32.gmra.mrb[58].mxu0 %vm625_vm1, %v10132_v2  ;;  %v10471_v48 = vld [vmem:[%s13548_s1 + $0xa8] sm:$0xff] }
 0x33f   :  { %v8014_v24 = vpop.f32.mrb[20].mxu0  ;;  %8152 = vmatprep.mubr.msk.f32.mxu0 %vm625_vm1, %v10144_v20  ;;  %8163 = vmatprep.mubr.msk.f32.mxu1 %vm625_vm1, %v10152_v47  ;;  %v3455_v20 = vsel %vm3394_vm2, %v10421_v26, -inf  ;;  %v10457_v47 = vadd.f32 %v8011_v11, %v10443_v54  ;;  %v10489_v51 = vadd.f32 %v10299_v53, %v10471_v48 }
 0x340   :  { %v1219_v2 = vpop.f32.mrb[21].mxu0  ;;  %8164 = vmatmul.mubr.msk.f32.gmra.mrb[74].mxu1 %vm625_vm1, %v10156_v23  ;;  %v3452_v23 = vsel %vm3394_vm2, %v10427_v46, -inf }
 0x341   :  { %3474 = vmax.xlane.f32.xlu1 %v3473_v56  ;;  %8166 = vmatprep.mubr.msk.f32.mxu1 %vm625_vm1, %v10162_v5  ;;  %v10450_v3 = vadd.f32 %v10434_v44, %v1219_v2  ;;  %v10464_v5 = vld [vmem:[%s13548_s1 + $0xb0] sm:$0xff]  ;;  %v3458_v2 = vsel %vm3394_vm2, %v10489_v51, -inf }
 0x342   :  { %3471 = vmax.xlane.f32.xlu0 %v3470_v33  ;;  %8153 = vmatmul.mubr.msk.f32.gmra.mrb[60].mxu0 %vm625_vm1, %v10150_v4 }
 0x343   :  { %8155 = vmatprep.mubr.msk.f32.mxu0 %vm625_vm1, %v10154_v34  ;;  %v3479_v11 = vsel %vm3394_vm2, %v10450_v3, -inf  ;;  %v10483_v34 = vadd.f32 %v10464_v5, %v10361_v28 }
 0x344   :  { %v10473_v4 = vpop.f32.mrb[34].mxu1  ;;  %8167 = vmatmul.mubr.msk.f32.gmra.mrb[76].mxu1 %vm625_vm1, %v10171_v8  ;;  %v3476_v8 = vsel %vm3394_vm2, %v10457_v47, -inf }
 0x345   :  { %3456 = vmax.xlane.f32.xlu1 %v3455_v20  ;;  %v1378_v1 = vpop.f32.mrb[35].mxu1  ;;  %8169 = vmatprep.mubr.msk.f32.mxu1 %vm625_vm1, %v10193_v52  ;;  %13768 = vst [vmem:[#allocation36_spill] sm:$0xff] %v10483_v34  ;;  %v10496_v52 = vld [vmem:[%s13548_s1 + $0xf0] sm:$0xff]  ;;  %v3461_v33 = vsel %vm3394_vm2, %v10483_v34, -inf }
 0x346   :  { %3453 = vmax.xlane.f32.xlu0 %v3452_v23  ;;  %8156 = vmatmul.mubr.msk.f32.gmra.mrb[62].mxu0 %vm625_vm1, %v10158_v37  ;;  %v10503_v37 = vld [vmem:[%s13548_s1 + $0xe8] sm:$0xff]  ;;  %v13811_v34 = vld [vmem:[#allocation20_spill] sm:$0xff] }
 0x347   :  { %v8017_v56 = vpop.f32.mrb[22].mxu0  ;;  %8174 = vmatprep.mubr.msk.f32.mxu0 %vm625_vm1, %v10164_v36  ;;  %v10515_v36 = vadd.f32 %v8014_v24, %v10503_v37  ;;  %v10529_v24 = vadd.f32 %v10114_v50, %v1368_v19 }
 0x348   :  { %v1229_v28 = vpop.f32.mrb[23].mxu0  ;;  %8170 = vmatmul.mubr.msk.f32.gmra.mrb[78].mxu1 %vm625_vm1, %v10240_v16  ;;  %v10524_v16 = vld [vmem:[%s13548_s1 + $0xb8] sm:$0xff] }
 0x349   :  { %3480 = vmax.xlane.f32.xlu1 %v3479_v11  ;;  %v10508_v53 = vadd.f32 %v10496_v52, %v1229_v28  ;;  %13770 = vst [vmem:[#allocation38_spill] sm:$0xff] %v10529_v24  ;;  %v3482_v11 = vsel %vm3394_vm2, %v10515_v36, -inf  ;;  %v10544_v28 = vld [vmem:[%s13548_s1 + $0xf8] sm:$0xff] }
 0x34a   :  { %3477 = vmax.xlane.f32.xlu0 %v3476_v8  ;;  %8175 = vmatmul.mubr.msk.f32.vlgmr.msra.gmra.mrb[64].mxu0 %vm625_vm1, %v10181_v43  ;;  %v10554_v19 = vadd.f32 %v8017_v56, %v10544_v28 }
 0x34b   :  { %13769 = vst [vmem:[#allocation37_spill] sm:$0xff] %v10508_v53  ;;  %8177 = vmatprep.mubr.msk.f32.mxu0 %vm625_vm1, %v10215_v15  ;;  %v3485_v43 = vsel %vm3394_vm2, %v10508_v53, -inf  ;;  %v10535_v15 = vadd.f32 %v10357_v42, %v10524_v16  ;;  %v3491_v42 = vsel %vm3394_vm2, %v10529_v24, -inf }
 0x34c   :  { %v8028_v20 = vpop.f32.mrb[36].mxu1  ;;  %13773 = vst [vmem:[#allocation41_spill] sm:$0xff] %v10554_v19 }
 0x34d   :  { %3462 = vmax.xlane.f32.xlu1 %v3461_v33  ;;  %v1388_v23 = vpop.f32.mrb[37].mxu1  ;;  %13771 = vst [vmem:[#allocation39_spill] sm:$0xff] %v10535_v15 }
 0x34e   :  { %3459 = vmax.xlane.f32.xlu0 %v3458_v2  ;;  %8178 = vmatmul.mubr.msk.f32.gmra.mrb[66].mxu0 %vm625_vm1, %v10238_v12 }
 0x34f   :  { %v8036_v8 = vpop.f32.mrb[24].mxu0  ;;  %8180 = vmatprep.mubr.msk.f32.mxu0 %vm625_vm1, %v10267_v25  ;;  %v3464_v25 = vsel %vm3394_vm2, %v10535_v15, -inf }
 0x350   :  { %v1537_v50 = vpop.f32.mrb[25].mxu0 }
 0x351   :  { %3486 = vmax.xlane.f32.xlu1 %v3485_v43  ;;  %v10547_v12 = vadd.f32 %v10169_v40, %v1537_v50  ;;  %v10563_v43 = vadd.f32 %v10137_v18, %v1378_v1  ;;  %v10579_v1 = vadd.f32 %v8036_v8, %v10176_v29 }
 0x352   :  { %3483 = vmax.xlane.f32.xlu0 %v3482_v11  ;;  %8181 = vmatmul.mubr.msk.f32.gmra.mrb[68].mxu0 %vm625_vm1, %v10286_v58  ;;  %v10569_v58 = vadd.f32 %v10414_v39, %v10107_v62 }
 0x353   :  { %13772 = vst [vmem:[#allocation40_spill] sm:$0xff] %v10547_v12  ;;  %8183 = vmatprep.mubr.msk.f32.mxu0 %vm625_vm1, %v10315_v31  ;;  %v3515_v40 = vsel %vm3394_vm2, %v10547_v12, -inf  ;;  %13774 = vst [vmem:[#allocation42_spill] sm:$0xff] %v10563_v43  ;;  %v3488_v31 = vsel %vm3394_vm2, %v10554_v19, -inf  ;;  %v3497_v18 = vsel %vm3394_vm2, %v10563_v43, -inf  ;;  %v3518_v29 = vsel %vm3394_vm2, %v10579_v1, -inf }
 0x354   :  { %v8031_v33 = vpop.f32.mrb[38].mxu1  ;;  %13775 = vst [vmem:[#allocation43_spill] sm:$0xff] %v10569_v58  ;;  %13777 = vst [vmem:[#allocation45_spill] sm:$0xff] %v10579_v1  ;;  %v3494_v62 = vsel %vm3394_vm2, %v10569_v58, -inf }
 0x355   :  { %3492 = vmax.xlane.f32.xlu1 %v3491_v42  ;;  %v1398_v2 = vpop.f32.mrb[39].mxu1 }
 0x356   :  { %3465 = vmax.xlane.f32.xlu0 %v3464_v25  ;;  %8184 = vmatmul.mubr.msk.f32.gmra.mrb[70].mxu0 %vm625_vm1, %v10343_v22  ;;  %v10594_v25 = vadd.f32 %v10473_v4, %v10198_v59 }
 0x357   :  { %v8039_v56 = vpop.f32.mrb[26].mxu0 }
 0x358   :  { %v1547_v11 = vpop.f32.mrb[27].mxu0  ;;  %13779 = vst [vmem:[#allocation47_spill] sm:$0xff] %v10594_v25  ;;  %v3500_v59 = vsel %vm3394_vm2, %v10594_v25, -inf }
 0x359   :  { %3516 = vmax.xlane.f32.xlu1 %v3515_v40  ;;  %v10574_v50 = vadd.f32 %v10186_v9, %v1547_v11  ;;  %v10590_v9 = vadd.f32 %v10203_v60, %v1388_v23  ;;  %v10604_v60 = vadd.f32 %v8039_v56, %v10213_v10 }
 0x35a   :  { %3489 = vmax.xlane.f32.xlu0 %v3488_v31 }
 0x35b   :  { %13776 = vst [vmem:[#allocation44_spill] sm:$0xff] %v10574_v50  ;;  %v3521_v42 = vsel %vm3394_vm2, %v10574_v50, -inf  ;;  %13778 = vst [vmem:[#allocation46_spill] sm:$0xff] %v10590_v9  ;;  %v3503_v11 = vsel %vm3394_vm2, %v10590_v9, -inf  ;;  %v3524_v10 = vsel %vm3394_vm2, %v10604_v60, -inf }
 0x35c   :  { %v10583_v22 = vpop.f32.mrb[40].mxu1  ;;  %13781 = vst [vmem:[#allocation49_spill] sm:$0xff] %v10604_v60 }
 0x35d   :  { %3498 = vmax.xlane.f32.xlu1 %v3497_v18  ;;  %v10585_v39 = vpop.f32.mrb[41].mxu1 }
 0x35e   :  { %3495 = vmax.xlane.f32.xlu0 %v3494_v62  ;;  %v10618_v62 = vadd.f32 %v8028_v20, %v10251_v6 }
 0x35f   :  { %v8042_v8 = vpop.f32.mrb[28].mxu0 }
 0x360   :  { %v1557_v40 = vpop.f32.mrb[29].mxu0  ;;  %13783 = vst [vmem:[#allocation51_spill] sm:$0xff] %v10618_v62  ;;  %v3506_v6 = vsel %vm3394_vm2, %v10618_v62, -inf }
 0x361   :  { %3522 = vmax.xlane.f32.xlu1 %v3521_v42  ;;  %v10599_v31 = vadd.f32 %v10220_v7, %v1557_v40  ;;  %v10615_v7 = vadd.f32 %v10256_v21, %v1398_v2 }
 0x362   :  { %3519 = vmax.xlane.f32.xlu0 %v3518_v29 }
 0x363   :  { %13780 = vst [vmem:[#allocation48_spill] sm:$0xff] %v10599_v31  ;;  %v3527_v18 = vsel %vm3394_vm2, %v10599_v31, -inf  ;;  %13782 = vst [vmem:[#allocation50_spill] sm:$0xff] %v10615_v7  ;;  %v3509_v40 = vsel %vm3394_vm2, %v10615_v7, -inf }
 0x364   :  { %v10608_v4 = vpop.f32.mrb[42].mxu1 }
 0x365   :  { %3504 = vmax.xlane.f32.xlu1 %v3503_v11  ;;  %v10610_v23 = vpop.f32.mrb[43].mxu1  ;;  %v10628_v11 = vadd.f32 %v8042_v8, %v10265_v17 }
 0x366   :  { %3501 = vmax.xlane.f32.xlu0 %v3500_v59 }
 0x367   :  { %v8045_v56 = vpop.f32.mrb[30].mxu0  ;;  %13785 = vst [vmem:[#allocation53_spill] sm:$0xff] %v10628_v11  ;;  %v3530_v59 = vsel %vm3394_vm2, %v10628_v11, -inf }
 0x368   :  { %v1567_v42 = vpop.f32.mrb[31].mxu0 }
 0x369   :  { %3528 = vmax.xlane.f32.xlu1 %v3527_v18  ;;  %v10623_v29 = vadd.f32 %v10272_v27, %v1567_v42  ;;  %v10639_v27 = vadd.f32 %v8031_v33, %v10304_v49  ;;  %v10648_v18 = vadd.f32 %v8045_v56, %v10329_v30 }
 0x36a   :  { %3525 = vmax.xlane.f32.xlu0 %v3524_v10 }
 0x36b   :  { %13784 = vst [vmem:[#allocation52_spill] sm:$0xff] %v10623_v29  ;;  %v3533_v2 = vsel %vm3394_vm2, %v10623_v29, -inf  ;;  %13786 = vst [vmem:[#allocation54_spill] sm:$0xff] %v10639_v27  ;;  %v3512_v10 = vsel %vm3394_vm2, %v10639_v27, -inf  ;;  %v3536_v49 = vsel %vm3394_vm2, %v10648_v18, -inf }
 0x36c   :  { %v10632_v21 = vpop.f32.mrb[44].mxu1  ;;  %13787 = vst [vmem:[#allocation55_spill] sm:$0xff] %v10648_v18 }
 0x36d   :  { %3510 = vmax.xlane.f32.xlu1 %v3509_v40  ;;  %v10634_v20 = vpop.f32.mrb[45].mxu1 }
 0x36e   :  { %3507 = vmax.xlane.f32.xlu0 %v3506_v6 }
 0x36f   :  { %v10643_v17 = vpop.f32.mrb[32].mxu0 }
 0x370   :  { %v10645_v8 = vpop.f32.mrb[33].mxu0 }
 0x371   :  { %3534 = vmax.xlane.f32.xlu1 %v3533_v2 }
 0x372   :  { %3531 = vmax.xlane.f32.xlu0 %v3530_v59 }
 0x374   :  { %v10652_v42 = vpop.f32.mrb[46].mxu1 }
 0x375   :  { %v10654_v40 = vpop.f32.mrb[47].mxu1 }
 0x376   :  { %3513 = vmax.xlane.f32.xlu0 %v3512_v10 }
 0x377   :  { %v10658_v33 = vpop.f32.mrb[34].mxu0 }
 0x378   :  { %v10660_v6 = vpop.f32.mrb[35].mxu0 }
 0x37a   :  { %3537 = vmax.xlane.f32.xlu0 %v3536_v49 }
 0x37c   :  { %v10662_v2 = vpop.f32.mrb[48].mxu1 }
 0x37d   :  { %v10664_v30 = vpop.f32.mrb[49].mxu1 }
 0x37f   :  { %v10666_v56 = vpop.f32.mrb[36].mxu0 }
 0x380   :  { %v10668_v59 = vpop.f32.mrb[37].mxu0 }
 0x384   :  { %v10670_v29 = vpop.f32.mrb[50].mxu1 }
 0x385   :  { %v10672_v7 = vpop.f32.mrb[51].mxu1 }
 0x387   :  { %v10674_v10 = vpop.f32.mrb[38].mxu0 }
 0x388   :  { %v10676_v18 = vpop.f32.mrb[39].mxu0 }
 0x38c   :  { %v10678_v27 = vpop.f32.mrb[52].mxu1 }
 0x38d   :  { %13788 = vst [vmem:[#allocation56_spill] sm:$0xff] %v10678_v27  ;;  %v3400_v31 = vpop.xlane.xlu1 %3399  ;;  %v10680_v49 = vpop.f32.mrb[53].mxu1 }
 0x38e   :  { %13789 = vst [vmem:[#allocation57_spill] sm:$0xff] %v10680_v49  ;;  %v3780_v9 = vsub.f32 %v10119_v14, %v3400_v31  ;;  %v3397_v50 = vpop.xlane.xlu0 %3396 }
 0x38f   :  { %v3779_v11 = vsub.f32 %v10122_v13, %v3397_v50  ;;  %v10684_v43 = vpop.f32.mrb[40].mxu0 }
 0x390   :  { %v3909_v62 = vmul.f32 1.442695, %v3780_v9  ;;  %v10686_v12 = vpop.f32.mrb[41].mxu0 }
 0x391   :  { %v3907_v60 = vmul.f32 1.442695, %v3779_v11 }
 0x392   :  { %8876 = vpow2.f32 %v3909_v62 }
 0x393   :  { %8878 = vpow2.f32 %v3907_v60 }
 0x394   :  { %v10688_v24 = vpop.f32.mrb[54].mxu1 }
 0x395   :  { %13790 = vst [vmem:[#allocation58_spill] sm:$0xff] %v10688_v24  ;;  %v10690_v25 = vpop.f32.mrb[55].mxu1 }
 0x396   :  { %13791 = vst [vmem:[#allocation59_spill] sm:$0xff] %v10690_v25 }
 0x397   :  { %v10692_v19 = vpop.f32.mrb[42].mxu0 }
 0x398   :  { %13792 = vst [vmem:[#allocation60_spill] sm:$0xff] %v10692_v19  ;;  %v10694_v27 = vpop.f32.mrb[43].mxu0 }
 0x39c   :  { %v10696_v14 = vpop.eup %8876  ;;  %v10698_v31 = vpop.f32.mrb[56].mxu1 }
 0x39d   :  { %13793 = vst [vmem:[#allocation61_spill] sm:$0xff] %v10696_v14  ;;  %13794 = vst [vmem:[#allocation62_spill] sm:$0xff] %v10698_v31  ;;  %v10700_v13 = vpop.eup %8878  ;;  %v4166_v50 = vsel %vm3394_vm2, %v10696_v14, 0.0  ;;  %v10704_v9 = vpop.f32.mrb[57].mxu1 }
 0x39e   :  { %13795 = vst [vmem:[#allocation63_spill] sm:$0xff] %v10700_v13  ;;  %13796 = vst [vmem:[#allocation64_spill] sm:$0xff] %v10704_v9  ;;  %4167 = vadd.xlane.f32.xlu0 %v4166_v50  ;;  %v4163_v60 = vsel %vm3394_vm2, %v10700_v13, 0.0  ;;  %v3403_v50 = vpop.xlane.xlu1 %3402 }
 0x39f   :  { %4164 = vadd.xlane.f32.xlu1 %v4163_v60  ;;  %v10708_v62 = vpop.f32.mrb[44].mxu0 }
 0x3a0   :  { %13797 = vst [vmem:[#allocation65_spill] sm:$0xff] %v10708_v62  ;;  %v10710_v11 = vpop.f32.mrb[45].mxu0 }
 0x3a1   :  { %13798 = vst [vmem:[#allocation66_spill] sm:$0xff] %v10710_v11 }
 0x3a4   :  { %v10712_v25 = vpop.f32.mrb[58].mxu1 }
 0x3a5   :  { %13799 = vst [vmem:[#allocation67_spill] sm:$0xff] %v10712_v25  ;;  %v10714_v24 = vpop.f32.mrb[59].mxu1 }
 0x3a6   :  { %13800 = vst [vmem:[#allocation68_spill] sm:$0xff] %v10714_v24 }
 0x3a7   :  { %v10716_v31 = vpop.f32.mrb[46].mxu0 }
 0x3a8   :  { %13801 = vst [vmem:[#allocation69_spill] sm:$0xff] %v10716_v31  ;;  %v10718_v1 = vpop.f32.mrb[47].mxu0  ;;  %v13807_v31 = vld [vmem:[#allocation18_spill] sm:$0xff] }
 0x3a9   :  { %13802 = vst [vmem:[#allocation70_spill] sm:$0xff] %v10718_v1  ;;  %v3781_v1 = vsub.f32 %v13807_v31, %v3403_v50 }
 0x3aa   :  { %v3421_v14 = vpop.xlane.xlu0 %3420 }
 0x3ab   :  { %v3787_v9 = vsub.f32 %v10179_v41, %v3421_v14  ;;  %v3911_v14 = vmul.f32 1.442695, %v3781_v1 }
 0x3ac   :  { %v10721_v53 = vpop.f32.mrb[60].mxu1 }
 0x3ad   :  { %13803 = vst [vmem:[#allocation71_spill] sm:$0xff] %v10721_v53  ;;  %v3923_v13 = vmul.f32 1.442695, %v3787_v9  ;;  %v10723_v60 = vpop.f32.mrb[61].mxu1  ;;  %v13809_v9 = vld [vmem:[#allocation19_spill] sm:$0xff] }
 0x3ae   :  { %13804 = vst [vmem:[#allocation72_spill] sm:$0xff] %v10723_v60  ;;  %v3424_v62 = vpop.xlane.xlu0 %3423  ;;  %v3427_v24 = vpop.xlane.xlu1 %3426 }
 0x3af   :  { %8880 = vpow2.f32 %v3923_v13  ;;  %v3788_v11 = vsub.f32 %v10189_v45, %v3424_v62  ;;  %v10726_v25 = vpop.f32.mrb[48].mxu0  ;;  %v3789_v53 = vsub.f32 %v13809_v9, %v3427_v24 }
 0x3b0   :  { %13805 = vst [vmem:[#allocation73_spill] sm:$0xff] %v10726_v25  ;;  %v10728_v49 = vpop.f32.mrb[49].mxu0 }
 0x3b1   :  { %13806 = vst [vmem:[#allocation74_spill] sm:$0xff] %v10728_v49  ;;  %v3925_v58 = vmul.f32 1.442695, %v3788_v11  ;;  %v13812_v49 = vld [vmem:[#allocation28_spill] sm:$0xff]  ;;  %v3927_v1 = vmul.f32 1.442695, %v3789_v53 }
 0x3b2   :  { %v3406_v15 = vpop.xlane.xlu0 %3405  ;;  %v3409_v13 = vpop.xlane.xlu1 %3408  ;;  %v10741_v19 = vadd.f32 %v13812_v49, %v10585_v39  ;;  %v13601_v11 = vmov 0.0|0.0   ;;  %v13816_v49 = vld [vmem:[#allocation30_spill] sm:$0xff] }
 0x3b3   :  { %8882 = vpow2.f32 %v3925_v58  ;;  %v3782_v45 = vsub.f32 %v13811_v34, %v3406_v15  ;;  %8506 = vmatprep.subr.bf16.mxu1 %v13601_v11  ;;  %8522 = vmatprep.subr.bf16.mxu0 %v13601_v11  ;;  %v13815_v34 = vld [vmem:[#allocation22_spill] sm:$0xff] }
 0x3b4   :  { %v10731_v41 = vpop.f32.mrb[62].mxu1  ;;  %13813 = vst [vmem:[#allocation20_spill] sm:$0xff] %v10741_v19  ;;  %8884 = vpow2.f32 %v3911_v14  ;;  %v3539_v53 = vsel %vm3394_vm2, %v10741_v19, -inf }
 0x3b5   :  { %13808 = vst [vmem:[#allocation18_spill] sm:$0xff] %v10731_v41  ;;  %v10734_v60 = vpop.f32.mrb[63].mxu1  ;;  %v3913_v24 = vmul.f32 1.442695, %v3782_v45  ;;  %8886 = vpow2.f32 %v3927_v1 }
 0x3b6   :  { %13810 = vst [vmem:[#allocation19_spill] sm:$0xff] %v10734_v60  ;;  %v3430_v62 = vpop.xlane.xlu0 %3429  ;;  %v3433_v39 = vpop.xlane.xlu1 %3432  ;;  %v10754_v60 = vadd.f32 %v13816_v49, %v10645_v8  ;;  %v13822_v49 = vld [vmem:[#allocation21_spill] sm:$0xff] }
 0x3b7   :  { %v10737_v25 = vpop.f32.mrb[50].mxu0  ;;  %v3790_v15 = vsub.f32 %v13815_v34, %v3430_v62  ;;  %8888 = vpow2.f32 %v3913_v24  ;;  %v13818_v62 = vld [vmem:[#allocation35_spill] sm:$0xff]  ;;  %v3783_v24 = vsub.f32 %v13822_v49, %v3409_v13 }
 0x3b8   :  { %v10743_v31 = vpop.f32.mrb[51].mxu0  ;;  %13817 = vst [vmem:[#allocation22_spill] sm:$0xff] %v10754_v60  ;;  %v10762_v34 = vadd.f32 %v10583_v22, %v13818_v62  ;;  %v3563_v8 = vsel %vm3394_vm2, %v10754_v60, -inf  ;;  %v13825_v60 = vld [vmem:[#allocation23_spill] sm:$0xff] }
 0x3b9   :  { %13814 = vst [vmem:[#allocation28_spill] sm:$0xff] %v10743_v31  ;;  %v10745_v58 = vpop.eup %8880  ;;  %v3929_v45 = vmul.f32 1.442695, %v3790_v15 }
 0x3ba   :  { %v3412_v50 = vpop.xlane.xlu0 %3411  ;;  %v4187_v9 = vsel %vm3394_vm2, %v10745_v58, 0.0  ;;  %13819 = vst [vmem:[#allocation30_spill] sm:$0xff] %v10762_v34  ;;  %v3415_v15 = vpop.xlane.xlu1 %3414  ;;  %v3542_v62 = vsel %vm3394_vm2, %v10762_v34, -inf  ;;  %v13829_v34 = vld [vmem:[#allocation26_spill] sm:$0xff] }
 0x3bb   :  { %4188 = vadd.xlane.f32.xlu1 %v4187_v9  ;;  %8890 = vpow2.f32 %v3929_v45 }
 0x3bd   :  { %v10758_v14 = vpop.eup %8882 }
 0x3be   :  { %v3436_v11 = vpop.xlane.xlu0 %3435  ;;  %v4190_v9 = vsel %vm3394_vm2, %v10758_v14, 0.0  ;;  %v10775_v22 = vpop.eup %8884 }
 0x3bf   :  { %3540 = vmax.xlane.f32.xlu1 %v3539_v53  ;;  %v10766_v41 = vpop.f32.mrb[52].mxu0  ;;  %4191 = vadd.xlane.f32.xlu0 %v4190_v9  ;;  %13823 = vst [vmem:[#allocation21_spill] sm:$0xff] %v10775_v22  ;;  %v10779_v53 = vadd.f32 %v10643_v17, %v10384_v0  ;;  %v3915_v9 = vmul.f32 1.442695, %v3783_v24  ;;  %v4169_v45 = vsel %vm3394_vm2, %v10775_v22, 0.0  ;;  %v10787_v49 = vpop.eup %8886 }
 0x3c0   :  { %13820 = vst [vmem:[#allocation35_spill] sm:$0xff] %v10766_v41  ;;  %v10770_v1 = vpop.f32.mrb[53].mxu0  ;;  %v13826_v41 = vld [vmem:[#allocation24_spill] sm:$0xff]  ;;  %v3439_v24 = vpop.xlane.xlu1 %3438 }
 0x3c1   :  { %13821 = vst [vmem:[#allocation75_spill] sm:$0xff] %v10770_v1  ;;  %13824 = vst [vmem:[#allocation76_spill] sm:$0xff] %v10779_v53  ;;  %v3791_v1 = vsub.f32 %v13825_v60, %v3433_v39  ;;  %v3784_v13 = vsub.f32 %v13826_v41, %v3412_v50  ;;  %v3566_v0 = vsel %vm3394_vm2, %v10779_v53, -inf  ;;  %v13828_v60 = vld [vmem:[#allocation34_spill] sm:$0xff]  ;;  %8892 = vpow2.f32 %v3915_v9 }
 0x3c2   :  { %v10773_v19 = vpop.xlane.xlu0 %3417  ;;  %v10799_v41 = vadd.f32 %v13828_v60, %v10610_v23  ;;  %v4193_v53 = vsel %vm3394_vm2, %v10787_v49, 0.0  ;;  %v10812_v23 = vadd.f32 %v10379_v55, %v10660_v6  ;;  %v13831_v6 = vld [vmem:[#allocation25_spill] sm:$0xff]  ;;  %v10831_v60 = vadd.f32 %v10658_v33, %v10443_v54 }
 0x3c3   :  { %3564 = vmax.xlane.f32.xlu1 %v3563_v8  ;;  %3543 = vmax.xlane.f32.xlu0 %v3542_v62  ;;  %v10795_v8 = vpop.eup %8888  ;;  %v3931_v39 = vmul.f32 1.442695, %v3791_v1  ;;  %v3917_v62 = vmul.f32 1.442695, %v3784_v13 }
 0x3c4   :  { %13830 = vst [vmem:[#allocation24_spill] sm:$0xff] %v10812_v23  ;;  %v3545_v1 = vsel %vm3394_vm2, %v10799_v41, -inf  ;;  %v3569_v55 = vsel %vm3394_vm2, %v10812_v23, -inf  ;;  %v3572_v54 = vsel %vm3394_vm2, %v10831_v60, -inf }
 0x3c5   :  { %v10808_v22 = vpop.eup %8890  ;;  %8894 = vpow2.f32 %v3931_v39 }
 0x3c6   :  { %8896 = vpow2.f32 %v3917_v62  ;;  %v4196_v13 = vsel %vm3394_vm2, %v10808_v22, 0.0 }
 0x3c7   :  { %v10789_v31 = vpop.xlane.xlu0 %3441  ;;  %4170 = vadd.xlane.f32.xlu1 %v4169_v45  ;;  %v10793_v17 = vpop.f32.mrb[54].mxu0  ;;  %3567 = vmax.xlane.f32.xlu0 %v3566_v0  ;;  %v3792_v45 = vsub.f32 %v13829_v34, %v3436_v11  ;;  %v3785_v0 = vsub.f32 %v13831_v6, %v3415_v15  ;;  %v13833_v15 = vld [vmem:[#allocation31_spill] sm:$0xff] }
 0x3c8   :  { %13827 = vst [vmem:[#allocation23_spill] sm:$0xff] %v10793_v17  ;;  %v10801_v50 = vpop.f32.mrb[55].mxu0  ;;  %v4172_v17 = vsel %vm3394_vm2, %v10795_v8, 0.0  ;;  %v3445_v34 = vpop.xlane.xlu1 %3444 }
 0x3c9   :  { %v3933_v11 = vmul.f32 1.442695, %v3792_v45  ;;  %v3919_v62 = vmul.f32 1.442695, %v3785_v0  ;;  %v13832_v45 = vld [vmem:[#allocation27_spill] sm:$0xff] }
 0x3cb   :  { %4194 = vadd.xlane.f32.xlu1 %v4193_v53  ;;  %4173 = vadd.xlane.f32.xlu0 %v4172_v17  ;;  %v10816_v9 = vpop.xlane.xlu0 %3447  ;;  %v10820_v53 = vadd.f32 %v10608_v4, %v10412_v63  ;;  %8898 = vpow2.f32 %v3933_v11  ;;  %v10827_v17 = vpop.eup %8892  ;;  %v3786_v11 = vsub.f32 %v13833_v15, %v10773_v19 }
 0x3cc   :  { %v3469_v4 = vpop.xlane.xlu1 %3468  ;;  %8900 = vpow2.f32 %v3919_v62 }
 0x3cd   :  { %v3548_v63 = vsel %vm3394_vm2, %v10820_v53, -inf  ;;  %v3921_v19 = vmul.f32 1.442695, %v3786_v11 }
 0x3cf   :  { %3546 = vmax.xlane.f32.xlu1 %v3545_v1  ;;  %4197 = vadd.xlane.f32.xlu0 %v4196_v13  ;;  %v10833_v39 = vpop.xlane.xlu0 %3471  ;;  %v3793_v1 = vsub.f32 %v13832_v45, %v3439_v24  ;;  %v4175_v13 = vsel %vm3394_vm2, %v10827_v17, 0.0  ;;  %v10842_v6 = vpop.eup %8894 }
 0x3d0   :  { %v10846_v33 = vpop.eup %8896  ;;  %v10856_v15 = vpop.xlane.xlu1 %3450 }
 0x3d1   :  { %v3935_v24 = vmul.f32 1.442695, %v3793_v1  ;;  %v10874_v1 = vadd.f32 %v10632_v21, %v10471_v48 }
 0x3d3   :  { %3570 = vmax.xlane.f32.xlu1 %v3569_v55  ;;  %3549 = vmax.xlane.f32.xlu0 %v3548_v63  ;;  %v10850_v55 = vadd.f32 %v10403_v61, %v10634_v20  ;;  %v10852_v0 = vpop.xlane.xlu0 %3453  ;;  %v13834_v63 = vld [vmem:[#allocation33_spill] sm:$0xff]  ;;  %v10866_v61 = vadd.f32 %v10434_v44, %v10668_v59  ;;  %8902 = vpow2.f32 %v3935_v24  ;;  %v3554_v48 = vsel %vm3394_vm2, %v10874_v1, -inf }
 0x3d4   :  { %v3794_v45 = vsub.f32 %v13834_v63, %v10789_v31  ;;  %8904 = vpow2.f32 %v3921_v19  ;;  %v10878_v63 = vpop.xlane.xlu1 %3474  ;;  %v13836_v59 = vld [vmem:[#allocation29_spill] sm:$0xff] }
 0x3d5   :  { %v10862_v23 = vpop.eup %8898  ;;  %13835 = vst [vmem:[#allocation34_spill] sm:$0xff] %v10866_v61  ;;  %v3551_v20 = vsel %vm3394_vm2, %v10850_v55, -inf  ;;  %v3575_v44 = vsel %vm3394_vm2, %v10866_v61, -inf  ;;  %v3795_v24 = vsub.f32 %v13836_v59, %v3445_v34  ;;  %v3796_v34 = vsub.f32 %v10372_v35, %v10816_v9  ;;  %v13891_v61 = vld [vmem:[#allocation66_spill] sm:$0xff] }
 0x3d6   :  { %v3937_v31 = vmul.f32 1.442695, %v3794_v45  ;;  %v4202_v11 = vsel %vm3394_vm2, %v10862_v23, 0.0  ;;  %v10883_v19 = vpop.eup %8900  ;;  %v10887_v45 = vadd.f32 %v10666_v56, %v10503_v37  ;;  %v3804_v59 = vsub.f32 %v10396_v38, %v10833_v39 }
 0x3d7   :  { %4176 = vadd.xlane.f32.xlu1 %v4175_v13  ;;  %3573 = vmax.xlane.f32.xlu0 %v3572_v54  ;;  %v4199_v13 = vsel %vm3394_vm2, %v10842_v6, 0.0  ;;  %v4178_v54 = vsel %vm3394_vm2, %v10846_v33, 0.0  ;;  %v10870_v62 = vpop.xlane.xlu0 %3477  ;;  %v3939_v21 = vmul.f32 1.442695, %v3795_v24  ;;  %v3941_v9 = vmul.f32 1.442695, %v3796_v34 }
 0x3d8   :  { %8906 = vpow2.f32 %v3937_v31  ;;  %v10896_v31 = vpop.xlane.xlu1 %3456  ;;  %v3578_v56 = vsel %vm3394_vm2, %v10887_v45, -inf  ;;  %v10924_v38 = vadd.f32 %v10496_v52, %v10676_v18  ;;  %v3797_v52 = vsub.f32 %v10366_v57, %v10856_v15 }
 0x3d9   :  { %8908 = vpow2.f32 %v3939_v21  ;;  %v3957_v21 = vmul.f32 1.442695, %v3804_v59  ;;  %v3805_v57 = vsub.f32 %v10389_v32, %v10878_v63  ;;  %v3798_v15 = vsub.f32 %v10427_v46, %v10852_v0  ;;  %v10971_v0 = vld [vmem:[%s13548_s1] sm:$0xff] }
 0x3da   :  { %13839 = vst [vmem:[#allocation25_spill] sm:$0xff] %v10924_v38  ;;  %v3943_v59 = vmul.f32 1.442695, %v3797_v52  ;;  %v3806_v46 = vsub.f32 %v10457_v47, %v10870_v62  ;;  %v10986_v47 = vld [vmem:[%s13548_s1 + $0x40] sm:$0xff] }
 0x3db   :  { %4200 = vadd.xlane.f32.xlu1 %v4199_v13  ;;  %4179 = vadd.xlane.f32.xlu0 %v4178_v54  ;;  %v13837_v13 = vld [vmem:[#allocation32_spill] sm:$0xff]  ;;  %v3959_v32 = vmul.f32 1.442695, %v3805_v57  ;;  %v3945_v63 = vmul.f32 1.442695, %v3798_v15  ;;  %v10990_v62 = vadd.f32 %v10986_v47, %v10686_v12  ;;  %v11001_v15 = vld [vmem:[%s13548_s1 + $0x8] sm:$0xff] }
 0x3dc   :  { %v3803_v54 = vsub.f32 %v13837_v13, %v3469_v4  ;;  %v10908_v4 = vadd.f32 %v10464_v5, %v10654_v40  ;;  %v10920_v40 = vpop.xlane.xlu1 %3480 }
 0x3dd   :  { %v10900_v37 = vpop.eup %8902  ;;  %13845 = vst [vmem:[#allocation77_spill] sm:$0xff] %v10990_v62 }
 0x3de   :  { %13838 = vst [vmem:[#allocation26_spill] sm:$0xff] %v10908_v4  ;;  %v3955_v35 = vmul.f32 1.442695, %v3803_v54  ;;  %v4205_v24 = vsel %vm3394_vm2, %v10900_v37, 0.0  ;;  %v3557_v39 = vsel %vm3394_vm2, %v10908_v4, -inf  ;;  %v10930_v54 = vadd.f32 %v10652_v42, %v10524_v16 }
 0x3df   :  { %3552 = vmax.xlane.f32.xlu1 %v3551_v20  ;;  %4203 = vadd.xlane.f32.xlu0 %v4202_v11  ;;  %v10892_v20 = vpop.xlane.xlu0 %3459  ;;  %v4181_v11 = vsel %vm3394_vm2, %v10883_v19, 0.0  ;;  %v10946_v16 = vadd.f32 %v10674_v10, %v10544_v28 }
 0x3e0   :  { %8910 = vpow2.f32 %v3955_v35  ;;  %v10940_v35 = vpop.xlane.xlu1 %3462  ;;  %v3560_v42 = vsel %vm3394_vm2, %v10930_v54, -inf }
 0x3e1   :  { %8912 = vpow2.f32 %v3941_v9  ;;  %v3584_v28 = vsel %vm3394_vm2, %v10946_v16, -inf }
 0x3e2   :  { %8914 = vpow2.f32 %v3957_v21  ;;  %v10975_v21 = vadd.f32 %v10971_v0, %v10664_v30 }
 0x3e3   :  { %3576 = vmax.xlane.f32.xlu1 %v3575_v44  ;;  %3555 = vmax.xlane.f32.xlu0 %v3554_v48  ;;  %v10904_v44 = vpop.eup %8904  ;;  %v9527_v48 = vmov 6   ;;  %v10914_v13 = vpop.xlane.xlu0 %3483  ;;  %8916 = vpow2.f32 %v3943_v59 }
 0x3e4   :  { %8835 = vset.pattern.permute.xlu0 %v9527_v48  ;;  %8834 = vset.pattern.permute.xlu1 %v9527_v48  ;;  %v10918_v5 = vpop.eup %8906  ;;  %13843 = vst [vmem:[#allocation29_spill] sm:$0xff] %v10975_v21  ;;  %8918 = vpow2.f32 %v3959_v32  ;;  %v3587_v57 = vsel %vm3394_vm2, %v10975_v21, -inf  ;;  %v3611_v32 = vsel %vm3394_vm2, %v10990_v62, -inf  ;;  %v3807_v21 = vsub.f32 %v10450_v3, %v10920_v40 }
 0x3e5   :  { %v4208_v34 = vsel %vm3394_vm2, %v10918_v5, 0.0  ;;  %v10942_v9 = vpop.eup %8908  ;;  %8920 = vpow2.f32 %v3945_v63 }
 0x3e6   :  { %13840 = vst [vmem:[#allocation27_spill] sm:$0xff] %v10942_v9  ;;  %v3963_v3 = vmul.f32 1.442695, %v3807_v21 }
 0x3e7   :  { %4182 = vadd.xlane.f32.xlu1 %v4181_v11  ;;  %3579 = vmax.xlane.f32.xlu0 %v3578_v56  ;;  %v4184_v11 = vsel %vm3394_vm2, %v10904_v44, 0.0  ;;  %v3581_v56 = vsel %vm3394_vm2, %v10924_v38, -inf  ;;  %v10938_v18 = vpop.xlane.xlu0 %3465 }
 0x3ea   :  { %v10956_v48 = vpop.eup %8910 }
 0x3eb   :  { %4206 = vadd.xlane.f32.xlu1 %v4205_v24  ;;  %4185 = vadd.xlane.f32.xlu0 %v4184_v11  ;;  %v4211_v24 = vsel %vm3394_vm2, %v10942_v9, 0.0  ;;  %13841 = vst [vmem:[#allocation31_spill] sm:$0xff] %v10956_v48  ;;  %v10958_v11 = vpop.xlane.xlu0 %3489  ;;  %v10962_v10 = vpop.eup %8912  ;;  %v3800_v9 = vsub.f32 %v10489_v51, %v10892_v20  ;;  %v3808_v20 = vsub.f32 %v10515_v36, %v10914_v13 }
 0x3ec   :  { %13842 = vst [vmem:[#allocation33_spill] sm:$0xff] %v10962_v10  ;;  %v10981_v52 = vpop.eup %8914 }
 0x3ed   :  { %13844 = vst [vmem:[#allocation32_spill] sm:$0xff] %v10981_v52  ;;  %v4238_v12 = vsel %vm3394_vm2, %v10981_v52, 0.0  ;;  %v3949_v51 = vmul.f32 1.442695, %v3800_v9 }
 0x3ef   :  { %3558 = vmax.xlane.f32.xlu1 %v3557_v39  ;;  %4209 = vadd.xlane.f32.xlu0 %v4208_v34  ;;  %v10964_v39 = vpop.xlane.xlu1 %3486  ;;  %v4235_v34 = vsel %vm3394_vm2, %v10956_v48, 0.0  ;;  %v10992_v30 = vpop.xlane.xlu0 %3495 }
 0x3f3   :  { %3582 = vmax.xlane.f32.xlu1 %v3581_v56  ;;  %3561 = vmax.xlane.f32.xlu0 %v3560_v42  ;;  %v4214_v56 = vsel %vm3394_vm2, %v10962_v10, 0.0  ;;  %v3961_v42 = vmul.f32 1.442695, %v3806_v46  ;;  %v10994_v59 = vpop.xlane.xlu1 %3492  ;;  %v3799_v46 = vsub.f32 %v10421_v26, %v10896_v31 }
 0x3f5   :  { %8922 = vpow2.f32 %v3961_v42  ;;  %v3947_v42 = vmul.f32 1.442695, %v3799_v46 }
 0x3f7   :  { %4212 = vadd.xlane.f32.xlu1 %v4211_v24  ;;  %3585 = vmax.xlane.f32.xlu0 %v3584_v28  ;;  %v11005_v24 = vadd.f32 %v11001_v15, %v10662_v2  ;;  %v11019_v2 = vpop.xlane.xlu0 %3519  ;;  %v11034_v26 = vpop.xlane.xlu1 %3516  ;;  %8924 = vpow2.f32 %v3947_v42 }
 0x3f8   :  { %8926 = vpow2.f32 %v3963_v3  ;;  %v11099_v3 = vld [vmem:[%s13548_s1 + $0x18] sm:$0xff] }
 0x3f9   :  { %13846 = vst [vmem:[#allocation78_spill] sm:$0xff] %v11005_v24  ;;  %8928 = vpow2.f32 %v3949_v51  ;;  %v11103_v51 = vadd.f32 %v11099_v3, %v10670_v29 }
 0x3fb   :  { %4236 = vadd.xlane.f32.xlu1 %v4235_v34  ;;  %4215 = vadd.xlane.f32.xlu0 %v4214_v56  ;;  %v11017_v34 = vpop.eup %8916  ;;  %v11024_v56 = vld [vmem:[%s13548_s1 + $0x48] sm:$0xff]  ;;  %v11054_v40 = vpop.xlane.xlu0 %3501  ;;  %13861 = vst [vmem:[#allocation93_spill] sm:$0xff] %v11103_v51 }
 0x3fc   :  { %13847 = vst [vmem:[#allocation79_spill] sm:$0xff] %v11017_v34 }
 0x3ff   :  { %3588 = vmax.xlane.f32.xlu1 %v3587_v57  ;;  %v11009_v28 = vpop.f32.mrb[64].mxu1  ;;  %4239 = vadd.xlane.f32.xlu0 %v4238_v12  ;;  %v11028_v57 = vadd.f32 %v11024_v56, %v10684_v43  ;;  %v3590_v12 = vsel %vm3394_vm2, %v11005_v24, -inf  ;;  %v4217_v43 = vsel %vm3394_vm2, %v11017_v34, 0.0  ;;  %v11058_v34 = vpop.xlane.xlu1 %3498 }
 0x400   :  { %v11013_v63 = vpop.f32.mrb[65].mxu1 }
 0x401   :  { %13848 = vst [vmem:[#allocation80_spill] sm:$0xff] %v11028_v57  ;;  %v3614_v24 = vsel %vm3394_vm2, %v11028_v57, -inf }
 0x403   :  { %3612 = vmax.xlane.f32.xlu1 %v3611_v32  ;;  %v11032_v62 = vpop.f32.mrb[66].mxu1  ;;  %3591 = vmax.xlane.f32.xlu0 %v3590_v12  ;;  %v11044_v32 = vpop.eup %8918 }
 0x404   :  { %v11036_v31 = vpop.f32.mrb[67].mxu1  ;;  %13850 = vst [vmem:[#allocation82_spill] sm:$0xff] %v11044_v32  ;;  %v11050_v12 = vpop.eup %8920  ;;  %v4241_v21 = vsel %vm3394_vm2, %v11044_v32, 0.0  ;;  %v11084_v32 = vld [vmem:[%s13548_s1 + $0x50] sm:$0xff] }
 0x405   :  { %13849 = vst [vmem:[#allocation81_spill] sm:$0xff] %v11036_v31  ;;  %13852 = vst [vmem:[#allocation84_spill] sm:$0xff] %v11050_v12  ;;  %v4220_v9 = vsel %vm3394_vm2, %v11050_v12, 0.0  ;;  %v11075_v36 = vpop.eup %8922 }
 0x406   :  { %13857 = vst [vmem:[#allocation89_spill] sm:$0xff] %v11075_v36  ;;  %13859 = vst [vmem:[#allocation91_spill] sm:$0xff] %v11084_v32  ;;  %v11119_v29 = vpop.eup %8924 }
 0x407   :  { %4218 = vadd.xlane.f32.xlu1 %v4217_v43  ;;  %v11048_v10 = vpop.f32.mrb[68].mxu1  ;;  %3615 = vmax.xlane.f32.xlu0 %v3614_v24  ;;  %v11063_v43 = vld [vmem:[%s13548_s1 + $0x10] sm:$0xff]  ;;  %13865 = vst [vmem:[#allocation97_spill] sm:$0xff] %v11119_v29 }
 0x408   :  { %13851 = vst [vmem:[#allocation83_spill] sm:$0xff] %v11048_v10  ;;  %v11052_v46 = vpop.f32.mrb[69].mxu1  ;;  %13854 = vst [vmem:[#allocation86_spill] sm:$0xff] %v11063_v43  ;;  %v11067_v24 = vadd.f32 %v11063_v43, %v10672_v7  ;;  %v3965_v7 = vmul.f32 1.442695, %v3808_v20  ;;  %v13889_v10 = vld [vmem:[#allocation45_spill] sm:$0xff] }
 0x409   :  { %13853 = vst [vmem:[#allocation85_spill] sm:$0xff] %v11052_v46 }
 0x40a   :  { %13855 = vst [vmem:[#allocation87_spill] sm:$0xff] %v11067_v24  ;;  %8930 = vpow2.f32 %v3965_v7  ;;  %v3596_v7 = vsel %vm3394_vm2, %v11103_v51, -inf  ;;  %v11148_v51 = vpop.eup %8926 }
 0x40b   :  { %4242 = vadd.xlane.f32.xlu1 %v4241_v21  ;;  %v11073_v42 = vpop.f32.mrb[70].mxu1  ;;  %4221 = vadd.xlane.f32.xlu0 %v4220_v9  ;;  %v11088_v21 = vadd.f32 %v11084_v32, %v10694_v27  ;;  %v4244_v27 = vsel %vm3394_vm2, %v11075_v36, 0.0  ;;  %v13870_v36 = vld [vmem:[#allocation36_spill] sm:$0xff]  ;;  %13873 = vst [vmem:[#allocation101_spill] sm:$0xff] %v11148_v51 }
 0x40c   :  { %13856 = vst [vmem:[#allocation88_spill] sm:$0xff] %v11073_v42  ;;  %v11077_v13 = vpop.f32.mrb[71].mxu1  ;;  %v3593_v42 = vsel %vm3394_vm2, %v11067_v24, -inf  ;;  %v11109_v24 = vpop.xlane.xlu1 %3522  ;;  %v3801_v38 = vsub.f32 %v13870_v36, %v10940_v35 }
 0x40d   :  { %13858 = vst [vmem:[#allocation90_spill] sm:$0xff] %v11077_v13  ;;  %v11079_v57 = vpop.f32.mrb[56].mxu0  ;;  %13860 = vst [vmem:[#allocation92_spill] sm:$0xff] %v11088_v21  ;;  %v11094_v13 = vpop.xlane.xlu0 %3525  ;;  %v3617_v52 = vsel %vm3394_vm2, %v11088_v21, -inf }
 0x40e   :  { %v11092_v9 = vpop.f32.mrb[57].mxu0  ;;  %v11154_v35 = vpop.eup %8928 }
 0x40f   :  { %3594 = vmax.xlane.f32.xlu1 %v3593_v42  ;;  %v11107_v20 = vpop.f32.mrb[72].mxu1  ;;  %4245 = vadd.xlane.f32.xlu0 %v4244_v27  ;;  %v11124_v42 = vld [vmem:[%s13548_s1 + $0x58] sm:$0xff]  ;;  %13875 = vst [vmem:[#allocation103_spill] sm:$0xff] %v11154_v35 }
 0x410   :  { %13862 = vst [vmem:[#allocation94_spill] sm:$0xff] %v11107_v20  ;;  %v11111_v12 = vpop.f32.mrb[73].mxu1  ;;  %v13866_v20 = vld [vmem:[#allocation60_spill] sm:$0xff] }
 0x411   :  { %13863 = vst [vmem:[#allocation95_spill] sm:$0xff] %v11111_v12  ;;  %v11113_v48 = vpop.f32.mrb[58].mxu0  ;;  %v11128_v27 = vadd.f32 %v11124_v42, %v13866_v20  ;;  %v11138_v4 = vpop.xlane.xlu0 %3507 }
 0x412   :  { %v11117_v46 = vpop.f32.mrb[59].mxu0 }
 0x413   :  { %13864 = vst [vmem:[#allocation96_spill] sm:$0xff] %v11117_v46  ;;  %13867 = vst [vmem:[#allocation60_spill] sm:$0xff] %v11128_v27  ;;  %3618 = vmax.xlane.f32.xlu1 %v3617_v52  ;;  %v11132_v12 = vpop.f32.mrb[74].mxu1  ;;  %3597 = vmax.xlane.f32.xlu0 %v3596_v7  ;;  %v11142_v46 = vpop.xlane.xlu1 %3504  ;;  %v4223_v52 = vsel %vm3394_vm2, %v11119_v29, 0.0  ;;  %v3620_v7 = vsel %vm3394_vm2, %v11128_v27, -inf }
 0x414   :  { %13868 = vst [vmem:[#allocation98_spill] sm:$0xff] %v11132_v12  ;;  %v11134_v21 = vpop.f32.mrb[75].mxu1  ;;  %v3951_v12 = vmul.f32 1.442695, %v3801_v38  ;;  %v4247_v38 = vsel %vm3394_vm2, %v11148_v51, 0.0 }
 0x415   :  { %13869 = vst [vmem:[#allocation99_spill] sm:$0xff] %v11134_v21  ;;  %v11140_v32 = vpop.f32.mrb[60].mxu0 }
 0x416   :  { %13871 = vst [vmem:[#allocation36_spill] sm:$0xff] %v11140_v32  ;;  %v11146_v20 = vpop.f32.mrb[61].mxu0  ;;  %v13877_v32 = vld [vmem:[#allocation39_spill] sm:$0xff]  ;;  %8932 = vpow2.f32 %v3951_v12 }
 0x417   :  { %13872 = vst [vmem:[#allocation100_spill] sm:$0xff] %v11146_v20  ;;  %4224 = vadd.xlane.f32.xlu1 %v4223_v52  ;;  %v11152_v21 = vpop.f32.mrb[76].mxu1  ;;  %3621 = vmax.xlane.f32.xlu0 %v3620_v7  ;;  %v3802_v43 = vsub.f32 %v13877_v32, %v10938_v18  ;;  %v13879_v20 = vld [vmem:[#allocation43_spill] sm:$0xff]  ;;  %v11167_v52 = vld [vmem:[%s13548_s1 + $0x20] sm:$0xff]  ;;  %v11177_v18 = vpop.xlane.xlu0 %3531 }
 0x418   :  { %13874 = vst [vmem:[#allocation102_spill] sm:$0xff] %v11152_v21  ;;  %v11156_v36 = vpop.f32.mrb[77].mxu1  ;;  %v3812_v31 = vsub.f32 %v13879_v20, %v10992_v30  ;;  %13880 = vst [vmem:[#allocation43_spill] sm:$0xff] %v11167_v52  ;;  %v13881_v21 = vld [vmem:[#allocation57_spill] sm:$0xff]  ;;  %v4226_v30 = vsel %vm3394_vm2, %v11154_v35, 0.0  ;;  %v11183_v20 = vpop.eup %8930  ;;  %v3820_v35 = vsub.f32 %v13889_v10, %v11019_v2  ;;  %v13894_v10 = vld [vmem:[#allocation56_spill] sm:$0xff] }
 0x419   :  { %13876 = vst [vmem:[#allocation104_spill] sm:$0xff] %v11156_v36  ;;  %v11160_v29 = vpop.f32.mrb[62].mxu0  ;;  %v11171_v27 = vadd.f32 %v11167_v52, %v13881_v21  ;;  %13885 = vst [vmem:[#allocation107_spill] sm:$0xff] %v11183_v20  ;;  %v11185_v36 = vpop.xlane.xlu1 %3528 }
 0x41a   :  { %13878 = vst [vmem:[#allocation39_spill] sm:$0xff] %v11160_v29  ;;  %v11175_v7 = vpop.f32.mrb[63].mxu0  ;;  %v13887_v29 = vld [vmem:[#allocation37_spill] sm:$0xff] }
 0x41b   :  { %13882 = vst [vmem:[#allocation57_spill] sm:$0xff] %v11171_v27  ;;  %13883 = vst [vmem:[#allocation105_spill] sm:$0xff] %v11175_v7  ;;  %4248 = vadd.xlane.f32.xlu1 %v4247_v38  ;;  %v11181_v32 = vpop.f32.mrb[78].mxu1  ;;  %4227 = vadd.xlane.f32.xlu0 %v4226_v30  ;;  %v3809_v51 = vsub.f32 %v13887_v29, %v10964_v39  ;;  %v3953_v7 = vmul.f32 1.442695, %v3802_v43  ;;  %v3599_v12 = vsel %vm3394_vm2, %v11171_v27, -inf  ;;  %v11221_v27 = vpop.xlane.xlu0 %3513 }
 0x41c   :  { %13884 = vst [vmem:[#allocation106_spill] sm:$0xff] %v11181_v32  ;;  %v11187_v21 = vpop.f32.mrb[79].mxu1  ;;  %v3973_v38 = vmul.f32 1.442695, %v3812_v31  ;;  %v11198_v32 = vld [vmem:[%s13548_s1 + $0x60] sm:$0xff]  ;;  %v11211_v31 = vld [vmem:[%s13548_s1 + $0x28] sm:$0xff] }
 0x41d   :  { %13886 = vst [vmem:[#allocation108_spill] sm:$0xff] %v11187_v21  ;;  %v11191_v52 = vpop.f32.mrb[64].mxu0  ;;  %13890 = vst [vmem:[#allocation45_spill] sm:$0xff] %v11198_v32  ;;  %v11202_v30 = vadd.f32 %v11198_v32, %v13891_v61  ;;  %v11215_v2 = vadd.f32 %v11211_v31, %v13894_v10  ;;  %v4250_v43 = vsel %vm3394_vm2, %v11183_v20, 0.0  ;;  %v3967_v61 = vmul.f32 1.442695, %v3809_v51  ;;  %v11225_v32 = vpop.xlane.xlu1 %3510 }
 0x41e   :  { %13888 = vst [vmem:[#allocation37_spill] sm:$0xff] %v11191_v52  ;;  %v11206_v39 = vpop.f32.mrb[65].mxu0  ;;  %8934 = vpow2.f32 %v3953_v7  ;;  %v13896_v29 = vld [vmem:[#allocation41_spill] sm:$0xff]  ;;  %v3989_v52 = vmul.f32 1.442695, %v3820_v35 }
 0x41f   :  { %13892 = vst [vmem:[#allocation66_spill] sm:$0xff] %v11202_v30  ;;  %13893 = vst [vmem:[#allocation109_spill] sm:$0xff] %v11206_v39  ;;  %3600 = vmax.xlane.f32.xlu1 %v3599_v12  ;;  %4251 = vadd.xlane.f32.xlu0 %v4250_v43  ;;  %v3810_v21 = vsub.f32 %v13896_v29, %v10958_v11  ;;  %8936 = vpow2.f32 %v3973_v38  ;;  %v11230_v12 = vld [vmem:[%s13548_s1 + $0x68] sm:$0xff]  ;;  %v13899_v10 = vld [vmem:[#allocation65_spill] sm:$0xff]  ;;  %v3623_v11 = vsel %vm3394_vm2, %v11202_v30, -inf  ;;  %v3602_v29 = vsel %vm3394_vm2, %v11215_v2, -inf }
 0x420   :  { %13895 = vst [vmem:[#allocation56_spill] sm:$0xff] %v11215_v2  ;;  %13898 = vst [vmem:[#allocation110_spill] sm:$0xff] %v11230_v12  ;;  %v11234_v51 = vadd.f32 %v11230_v12, %v13899_v10  ;;  %v9468_v35 = vld [vmem:[%s13548_s1 + $0x38] sm:$0xff]  ;;  %v13902_v38 = vld [vmem:[#allocation58_spill] sm:$0xff]  ;;  %8938 = vpow2.f32 %v3967_v61  ;;  %v11254_v20 = vpop.eup %8932  ;;  %v11256_v12 = vpop.xlane.xlu0 %3537 }
 0x421   :  { %v11223_v39 = vpop.f32.mrb[66].mxu0  ;;  %v11244_v43 = vadd.f32 %v9468_v35, %v13902_v38  ;;  %v3969_v10 = vmul.f32 1.442695, %v3810_v21  ;;  %8940 = vpow2.f32 %v3989_v52  ;;  %13906 = vst [vmem:[#allocation114_spill] sm:$0xff] %v11254_v20  ;;  %v13907_v35 = vld [vmem:[#allocation69_spill] sm:$0xff]  ;;  %v11266_v21 = vpop.xlane.xlu1 %3534 }
 0x422   :  { %13897 = vst [vmem:[#allocation41_spill] sm:$0xff] %v11223_v39  ;;  %13900 = vst [vmem:[#allocation65_spill] sm:$0xff] %v11234_v51  ;;  %v11238_v7 = vpop.f32.mrb[67].mxu0 }
 0x423   :  { %13901 = vst [vmem:[#allocation111_spill] sm:$0xff] %v11238_v7  ;;  %13903 = vst [vmem:[#allocation58_spill] sm:$0xff] %v11244_v43  ;;  %3624 = vmax.xlane.f32.xlu1 %v3623_v11  ;;  %3603 = vmax.xlane.f32.xlu0 %v3602_v29  ;;  %v3626_v7 = vsel %vm3394_vm2, %v11234_v51, -inf  ;;  %v9469_v11 = vld [vmem:[%s13548_s1 + $0x78] sm:$0xff]  ;;  %v3608_v52 = vsel %vm3394_vm2, %v11244_v43, -inf  ;;  %8942 = vpow2.f32 %v3969_v10  ;;  %v13910_v29 = vld [vmem:[#allocation47_spill] sm:$0xff] }
 0x424   :  { %v11262_v38 = vadd.f32 %v9469_v11, %v13907_v35 }
 0x425   :  { %v11248_v39 = vpop.f32.mrb[68].mxu0 }
 0x426   :  { %13904 = vst [vmem:[#allocation112_spill] sm:$0xff] %v11248_v39  ;;  %v11252_v30 = vpop.f32.mrb[69].mxu0  ;;  %13908 = vst [vmem:[#allocation69_spill] sm:$0xff] %v11262_v38  ;;  %v4229_v39 = vsel %vm3394_vm2, %v11254_v20, 0.0 }
 0x427   :  { %13905 = vst [vmem:[#allocation113_spill] sm:$0xff] %v11252_v30  ;;  %3627 = vmax.xlane.f32.xlu1 %v3626_v7  ;;  %3609 = vmax.xlane.f32.xlu0 %v3608_v52  ;;  %v3814_v30 = vsub.f32 %v13910_v29, %v11054_v40  ;;  %v3632_v7 = vsel %vm3394_vm2, %v11262_v38, -inf  ;;  %v13914_v52 = vld [vmem:[#allocation38_spill] sm:$0xff] }
 0x428   :  { %v11276_v11 = vpop.eup %8934  ;;  %v3811_v40 = vsub.f32 %v13914_v52, %v10994_v59  ;;  %v13918_v59 = vld [vmem:[#allocation40_spill] sm:$0xff]  ;;  %v9470_v52 = vld [vmem:[%s13548_s1 + $0x88] sm:$0xff] }
 0x429   :  { %v11268_v61 = vpop.f32.mrb[70].mxu0  ;;  %13912 = vst [vmem:[#allocation116_spill] sm:$0xff] %v11276_v11  ;;  %v11280_v43 = vpop.eup %8936  ;;  %v3977_v29 = vmul.f32 1.442695, %v3814_v30 }
 0x42a   :  { %13909 = vst [vmem:[#allocation115_spill] sm:$0xff] %v11268_v61  ;;  %v11274_v51 = vpop.f32.mrb[71].mxu0  ;;  %13913 = vst [vmem:[#allocation117_spill] sm:$0xff] %v11280_v43  ;;  %v13915_v61 = vld [vmem:[#allocation49_spill] sm:$0xff]  ;;  %v11288_v2 = vpop.eup %8938  ;;  %v4262_v38 = vsel %vm3394_vm2, %v11280_v43, 0.0 }
 0x42b   :  { %13911 = vst [vmem:[#allocation47_spill] sm:$0xff] %v11274_v51  ;;  %4230 = vadd.xlane.f32.xlu1 %v4229_v39  ;;  %v4168_v35 = vpop.xlane.xlu0 %4167  ;;  %3633 = vmax.xlane.f32.xlu0 %v3632_v7  ;;  %v3822_v51 = vsub.f32 %v13915_v61, %v11094_v13  ;;  %v4232_v39 = vsel %vm3394_vm2, %v11276_v11, 0.0  ;;  %13916 = vst [vmem:[#allocation38_spill] sm:$0xff] %v11288_v2  ;;  %v11292_v7 = vpop.eup %8940  ;;  %v4253_v13 = vsel %vm3394_vm2, %v11288_v2, 0.0  ;;  %v13926_v11 = vld [vmem:[#allocation63_spill] sm:$0xff] }
 0x42c   :  { %8944 = vrcp.f32 %v4168_v35  ;;  %v4165_v10 = vpop.xlane.xlu1 %4164  ;;  %13917 = vst [vmem:[#allocation49_spill] sm:$0xff] %v11292_v7  ;;  %v3971_v35 = vmul.f32 1.442695, %v3811_v40  ;;  %v9471_v40 = vld [vmem:[%s13548_s1 + $0x30] sm:$0xff] }
 0x42d   :  { %8946 = vrcp.f32 %v4165_v10  ;;  %v3819_v10 = vsub.f32 %v13918_v59, %v11034_v26  ;;  %v3993_v30 = vmul.f32 1.442695, %v3822_v51  ;;  %v11298_v61 = vpop.eup %8942 }
 0x42e   :  { %8948 = vpow2.f32 %v3977_v29  ;;  %v13921_v29 = vld [vmem:[#allocation59_spill] sm:$0xff] }
 0x42f   :  { %4233 = vadd.xlane.f32.xlu1 %v4232_v39  ;;  %4263 = vadd.xlane.f32.xlu0 %v4262_v38  ;;  %v13919_v39 = vld [vmem:[#allocation62_spill] sm:$0xff]  ;;  %v4286_v38 = vsel %vm3394_vm2, %v11292_v7, 0.0  ;;  %8950 = vpow2.f32 %v3971_v35  ;;  %v3987_v26 = vmul.f32 1.442695, %v3819_v10  ;;  %v11312_v59 = vadd.f32 %v9471_v40, %v13921_v29  ;;  %v13925_v10 = vld [vmem:[#allocation61_spill] sm:$0xff]  ;;  %v13929_v7 = vld [vmem:[#allocation51_spill] sm:$0xff] }
 0x430   :  { %v11304_v43 = vadd.f32 %v9470_v52, %v13919_v39  ;;  %8952 = vpow2.f32 %v3993_v30  ;;  %v4256_v52 = vsel %vm3394_vm2, %v11298_v61, 0.0 }
 0x431   :  { %13922 = vst [vmem:[#allocation62_spill] sm:$0xff] %v11312_v59  ;;  %8954 = vpow2.f32 %v3987_v26 }
 0x432   :  { %13920 = vst [vmem:[#allocation40_spill] sm:$0xff] %v11304_v43  ;;  %v3638_v20 = vsel %vm3394_vm2, %v11304_v43, -inf }
 0x433   :  { %4254 = vadd.xlane.f32.xlu1 %v4253_v13  ;;  %4287 = vadd.xlane.f32.xlu0 %v4286_v38  ;;  %v9472_v13 = vld [vmem:[%s13548_s1 + $0xc8] sm:$0xff]  ;;  %v13923_v38 = vld [vmem:[#allocation73_spill] sm:$0xff] }
 0x434   :  { %v11320_v35 = vadd.f32 %v9472_v13, %v13923_v38  ;;  %v3816_v13 = vsub.f32 %v13929_v7, %v11138_v4  ;;  %v13933_v4 = vld [vmem:[#allocation42_spill] sm:$0xff] }
 0x435   :  { %v3813_v7 = vsub.f32 %v13933_v4, %v11058_v34  ;;  %v13938_v34 = vld [vmem:[#allocation44_spill] sm:$0xff] }
 0x436   :  { %v8945_v51 = vpop.eup %8944  ;;  %13924 = vst [vmem:[#allocation59_spill] sm:$0xff] %v11320_v35  ;;  %v3662_v26 = vsel %vm3394_vm2, %v11320_v35, -inf  ;;  %v3821_v4 = vsub.f32 %v13938_v34, %v11109_v24  ;;  %v13940_v35 = vld [vmem:[#allocation67_spill] sm:$0xff] }
 0x437   :  { %v8947_v39 = vpop.eup %8946  ;;  %v4550_v30 = vmul.f32 %v8945_v51, %v13925_v10  ;;  %4257 = vadd.xlane.f32.xlu1 %v4256_v52  ;;  %3639 = vmax.xlane.f32.xlu0 %v3638_v20  ;;  %v9473_v51 = vld [vmem:[%s13548_s1 + $0x70] sm:$0xff]  ;;  %v13930_v52 = vld [vmem:[#allocation70_spill] sm:$0xff]  ;;  %v3605_v20 = vsel %vm3394_vm2, %v11312_v59, -inf  ;;  %v13934_v10 = vmov 0.0|0.0  }
 0x438   :  { %v4548_v40 = vmul.f32 %v8947_v39, %v13926_v11  ;;  %v11338_v38 = vadd.f32 %v9473_v51, %v13930_v52  ;;  %v11344_v39 = vpop.eup %8948  ;;  %v3981_v51 = vmul.f32 1.442695, %v3816_v13  ;;  %v13935_v52 = vld [vmem:[#allocation53_spill] sm:$0xff]  ;;  %v3991_v24 = vmul.f32 1.442695, %v3821_v4 }
 0x439   :  { %13932 = vst [vmem:[#allocation61_spill] sm:$0xff] %v11344_v39  ;;  %v3824_v43 = vsub.f32 %v13935_v52, %v11177_v18 }
 0x43a   :  { %13931 = vst [vmem:[#allocation73_spill] sm:$0xff] %v11338_v38  ;;  %v8507_v11 = vpack.c.bf16 %v4550_v30, %v4548_v40  ;;  %v3629_v30 = vsel %vm3394_vm2, %v11338_v38, -inf  ;;  %v11355_v40 = vpop.eup %8950  ;;  %8956 = vpow2.f32 %v3981_v51  ;;  %v13942_v51 = vld [vmem:[#allocation64_spill] sm:$0xff] }
 0x43b   :  { %3606 = vmax.xlane.f32.xlu1 %v3605_v20  ;;  %3663 = vmax.xlane.f32.xlu0 %v3662_v26  ;;  %13936 = vst [vmem:[#allocation63_spill] sm:$0xff] %v11355_v40  ;;  %v4268_v20 = vsel %vm3394_vm2, %v11344_v39, 0.0  ;;  %v11359_v26 = vpop.eup %8952  ;;  %v3997_v13 = vmul.f32 1.442695, %v3824_v43  ;;  %v4259_v18 = vsel %vm3394_vm2, %v11355_v40, 0.0  ;;  %v9475_v43 = vld [vmem:[%s13548_s1 + $0x80] sm:$0xff] }
 0x43c   :  { %8509 = vmatpush3.bf16.xpose.msk.msra.mxu1 %vm11328_vm3, %v8507_v11  ;;  %13937 = vst [vmem:[#allocation51_spill] sm:$0xff] %v11359_v26  ;;  %v3975_v11 = vmul.f32 1.442695, %v3813_v7  ;;  %v11365_v52 = vpop.eup %8954  ;;  %v4292_v7 = vsel %vm3394_vm2, %v11359_v26, 0.0  ;;  %v13955_v40 = vld [vmem:[#allocation28_spill] sm:$0xff] }
 0x43d   :  { %8510 = vmatprep.subr.bf16.mxu1 %v13934_v10  ;;  %13939 = vst [vmem:[#allocation70_spill] sm:$0xff] %v11365_v52  ;;  %v4283_v34 = vsel %vm3394_vm2, %v11365_v52, 0.0 }
 0x43e   :  { %8958 = vpow2.f32 %v3975_v11 }
 0x43f   :  { %3630 = vmax.xlane.f32.xlu1 %v3629_v30  ;;  %4269 = vadd.xlane.f32.xlu0 %v4268_v20  ;;  %v9474_v30 = vld [vmem:[%s13548_s1 + $0x98] sm:$0xff]  ;;  %8960 = vpow2.f32 %v3997_v13  ;;  %v11379_v20 = vadd.f32 %v9475_v43, %v13942_v51  ;;  %v9477_v13 = vld [vmem:[%s13548_s1 + $0xc0] sm:$0xff] }
 0x440   :  { %v11371_v38 = vadd.f32 %v9474_v30, %v13940_v35  ;;  %v9476_v35 = vld [vmem:[%s13548_s1 + $0xd8] sm:$0xff]  ;;  %8962 = vpow2.f32 %v3991_v24  ;;  %v13945_v30 = vld [vmem:[#allocation74_spill] sm:$0xff] }
 0x441   :  { %13943 = vst [vmem:[#allocation53_spill] sm:$0xff] %v11379_v20  ;;  %v3635_v43 = vsel %vm3394_vm2, %v11379_v20, -inf  ;;  %v13948_v24 = vld [vmem:[#allocation46_spill] sm:$0xff] }
 0x442   :  { %13941 = vst [vmem:[#allocation42_spill] sm:$0xff] %v11371_v38  ;;  %v3644_v11 = vsel %vm3394_vm2, %v11371_v38, -inf }
 0x443   :  { %4260 = vadd.xlane.f32.xlu1 %v4259_v18  ;;  %4293 = vadd.xlane.f32.xlu0 %v4292_v7  ;;  %v11387_v18 = vadd.f32 %v9476_v35, %v10737_v25  ;;  %v11395_v7 = vadd.f32 %v9477_v13, %v13945_v30  ;;  %v3815_v35 = vsub.f32 %v13948_v24, %v11142_v46 }
 0x444   :  { %v11401_v51 = vpop.eup %8956 }
 0x445   :  { %13944 = vst [vmem:[#allocation44_spill] sm:$0xff] %v11387_v18  ;;  %13946 = vst [vmem:[#allocation67_spill] sm:$0xff] %v11395_v7  ;;  %v3668_v25 = vsel %vm3394_vm2, %v11387_v18, -inf  ;;  %v3659_v13 = vsel %vm3394_vm2, %v11395_v7, -inf  ;;  %v3979_v46 = vmul.f32 1.442695, %v3815_v35 }
 0x446   :  { %13947 = vst [vmem:[#allocation64_spill] sm:$0xff] %v11401_v51  ;;  %v9478_v35 = vld [vmem:[%s13548_s1 + $0x90] sm:$0xff] }
 0x447   :  { %4284 = vadd.xlane.f32.xlu1 %v4283_v34  ;;  %3645 = vmax.xlane.f32.xlu0 %v3644_v11 }
 0x448   :  { %v4189_v4 = vpop.xlane.xlu1 %4188  ;;  %v11409_v30 = vpop.eup %8958 }
 0x449   :  { %8964 = vrcp.f32 %v4189_v4  ;;  %13949 = vst [vmem:[#allocation74_spill] sm:$0xff] %v11409_v30  ;;  %v11413_v20 = vpop.eup %8960  ;;  %v13951_v4 = vld [vmem:[#allocation48_spill] sm:$0xff] }
 0x44a   :  { %13950 = vst [vmem:[#allocation46_spill] sm:$0xff] %v11413_v20  ;;  %v11423_v7 = vpop.eup %8962 }
 0x44b   :  { %3636 = vmax.xlane.f32.xlu1 %v3635_v43  ;;  %3669 = vmax.xlane.f32.xlu0 %v3668_v25  ;;  %v4274_v43 = vsel %vm3394_vm2, %v11401_v51, 0.0  ;;  %v3823_v25 = vsub.f32 %v13951_v4, %v11185_v36  ;;  %13952 = vst [vmem:[#allocation48_spill] sm:$0xff] %v11423_v7  ;;  %v13953_v4 = vld [vmem:[#allocation68_spill] sm:$0xff] }
 0x44c   :  { %v11403_v34 = vpop.xlane.xlu1 %3540  ;;  %v4192_v11 = vpop.xlane.xlu0 %4191  ;;  %v11433_v51 = vadd.f32 %v9478_v35, %v13953_v4 }
 0x44d   :  { %8966 = vrcp.f32 %v4192_v11  ;;  %v4265_v11 = vsel %vm3394_vm2, %v11409_v30, 0.0  ;;  %v3995_v38 = vmul.f32 1.442695, %v3823_v25 }
 0x44e   :  { %8968 = vpow2.f32 %v3979_v46  ;;  %13954 = vst [vmem:[#allocation68_spill] sm:$0xff] %v11433_v51  ;;  %v3641_v4 = vsel %vm3394_vm2, %v11433_v51, -inf }
 0x44f   :  { %3660 = vmax.xlane.f32.xlu1 %v3659_v13  ;;  %4275 = vadd.xlane.f32.xlu0 %v4274_v43  ;;  %v4298_v13 = vsel %vm3394_vm2, %v11413_v20, 0.0  ;;  %8970 = vpow2.f32 %v3995_v38  ;;  %v9479_v20 = vld [vmem:[%s13548_s1 + $0xd0] sm:$0xff] }
 0x450   :  { %v11417_v18 = vpop.xlane.xlu1 %3564  ;;  %v11419_v24 = vpop.xlane.xlu0 %3543  ;;  %v11443_v35 = vadd.f32 %v9479_v20, %v13955_v40 }
 0x452   :  { %13956 = vst [vmem:[#allocation28_spill] sm:$0xff] %v11443_v35 }
 0x453   :  { %4266 = vadd.xlane.f32.xlu1 %v4265_v11  ;;  %4299 = vadd.xlane.f32.xlu0 %v4298_v13  ;;  %v8965_v43 = vpop.eup %8964  ;;  %v4289_v11 = vsel %vm3394_vm2, %v11423_v7, 0.0 }
 0x454   :  { %v4171_v59 = vpop.xlane.xlu1 %4170  ;;  %v11427_v36 = vpop.xlane.xlu0 %3567  ;;  %v4564_v13 = vmul.f32 %v8965_v43, %v10745_v58 }
 0x455   :  { %8972 = vrcp.f32 %v4171_v59 }
 0x457   :  { %4290 = vadd.xlane.f32.xlu1 %v4289_v11  ;;  %v8967_v39 = vpop.eup %8966 }
 0x458   :  { %v4195_v25 = vpop.xlane.xlu1 %4194  ;;  %v4566_v46 = vmul.f32 %v8967_v39, %v10758_v14  ;;  %v4174_v30 = vpop.xlane.xlu0 %4173  ;;  %v3665_v14 = vsel %vm3394_vm2, %v11443_v35, -inf }
 0x459   :  { %8974 = vrcp.f32 %v4174_v30  ;;  %v11454_v59 = vpop.eup %8968 }
 0x45a   :  { %v8523_v38 = vpack.c.bf16 %v4566_v46, %v4564_v13  ;;  %8976 = vrcp.f32 %v4195_v25  ;;  %13957 = vst [vmem:[#allocation118_spill] sm:$0xff] %v11454_v59  ;;  %v11460_v20 = vpop.eup %8970  ;;  %v4271_v30 = vsel %vm3394_vm2, %v11454_v59, 0.0 }
 0x45b   :  { %3642 = vmax.xlane.f32.xlu1 %v3641_v4  ;;  %13958 = vst [vmem:[#allocation119_spill] sm:$0xff] %v11460_v20  ;;  %v4295_v35 = vsel %vm3394_vm2, %v11460_v20, 0.0 }
 0x45c   :  { %v11447_v11 = vpop.xlane.xlu1 %3546  ;;  %8525 = vmatpush3.bf16.xpose.msk.msra.mxu0 %vm11328_vm3, %v8523_v38  ;;  %v4198_v58 = vpop.xlane.xlu0 %4197  ;;  %v13959_v38 = vld [vmem:[#allocation21_spill] sm:$0xff] }
 0x45d   :  { %8978 = vrcp.f32 %v4198_v58  ;;  %8526 = vmatprep.subr.bf16.mxu0 %v13934_v10 }
 0x45f   :  { %3666 = vmax.xlane.f32.xlu1 %v3665_v14  ;;  %v8973_v43 = vpop.eup %8972 }
 0x460   :  { %v11456_v39 = vpop.xlane.xlu1 %3570  ;;  %v11458_v40 = vpop.xlane.xlu0 %3549  ;;  %v4552_v58 = vmul.f32 %v8973_v43, %v13959_v38 }
 0x463   :  { %4272 = vadd.xlane.f32.xlu1 %v4271_v30  ;;  %v8975_v13 = vpop.eup %8974 }
 0x464   :  { %v4177_v25 = vpop.xlane.xlu1 %4176  ;;  %v11464_v46 = vpop.xlane.xlu0 %3573  ;;  %v4554_v14 = vmul.f32 %v8975_v13, %v10795_v8  ;;  %v9480_v8 = vld [vmem:[%s13545_s4 + $0x8] sm:$0xff] }
 0x465   :  { %v8977_v4 = vpop.eup %8976  ;;  %8980 = vrcp.f32 %v4177_v25 }
 0x466   :  { %v8511_v7 = vpack.c.bf16 %v4554_v14, %v4552_v58  ;;  %v4568_v59 = vmul.f32 %v8977_v4, %v10787_v49  ;;  %v13960_v49 = vmov 0.0  }
 0x467   :  { %4296 = vadd.xlane.f32.xlu1 %v4295_v35  ;;  %v8979_v51 = vpop.eup %8978  ;;  %8221 = vmatprep.mubr.msk.f32.mxu0 %vm9528_vm4, %v13960_v49 }
 0x468   :  { %v4201_v26 = vpop.xlane.xlu1 %4200  ;;  %v4570_v30 = vmul.f32 %v8979_v51, %v10808_v22  ;;  %v4180_v52 = vpop.xlane.xlu0 %4179  ;;  %8513 = vmatpush3.bf16.xpose.msk.msra.mxu1 %vm11328_vm3, %v8511_v7  ;;  %8202 = vmatprep.mubr.msk.f32.mxu1 %vm9528_vm4, %v13960_v49 }
 0x469   :  { %574 = vperm.xlu0 %8835, %v9480_v8   ;;  %8982 = vrcp.f32 %v4180_v52  ;;  %8514 = vmatprep.subr.bf16.mxu1 %v13934_v10  ;;  %v9481_v52 = vld [vmem:[%s13545_s4 + $0x18] sm:$0xff]  ;;  %v9482_v8 = vld [vmem:[%s13545_s4] sm:$0xff] }
 0x46a   :  { %v8527_v43 = vpack.c.bf16 %v4570_v30, %v4568_v59  ;;  %8984 = vrcp.f32 %v4201_v26 }
 0x46c   :  { %v11478_v35 = vpop.xlane.xlu1 %3552  ;;  %8529 = vmatpush3.bf16.xpose.msk.msra.mxu0 %vm11328_vm3, %v8527_v43  ;;  %v4204_v22 = vpop.xlane.xlu0 %4203 }
 0x46d   :  { %8986 = vrcp.f32 %v4204_v22  ;;  %582 = vperm.xlu0 %8835, %v9481_v52   ;;  %8530 = vmatprep.subr.bf16.mxu0 %v13934_v10 }
 0x46f   :  { %v8981_v51 = vpop.eup %8980 }
 0x470   :  { %v11490_v26 = vpop.xlane.xlu1 %3576  ;;  %v11492_v7 = vpop.xlane.xlu0 %3555  ;;  %v4556_v38 = vmul.f32 %v8981_v51, %v10827_v17  ;;  %v9483_v51 = vld [vmem:[%s13545_s4 + $0x10] sm:$0xff] }
 0x473   :  { %v8983_v25 = vpop.eup %8982 }
 0x474   :  { %v4183_v59 = vpop.xlane.xlu1 %4182  ;;  %v11494_v13 = vpop.xlane.xlu0 %3579  ;;  %v4558_v58 = vmul.f32 %v8983_v25, %v10846_v33 }
 0x475   :  { %v8985_v4 = vpop.eup %8984  ;;  %8988 = vrcp.f32 %v4183_v59 }
 0x476   :  { %v8515_v43 = vpack.c.bf16 %v4558_v58, %v4556_v38  ;;  %v4572_v22 = vmul.f32 %v8985_v4, %v10842_v6  ;;  %v13961_v6 = vld [vmem:[#allocation54_spill] sm:$0xff]  ;;  %v13962_v58 = vld [vmem:[#allocation55_spill] sm:$0xff] }
 0x477   :  { %v8987_v14 = vpop.eup %8986 }
 0x478   :  { %v4207_v30 = vpop.xlane.xlu1 %4206  ;;  %570 = vperm.xlu1 %8834, %v9482_v8   ;;  %v4574_v52 = vmul.f32 %v8987_v14, %v10862_v23  ;;  %v4186_v20 = vpop.xlane.xlu0 %4185  ;;  %8517 = vmatpush3.bf16.xpose.msk.msra.mxu1 %vm11328_vm3, %v8515_v43  ;;  %v3826_v14 = vsub.f32 %v13962_v58, %v11256_v12 }
 0x479   :  { %8990 = vrcp.f32 %v4186_v20  ;;  %8518 = vmatprep.subr.bf16.mxu1 %v13934_v10  ;;  %v3818_v20 = vsub.f32 %v13961_v6, %v11221_v27  ;;  %v13964_v6 = vld [vmem:[#allocation71_spill] sm:$0xff] }
 0x47a   :  { %v8531_v17 = vpack.c.bf16 %v4574_v52, %v4572_v22  ;;  %8992 = vrcp.f32 %v4207_v30  ;;  %v4001_v27 = vmul.f32 1.442695, %v3826_v14  ;;  %v13967_v14 = vld [vmem:[#allocation35_spill] sm:$0xff] }
 0x47b   :  { %v3985_v38 = vmul.f32 1.442695, %v3818_v20 }
 0x47c   :  { %v11506_v33 = vpop.xlane.xlu1 %3558  ;;  %578 = vperm.xlu1 %8834, %v9483_v51   ;;  %8533 = vmatpush3.bf16.xpose.msk.msra.mxu0 %vm11328_vm3, %v8531_v17  ;;  %v4210_v23 = vpop.xlane.xlu0 %4209 }
 0x47d   :  { %8994 = vrcp.f32 %v4210_v23  ;;  %8534 = vmatprep.subr.bf16.mxu0 %v13934_v10  ;;  %v11531_v23 = vld [vmem:[%s13548_s1 + $0xa8] sm:$0xff] }
 0x47e   :  { %8996 = vpow2.f32 %v3985_v38  ;;  %13963 = vst [vmem:[#allocation21_spill] sm:$0xff] %v11531_v23  ;;  %v11535_v12 = vadd.f32 %v11531_v23, %v13964_v6  ;;  %v11549_v38 = vld [vmem:[%s13548_s1 + $0xe8] sm:$0xff] }
 0x47f   :  { %v8989_v4 = vpop.eup %8988  ;;  %8998 = vpow2.f32 %v4001_v27  ;;  %13966 = vst [vmem:[#allocation55_spill] sm:$0xff] %v11549_v38 }
 0x480   :  { %v11516_v59 = vpop.xlane.xlu1 %3582  ;;  %v11518_v25 = vpop.xlane.xlu0 %3561  ;;  %v4560_v52 = vmul.f32 %v8989_v4, %v10883_v19  ;;  %13965 = vst [vmem:[#allocation54_spill] sm:$0xff] %v11535_v12 }
 0x483   :  { %v8991_v8 = vpop.eup %8990 }
 0x484   :  { %v11522_v30 = vpop.xlane.xlu1 %4212  ;;  %v11524_v43 = vpop.xlane.xlu0 %3585  ;;  %v4562_v17 = vmul.f32 %v8991_v8, %v10904_v44  ;;  %v11553_v8 = vadd.f32 %v11549_v38, %v13967_v14  ;;  %v13972_v14 = vld [vmem:[#allocation76_spill] sm:$0xff] }
 0x485   :  { %v8993_v22 = vpop.eup %8992  ;;  %v13974_v38 = vld [vmem:[#allocation52_spill] sm:$0xff] }
 0x486   :  { %v8519_v58 = vpack.c.bf16 %v4562_v17, %v4560_v52  ;;  %v4576_v2 = vmul.f32 %v8993_v22, %v10900_v37  ;;  %13968 = vst [vmem:[#allocation71_spill] sm:$0xff] %v11553_v8  ;;  %v13969_v22 = vld [vmem:[#allocation30_spill] sm:$0xff]  ;;  %v3674_v27 = vsel %vm3394_vm2, %v11553_v8, -inf  ;;  %v3825_v23 = vsub.f32 %v13974_v38, %v11266_v21  ;;  %v13978_v38 = vld [vmem:[#allocation72_spill] sm:$0xff] }
 0x487   :  { %v8995_v51 = vpop.eup %8994  ;;  %v3828_v52 = vsub.f32 %v13969_v22, %v11419_v24  ;;  %v11603_v21 = vld [vmem:[%s13548_s1 + $0xa0] sm:$0xff] }
 0x488   :  { %v11537_v20 = vpop.xlane.xlu1 %4236  ;;  %v4578_v19 = vmul.f32 %v8995_v51, %v10918_v5  ;;  %v11541_v44 = vpop.xlane.xlu0 %4215  ;;  %8521 = vmatpush3.bf16.xpose.msk.msra.mxu1 %vm11328_vm3, %v8519_v58  ;;  %v3650_v5 = vsel %vm3394_vm2, %v11535_v12, -inf  ;;  %v13971_v58 = vld [vmem:[#allocation50_spill] sm:$0xff]  ;;  %13977 = vst [vmem:[#allocation76_spill] sm:$0xff] %v11603_v21 }
 0x489   :  { %8538 = vmatprep.subr.bf16.mxu1 %v13934_v10  ;;  %v11570_v51 = vpop.eup %8996 }
 0x48a   :  { %v8535_v4 = vpack.c.bf16 %v4578_v19, %v4576_v2  ;;  %13970 = vst [vmem:[#allocation35_spill] sm:$0xff] %v11570_v51  ;;  %v3817_v19 = vsub.f32 %v13971_v58, %v11225_v32  ;;  %v4280_v24 = vsel %vm3394_vm2, %v11570_v51, 0.0  ;;  %v11582_v22 = vpop.eup %8998 }
 0x48b   :  { %13973 = vst [vmem:[#allocation30_spill] sm:$0xff] %v11582_v22 }
 0x48c   :  { %v11555_v37 = vpop.xlane.xlu1 %3588  ;;  %3651 = vmax.xlane.f32.xlu0 %v3650_v5  ;;  %8537 = vmatpush3.bf16.xpose.msk.msra.mxu0 %vm11328_vm3, %v8535_v4  ;;  %v11561_v2 = vpop.xlane.xlu0 %4239  ;;  %v4005_v4 = vmul.f32 1.442695, %v3828_v52  ;;  %v3836_v5 = vsub.f32 %v13972_v14, %v11427_v36  ;;  %v9486_v36 = vld [vmem:[%s13548_s1 + $0xb8] sm:$0xff]  ;;  %v13975_v52 = vld [vmem:[#allocation18_spill] sm:$0xff] }
 0x48d   :  { %8554 = vmatprep.subr.bf16.mxu0 %v13934_v10  ;;  %v11592_v58 = vadd.f32 %v9486_v36, %v13975_v52  ;;  %v13980_v36 = vld [vmem:[#allocation23_spill] sm:$0xff] }
 0x48e   :  { %9000 = vpow2.f32 %v4005_v4  ;;  %v4021_v32 = vmul.f32 1.442695, %v3836_v5  ;;  %v11607_v4 = vadd.f32 %v11603_v21, %v13978_v38  ;;  %v9488_v5 = vld [vmem:[%s13548_s1 + $0xf8] sm:$0xff]  ;;  %v13984_v38 = vld [vmem:[#allocation75_spill] sm:$0xff] }
 0x48f   :  { %13976 = vst [vmem:[#allocation50_spill] sm:$0xff] %v11592_v58  ;;  %v11613_v52 = vadd.f32 %v9488_v5, %v13980_v36  ;;  %v3830_v5 = vsub.f32 %v10820_v53, %v11458_v40  ;;  %v3838_v53 = vsub.f32 %v10831_v60, %v11464_v46 }
 0x490   :  { %v11566_v17 = vpop.xlane.xlu1 %3612  ;;  %3675 = vmax.xlane.f32.xlu0 %v3674_v27  ;;  %v11572_v6 = vpop.xlane.xlu0 %3591  ;;  %v3983_v27 = vmul.f32 1.442695, %v3817_v19  ;;  %v3999_v19 = vmul.f32 1.442695, %v3825_v23  ;;  %13979 = vst [vmem:[#allocation52_spill] sm:$0xff] %v11607_v4  ;;  %v3656_v23 = vsel %vm3394_vm2, %v11592_v58, -inf }
 0x491   :  { %13981 = vst [vmem:[#allocation18_spill] sm:$0xff] %v11613_v52  ;;  %v3647_v36 = vsel %vm3394_vm2, %v11607_v4, -inf  ;;  %v4025_v46 = vmul.f32 1.442695, %v3838_v53  ;;  %v13991_v53 = vld [vmem:[#allocation19_spill] sm:$0xff] }
 0x492   :  { %9002 = vpow2.f32 %v3983_v27 }
 0x493   :  { %9004 = vpow2.f32 %v4021_v32  ;;  %v11624_v32 = vld [vmem:[%s13548_s1 + $0xe0] sm:$0xff] }
 0x494   :  { %v11578_v12 = vpop.xlane.xlu1 %4218  ;;  %4281 = vadd.xlane.f32.xlu0 %v4280_v24  ;;  %v11584_v8 = vpop.xlane.xlu0 %3615  ;;  %v4304_v24 = vsel %vm3394_vm2, %v11582_v22, 0.0  ;;  %9006 = vpow2.f32 %v3999_v19  ;;  %13983 = vst [vmem:[#allocation23_spill] sm:$0xff] %v11624_v32  ;;  %v11628_v21 = vadd.f32 %v11624_v32, %v13984_v38  ;;  %v3680_v19 = vsel %vm3394_vm2, %v11613_v52, -inf  ;;  %v13988_v38 = vld [vmem:[#allocation20_spill] sm:$0xff] }
 0x495   :  { %v3827_v32 = vsub.f32 %v13988_v38, %v11403_v34 }
 0x496   :  { %13985 = vst [vmem:[#allocation75_spill] sm:$0xff] %v11628_v21  ;;  %v3671_v40 = vsel %vm3394_vm2, %v11628_v21, -inf }
 0x497   :  { %v4003_v34 = vmul.f32 1.442695, %v3827_v32 }
 0x498   :  { %v11594_v14 = vpop.xlane.xlu1 %4242  ;;  %4305 = vadd.xlane.f32.xlu0 %v4304_v24  ;;  %v11598_v51 = vpop.xlane.xlu0 %4221 }
 0x49c   :  { %v11615_v24 = vpop.xlane.xlu1 %3594  ;;  %3657 = vmax.xlane.f32.xlu0 %v3656_v23  ;;  %v11619_v27 = vpop.xlane.xlu0 %4245 }
 0x49d   :  { %13982 = vst [vmem:[#allocation72_spill] sm:$0xff] %v11615_v24  ;;  %v11638_v23 = vpop.eup %9000  ;;  %v4009_v24 = vmul.f32 1.442695, %v3830_v5  ;;  %v13989_v5 = vld [vmem:[#allocation22_spill] sm:$0xff] }
 0x49e   :  { %13987 = vst [vmem:[#allocation121_spill] sm:$0xff] %v11638_v23  ;;  %v11648_v4 = vpop.eup %9002  ;;  %v3835_v60 = vsub.f32 %v13989_v5, %v11417_v18 }
 0x49f   :  { %v11654_v52 = vpop.eup %9004  ;;  %9008 = vpow2.f32 %v4009_v24  ;;  %v4277_v38 = vsel %vm3394_vm2, %v11648_v4, 0.0  ;;  %v9490_v24 = vld [vmem:[%s13548_s1 + $0xb0] sm:$0xff] }
 0x4a0   :  { %v11634_v58 = vpop.xlane.xlu1 %3618  ;;  %3648 = vmax.xlane.f32.xlu1 %v3647_v36  ;;  %3681 = vmax.xlane.f32.xlu0 %v3680_v19  ;;  %v11640_v22 = vpop.xlane.xlu0 %3597  ;;  %v4310_v19 = vsel %vm3394_vm2, %v11638_v23, 0.0  ;;  %v4334_v32 = vsel %vm3394_vm2, %v11654_v52, 0.0  ;;  %9010 = vpow2.f32 %v4003_v34  ;;  %v4019_v18 = vmul.f32 1.442695, %v3835_v60 }
 0x4a1   :  { %13986 = vst [vmem:[#allocation120_spill] sm:$0xff] %v11634_v58  ;;  %v11662_v21 = vpop.eup %9006  ;;  %v11678_v5 = vadd.f32 %v9490_v24, %v13991_v53  ;;  %9012 = vpow2.f32 %v4025_v46  ;;  %v9491_v46 = vld [vmem:[%s13548_s1 + $0xf0] sm:$0xff] }
 0x4a2   :  { %9014 = vpow2.f32 %v4019_v18 }
 0x4a3   :  { %13992 = vst [vmem:[#allocation22_spill] sm:$0xff] %v11678_v5 }
 0x4a4   :  { %v11650_v36 = vpop.xlane.xlu1 %4224  ;;  %3672 = vmax.xlane.f32.xlu1 %v3671_v40  ;;  %4311 = vadd.xlane.f32.xlu0 %v4310_v19  ;;  %v11656_v58 = vpop.xlane.xlu0 %3621  ;;  %v11666_v40 = vadd.f32 %v11001_v15, %v11009_v28  ;;  %v4301_v15 = vsel %vm3394_vm2, %v11662_v21, 0.0  ;;  %v11684_v28 = vadd.f32 %v11024_v56, %v11079_v57  ;;  %v3832_v56 = vsub.f32 %v10874_v1, %v11492_v7 }
 0x4a5   :  { %v3653_v57 = vsel %vm3394_vm2, %v11678_v5, -inf  ;;  %v3840_v1 = vsub.f32 %v10887_v45, %v11494_v13 }
 0x4a6   :  { %13990 = vst [vmem:[#allocation20_spill] sm:$0xff] %v11666_v40  ;;  %13993 = vst [vmem:[#allocation19_spill] sm:$0xff] %v11684_v28  ;;  %v3686_v34 = vsel %vm3394_vm2, %v11666_v40, -inf  ;;  %v3710_v53 = vsel %vm3394_vm2, %v11684_v28, -inf }
 0x4a7   :  { %v4029_v13 = vmul.f32 1.442695, %v3840_v1 }
 0x4a8   :  { %v11668_v23 = vpop.xlane.xlu1 %4248  ;;  %4278 = vadd.xlane.f32.xlu1 %v4277_v38  ;;  %4335 = vadd.xlane.f32.xlu0 %v4334_v32  ;;  %v11672_v19 = vpop.xlane.xlu0 %4227  ;;  %v11696_v32 = vadd.f32 %v9491_v46, %v10801_v50  ;;  %v3829_v50 = vsub.f32 %v10799_v41, %v11447_v11  ;;  %v13997_v11 = vld [vmem:[#allocation24_spill] sm:$0xff] }
 0x4a9   :  { %v11706_v18 = vpop.eup %9008  ;;  %v3837_v45 = vsub.f32 %v13997_v11, %v11456_v39 }
 0x4aa   :  { %13994 = vst [vmem:[#allocation122_spill] sm:$0xff] %v11696_v32  ;;  %13995 = vst [vmem:[#allocation123_spill] sm:$0xff] %v11706_v18  ;;  %v3677_v7 = vsel %vm3394_vm2, %v11696_v32, -inf  ;;  %v11716_v46 = vpop.eup %9010  ;;  %v4007_v41 = vmul.f32 1.442695, %v3829_v50 }
 0x4ab   :  { %13996 = vst [vmem:[#allocation124_spill] sm:$0xff] %v11716_v46  ;;  %v11722_v5 = vpop.eup %9012  ;;  %v4023_v39 = vmul.f32 1.442695, %v3837_v45 }
 0x4ac   :  { %v11686_v38 = vpop.xlane.xlu1 %3600  ;;  %4302 = vadd.xlane.f32.xlu1 %v4301_v15  ;;  %3687 = vmax.xlane.f32.xlu0 %v3686_v34  ;;  %v11690_v60 = vpop.xlane.xlu0 %4251  ;;  %v4013_v34 = vmul.f32 1.442695, %v3832_v56  ;;  %v4307_v56 = vsel %vm3394_vm2, %v11716_v46, 0.0  ;;  %v4340_v50 = vsel %vm3394_vm2, %v11722_v5, 0.0 }
 0x4ad   :  { %v11730_v32 = vpop.eup %9014 }
 0x4ae   :  { %9016 = vpow2.f32 %v4013_v34  ;;  %v11744_v34 = vadd.f32 %v10971_v0, %v11013_v63  ;;  %v11760_v0 = vadd.f32 %v10986_v47, %v11092_v9  ;;  %v3834_v63 = vsub.f32 %v10930_v54, %v11518_v25 }
 0x4af   :  { %9018 = vpow2.f32 %v4007_v41  ;;  %v3831_v47 = vsub.f32 %v10850_v55, %v11478_v35  ;;  %v3842_v54 = vsub.f32 %v10946_v16, %v11524_v43  ;;  %v14004_v35 = vld [vmem:[#allocation34_spill] sm:$0xff] }
 0x4b0   :  { %v11702_v24 = vpop.xlane.xlu1 %3624  ;;  %3654 = vmax.xlane.f32.xlu1 %v3653_v57  ;;  %3711 = vmax.xlane.f32.xlu0 %v3710_v53  ;;  %v11708_v15 = vpop.xlane.xlu0 %3603  ;;  %v4316_v53 = vsel %vm3394_vm2, %v11706_v18, 0.0  ;;  %13999 = vst [vmem:[#allocation125_spill] sm:$0xff] %v11744_v34  ;;  %9020 = vpow2.f32 %v4029_v13  ;;  %14001 = vst [vmem:[#allocation127_spill] sm:$0xff] %v11760_v0  ;;  %v4017_v9 = vmul.f32 1.442695, %v3834_v63  ;;  %v3707_v25 = vsel %vm3394_vm2, %v11760_v0, -inf }
 0x4b1   :  { %9022 = vpow2.f32 %v4023_v39  ;;  %v4011_v55 = vmul.f32 1.442695, %v3831_v47  ;;  %v3839_v16 = vsub.f32 %v14004_v35, %v11490_v26  ;;  %v4033_v43 = vmul.f32 1.442695, %v3842_v54  ;;  %v14008_v54 = vld [vmem:[#allocation86_spill] sm:$0xff] }
 0x4b2   :  { %9024 = vpow2.f32 %v4017_v9  ;;  %v14007_v9 = vld [vmem:[#allocation81_spill] sm:$0xff] }
 0x4b3   :  { %9026 = vpow2.f32 %v4011_v55  ;;  %v4027_v26 = vmul.f32 1.442695, %v3839_v16  ;;  %v11808_v35 = vadd.f32 %v14008_v54, %v14007_v9  ;;  %v14013_v16 = vld [vmem:[#allocation96_spill] sm:$0xff]  ;;  %v14014_v9 = vld [vmem:[#allocation91_spill] sm:$0xff] }
 0x4b4   :  { %v11718_v57 = vpop.xlane.xlu1 %3627  ;;  %3678 = vmax.xlane.f32.xlu1 %v3677_v7  ;;  %4317 = vadd.xlane.f32.xlu0 %v4316_v53  ;;  %v11724_v28 = vpop.xlane.xlu0 %3609  ;;  %v11734_v7 = vadd.f32 %v11099_v3, %v11032_v62  ;;  %v4331_v62 = vsel %vm3394_vm2, %v11730_v32, 0.0  ;;  %v11750_v3 = vadd.f32 %v11124_v42, %v11113_v48  ;;  %v3683_v48 = vsel %vm3394_vm2, %v11744_v34, -inf }
 0x4b5   :  { %9028 = vpow2.f32 %v4033_v43  ;;  %v11824_v43 = vadd.f32 %v14014_v9, %v14013_v16  ;;  %v3689_v54 = vsel %vm3394_vm2, %v11808_v35, -inf }
 0x4b6   :  { %13998 = vst [vmem:[#allocation24_spill] sm:$0xff] %v11734_v7  ;;  %14000 = vst [vmem:[#allocation126_spill] sm:$0xff] %v11750_v3  ;;  %v3692_v11 = vsel %vm3394_vm2, %v11734_v7, -inf  ;;  %v3716_v45 = vsel %vm3394_vm2, %v11750_v3, -inf  ;;  %9030 = vpow2.f32 %v4027_v26 }
 0x4b7   :  { %14015 = vst [vmem:[#allocation86_spill] sm:$0xff] %v11824_v43  ;;  %v3713_v16 = vsel %vm3394_vm2, %v11824_v43, -inf }
 0x4b8   :  { %v11736_v40 = vpop.xlane.xlu1 %4230  ;;  %4308 = vadd.xlane.f32.xlu1 %v4307_v56  ;;  %4341 = vadd.xlane.f32.xlu0 %v4340_v50  ;;  %v11740_v53 = vpop.xlane.xlu0 %3633 }
 0x4b9   :  { %v11770_v13 = vpop.eup %9016 }
 0x4ba   :  { %14002 = vst [vmem:[#allocation128_spill] sm:$0xff] %v11770_v13  ;;  %v11780_v50 = vpop.eup %9018 }
 0x4bb   :  { %14003 = vst [vmem:[#allocation129_spill] sm:$0xff] %v11780_v50  ;;  %v4313_v63 = vsel %vm3394_vm2, %v11780_v50, 0.0  ;;  %v14023_v50 = vld [vmem:[#allocation85_spill] sm:$0xff] }
 0x4bc   :  { %v11752_v1 = vpop.xlane.xlu1 %4233  ;;  %4332 = vadd.xlane.f32.xlu1 %v4331_v62  ;;  %3693 = vmax.xlane.f32.xlu0 %v3692_v11  ;;  %v11756_v41 = vpop.xlane.xlu0 %4263  ;;  %v4322_v62 = vsel %vm3394_vm2, %v11770_v13, 0.0 }
 0x4bd   :  { %v11786_v11 = vpop.eup %9020 }
 0x4be   :  { %v4346_v47 = vsel %vm3394_vm2, %v11786_v11, 0.0 }
 0x4c0   :  { %v11766_v42 = vpop.xlane.xlu1 %4254  ;;  %3684 = vmax.xlane.f32.xlu1 %v3683_v48  ;;  %3717 = vmax.xlane.f32.xlu0 %v3716_v45  ;;  %v11772_v56 = vpop.xlane.xlu0 %4287 }
 0x4c1   :  { %v11794_v45 = vpop.eup %9022 }
 0x4c4   :  { %3708 = vmax.xlane.f32.xlu1 %v3707_v25  ;;  %v11782_v39 = vpop.xlane.xlu1 %4257  ;;  %4323 = vadd.xlane.f32.xlu0 %v4322_v62  ;;  %v11788_v48 = vpop.xlane.xlu0 %3639  ;;  %v14005_v25 = vld [vmem:[#allocation83_spill] sm:$0xff] }
 0x4c5   :  { %v11798_v0 = vadd.f32 %v11211_v31, %v14005_v25  ;;  %14009 = vst [vmem:[#allocation83_spill] sm:$0xff] %v11808_v35  ;;  %v4337_v31 = vsel %vm3394_vm2, %v11794_v45, 0.0  ;;  %v14010_v25 = vld [vmem:[#allocation36_spill] sm:$0xff] }
 0x4c7   :  { %14006 = vst [vmem:[#allocation34_spill] sm:$0xff] %v11798_v0 }
 0x4c8   :  { %4314 = vadd.xlane.f32.xlu1 %v4313_v63  ;;  %v11800_v34 = vpop.xlane.xlu1 %3606  ;;  %4347 = vadd.xlane.f32.xlu0 %v4346_v47  ;;  %v11804_v62 = vpop.xlane.xlu0 %3663  ;;  %v14011_v63 = vld [vmem:[#allocation110_spill] sm:$0xff]  ;;  %v3698_v47 = vsel %vm3394_vm2, %v11798_v0, -inf }
 0x4c9   :  { %v11814_v3 = vadd.f32 %v14011_v63, %v14010_v25  ;;  %v11832_v63 = vpop.eup %9024 }
 0x4ca   :  { %14016 = vst [vmem:[#allocation36_spill] sm:$0xff] %v11832_v63  ;;  %v11840_v9 = vpop.eup %9026  ;;  %v4328_v35 = vsel %vm3394_vm2, %v11832_v63, 0.0 }
 0x4cb   :  { %14012 = vst [vmem:[#allocation81_spill] sm:$0xff] %v11814_v3  ;;  %14018 = vst [vmem:[#allocation110_spill] sm:$0xff] %v11840_v9 }
 0x4cc   :  { %4338 = vadd.xlane.f32.xlu1 %v4337_v31  ;;  %v11816_v7 = vpop.xlane.xlu1 %3630  ;;  %3699 = vmax.xlane.f32.xlu0 %v3698_v47  ;;  %v11820_v55 = vpop.xlane.xlu0 %4269  ;;  %v3722_v31 = vsel %vm3394_vm2, %v11814_v3, -inf  ;;  %v14017_v47 = vld [vmem:[#allocation26_spill] sm:$0xff] }
 0x4cd   :  { %v3833_v0 = vsub.f32 %v14017_v47, %v11506_v33  ;;  %v11846_v3 = vpop.eup %9028  ;;  %v14020_v33 = vld [vmem:[#allocation25_spill] sm:$0xff]  ;;  %v4319_v47 = vsel %vm3394_vm2, %v11840_v9, 0.0 }
 0x4ce   :  { %14019 = vst [vmem:[#allocation96_spill] sm:$0xff] %v11846_v3  ;;  %v11854_v43 = vpop.eup %9030  ;;  %v4352_v63 = vsel %vm3394_vm2, %v11846_v3, 0.0 }
 0x4cf   :  { %v4015_v13 = vmul.f32 1.442695, %v3833_v0  ;;  %v4343_v9 = vsel %vm3394_vm2, %v11854_v43, 0.0 }
 0x4d0   :  { %3690 = vmax.xlane.f32.xlu1 %v3689_v54  ;;  %v11828_v25 = vpop.xlane.xlu1 %4260  ;;  %3723 = vmax.xlane.f32.xlu0 %v3722_v31  ;;  %v11836_v26 = vpop.xlane.xlu0 %4293  ;;  %v3841_v31 = vsub.f32 %v14020_v33, %v11516_v59  ;;  %v14024_v59 = vld [vmem:[#allocation43_spill] sm:$0xff] }
 0x4d1   :  { %9032 = vpow2.f32 %v4015_v13  ;;  %v11865_v33 = vadd.f32 %v14024_v59, %v14023_v50  ;;  %v14027_v13 = vld [vmem:[#allocation100_spill] sm:$0xff] }
 0x4d2   :  { %9034 = vrcp.f32 %v11561_v2 }
 0x4d3   :  { %14025 = vst [vmem:[#allocation25_spill] sm:$0xff] %v11865_v33  ;;  %9036 = vrcp.f32 %v11537_v20  ;;  %v3695_v2 = vsel %vm3394_vm2, %v11865_v33, -inf  ;;  %v14031_v33 = vld [vmem:[#allocation32_spill] sm:$0xff] }
 0x4d4   :  { %3714 = vmax.xlane.f32.xlu1 %v3713_v16  ;;  %v11842_v54 = vpop.xlane.xlu1 %4284  ;;  %4329 = vadd.xlane.f32.xlu0 %v4328_v35  ;;  %v11848_v18 = vpop.xlane.xlu0 %3645  ;;  %v4031_v35 = vmul.f32 1.442695, %v3841_v31 }
 0x4d6   :  { %9038 = vpow2.f32 %v4031_v35 }
 0x4d7   :  { %9040 = vrcp.f32 %v11619_v27 }
 0x4d8   :  { %4320 = vadd.xlane.f32.xlu1 %v4319_v47  ;;  %v11856_v16 = vpop.xlane.xlu1 %3636  ;;  %4353 = vadd.xlane.f32.xlu0 %v4352_v63  ;;  %v11860_v0 = vpop.xlane.xlu0 %3669  ;;  %v14028_v63 = vld [vmem:[#allocation45_spill] sm:$0xff]  ;;  %9042 = vrcp.f32 %v11594_v14 }
 0x4d9   :  { %14021 = vst [vmem:[#allocation91_spill] sm:$0xff] %v11856_v16  ;;  %14022 = vst [vmem:[#allocation26_spill] sm:$0xff] %v11860_v0  ;;  %v11874_v3 = vadd.f32 %v14028_v63, %v14027_v13  ;;  %9044 = vrcp.f32 %v11541_v44 }
 0x4da   :  { %9046 = vrcp.f32 %v11690_v60 }
 0x4db   :  { %14029 = vst [vmem:[#allocation43_spill] sm:$0xff] %v11874_v3  ;;  %v11883_v59 = vpop.eup %9032  ;;  %v3719_v20 = vsel %vm3394_vm2, %v11874_v3, -inf  ;;  %v14032_v3 = vld [vmem:[#allocation31_spill] sm:$0xff]  ;;  %9048 = vrcp.f32 %v11522_v30  ;;  %v14036_v30 = vld [vmem:[#allocation89_spill] sm:$0xff] }
 0x4dc   :  { %4344 = vadd.xlane.f32.xlu1 %v4343_v9  ;;  %v11870_v47 = vpop.xlane.xlu1 %3660  ;;  %v11876_v31 = vpop.xlane.xlu0 %4275  ;;  %14030 = vst [vmem:[#allocation100_spill] sm:$0xff] %v11883_v59  ;;  %9050 = vrcp.f32 %v11668_v23  ;;  %v14037_v23 = vld [vmem:[#allocation82_spill] sm:$0xff] }
 0x4dd   :  { %14026 = vst [vmem:[#allocation85_spill] sm:$0xff] %v11870_v47  ;;  %v9035_v9 = vpop.eup %9034  ;;  %v4325_v47 = vsel %vm3394_vm2, %v11883_v59, 0.0  ;;  %9052 = vrcp.f32 %v11598_v51  ;;  %v14039_v51 = vld [vmem:[#allocation107_spill] sm:$0xff] }
 0x4de   :  { %v9037_v63 = vpop.eup %9036  ;;  %9054 = vrcp.f32 %v11782_v39  ;;  %v14040_v39 = vld [vmem:[#allocation27_spill] sm:$0xff] }
 0x4df   :  { %v4596_v0 = vmul.f32 %v9037_v63, %v14032_v3  ;;  %9056 = vrcp.f32 %v11578_v12  ;;  %v14042_v12 = vld [vmem:[#allocation101_spill] sm:$0xff] }
 0x4e0   :  { %3696 = vmax.xlane.f32.xlu1 %v3695_v2  ;;  %v11880_v50 = vpop.xlane.xlu1 %4266  ;;  %v11890_v13 = vpop.xlane.xlu0 %4299  ;;  %v4598_v2 = vmul.f32 %v9035_v9, %v14031_v33  ;;  %9058 = vrcp.f32 %v11766_v42  ;;  %v14043_v42 = vld [vmem:[#allocation10_spill] sm:$0xff] }
 0x4e1   :  { %v11895_v27 = vpop.eup %9038  ;;  %9060 = vrcp.f32 %v11672_v19 }
 0x4e2   :  { %v8555_v33 = vpack.c.bf16 %v4598_v2, %v4596_v0  ;;  %v4349_v9 = vsel %vm3394_vm2, %v11895_v27, 0.0  ;;  %9062 = vrcp.f32 %v11842_v54 }
 0x4e3   :  { %9064 = vrcp.f32 %v11650_v36  ;;  %v14044_v36 = vld [vmem:[#allocation84_spill] sm:$0xff] }
 0x4e4   :  { %3720 = vmax.xlane.f32.xlu1 %v3719_v20  ;;  %v11888_v35 = vpop.xlane.xlu1 %4290  ;;  %v14034_v20 = vld [vmem:[#allocation12_spill] sm:$0xff]  ;;  %9066 = vrcp.f32 %v11772_v56  ;;  %v14045_v56 = vld [vmem:[#allocation78_spill] sm:$0xff] }
 0x4e5   :  { %9068 = vrcp.f32 %v11752_v1  ;;  %v14049_v1 = vld [vmem:[#allocation103_spill] sm:$0xff] }
 0x4e6   :  { %9070 = vrcp.f32 %v11888_v35 }
 0x4e8   :  { %4326 = vadd.xlane.f32.xlu1 %v4325_v47  ;;  %v11897_v16 = vpop.xlane.xlu1 %3642  ;;  %v11901_v14 = vpop.permute.xlu0 %574 }
 0x4e9   :  { %14033 = vst [vmem:[#allocation45_spill] sm:$0xff] %v11901_v14  ;;  %v587_v46 = vadd.f32 %v11901_v14, %v14034_v20  ;;  %v9041_v47 = vpop.eup %9040  ;;  %9072 = vrcp.f32 %v11736_v40  ;;  %v14050_v40 = vld [vmem:[#allocation70_spill] sm:$0xff] }
 0x4ea   :  { %v9043_v60 = vpop.eup %9042  ;;  %v4602_v3 = vmul.f32 %v9041_v47, %v14036_v30  ;;  %v14038_v47 = vld [vmem:[#allocation33_spill] sm:$0xff]  ;;  %9074 = vrcp.f32 %v11836_v26 }
 0x4eb   :  { %8222 = vmatmul.mubr.msk.f32.vlgmr.msra.gmra.mrb[72].mxu0 %vm3394_vm2, %v587_v46  ;;  %v4600_v63 = vmul.f32 %v9043_v60, %v14037_v23  ;;  %v9045_v2 = vpop.eup %9044  ;;  %v14052_v26 = vld [vmem:[#allocation97_spill] sm:$0xff] }
 0x4ec   :  { %4350 = vadd.xlane.f32.xlu1 %v4349_v9  ;;  %v11911_v44 = vpop.xlane.xlu1 %3666  ;;  %8557 = vmatpush3.bf16.xpose.msk.msra.mxu0 %vm11328_vm3, %v8555_v33  ;;  %v9047_v33 = vpop.eup %9046  ;;  %v4582_v30 = vmul.f32 %v9045_v2, %v14038_v47 }
 0x4ed   :  { %14035 = vst [vmem:[#allocation32_spill] sm:$0xff] %v11911_v44  ;;  %8259 = vmatprep.mubr.msk.f32.mxu0 %vm9528_vm4, %v13960_v49  ;;  %8558 = vmatprep.subr.bf16.mxu0 %v13934_v10  ;;  %v8559_v20 = vpack.c.bf16 %v4602_v3, %v4600_v63  ;;  %v9049_v14 = vpop.eup %9048  ;;  %v4606_v60 = vmul.f32 %v9047_v33, %v14039_v51 }
 0x4ee   :  { %5289 = vrot.lane.b32.xlu0 %v587_v46, %s9525_s24  ;;  %v9051_v46 = vpop.eup %9050  ;;  %v4580_v23 = vmul.f32 %v9049_v14, %v14040_v39 }
 0x4ef   :  { %v4604_v3 = vmul.f32 %v9051_v46, %v14042_v12  ;;  %v9053_v44 = vpop.eup %9052  ;;  %v3844_v46 = vsub.f32 %v14045_v56, %v11572_v6  ;;  %v14054_v56 = vld [vmem:[#allocation49_spill] sm:$0xff] }
 0x4f0   :  { %v11920_v0 = vpop.xlane.xlu1 %4272  ;;  %v9055_v33 = vpop.eup %9054  ;;  %v4586_v14 = vmul.f32 %v9053_v44, %v14044_v36  ;;  %v14053_v36 = vld [vmem:[#allocation88_spill] sm:$0xff] }
 0x4f1   :  { %v8563_v2 = vpack.c.bf16 %v4606_v60, %v4604_v3  ;;  %v9057_v19 = vpop.eup %9056  ;;  %v4610_v47 = vmul.f32 %v9055_v33, %v11298_v61  ;;  %v14047_v60 = vld [vmem:[#allocation80_spill] sm:$0xff]  ;;  %v11972_v33 = vpop.permute.xlu0 %582 }
 0x4f2   :  { %v9059_v54 = vpop.eup %9058  ;;  %v3852_v39 = vsub.f32 %v14047_v60, %v11584_v8  ;;  %14051 = vst [vmem:[#allocation12_spill] sm:$0xff] %v11972_v33 }
 0x4f3   :  { %v9061_v3 = vpop.eup %9060 }
 0x4f4   :  { %v4297_v9 = vpop.xlane.xlu1 %4296  ;;  %8561 = vmatpush3.bf16.xpose.msk.msra.mxu0 %vm11328_vm3, %v8559_v20  ;;  %v8539_v20 = vpack.c.bf16 %v4582_v30, %v4580_v23  ;;  %v14046_v30 = vld [vmem:[#allocation79_spill] sm:$0xff]  ;;  %v14048_v23 = vld [vmem:[#allocation38_spill] sm:$0xff]  ;;  %v9063_v6 = vpop.eup %9062  ;;  %v4590_v35 = vmul.f32 %v9061_v3, %v14049_v1  ;;  %v14057_v3 = vld [vmem:[#allocation116_spill] sm:$0xff] }
 0x4f5   :  { %8562 = vmatprep.subr.bf16.mxu0 %v13934_v10  ;;  %v4584_v51 = vmul.f32 %v9057_v19, %v14046_v30  ;;  %v4608_v12 = vmul.f32 %v9059_v54, %v14048_v23  ;;  %v9065_v61 = vpop.eup %9064  ;;  %v9492_v54 = vld [vmem:[%s13548_s1 + $0x38] sm:$0xff] }
 0x4f6   :  { %v9067_v8 = vpop.eup %9066  ;;  %v4588_v19 = vmul.f32 %v9065_v61, %v14052_v26 }
 0x4f7   :  { %v8543_v44 = vpack.c.bf16 %v4586_v14, %v4584_v51  ;;  %v11979_v14 = vadd.f32 %v9492_v54, %v14053_v36  ;;  %v9069_v60 = vpop.eup %9068  ;;  %v14064_v54 = vld [vmem:[#allocation29_spill] sm:$0xff] }
 0x4f8   :  { %v11933_v59 = vpop.permute.xlu1 %570  ;;  %v8547_v51 = vpack.c.bf16 %v4590_v35, %v4588_v19  ;;  %v9071_v23 = vpop.eup %9070  ;;  %v3843_v36 = vsub.f32 %v14064_v54, %v11555_v37 }
 0x4f9   :  { %14041 = vst [vmem:[#allocation31_spill] sm:$0xff] %v11933_v59  ;;  %v585_v63 = vadd.f32 %v11933_v59, %v14043_v42  ;;  %v4037_v42 = vmul.f32 1.442695, %v3844_v46  ;;  %v4630_v46 = vmul.f32 %v9067_v8, %v14054_v56  ;;  %v14060_v8 = vld [vmem:[#allocation114_spill] sm:$0xff] }
 0x4fb   :  { %8203 = vmatmul.mubr.msk.f32.vlgmr.msra.gmra.mrb[80].mxu1 %vm3394_vm2, %v585_v63  ;;  %9076 = vpow2.f32 %v4037_v42  ;;  %v4594_v42 = vmul.f32 %v9069_v60, %v14057_v3  ;;  %v14065_v60 = vld [vmem:[#allocation60_spill] sm:$0xff] }
 0x4fc   :  { %8541 = vmatpush3.bf16.xpose.msk.msra.mxu1 %vm11328_vm3, %v8539_v20  ;;  %8240 = vmatprep.mubr.msk.f32.mxu1 %vm9528_vm4, %v13960_v49  ;;  %v4053_v20 = vmul.f32 1.442695, %v3852_v39 }
 0x4fd   :  { %8565 = vmatpush3.bf16.xpose.msk.msra.mxu0 %vm11328_vm3, %v8563_v2  ;;  %5191 = vrot.lane.b32.xlu1 %v585_v63, %s9525_s24  ;;  %v8567_v63 = vpack.c.bf16 %v4610_v47, %v4608_v12  ;;  %v4628_v2 = vmul.f32 %v9063_v6, %v14050_v40  ;;  %v14055_v47 = vld [vmem:[#allocation16_spill] sm:$0xff]  ;;  %v9493_v12 = vld [vmem:[%s13548_s1 + $0x78] sm:$0xff]  ;;  %v14062_v40 = vld [vmem:[#allocation51_spill] sm:$0xff] }
 0x4fe   :  { %8542 = vmatprep.subr.bf16.mxu1 %v13934_v10  ;;  %8566 = vmatprep.subr.bf16.mxu0 %v13934_v10  ;;  %9078 = vpow2.f32 %v4053_v20  ;;  %v11985_v30 = vadd.f32 %v11972_v33, %v14055_v47  ;;  %v14059_v20 = vld [vmem:[#allocation93_spill] sm:$0xff] }
 0x4ff   :  { %9080 = vrcp.f32 %v11828_v25  ;;  %v8587_v39 = vpack.c.bf16 %v4630_v46, %v4628_v2  ;;  %v9073_v25 = vpop.eup %9072  ;;  %v3846_v61 = vsub.f32 %v14059_v20, %v11640_v22  ;;  %v14104_v33 = vld [vmem:[#allocation21_spill] sm:$0xff] }
 0x500   :  { %9082 = vrcp.f32 %v4297_v9  ;;  %v14056_v9 = vld [vmem:[#allocation39_spill] sm:$0xff]  ;;  %v4592_v1 = vmul.f32 %v9073_v25, %v14060_v8 }
 0x501   :  { %9084 = vrcp.f32 %v11756_v41  ;;  %v3704_v41 = vsel %vm3394_vm2, %v11979_v14, -inf  ;;  %v14066_v25 = vld [vmem:[#allocation63_spill] sm:$0xff] }
 0x502   :  { %9086 = vrcp.f32 %v11890_v13  ;;  %v9075_v13 = vpop.eup %9074  ;;  %v8551_v56 = vpack.c.bf16 %v4594_v42, %v4592_v1  ;;  %v9494_v42 = vld [vmem:[%s13548_s1 + $0x88] sm:$0xff]  ;;  %v14072_v1 = vld [vmem:[#allocation46_spill] sm:$0xff] }
 0x503   :  { %v4634_v2 = vmul.f32 %v9075_v13, %v14062_v40  ;;  %9088 = vrcp.f32 %v11880_v50  ;;  %v14069_v13 = vld [vmem:[#allocation119_spill] sm:$0xff] }
 0x504   :  { %8545 = vmatpush3.bf16.xpose.msk.msra.mxu1 %vm11328_vm3, %v8543_v44  ;;  %v11997_v44 = vadd.f32 %v9493_v12, %v14056_v9  ;;  %9090 = vrcp.f32 %v11820_v55  ;;  %v4035_v55 = vmul.f32 1.442695, %v3843_v36  ;;  %v12033_v9 = vpop.permute.xlu1 %578 }
 0x505   :  { %8569 = vmatpush3.bf16.xpose.msk.msra.mxu0 %vm11328_vm3, %v8567_v63  ;;  %8546 = vmatprep.subr.bf16.mxu1 %v13934_v10  ;;  %v14058_v63 = vld [vmem:[#allocation48_spill] sm:$0xff]  ;;  %v12012_v35 = vpop.eup %9076  ;;  %14067 = vst [vmem:[#allocation33_spill] sm:$0xff] %v12033_v9 }
 0x506   :  { %8586 = vmatprep.subr.bf16.mxu0 %v13934_v10  ;;  %v4632_v6 = vmul.f32 %v9071_v23, %v14058_v63  ;;  %14061 = vst [vmem:[#allocation89_spill] sm:$0xff] %v12012_v35  ;;  %v3728_v26 = vsel %vm3394_vm2, %v11997_v44, -inf  ;;  %v4358_v37 = vsel %vm3394_vm2, %v12012_v35, 0.0  ;;  %v14070_v63 = vld [vmem:[#allocation94_spill] sm:$0xff] }
 0x508   :  { %v12018_v19 = vpop.eup %9078  ;;  %v8591_v22 = vpack.c.bf16 %v4634_v2, %v4632_v6  ;;  %v12043_v6 = vadd.f32 %v9494_v42, %v14070_v63  ;;  %v14073_v2 = vld [vmem:[#allocation14_spill] sm:$0xff]  ;;  %v14079_v42 = vld [vmem:[#allocation61_spill] sm:$0xff] }
 0x509   :  { %14063 = vst [vmem:[#allocation82_spill] sm:$0xff] %v12018_v19  ;;  %v9081_v46 = vpop.eup %9080 }
 0x50a   :  { %v9083_v47 = vpop.eup %9082  ;;  %v4612_v12 = vmul.f32 %v9081_v46, %v14066_v25 }
 0x50b   :  { %v9085_v50 = vpop.eup %9084  ;;  %v4636_v3 = vmul.f32 %v9083_v47, %v14069_v13  ;;  %v14074_v47 = vld [vmem:[#allocation90_spill] sm:$0xff]  ;;  %v14078_v13 = vld [vmem:[#allocation56_spill] sm:$0xff] }
 0x50c   :  { %8260 = vmatmul.mubr.msk.f32.vlgmr.msra.gmra.mrb[74].mxu0 %vm3394_vm2, %v11985_v30  ;;  %8549 = vmatpush3.bf16.xpose.msk.msra.mxu1 %vm11328_vm3, %v8547_v51  ;;  %v4041_v51 = vmul.f32 1.442695, %v3846_v61  ;;  %v9087_v23 = vpop.eup %9086  ;;  %v14071_v61 = vld [vmem:[#allocation117_spill] sm:$0xff] }
 0x50d   :  { %8589 = vmatpush3.bf16.xpose.msk.msra.mxu0 %vm11328_vm3, %v8587_v39  ;;  %8550 = vmatprep.subr.bf16.mxu1 %v13934_v10  ;;  %v3854_v39 = vsub.f32 %v14065_v60, %v11656_v58  ;;  %v14068_v58 = vld [vmem:[#allocation77_spill] sm:$0xff]  ;;  %v4614_v8 = vmul.f32 %v9085_v50, %v14071_v61  ;;  %v4638_v40 = vmul.f32 %v9087_v23, %v14072_v1  ;;  %v14076_v23 = vld [vmem:[#allocation74_spill] sm:$0xff] }
 0x50e   :  { %3705 = vmax.xlane.f32.xlu0 %v3704_v41  ;;  %8590 = vmatprep.subr.bf16.mxu0 %v13934_v10  ;;  %v3851_v41 = vsub.f32 %v14068_v58, %v11566_v17  ;;  %9092 = vpow2.f32 %v4041_v51  ;;  %v12050_v17 = vadd.f32 %v12033_v9, %v14073_v2  ;;  %v14077_v58 = vld [vmem:[#allocation105_spill] sm:$0xff] }
 0x50f   :  { %8297 = vmatprep.mubr.msk.f32.mxu0 %vm9528_vm4, %v13960_v49  ;;  %v4057_v20 = vmul.f32 1.442695, %v3854_v39  ;;  %9094 = vrcp.f32 %v11920_v0  ;;  %v8571_v36 = vpack.c.bf16 %v4614_v8, %v4612_v12  ;;  %v8595_v0 = vpack.c.bf16 %v4638_v40, %v4636_v3  ;;  %v14075_v39 = vld [vmem:[#allocation37_spill] sm:$0xff]  ;;  %v9497_v12 = vld [vmem:[%s13548_s1 + $0x70] sm:$0xff] }
 0x510   :  { %9096 = vpow2.f32 %v4035_v55  ;;  %v4051_v46 = vmul.f32 1.442695, %v3851_v41  ;;  %v12088_v41 = vadd.f32 %v9497_v12, %v14077_v58  ;;  %v3848_v3 = vsub.f32 %v14078_v13, %v11708_v15  ;;  %v14087_v12 = vld [vmem:[#allocation120_spill] sm:$0xff] }
 0x511   :  { %9098 = vrcp.f32 %v11876_v31  ;;  %v9496_v31 = vld [vmem:[%s13548_s1 + $0xc8] sm:$0xff]  ;;  %v14088_v58 = vld [vmem:[#allocation92_spill] sm:$0xff] }
 0x512   :  { %3729 = vmax.xlane.f32.xlu0 %v3728_v26  ;;  %v4382_v26 = vsel %vm3394_vm2, %v12018_v19, 0.0  ;;  %9100 = vpow2.f32 %v4057_v20  ;;  %v12073_v50 = vadd.f32 %v9496_v31, %v14075_v39  ;;  %v4045_v15 = vmul.f32 1.442695, %v3848_v3 }
 0x513   :  { %9102 = vpow2.f32 %v4051_v46  ;;  %v3853_v13 = vsub.f32 %v14088_v58, %v14087_v12 }
 0x514   :  { %8553 = vmatpush3.bf16.xpose.msk.msra.mxu1 %vm11328_vm3, %v8551_v56  ;;  %v9089_v56 = vpop.eup %9088  ;;  %v3758_v61 = vsel %vm3394_vm2, %v12073_v50, -inf  ;;  %9104 = vpow2.f32 %v4045_v15 }
 0x515   :  { %8593 = vmatpush3.bf16.xpose.msk.msra.mxu0 %vm11328_vm3, %v8591_v22  ;;  %8570 = vmatprep.subr.bf16.mxu1 %v13934_v10  ;;  %v9495_v22 = vld [vmem:[%s13548_s1 + $0x30] sm:$0xff]  ;;  %v9091_v60 = vpop.eup %9090  ;;  %v4616_v55 = vmul.f32 %v9089_v56, %v14076_v23 }
 0x516   :  { %4359 = vadd.xlane.f32.xlu0 %v4358_v37  ;;  %8594 = vmatprep.subr.bf16.mxu0 %v13934_v10  ;;  %v12063_v51 = vadd.f32 %v9495_v22, %v14074_v47  ;;  %v3734_v37 = vsel %vm3394_vm2, %v12043_v6, -inf  ;;  %v4618_v63 = vmul.f32 %v9091_v60, %v14079_v42  ;;  %v3725_v47 = vsel %vm3394_vm2, %v12088_v41, -inf  ;;  %v14089_v42 = vld [vmem:[#allocation64_spill] sm:$0xff] }
 0x518   :  { %v3701_v20 = vsel %vm3394_vm2, %v12063_v51, -inf  ;;  %v12097_v8 = vpop.eup %9092  ;;  %v8575_v40 = vpack.c.bf16 %v4618_v63, %v4616_v55 }
 0x519   :  { %v12054_v54 = vpop.xlane.xlu0 %3651  ;;  %14080 = vst [vmem:[#allocation107_spill] sm:$0xff] %v12097_v8  ;;  %v9095_v2 = vpop.eup %9094  ;;  %v4364_v31 = vsel %vm3394_vm2, %v12097_v8, 0.0 }
 0x51a   :  { %4383 = vadd.xlane.f32.xlu0 %v4382_v26  ;;  %v14081_v26 = vld [vmem:[#allocation72_spill] sm:$0xff]  ;;  %v12101_v46 = vpop.eup %9096 }
 0x51b   :  { %8241 = vmatmul.mubr.msk.f32.vlgmr.msra.gmra.mrb[82].mxu1 %vm3394_vm2, %v12050_v17  ;;  %14083 = vst [vmem:[#allocation27_spill] sm:$0xff] %v12101_v46  ;;  %v9099_v60 = vpop.eup %9098 }
 0x51c   :  { %8573 = vmatpush3.bf16.xpose.msk.msra.mxu1 %vm11328_vm3, %v8571_v36  ;;  %8278 = vmatprep.mubr.msk.f32.mxu1 %vm9528_vm4, %v13960_v49  ;;  %v14082_v36 = vld [vmem:[#allocation87_spill] sm:$0xff]  ;;  %v12112_v39 = vpop.eup %9100  ;;  %v4622_v63 = vmul.f32 %v9099_v60, %v14089_v42 }
 0x51d   :  { %8597 = vmatpush3.bf16.xpose.msk.msra.mxu0 %vm11328_vm3, %v8595_v0  ;;  %8574 = vmatprep.subr.bf16.mxu1 %v13934_v10  ;;  %v12081_v25 = vpop.xlane.xlu0 %3675  ;;  %v3845_v56 = vsub.f32 %v14082_v36, %v14081_v26  ;;  %v14084_v0 = vld [vmem:[#allocation65_spill] sm:$0xff]  ;;  %14085 = vst [vmem:[#allocation101_spill] sm:$0xff] %v12112_v39  ;;  %v4388_v36 = vsel %vm3394_vm2, %v12112_v39, 0.0 }
 0x51e   :  { %3735 = vmax.xlane.f32.xlu0 %v3734_v37  ;;  %8598 = vmatprep.subr.bf16.mxu0 %v13934_v10  ;;  %v3856_v22 = vsub.f32 %v14084_v0, %v11718_v57  ;;  %v14086_v37 = vld [vmem:[#allocation118_spill] sm:$0xff]  ;;  %v4055_v0 = vmul.f32 1.442695, %v3853_v13 }
 0x51f   :  { %v4620_v23 = vmul.f32 %v9095_v2, %v14086_v37  ;;  %v4039_v57 = vmul.f32 1.442695, %v3845_v56  ;;  %v14091_v2 = vld [vmem:[#allocation98_spill] sm:$0xff]  ;;  %v9500_v37 = vld [vmem:[%s13548_s1 + $0xd8] sm:$0xff] }
 0x520   :  { %v4061_v3 = vmul.f32 1.442695, %v3856_v22  ;;  %v9499_v22 = vld [vmem:[%s13548_s1 + $0x80] sm:$0xff] }
 0x521   :  { %3702 = vmax.xlane.f32.xlu1 %v3701_v20  ;;  %v4282_v1 = vpop.xlane.xlu0 %4281  ;;  %v4355_v20 = vsel %vm3394_vm2, %v12101_v46, 0.0  ;;  %v8579_v15 = vpack.c.bf16 %v4622_v63, %v4620_v23  ;;  %9106 = vpow2.f32 %v4039_v57  ;;  %v14093_v23 = vld [vmem:[#allocation41_spill] sm:$0xff]  ;;  %v14094_v13 = vld [vmem:[#allocation58_spill] sm:$0xff] }
 0x522   :  { %3759 = vmax.xlane.f32.xlu0 %v3758_v61  ;;  %v12120_v61 = vpop.eup %9102  ;;  %9108 = vpow2.f32 %v4061_v3  ;;  %v12146_v57 = vadd.f32 %v9500_v37, %v14093_v23  ;;  %v3850_v3 = vsub.f32 %v14094_v13, %v11724_v28  ;;  %v9501_v63 = vld [vmem:[%s13548_s1 + $0xc0] sm:$0xff]  ;;  %v14098_v37 = vld [vmem:[#allocation69_spill] sm:$0xff] }
 0x523   :  { %14090 = vst [vmem:[#allocation10_spill] sm:$0xff] %v12120_v61  ;;  %9110 = vpow2.f32 %v4055_v0  ;;  %v3858_v23 = vsub.f32 %v14098_v37, %v11740_v53  ;;  %v14101_v53 = vld [vmem:[#allocation66_spill] sm:$0xff] }
 0x524   :  { %8577 = vmatpush3.bf16.xpose.msk.msra.mxu1 %vm11328_vm3, %v8575_v40  ;;  %v9498_v40 = vld [vmem:[%s13548_s1 + $0x98] sm:$0xff]  ;;  %v3764_v28 = vsel %vm3394_vm2, %v12146_v57, -inf  ;;  %9112 = vrcp.f32 %v4282_v1 }
 0x525   :  { %3726 = vmax.xlane.f32.xlu1 %v3725_v47  ;;  %8578 = vmatprep.subr.bf16.mxu1 %v13934_v10  ;;  %v4306_v55 = vpop.xlane.xlu0 %4305  ;;  %v12126_v26 = vadd.f32 %v9498_v40, %v14091_v2  ;;  %v14092_v47 = vld [vmem:[#allocation95_spill] sm:$0xff] }
 0x526   :  { %4365 = vadd.xlane.f32.xlu0 %v4364_v31  ;;  %v12136_v60 = vadd.f32 %v9499_v22, %v14092_v47  ;;  %v4379_v31 = vsel %vm3394_vm2, %v12120_v61, 0.0  ;;  %v4049_v22 = vmul.f32 1.442695, %v3850_v3  ;;  %v14097_v47 = vld [vmem:[#allocation57_spill] sm:$0xff] }
 0x527   :  { %v3740_v58 = vsel %vm3394_vm2, %v12126_v26, -inf }
 0x528   :  { %v3731_v2 = vsel %vm3394_vm2, %v12136_v60, -inf  ;;  %9114 = vpow2.f32 %v4049_v22 }
 0x529   :  { %4356 = vadd.xlane.f32.xlu1 %v4355_v20  ;;  %v12130_v56 = vpop.xlane.xlu0 %3657  ;;  %v14095_v20 = vld [vmem:[#allocation109_spill] sm:$0xff] }
 0x52a   :  { %4389 = vadd.xlane.f32.xlu0 %v4388_v36  ;;  %v12161_v40 = vadd.f32 %v9501_v63, %v14095_v20 }
 0x52c   :  { %8581 = vmatpush3.bf16.xpose.msk.msra.mxu1 %vm11328_vm3, %v8579_v15  ;;  %v12169_v15 = vpop.eup %9104 }
 0x52d   :  { %4380 = vadd.xlane.f32.xlu1 %v4379_v31  ;;  %v12148_v12 = vpop.xlane.xlu1 %3648  ;;  %8582 = vmatprep.subr.bf16.mxu1 %v13934_v10  ;;  %v12155_v42 = vpop.xlane.xlu0 %3681  ;;  %14096 = vst [vmem:[#allocation84_spill] sm:$0xff] %v12169_v15  ;;  %v3847_v31 = vsub.f32 %v14097_v47, %v11686_v38  ;;  %v4370_v3 = vsel %vm3394_vm2, %v12169_v15, 0.0  ;;  %v4065_v47 = vmul.f32 1.442695, %v3858_v23  ;;  %v9502_v23 = vld [vmem:[%s13548_s1 + $0x90] sm:$0xff]  ;;  %v14112_v15 = vld [vmem:[#allocation35_spill] sm:$0xff] }
 0x52e   :  { %3741 = vmax.xlane.f32.xlu0 %v3740_v58  ;;  %v3755_v58 = vsel %vm3394_vm2, %v12161_v40, -inf  ;;  %v12179_v13 = vpop.eup %9106 }
 0x52f   :  { %14099 = vst [vmem:[#allocation78_spill] sm:$0xff] %v12179_v13  ;;  %v12183_v20 = vpop.eup %9108  ;;  %v4043_v38 = vmul.f32 1.442695, %v3847_v31  ;;  %v4361_v1 = vsel %vm3394_vm2, %v12179_v13, 0.0 }
 0x530   :  { %14100 = vst [vmem:[#allocation79_spill] sm:$0xff] %v12183_v20  ;;  %v12191_v37 = vpop.eup %9110  ;;  %v4394_v31 = vsel %vm3394_vm2, %v12183_v20, 0.0 }
 0x531   :  { %3732 = vmax.xlane.f32.xlu1 %v3731_v2  ;;  %v12165_v36 = vpop.xlane.xlu1 %3672  ;;  %v12171_v0 = vpop.xlane.xlu0 %4311  ;;  %14102 = vst [vmem:[#allocation80_spill] sm:$0xff] %v12191_v37 }
 0x532   :  { %3765 = vmax.xlane.f32.xlu0 %v3764_v28  ;;  %v3855_v28 = vsub.f32 %v14101_v53, %v11702_v24  ;;  %v14106_v53 = vld [vmem:[#allocation112_spill] sm:$0xff] }
 0x535   :  { %3756 = vmax.xlane.f32.xlu1 %v3755_v58  ;;  %v4279_v63 = vpop.xlane.xlu1 %4278  ;;  %v12185_v2 = vpop.xlane.xlu0 %4335  ;;  %v14103_v58 = vld [vmem:[#allocation102_spill] sm:$0xff] }
 0x536   :  { %4371 = vadd.xlane.f32.xlu0 %v4370_v3  ;;  %9116 = vrcp.f32 %v4279_v63  ;;  %v12195_v9 = vadd.f32 %v14104_v33, %v14103_v58  ;;  %v14105_v63 = vld [vmem:[#allocation99_spill] sm:$0xff]  ;;  %v4385_v33 = vsel %vm3394_vm2, %v12191_v37, 0.0  ;;  %v14115_v37 = vld [vmem:[#allocation30_spill] sm:$0xff] }
 0x537   :  { %9118 = vrcp.f32 %v4306_v55  ;;  %v4059_v55 = vmul.f32 1.442695, %v3855_v28  ;;  %v12205_v3 = vadd.f32 %v9502_v23, %v14105_v63  ;;  %v14110_v63 = vld [vmem:[#allocation111_spill] sm:$0xff] }
 0x539   :  { %4362 = vadd.xlane.f32.xlu1 %v4361_v1  ;;  %v4303_v22 = vpop.xlane.xlu1 %4302  ;;  %v12199_v24 = vpop.xlane.xlu0 %3687  ;;  %v14107_v1 = vld [vmem:[#allocation55_spill] sm:$0xff] }
 0x53a   :  { %9120 = vrcp.f32 %v4303_v22  ;;  %4395 = vadd.xlane.f32.xlu0 %v4394_v31  ;;  %v12211_v58 = vadd.f32 %v14107_v1, %v14106_v53  ;;  %v9113_v31 = vpop.eup %9112 }
 0x53b   :  { %9122 = vpow2.f32 %v4043_v38  ;;  %v3746_v38 = vsel %vm3394_vm2, %v12195_v9, -inf  ;;  %v12219_v23 = vpop.eup %9114  ;;  %v4626_v8 = vmul.f32 %v9113_v31, %v14112_v15 }
 0x53c   :  { %9124 = vpow2.f32 %v4065_v47  ;;  %14108 = vst [vmem:[#allocation38_spill] sm:$0xff] %v12211_v58  ;;  %14109 = vst [vmem:[#allocation103_spill] sm:$0xff] %v12219_v23  ;;  %v9503_v47 = vld [vmem:[%s13548_s1 + $0xd0] sm:$0xff] }
 0x53d   :  { %4386 = vadd.xlane.f32.xlu1 %v4385_v33  ;;  %v12213_v22 = vpop.xlane.xlu1 %3654  ;;  %v12217_v28 = vpop.xlane.xlu0 %3711  ;;  %9126 = vpow2.f32 %v4059_v55  ;;  %v12225_v53 = vadd.f32 %v9503_v47, %v14110_v63  ;;  %v3737_v33 = vsel %vm3394_vm2, %v12205_v3, -inf  ;;  %v14113_v47 = vld [vmem:[#allocation62_spill] sm:$0xff] }
 0x53e   :  { %3747 = vmax.xlane.f32.xlu0 %v3746_v38  ;;  %v3770_v38 = vsel %vm3394_vm2, %v12211_v58, -inf  ;;  %v3849_v63 = vsub.f32 %v14113_v47, %v11800_v34 }
 0x53f   :  { %14111 = vst [vmem:[#allocation70_spill] sm:$0xff] %v12225_v53 }
 0x540   :  { %v9117_v1 = vpop.eup %9116 }
 0x541   :  { %3738 = vmax.xlane.f32.xlu1 %v3737_v33  ;;  %v12229_v59 = vpop.xlane.xlu1 %3678  ;;  %v9119_v55 = vpop.eup %9118  ;;  %v4624_v13 = vmul.f32 %v9117_v1, %v11648_v4  ;;  %v3761_v33 = vsel %vm3394_vm2, %v12225_v53, -inf  ;;  %v4376_v4 = vsel %vm3394_vm2, %v12219_v23, 0.0 }
 0x542   :  { %3771 = vmax.xlane.f32.xlu0 %v3770_v38  ;;  %v12235_v35 = vpop.xlane.xlu0 %4317  ;;  %v4642_v19 = vmul.f32 %v9119_v55, %v14115_v37 }
 0x543   :  { %v8583_v20 = vpack.c.bf16 %v4626_v8, %v4624_v13  ;;  %v4047_v8 = vmul.f32 1.442695, %v3849_v63  ;;  %v14117_v13 = vld [vmem:[#allocation73_spill] sm:$0xff] }
 0x544   :  { %v9121_v46 = vpop.eup %9120  ;;  %v3857_v1 = vsub.f32 %v14117_v13, %v11816_v7  ;;  %v14122_v13 = vld [vmem:[#allocation113_spill] sm:$0xff] }
 0x545   :  { %v12241_v39 = vpop.eup %9122  ;;  %v4640_v61 = vmul.f32 %v9121_v46, %v11662_v21  ;;  %3762 = vmax.xlane.f32.xlu1 %v3761_v33  ;;  %v12245_v15 = vpop.xlane.xlu1 %4308  ;;  %8585 = vmatpush3.bf16.xpose.msk.msra.mxu1 %vm11328_vm3, %v8583_v20  ;;  %9128 = vpow2.f32 %v4047_v8 }
 0x546   :  { %14114 = vst [vmem:[#allocation97_spill] sm:$0xff] %v12241_v39  ;;  %v12249_v31 = vpop.eup %9124  ;;  %4377 = vadd.xlane.f32.xlu0 %v4376_v4  ;;  %v4342_v34 = vpop.xlane.xlu0 %4341  ;;  %8602 = vmatprep.subr.bf16.mxu1 %v13934_v10  ;;  %v4367_v21 = vsel %vm3394_vm2, %v12241_v39, 0.0  ;;  %v4063_v7 = vmul.f32 1.442695, %v3857_v1 }
 0x547   :  { %14116 = vst [vmem:[#allocation88_spill] sm:$0xff] %v12249_v31  ;;  %v8599_v37 = vpack.c.bf16 %v4642_v19, %v4640_v61  ;;  %v12258_v46 = vpop.eup %9126  ;;  %v4400_v55 = vsel %vm3394_vm2, %v12249_v31, 0.0  ;;  %v14119_v19 = vld [vmem:[#allocation104_spill] sm:$0xff] }
 0x548   :  { %14118 = vst [vmem:[#allocation49_spill] sm:$0xff] %v12258_v46  ;;  %v14120_v61 = vld [vmem:[#allocation76_spill] sm:$0xff]  ;;  %v4391_v63 = vsel %vm3394_vm2, %v12258_v46, 0.0  ;;  %9130 = vpow2.f32 %v4063_v7 }
 0x549   :  { %4368 = vadd.xlane.f32.xlu1 %v4367_v21  ;;  %v4333_v38 = vpop.xlane.xlu1 %4332  ;;  %8601 = vmatpush3.bf16.xpose.msk.msra.mxu0 %vm11328_vm3, %v8599_v37  ;;  %v12269_v47 = vadd.f32 %v14120_v61, %v14119_v19  ;;  %v14123_v37 = vld [vmem:[#allocation23_spill] sm:$0xff] }
 0x54a   :  { %4401 = vadd.xlane.f32.xlu0 %v4400_v55  ;;  %v12264_v20 = vpop.xlane.xlu0 %3693  ;;  %8618 = vmatprep.subr.bf16.mxu0 %v13934_v10  ;;  %v12279_v21 = vadd.f32 %v14123_v37, %v14122_v13  ;;  %9132 = vrcp.f32 %v4333_v38 }
 0x54b   :  { %14121 = vst [vmem:[#allocation16_spill] sm:$0xff] %v12269_v47  ;;  %v3743_v8 = vsel %vm3394_vm2, %v12269_v47, -inf  ;;  %9134 = vrcp.f32 %v12185_v2 }
 0x54c   :  { %14124 = vst [vmem:[#allocation39_spill] sm:$0xff] %v12279_v21  ;;  %v3767_v19 = vsel %vm3394_vm2, %v12279_v21, -inf }
 0x54d   :  { %4392 = vadd.xlane.f32.xlu1 %v4391_v63  ;;  %v12273_v33 = vpop.xlane.xlu1 %3684 }
 0x54e   :  { %v12275_v4 = vpop.xlane.xlu0 %3717 }
 0x54f   :  { %v12289_v61 = vpop.eup %9128 }
 0x550   :  { %14125 = vst [vmem:[#allocation116_spill] sm:$0xff] %v12289_v61  ;;  %v4373_v13 = vsel %vm3394_vm2, %v12289_v61, 0.0 }
 0x551   :  { %3744 = vmax.xlane.f32.xlu1 %v3743_v8  ;;  %v12283_v1 = vpop.xlane.xlu1 %3708 }
 0x552   :  { %v12285_v55 = vpop.xlane.xlu0 %4323  ;;  %v12293_v37 = vpop.eup %9130 }
 0x553   :  { %14126 = vst [vmem:[#allocation48_spill] sm:$0xff] %v12293_v37  ;;  %v4397_v39 = vsel %vm3394_vm2, %v12293_v37, 0.0 }
 0x555   :  { %3768 = vmax.xlane.f32.xlu1 %v3767_v19  ;;  %v4315_v63 = vpop.xlane.xlu1 %4314 }
 0x556   :  { %v4348_v7 = vpop.xlane.xlu0 %4347 }
 0x559   :  { %4374 = vadd.xlane.f32.xlu1 %v4373_v13  ;;  %v4339_v8 = vpop.xlane.xlu1 %4338  ;;  %v9133_v13 = vpop.eup %9132 }
 0x55a   :  { %v12295_v23 = vpop.xlane.xlu0 %3699  ;;  %9136 = vrcp.f32 %v4339_v8  ;;  %v9135_v46 = vpop.eup %9134  ;;  %v4660_v21 = vmul.f32 %v9133_v13, %v11730_v32 }
 0x55b   :  { %9138 = vrcp.f32 %v4342_v34 }
 0x55c   :  { %9140 = vrcp.f32 %v4348_v7 }
 0x55d   :  { %4398 = vadd.xlane.f32.xlu1 %v4397_v39  ;;  %v12300_v31 = vpop.xlane.xlu1 %3690  ;;  %v4662_v39 = vmul.f32 %v9135_v46, %v11654_v52 }
 0x55e   :  { %v12302_v19 = vpop.xlane.xlu0 %3723 }
 0x55f   :  { %v8619_v58 = vpack.c.bf16 %v4662_v39, %v4660_v21 }
 0x560   :  { %5485 = vrot.lane.b32.xlu0 %v11985_v30, %s9525_s24 }
 0x561   :  { %v12306_v61 = vpop.xlane.xlu1 %3714 }
 0x562   :  { %v12308_v38 = vpop.xlane.xlu0 %4329 }
 0x564   :  { %v9137_v30 = vpop.eup %9136 }
 0x565   :  { %v4321_v2 = vpop.xlane.xlu1 %4320  ;;  %v9139_v32 = vpop.eup %9138  ;;  %v4664_v52 = vmul.f32 %v9137_v30, %v11794_v45  ;;  %v14128_v45 = vld [vmem:[#allocation59_spill] sm:$0xff] }
 0x566   :  { %v4354_v37 = vpop.xlane.xlu0 %4353  ;;  %v9141_v21 = vpop.eup %9140  ;;  %v3868_v8 = vsub.f32 %v14128_v45, %v11804_v62 }
 0x568   :  { %v4085_v30 = vmul.f32 1.442695, %v3868_v8 }
 0x569   :  { %v4345_v47 = vpop.xlane.xlu1 %4344 }
 0x56a   :  { %9142 = vrcp.f32 %v4345_v47  ;;  %v5290_v53 = vpop.permute.xlu0 %5289 }
 0x56b   :  { %8298 = vmatmul.mubr.msk.f32.vlgmr.msra.gmra.mrb[76].mxu0 %vm3394_vm2, %v5290_v53  ;;  %9144 = vrcp.f32 %v12245_v15  ;;  %v4666_v53 = vmul.f32 %v9139_v32, %v11722_v5  ;;  %v14127_v15 = vld [vmem:[#allocation40_spill] sm:$0xff]  ;;  %v14129_v32 = vld [vmem:[#allocation42_spill] sm:$0xff] }
 0x56c   :  { %8621 = vmatpush3.bf16.xpose.msk.msra.mxu0 %vm11328_vm3, %v8619_v58  ;;  %8335 = vmatprep.mubr.msk.f32.mxu0 %vm9528_vm4, %v13960_v49  ;;  %9146 = vrcp.f32 %v12171_v0  ;;  %v3860_v58 = vsub.f32 %v14127_v15, %v11788_v48  ;;  %v4670_v48 = vmul.f32 %v9141_v21, %v11786_v11  ;;  %v14132_v11 = vld [vmem:[#allocation26_spill] sm:$0xff]  ;;  %v14134_v21 = vld [vmem:[#allocation121_spill] sm:$0xff] }
 0x56d   :  { %v12318_v34 = vpop.xlane.xlu1 %3696  ;;  %8622 = vmatprep.subr.bf16.mxu0 %v13934_v10  ;;  %v8623_v47 = vpack.c.bf16 %v4666_v53, %v4664_v52  ;;  %9148 = vrcp.f32 %v4315_v63  ;;  %v3862_v52 = vsub.f32 %v14129_v32, %v11848_v18  ;;  %v14130_v53 = vld [vmem:[#allocation124_spill] sm:$0xff] }
 0x56e   :  { %5387 = vrot.lane.b32.xlu1 %v12050_v17, %s9525_s24  ;;  %v4069_v0 = vmul.f32 1.442695, %v3860_v58  ;;  %9150 = vrcp.f32 %v12235_v35  ;;  %v14131_v58 = vld [vmem:[#allocation106_spill] sm:$0xff]  ;;  %v14133_v35 = vld [vmem:[#allocation44_spill] sm:$0xff] }
 0x56f   :  { %9152 = vrcp.f32 %v4354_v37  ;;  %v3870_v37 = vsub.f32 %v14133_v35, %v14132_v11  ;;  %v4073_v18 = vmul.f32 1.442695, %v3862_v52  ;;  %v14140_v35 = vld [vmem:[#allocation53_spill] sm:$0xff] }
 0x570   :  { %9154 = vpow2.f32 %v4069_v0 }
 0x571   :  { %v12328_v46 = vpop.xlane.xlu1 %3720 }
 0x574   :  { %v9143_v7 = vpop.eup %9142  ;;  %8625 = vmatpush3.bf16.xpose.msk.msra.mxu0 %vm11328_vm3, %v8623_v47 }
 0x575   :  { %v4668_v17 = vmul.f32 %v9143_v7, %v11854_v43  ;;  %v4327_v13 = vpop.xlane.xlu1 %4326  ;;  %8626 = vmatprep.subr.bf16.mxu0 %v13934_v10  ;;  %v9145_v5 = vpop.eup %9144  ;;  %v9504_v43 = vld [vmem:[%s13548_s1 + $0xb8] sm:$0xff] }
 0x576   :  { %v9147_v39 = vpop.eup %9146  ;;  %v4644_v62 = vmul.f32 %v9145_v5, %v14130_v53  ;;  %v12345_v47 = vadd.f32 %v9504_v43, %v14131_v58  ;;  %v14135_v5 = vld [vmem:[#allocation115_spill] sm:$0xff] }
 0x577   :  { %v8627_v63 = vpack.c.bf16 %v4670_v48, %v4668_v17  ;;  %v4646_v7 = vmul.f32 %v9147_v39, %v14134_v21  ;;  %v9149_v8 = vpop.eup %9148  ;;  %v9505_v17 = vld [vmem:[%s13548_s1 + $0xf8] sm:$0xff]  ;;  %v4089_v39 = vmul.f32 1.442695, %v3870_v37  ;;  %v14138_v43 = vld [vmem:[#allocation123_spill] sm:$0xff] }
 0x578   :  { %v12357_v48 = vadd.f32 %v9505_v17, %v14135_v5 }
 0x579   :  { %v4351_v15 = vpop.xlane.xlu1 %4350  ;;  %v8603_v45 = vpack.c.bf16 %v4646_v7, %v4644_v62  ;;  %v14141_v7 = vld [vmem:[#allocation71_spill] sm:$0xff] }
 0x57a   :  { %9156 = vrcp.f32 %v4351_v15  ;;  %v3776_v62 = vsel %vm3394_vm2, %v12357_v48, -inf }
 0x57b   :  { %9158 = vrcp.f32 %v4321_v2  ;;  %v3752_v2 = vsel %vm3394_vm2, %v12345_v47, -inf }
 0x57c   :  { %8629 = vmatpush3.bf16.xpose.msk.msra.mxu0 %vm11328_vm3, %v8627_v63  ;;  %9160 = vpow2.f32 %v4085_v30  ;;  %v9151_v63 = vpop.eup %9150  ;;  %v14136_v30 = vld [vmem:[#allocation54_spill] sm:$0xff] }
 0x57d   :  { %v5192_v0 = vpop.permute.xlu1 %5191  ;;  %8630 = vmatprep.subr.bf16.mxu0 %v13934_v10  ;;  %9162 = vrcp.f32 %v12285_v55  ;;  %v3864_v32 = vsub.f32 %v14136_v30, %v12054_v54  ;;  %v14137_v55 = vld [vmem:[#allocation129_spill] sm:$0xff]  ;;  %v9153_v53 = vpop.eup %9152  ;;  %v4650_v58 = vmul.f32 %v9151_v63, %v14138_v43  ;;  %v14139_v54 = vld [vmem:[#allocation91_spill] sm:$0xff] }
 0x57e   :  { %8279 = vmatmul.mubr.msk.f32.vlgmr.msra.gmra.mrb[84].mxu1 %vm3394_vm2, %v5192_v0  ;;  %9164 = vpow2.f32 %v4073_v18  ;;  %v4648_v52 = vmul.f32 %v9149_v8, %v14137_v55  ;;  %v12373_v15 = vpop.eup %9154  ;;  %v3859_v37 = vsub.f32 %v14140_v35, %v14139_v54  ;;  %v3872_v18 = vsub.f32 %v14141_v7, %v12081_v25  ;;  %v14142_v0 = vld [vmem:[#allocation96_spill] sm:$0xff]  ;;  %v14143_v30 = vld [vmem:[#allocation85_spill] sm:$0xff] }
 0x57f   :  { %3753 = vmax.xlane.f32.xlu0 %v3752_v2  ;;  %8605 = vmatpush3.bf16.xpose.msk.msra.mxu1 %vm11328_vm3, %v8603_v45  ;;  %9166 = vpow2.f32 %v4089_v39  ;;  %v4077_v21 = vmul.f32 1.442695, %v3864_v32  ;;  %v4674_v45 = vmul.f32 %v9153_v53, %v14142_v0  ;;  %v4406_v2 = vsel %vm3394_vm2, %v12373_v15, 0.0  ;;  %v14144_v32 = vld [vmem:[#allocation67_spill] sm:$0xff]  ;;  %v14146_v53 = vld [vmem:[#allocation110_spill] sm:$0xff]  ;;  %v14147_v54 = vld [vmem:[#allocation108_spill] sm:$0xff] }
 0x580   :  { %8606 = vmatprep.subr.bf16.mxu1 %v13934_v10  ;;  %8316 = vmatprep.mubr.msk.f32.mxu1 %vm9528_vm4, %v13960_v49  ;;  %9168 = vrcp.f32 %v4327_v13  ;;  %v8607_v17 = vpack.c.bf16 %v4650_v58, %v4648_v52  ;;  %v4067_v25 = vmul.f32 1.442695, %v3859_v37  ;;  %v3867_v55 = vsub.f32 %v14144_v32, %v14143_v30  ;;  %v14149_v7 = vld [vmem:[#allocation68_spill] sm:$0xff]  ;;  %v14151_v30 = vld [vmem:[#allocation47_spill] sm:$0xff] }
 0x581   :  { %9170 = vrcp.f32 %v12308_v38  ;;  %v14145_v38 = vld [vmem:[#allocation50_spill] sm:$0xff] }
 0x582   :  { %9172 = vpow2.f32 %v4077_v21  ;;  %v3866_v52 = vsub.f32 %v14145_v38, %v12130_v56  ;;  %v14148_v56 = vld [vmem:[#allocation128_spill] sm:$0xff]  ;;  %v4083_v21 = vmul.f32 1.442695, %v3867_v55 }
 0x583   :  { %3777 = vmax.xlane.f32.xlu0 %v3776_v62  ;;  %9174 = vpow2.f32 %v4067_v25  ;;  %v9507_v25 = vld [vmem:[%s13548_s1 + $0xf0] sm:$0xff] }
 0x584   :  { %v9157_v11 = vpop.eup %9156  ;;  %v12425_v32 = vadd.f32 %v9507_v25, %v14151_v30  ;;  %v14152_v55 = vld [vmem:[#allocation32_spill] sm:$0xff]  ;;  %v14159_v25 = vld [vmem:[#allocation75_spill] sm:$0xff] }
 0x585   :  { %v4672_v8 = vmul.f32 %v9157_v11, %v11895_v27  ;;  %v9159_v5 = vpop.eup %9158  ;;  %v4093_v27 = vmul.f32 1.442695, %v3872_v18  ;;  %v9506_v11 = vld [vmem:[%s13548_s1 + $0xb0] sm:$0xff]  ;;  %v3861_v18 = vsub.f32 %v14149_v7, %v11897_v16  ;;  %v3871_v30 = vsub.f32 %v14159_v25, %v12165_v36 }
 0x586   :  { %v12385_v39 = vpop.eup %9160  ;;  %v4652_v62 = vmul.f32 %v9159_v5, %v14146_v53  ;;  %v12406_v35 = vadd.f32 %v9506_v11, %v14147_v54  ;;  %v14154_v53 = vld [vmem:[#allocation20_spill] sm:$0xff] }
 0x587   :  { %4407 = vadd.xlane.f32.xlu0 %v4406_v2  ;;  %8609 = vmatpush3.bf16.xpose.msk.msra.mxu1 %vm11328_vm3, %v8607_v17  ;;  %v8631_v13 = vpack.c.bf16 %v4674_v45, %v4672_v8  ;;  %v9163_v63 = vpop.eup %9162  ;;  %v4430_v43 = vsel %vm3394_vm2, %v12385_v39, 0.0  ;;  %9176 = vpow2.f32 %v4093_v27  ;;  %v4081_v45 = vmul.f32 1.442695, %v3866_v52  ;;  %v14150_v8 = vld [vmem:[#allocation18_spill] sm:$0xff]  ;;  %v14153_v27 = vld [vmem:[#allocation28_spill] sm:$0xff] }
 0x588   :  { %8610 = vmatprep.subr.bf16.mxu1 %v13934_v10  ;;  %v12400_v58 = vpop.eup %9164  ;;  %v4654_v37 = vmul.f32 %v9163_v63, %v14148_v56  ;;  %v3874_v17 = vsub.f32 %v14150_v8, %v12155_v42  ;;  %v3749_v63 = vsel %vm3394_vm2, %v12406_v35, -inf  ;;  %9178 = vpow2.f32 %v4083_v21 }
 0x589   :  { %8633 = vmatpush3.bf16.xpose.msk.msra.mxu0 %vm11328_vm3, %v8631_v13  ;;  %v12411_v0 = vpop.eup %9166  ;;  %v4412_v13 = vsel %vm3394_vm2, %v12400_v58, 0.0  ;;  %v4071_v42 = vmul.f32 1.442695, %v3861_v18  ;;  %v3869_v38 = vsub.f32 %v14153_v27, %v14152_v55  ;;  %9180 = vpow2.f32 %v4081_v45  ;;  %v14157_v18 = vld [vmem:[#allocation52_spill] sm:$0xff] }
 0x58a   :  { %8650 = vmatprep.subr.bf16.mxu0 %v13934_v10  ;;  %v8611_v5 = vpack.c.bf16 %v4654_v37, %v4652_v62  ;;  %v9169_v2 = vpop.eup %9168  ;;  %v4097_v52 = vmul.f32 1.442695, %v3874_v17  ;;  %v3876_v62 = vsub.f32 %v14154_v53, %v12199_v24  ;;  %v4436_v54 = vsel %vm3394_vm2, %v12411_v0, 0.0  ;;  %v14156_v37 = vld [vmem:[#allocation36_spill] sm:$0xff]  ;;  %v14158_v17 = vld [vmem:[#allocation19_spill] sm:$0xff] }
 0x58b   :  { %4431 = vadd.xlane.f32.xlu0 %v4430_v43  ;;  %v9171_v16 = vpop.eup %9170  ;;  %v14155_v43 = vld [vmem:[#allocation100_spill] sm:$0xff]  ;;  %9182 = vpow2.f32 %v4071_v42  ;;  %v4087_v7 = vmul.f32 1.442695, %v3869_v38  ;;  %v3863_v45 = vsub.f32 %v14157_v18, %v12148_v12  ;;  %v3773_v8 = vsel %vm3394_vm2, %v12425_v32, -inf }
 0x58c   :  { %v4656_v11 = vmul.f32 %v9169_v2, %v14155_v43  ;;  %v12435_v56 = vpop.eup %9172  ;;  %v4658_v21 = vmul.f32 %v9171_v16, %v14156_v37  ;;  %9184 = vpow2.f32 %v4097_v52  ;;  %v4101_v24 = vmul.f32 1.442695, %v3876_v62  ;;  %v14160_v42 = vld [vmem:[#allocation24_spill] sm:$0xff]  ;;  %v14161_v43 = vld [vmem:[#allocation22_spill] sm:$0xff] }
 0x58d   :  { %9186 = vpow2.f32 %v4087_v7  ;;  %v4075_v12 = vmul.f32 1.442695, %v3863_v45  ;;  %v3878_v55 = vsub.f32 %v14160_v42, %v12264_v20  ;;  %v4091_v62 = vmul.f32 1.442695, %v3871_v30  ;;  %v14165_v42 = vld [vmem:[#allocation125_spill] sm:$0xff] }
 0x58e   :  { %v8615_v2 = vpack.c.bf16 %v4658_v21, %v4656_v11  ;;  %9188 = vpow2.f32 %v4101_v24  ;;  %v3865_v11 = vsub.f32 %v14161_v43, %v12213_v22  ;;  %v14163_v24 = vld [vmem:[#allocation122_spill] sm:$0xff] }
 0x58f   :  { %4413 = vadd.xlane.f32.xlu0 %v4412_v13  ;;  %8613 = vmatpush3.bf16.xpose.msk.msra.mxu1 %vm11328_vm3, %v8611_v5  ;;  %v3884_v5 = vsub.f32 %v14158_v17, %v12217_v28  ;;  %v12444_v13 = vpop.eup %9174  ;;  %9190 = vpow2.f32 %v4075_v12  ;;  %v4105_v20 = vmul.f32 1.442695, %v3878_v55  ;;  %v3873_v17 = vsub.f32 %v14163_v24, %v12229_v59 }
 0x590   :  { %8614 = vmatprep.subr.bf16.mxu1 %v13934_v10  ;;  %v4403_v27 = vsel %vm3394_vm2, %v12444_v13, 0.0  ;;  %v4079_v22 = vmul.f32 1.442695, %v3865_v11  ;;  %v3875_v55 = vsub.f32 %v14165_v42, %v12273_v33 }
 0x591   :  { %v12448_v16 = vpop.eup %9176  ;;  %v4117_v28 = vmul.f32 1.442695, %v3884_v5  ;;  %v14164_v5 = vld [vmem:[#allocation34_spill] sm:$0xff]  ;;  %v4095_v59 = vmul.f32 1.442695, %v3873_v17 }
 0x592   :  { %3750 = vmax.xlane.f32.xlu1 %v3749_v63  ;;  %v4418_v63 = vsel %vm3394_vm2, %v12435_v56, 0.0  ;;  %v12459_v38 = vpop.eup %9178  ;;  %v4442_v52 = vsel %vm3394_vm2, %v12448_v16, 0.0  ;;  %v4099_v33 = vmul.f32 1.442695, %v3875_v55 }
 0x593   :  { %4437 = vadd.xlane.f32.xlu0 %v4436_v54  ;;  %v12463_v53 = vpop.eup %9180  ;;  %9192 = vpow2.f32 %v4117_v28  ;;  %v14162_v54 = vld [vmem:[#allocation126_spill] sm:$0xff]  ;;  %v4427_v21 = vsel %vm3394_vm2, %v12459_v38, 0.0 }
 0x594   :  { %v3886_v37 = vsub.f32 %v14162_v54, %v12275_v4  ;;  %v4424_v18 = vsel %vm3394_vm2, %v12463_v53, 0.0  ;;  %9194 = vpow2.f32 %v4091_v62 }
 0x595   :  { %v12471_v7 = vpop.eup %9182  ;;  %9196 = vpow2.f32 %v4105_v20 }
 0x596   :  { %3774 = vmax.xlane.f32.xlu1 %v3773_v8  ;;  %v12475_v45 = vpop.eup %9184  ;;  %v4121_v4 = vmul.f32 1.442695, %v3886_v37  ;;  %9198 = vpow2.f32 %v4079_v22  ;;  %v14167_v37 = vld [vmem:[#allocation127_spill] sm:$0xff] }
 0x597   :  { %4419 = vadd.xlane.f32.xlu0 %v4418_v63  ;;  %8617 = vmatpush3.bf16.xpose.msk.msra.mxu1 %vm11328_vm3, %v8615_v2  ;;  %v3880_v2 = vsub.f32 %v14164_v5, %v12295_v23  ;;  %v4409_v63 = vsel %vm3394_vm2, %v12471_v7, 0.0  ;;  %v12483_v12 = vpop.eup %9186  ;;  %v4448_v25 = vsel %vm3394_vm2, %v12475_v45, 0.0 }
 0x598   :  { %8634 = vmatprep.subr.bf16.mxu1 %v13934_v10  ;;  %v12487_v30 = vpop.eup %9188  ;;  %9200 = vpow2.f32 %v4121_v4  ;;  %v4433_v62 = vsel %vm3394_vm2, %v12483_v12, 0.0 }
 0x599   :  { %v4109_v23 = vmul.f32 1.442695, %v3880_v2  ;;  %v12497_v43 = vpop.eup %9190  ;;  %v4454_v11 = vsel %vm3394_vm2, %v12487_v30, 0.0  ;;  %9202 = vpow2.f32 %v4095_v59 }
 0x59a   :  { %4404 = vadd.xlane.f32.xlu1 %v4403_v27  ;;  %v14166_v27 = vld [vmem:[#allocation81_spill] sm:$0xff]  ;;  %v4415_v22 = vsel %vm3394_vm2, %v12497_v43, 0.0 }
 0x59b   :  { %4443 = vadd.xlane.f32.xlu0 %v4442_v52  ;;  %v3706_v36 = vpop.xlane.xlu0 %3705  ;;  %v3888_v52 = vsub.f32 %v14166_v27, %v12302_v19  ;;  %9204 = vpow2.f32 %v4109_v23 }
 0x59c   :  { %9206 = vpow2.f32 %v4099_v33 }
 0x59d   :  { %v12501_v20 = vpop.eup %9192  ;;  %v4125_v19 = vmul.f32 1.442695, %v3888_v52  ;;  %v14169_v52 = vld [vmem:[#allocation86_spill] sm:$0xff] }
 0x59e   :  { %4428 = vadd.xlane.f32.xlu1 %v4427_v21  ;;  %v3883_v21 = vsub.f32 %v14167_v37, %v12283_v1  ;;  %v12510_v24 = vpop.eup %9194  ;;  %v4478_v17 = vsel %vm3394_vm2, %v12501_v20, 0.0  ;;  %v14168_v1 = vld [vmem:[#allocation83_spill] sm:$0xff] }
 0x59f   :  { %4425 = vadd.xlane.f32.xlu0 %v4424_v18  ;;  %v3730_v8 = vpop.xlane.xlu0 %3729  ;;  %v3882_v18 = vsub.f32 %v11979_v14, %v3706_v36  ;;  %v12514_v4 = vpop.eup %9196  ;;  %9208 = vpow2.f32 %v4125_v19 }
 0x5a0   :  { %v4115_v2 = vmul.f32 1.442695, %v3883_v21  ;;  %v3890_v36 = vsub.f32 %v11997_v44, %v3730_v8  ;;  %v12521_v59 = vpop.eup %9198  ;;  %v4460_v55 = vsel %vm3394_vm2, %v12514_v4, 0.0 }
 0x5a1   :  { %v4113_v14 = vmul.f32 1.442695, %v3882_v18 }
 0x5a2   :  { %4410 = vadd.xlane.f32.xlu1 %v4409_v63  ;;  %v3877_v63 = vsub.f32 %v14168_v1, %v12300_v31  ;;  %v12525_v23 = vpop.eup %9200  ;;  %9210 = vpow2.f32 %v4115_v2  ;;  %v4129_v44 = vmul.f32 1.442695, %v3890_v36 }
 0x5a3   :  { %4449 = vadd.xlane.f32.xlu0 %v4448_v25  ;;  %v12489_v28 = vpop.xlane.xlu0 %4359  ;;  %v4439_v25 = vsel %vm3394_vm2, %v12510_v24, 0.0  ;;  %9212 = vpow2.f32 %v4113_v14  ;;  %v12532_v33 = vpop.eup %9202  ;;  %v4484_v21 = vsel %vm3394_vm2, %v12525_v23, 0.0 }
 0x5a4   :  { %v4103_v31 = vmul.f32 1.442695, %v3877_v63  ;;  %v4445_v2 = vsel %vm3394_vm2, %v12532_v33, 0.0 }
 0x5a5   :  { %v12538_v19 = vpop.eup %9204 }
 0x5a6   :  { %4434 = vadd.xlane.f32.xlu1 %v4433_v62  ;;  %v3885_v62 = vsub.f32 %v14169_v52, %v12306_v61  ;;  %9214 = vpow2.f32 %v4103_v31  ;;  %v12547_v1 = vpop.eup %9206  ;;  %v4466_v14 = vsel %vm3394_vm2, %v12538_v19, 0.0 }
 0x5a7   :  { %4455 = vadd.xlane.f32.xlu0 %v4454_v11  ;;  %v12503_v54 = vpop.xlane.xlu0 %4383  ;;  %v4421_v11 = vsel %vm3394_vm2, %v12521_v59, 0.0  ;;  %9216 = vpow2.f32 %v4129_v44  ;;  %v4451_v31 = vsel %vm3394_vm2, %v12547_v1, 0.0 }
 0x5a8   :  { %v4119_v61 = vmul.f32 1.442695, %v3885_v62 }
 0x5a9   :  { %v12553_v36 = vpop.eup %9208 }
 0x5aa   :  { %4416 = vadd.xlane.f32.xlu1 %v4415_v22  ;;  %9218 = vpow2.f32 %v4119_v61  ;;  %v4490_v44 = vsel %vm3394_vm2, %v12553_v36, 0.0 }
 0x5ab   :  { %4479 = vadd.xlane.f32.xlu0 %v4478_v17  ;;  %v3736_v5 = vpop.xlane.xlu0 %3735 }
 0x5ac   :  { %v3892_v8 = vsub.f32 %v12043_v6, %v3736_v5  ;;  %v14170_v6 = vld [vmem:[#allocation25_spill] sm:$0xff]  ;;  %v12561_v52 = vpop.eup %9210 }
 0x5ad   :  { %v3879_v22 = vsub.f32 %v14170_v6, %v12318_v34  ;;  %v4475_v6 = vsel %vm3394_vm2, %v12561_v52, 0.0 }
 0x5ae   :  { %4440 = vadd.xlane.f32.xlu1 %v4439_v25  ;;  %v3703_v42 = vpop.xlane.xlu1 %3702  ;;  %v4133_v17 = vmul.f32 1.442695, %v3892_v8  ;;  %v12565_v8 = vpop.eup %9212 }
 0x5af   :  { %4461 = vadd.xlane.f32.xlu0 %v4460_v55  ;;  %v3760_v27 = vpop.xlane.xlu0 %3759  ;;  %v4107_v34 = vmul.f32 1.442695, %v3879_v22 }
 0x5b0   :  { %v3900_v5 = vsub.f32 %v12073_v50, %v3760_v27  ;;  %v14171_v50 = vld [vmem:[#allocation43_spill] sm:$0xff]  ;;  %9220 = vpow2.f32 %v4133_v17  ;;  %v12571_v22 = vpop.eup %9214 }
 0x5b1   :  { %v3887_v55 = vsub.f32 %v14171_v50, %v12328_v46  ;;  %9222 = vpow2.f32 %v4107_v34  ;;  %v3881_v46 = vsub.f32 %v12063_v51, %v3703_v42 }
 0x5b2   :  { %4422 = vadd.xlane.f32.xlu1 %v4421_v11  ;;  %v12534_v37 = vpop.xlane.xlu1 %3726  ;;  %v4149_v27 = vmul.f32 1.442695, %v3900_v5 }
 0x5b3   :  { %4485 = vadd.xlane.f32.xlu0 %v4484_v21  ;;  %v12540_v18 = vpop.xlane.xlu0 %4365  ;;  %v4123_v21 = vmul.f32 1.442695, %v3887_v55  ;;  %v3889_v42 = vsub.f32 %v12088_v41, %v12534_v37 }
 0x5b4   :  { %9224 = vpow2.f32 %v4149_v27  ;;  %v4457_v27 = vsel %vm3394_vm2, %v12571_v22, 0.0 }
 0x5b5   :  { %9226 = vpow2.f32 %v4123_v21  ;;  %v4127_v41 = vmul.f32 1.442695, %v3889_v42 }
 0x5b6   :  { %4446 = vadd.xlane.f32.xlu1 %v4445_v2  ;;  %v12549_v63 = vpop.xlane.xlu1 %4356  ;;  %v4472_v2 = vsel %vm3394_vm2, %v12565_v8, 0.0 }
 0x5b7   :  { %4467 = vadd.xlane.f32.xlu0 %v4466_v14  ;;  %v12555_v25 = vpop.xlane.xlu0 %4389  ;;  %v12575_v14 = vpop.eup %9216 }
 0x5ba   :  { %4452 = vadd.xlane.f32.xlu1 %v4451_v31  ;;  %v4381_v62 = vpop.xlane.xlu1 %4380  ;;  %v12584_v31 = vpop.eup %9218 }
 0x5bb   :  { %4491 = vadd.xlane.f32.xlu0 %v4490_v44  ;;  %v3742_v11 = vpop.xlane.xlu0 %3741  ;;  %v12588_v21 = vpop.eup %9220  ;;  %v4481_v37 = vsel %vm3394_vm2, %v12584_v31, 0.0 }
 0x5bc   :  { %v3894_v61 = vsub.f32 %v12126_v26, %v3742_v11  ;;  %v4111_v26 = vmul.f32 1.442695, %v3881_v46  ;;  %14173 = vst [vmem:[#allocation114_spill] sm:$0xff] %v12588_v21 }
 0x5be   :  { %v4137_v17 = vmul.f32 1.442695, %v3894_v61  ;;  %4476 = vadd.xlane.f32.xlu1 %v4475_v6  ;;  %v3733_v5 = vpop.xlane.xlu1 %3732  ;;  %v12577_v34 = vpop.f32.mrb[72].mxu0  ;;  %v4496_v61 = vsel %vm3394_vm2, %v12575_v14, 0.0 }
 0x5bf   :  { %14172 = vst [vmem:[#allocation93_spill] sm:$0xff] %v12577_v34  ;;  %4473 = vadd.xlane.f32.xlu0 %v4472_v2  ;;  %v3766_v51 = vpop.xlane.xlu0 %3765  ;;  %v8223_v55 = vpop.f32.mrb[73].mxu0  ;;  %v4502_v2 = vsel %vm3394_vm2, %v12588_v21, 0.0 }
 0x5c0   :  { %v3902_v50 = vsub.f32 %v12146_v57, %v3766_v51  ;;  %9228 = vpow2.f32 %v4137_v17  ;;  %v3891_v57 = vsub.f32 %v12136_v60, %v3733_v5  ;;  %v12595_v6 = vpop.eup %9222 }
 0x5c1   :  { %9230 = vpow2.f32 %v4111_v26  ;;  %v12601_v51 = vpop.eup %9224  ;;  %v4463_v5 = vsel %vm3394_vm2, %v12595_v6, 0.0 }
 0x5c2   :  { %v4153_v44 = vmul.f32 1.442695, %v3902_v50  ;;  %4458 = vadd.xlane.f32.xlu1 %v4457_v27  ;;  %v3757_v11 = vpop.xlane.xlu1 %3756  ;;  %14174 = vst [vmem:[#allocation51_spill] sm:$0xff] %v12601_v51  ;;  %v4131_v60 = vmul.f32 1.442695, %v3891_v57  ;;  %v12606_v42 = vpop.eup %9226  ;;  %v4526_v27 = vsel %vm3394_vm2, %v12601_v51, 0.0 }
 0x5c3   :  { %4497 = vadd.xlane.f32.xlu0 %v4496_v61  ;;  %v12590_v46 = vpop.xlane.xlu0 %4371  ;;  %v3899_v50 = vsub.f32 %v12161_v40, %v3757_v11 }
 0x5c4   :  { %9232 = vpow2.f32 %v4153_v44 }
 0x5c5   :  { %9234 = vpow2.f32 %v4127_v41  ;;  %v4147_v40 = vmul.f32 1.442695, %v3899_v50  ;;  %v4487_v41 = vsel %vm3394_vm2, %v12606_v42, 0.0 }
 0x5c6   :  { %4482 = vadd.xlane.f32.xlu1 %v4481_v37  ;;  %v12597_v17 = vpop.xlane.xlu1 %4362  ;;  %9236 = vrcp.f32 %v4381_v62 }
 0x5c7   :  { %4503 = vadd.xlane.f32.xlu0 %v4502_v2  ;;  %v4396_v26 = vpop.xlane.xlu0 %4395  ;;  %9238 = vrcp.f32 %v12503_v54 }
 0x5c8   :  { %9240 = vpow2.f32 %v4131_v60 }
 0x5c9   :  { %9242 = vpow2.f32 %v4147_v40 }
 0x5ca   :  { %4464 = vadd.xlane.f32.xlu1 %v4463_v5  ;;  %v4387_v55 = vpop.xlane.xlu1 %4386  ;;  %v12610_v44 = vpop.eup %9228 }
 0x5cb   :  { %14175 = vst [vmem:[#allocation29_spill] sm:$0xff] %v12610_v44  ;;  %4527 = vadd.xlane.f32.xlu0 %v4526_v27  ;;  %v3748_v11 = vpop.xlane.xlu0 %3747  ;;  %v12616_v57 = vpop.eup %9230  ;;  %v4508_v5 = vsel %vm3394_vm2, %v12610_v44, 0.0  ;;  %v14178_v27 = vld [vmem:[#allocation38_spill] sm:$0xff] }
 0x5cc   :  { %v3896_v61 = vsub.f32 %v12195_v9, %v3748_v11 }
 0x5ce   :  { %v4141_v62 = vmul.f32 1.442695, %v3896_v61  ;;  %4488 = vadd.xlane.f32.xlu1 %v4487_v41  ;;  %v3739_v37 = vpop.xlane.xlu1 %3738  ;;  %v12618_v2 = vpop.f32.mrb[80].mxu1  ;;  %v4469_v41 = vsel %vm3394_vm2, %v12616_v57, 0.0 }
 0x5cf   :  { %14176 = vst [vmem:[#allocation60_spill] sm:$0xff] %v12618_v2  ;;  %v12622_v54 = vpop.eup %9232  ;;  %v3893_v50 = vsub.f32 %v12205_v3, %v3739_v37  ;;  %4509 = vadd.xlane.f32.xlu0 %v4508_v5  ;;  %v3772_v9 = vpop.xlane.xlu0 %3771  ;;  %v14179_v37 = vld [vmem:[#allocation70_spill] sm:$0xff] }
 0x5d0   :  { %14177 = vst [vmem:[#allocation63_spill] sm:$0xff] %v12622_v54  ;;  %v8204_v60 = vpop.f32.mrb[81].mxu1  ;;  %9244 = vpow2.f32 %v4141_v62  ;;  %v3904_v11 = vsub.f32 %v14178_v27, %v3772_v9  ;;  %v12629_v2 = vpop.eup %9234  ;;  %v4532_v3 = vsel %vm3394_vm2, %v12622_v54, 0.0 }
 0x5d1   :  { %9246 = vrcp.f32 %v12555_v25  ;;  %v4135_v61 = vmul.f32 1.442695, %v3893_v50  ;;  %v9237_v25 = vpop.eup %9236  ;;  %v4493_v60 = vsel %vm3394_vm2, %v12629_v2, 0.0 }
 0x5d2   :  { %9248 = vrcp.f32 %v4387_v55  ;;  %v4157_v34 = vmul.f32 1.442695, %v3904_v11  ;;  %4470 = vadd.xlane.f32.xlu1 %v4469_v41  ;;  %v3763_v40 = vpop.xlane.xlu1 %3762  ;;  %v9239_v50 = vpop.eup %9238  ;;  %v14181_v11 = vld [vmem:[#allocation10_spill] sm:$0xff] }
 0x5d3   :  { %9250 = vpow2.f32 %v4135_v61  ;;  %v3901_v62 = vsub.f32 %v14179_v37, %v3763_v40  ;;  %4533 = vadd.xlane.f32.xlu0 %v4532_v3  ;;  %v12634_v5 = vpop.xlane.xlu0 %4377  ;;  %v12638_v55 = vpop.eup %9240  ;;  %v4692_v41 = vmul.f32 %v9237_v25, %v14181_v11  ;;  %v14182_v3 = vld [vmem:[#allocation82_spill] sm:$0xff] }
 0x5d4   :  { %9252 = vpow2.f32 %v4157_v34  ;;  %14180 = vst [vmem:[#allocation77_spill] sm:$0xff] %v12638_v55  ;;  %v12643_v40 = vpop.eup %9242  ;;  %v4694_v37 = vmul.f32 %v9239_v50, %v14182_v3  ;;  %v4499_v34 = vsel %vm3394_vm2, %v12638_v55, 0.0  ;;  %v14185_v3 = vld [vmem:[#allocation80_spill] sm:$0xff] }
 0x5d5   :  { %v4151_v9 = vmul.f32 1.442695, %v3901_v62 }
 0x5d6   :  { %4494 = vadd.xlane.f32.xlu1 %v4493_v60  ;;  %v12640_v27 = vpop.xlane.xlu1 %4368  ;;  %v8651_v11 = vpack.c.bf16 %v4694_v37, %v4692_v41 }
 0x5d7   :  { %v4402_v61 = vpop.xlane.xlu0 %4401  ;;  %9254 = vpow2.f32 %v4151_v9 }
 0x5d8   :  { %9256 = vrcp.f32 %v4396_v26  ;;  %v4523_v26 = vsel %vm3394_vm2, %v12643_v40, 0.0 }
 0x5da   :  { %v12648_v62 = vpop.eup %9244  ;;  %4500 = vadd.xlane.f32.xlu1 %v4499_v34  ;;  %v4393_v44 = vpop.xlane.xlu1 %4392  ;;  %v14187_v34 = vld [vmem:[#allocation16_spill] sm:$0xff] }
 0x5db   :  { %14183 = vst [vmem:[#allocation119_spill] sm:$0xff] %v12648_v62  ;;  %v9247_v21 = vpop.eup %9246  ;;  %9258 = vrcp.f32 %v4393_v44  ;;  %v5486_v60 = vpop.permute.xlu0 %5485  ;;  %v4514_v25 = vsel %vm3394_vm2, %v12648_v62, 0.0  ;;  %v14188_v62 = vld [vmem:[#allocation101_spill] sm:$0xff] }
 0x5dc   :  { %v9249_v9 = vpop.eup %9248  ;;  %4515 = vadd.xlane.f32.xlu0 %v4514_v25  ;;  %8336 = vmatmul.mubr.msk.f32.vlgmr.msra.gmra.mrb[78].mxu0 %vm3394_vm2, %v5486_v60  ;;  %9260 = vrcp.f32 %v12549_v63  ;;  %v4698_v55 = vmul.f32 %v9247_v21, %v14188_v62  ;;  %v14190_v62 = vld [vmem:[#allocation49_spill] sm:$0xff] }
 0x5dd   :  { %v12653_v50 = vpop.eup %9250  ;;  %8653 = vmatpush3.bf16.xpose.msk.msra.mxu0 %vm11328_vm3, %v8651_v11  ;;  %8373 = vmatprep.mubr.msk.f32.mxu0 %vm9528_vm4, %v13960_v49  ;;  %9262 = vrcp.f32 %v12489_v28  ;;  %v4696_v37 = vmul.f32 %v9249_v9, %v14185_v3  ;;  %v14189_v9 = vld [vmem:[#allocation39_spill] sm:$0xff] }
 0x5de   :  { %14184 = vst [vmem:[#allocation94_spill] sm:$0xff] %v12653_v50  ;;  %v12662_v44 = vpop.eup %9252  ;;  %4524 = vadd.xlane.f32.xlu1 %v4523_v26  ;;  %v3745_v41 = vpop.xlane.xlu1 %3744  ;;  %8654 = vmatprep.subr.bf16.mxu0 %v13934_v10  ;;  %v4505_v26 = vsel %vm3394_vm2, %v12653_v50, 0.0 }
 0x5df   :  { %v12667_v63 = vpop.f32.mrb[74].mxu0  ;;  %v3895_v60 = vsub.f32 %v14187_v34, %v3745_v41  ;;  %v4538_v25 = vsel %vm3394_vm2, %v12662_v44, 0.0 }
 0x5e0   :  { %14186 = vst [vmem:[#allocation117_spill] sm:$0xff] %v12667_v63  ;;  %v8261_v11 = vpop.f32.mrb[75].mxu0  ;;  %4539 = vadd.xlane.f32.xlu0 %v4538_v25  ;;  %v8655_v63 = vpack.c.bf16 %v4698_v55, %v4696_v37  ;;  %v14191_v37 = vld [vmem:[#allocation79_spill] sm:$0xff] }
 0x5e1   :  { %v4139_v54 = vmul.f32 1.442695, %v3895_v60  ;;  %v12675_v51 = vpop.eup %9254 }
 0x5e2   :  { %4506 = vadd.xlane.f32.xlu1 %v4505_v26  ;;  %v3769_v28 = vpop.xlane.xlu1 %3768  ;;  %v9257_v41 = vpop.eup %9256  ;;  %v4529_v21 = vsel %vm3394_vm2, %v12675_v51, 0.0 }
 0x5e3   :  { %9264 = vpow2.f32 %v4139_v54  ;;  %v3903_v3 = vsub.f32 %v14189_v9, %v3769_v28  ;;  %v4702_v25 = vmul.f32 %v9257_v41, %v14191_v37  ;;  %v14192_v28 = vld [vmem:[#allocation27_spill] sm:$0xff] }
 0x5e4   :  { %9266 = vrcp.f32 %v12597_v17 }
 0x5e5   :  { %v9259_v34 = vpop.eup %9258  ;;  %v4155_v11 = vmul.f32 1.442695, %v3903_v3  ;;  %8657 = vmatpush3.bf16.xpose.msk.msra.mxu0 %vm11328_vm3, %v8655_v63  ;;  %9268 = vrcp.f32 %v12540_v18  ;;  %v14193_v3 = vld [vmem:[#allocation89_spill] sm:$0xff] }
 0x5e6   :  { %v4700_v60 = vmul.f32 %v9259_v34, %v14190_v62  ;;  %4530 = vadd.xlane.f32.xlu1 %v4529_v21  ;;  %v4375_v54 = vpop.xlane.xlu1 %4374  ;;  %8658 = vmatprep.subr.bf16.mxu0 %v13934_v10  ;;  %v9261_v55 = vpop.eup %9260 }
 0x5e7   :  { %9270 = vpow2.f32 %v4155_v11  ;;  %v9263_v17 = vpop.eup %9262  ;;  %v4676_v63 = vmul.f32 %v9261_v55, %v14192_v28  ;;  %v14197_v28 = vld [vmem:[#allocation88_spill] sm:$0xff] }
 0x5e8   :  { %9272 = vrcp.f32 %v4402_v61  ;;  %v8659_v26 = vpack.c.bf16 %v4702_v25, %v4700_v60  ;;  %v4678_v50 = vmul.f32 %v9263_v17, %v14193_v3  ;;  %v14196_v25 = vld [vmem:[#allocation107_spill] sm:$0xff] }
 0x5ea   :  { %v4399_v9 = vpop.xlane.xlu1 %4398  ;;  %v8635_v11 = vpack.c.bf16 %v4678_v50, %v4676_v63  ;;  %v14195_v50 = vld [vmem:[#allocation78_spill] sm:$0xff] }
 0x5eb   :  { %9274 = vrcp.f32 %v4399_v9  ;;  %v14198_v9 = vld [vmem:[#allocation48_spill] sm:$0xff] }
 0x5ec   :  { %9276 = vrcp.f32 %v12640_v27 }
 0x5ed   :  { %v12689_v18 = vpop.eup %9264  ;;  %8661 = vmatpush3.bf16.xpose.msk.msra.mxu0 %vm11328_vm3, %v8659_v26  ;;  %9278 = vrcp.f32 %v12590_v46 }
 0x5ee   :  { %v12694_v34 = vpop.f32.mrb[82].mxu1  ;;  %v5388_v41 = vpop.permute.xlu1 %5387  ;;  %v4511_v61 = vsel %vm3394_vm2, %v12689_v18, 0.0  ;;  %8662 = vmatprep.subr.bf16.mxu0 %v13934_v10  ;;  %9280 = vrcp.f32 %v4375_v54  ;;  %v14200_v54 = vld [vmem:[#allocation84_spill] sm:$0xff] }
 0x5ef   :  { %14194 = vst [vmem:[#allocation46_spill] sm:$0xff] %v12694_v34  ;;  %v9267_v21 = vpop.eup %9266  ;;  %v8242_v62 = vpop.f32.mrb[83].mxu1  ;;  %4512 = vadd.xlane.f32.xlu1 %v4511_v61  ;;  %8317 = vmatmul.mubr.msk.f32.vlgmr.msra.gmra.mrb[86].mxu1 %vm3394_vm2, %v5388_v41  ;;  %9282 = vrcp.f32 %v12634_v5  ;;  %v14202_v5 = vld [vmem:[#allocation45_spill] sm:$0xff] }
 0x5f0   :  { %v9269_v27 = vpop.eup %9268  ;;  %8637 = vmatpush3.bf16.xpose.msk.msra.mxu1 %vm11328_vm3, %v8635_v11  ;;  %8354 = vmatprep.mubr.msk.f32.mxu1 %vm9528_vm4, %v13960_v49  ;;  %v4680_v55 = vmul.f32 %v9267_v21, %v14195_v50  ;;  %v14199_v62 = vld [vmem:[#allocation97_spill] sm:$0xff] }
 0x5f1   :  { %v12705_v60 = vpop.eup %9270  ;;  %8638 = vmatprep.subr.bf16.mxu1 %v13934_v10  ;;  %v4682_v17 = vmul.f32 %v9269_v27, %v14196_v25 }
 0x5f2   :  { %v4535_v46 = vsel %vm3394_vm2, %v12705_v60, 0.0  ;;  %v9273_v37 = vpop.eup %9272 }
 0x5f3   :  { %4536 = vadd.xlane.f32.xlu1 %v4535_v46  ;;  %v4706_v63 = vmul.f32 %v9273_v37, %v14197_v28  ;;  %v8639_v41 = vpack.c.bf16 %v4682_v17, %v4680_v55  ;;  %v14201_v37 = vld [vmem:[#allocation13_spill] sm:$0xff] }
 0x5f4   :  { %v12725_v25 = vadd.f32 %v14202_v5, %v14201_v37 }
 0x5f5   :  { %v9275_v26 = vpop.eup %9274 }
 0x5f6   :  { %v4704_v3 = vmul.f32 %v9275_v26, %v14198_v9  ;;  %v9277_v61 = vpop.eup %9276  ;;  %v14203_v26 = vld [vmem:[#allocation116_spill] sm:$0xff] }
 0x5f7   :  { %v9279_v21 = vpop.eup %9278  ;;  %v4684_v50 = vmul.f32 %v9277_v61, %v14199_v62  ;;  %v14205_v61 = vld [vmem:[#allocation11_spill] sm:$0xff] }
 0x5f8   :  { %8641 = vmatpush3.bf16.xpose.msk.msra.mxu1 %vm11328_vm3, %v8639_v41  ;;  %v8663_v11 = vpack.c.bf16 %v4706_v63, %v4704_v3  ;;  %v4686_v27 = vmul.f32 %v9279_v21, %v14200_v54  ;;  %v9281_v46 = vpop.eup %9280  ;;  %v14204_v63 = vld [vmem:[#allocation103_spill] sm:$0xff] }
 0x5f9   :  { %8642 = vmatprep.subr.bf16.mxu1 %v13934_v10  ;;  %v9283_v17 = vpop.eup %9282  ;;  %v4688_v28 = vmul.f32 %v9281_v46, %v14203_v26 }
 0x5fa   :  { %8665 = vmatpush3.bf16.xpose.msk.msra.mxu0 %vm11328_vm3, %v8663_v11  ;;  %v8643_v55 = vpack.c.bf16 %v4686_v27, %v4684_v50  ;;  %v4690_v9 = vmul.f32 %v9283_v17, %v14204_v63  ;;  %v14206_v11 = vld [vmem:[#allocation31_spill] sm:$0xff] }
 0x5fb   :  { %8682 = vmatprep.subr.bf16.mxu0 %v13934_v10  ;;  %v12741_v21 = vadd.f32 %v14206_v11, %v14205_v61 }
 0x5fc   :  { %v8647_v3 = vpack.c.bf16 %v4690_v9, %v4688_v28 }
 0x600   :  { %8645 = vmatpush3.bf16.xpose.msk.msra.mxu1 %vm11328_vm3, %v8643_v55 }
 0x601   :  { %8374 = vmatmul.mubr.msk.f32.vlgmr.msra.gmra.mrb[80].mxu0 %vm3394_vm2, %v12725_v25  ;;  %8646 = vmatprep.subr.bf16.mxu1 %v13934_v10 }
 0x602   :  { %8411 = vmatprep.mubr.msk.f32.mxu0 %vm9528_vm4, %v13960_v49 }
 0x608   :  { %8649 = vmatpush3.bf16.xpose.msk.msra.mxu1 %vm11328_vm3, %v8647_v3 }
 0x609   :  { %8666 = vmatprep.subr.bf16.mxu1 %v13934_v10 }
 0x60c   :  { %v3754_v41 = vpop.xlane.xlu0 %3753 }
 0x60d   :  { %v3898_v62 = vsub.f32 %v12345_v47, %v3754_v41 }
 0x60f   :  { %v4145_v50 = vmul.f32 1.442695, %v3898_v62  ;;  %8355 = vmatmul.mubr.msk.f32.vlgmr.msra.gmra.mrb[88].mxu1 %vm3394_vm2, %v12741_v21 }
 0x610   :  { %v3778_v54 = vpop.xlane.xlu0 %3777  ;;  %8392 = vmatprep.mubr.msk.f32.mxu1 %vm9528_vm4, %v13960_v49 }
 0x611   :  { %9284 = vpow2.f32 %v4145_v50  ;;  %v3906_v27 = vsub.f32 %v12357_v48, %v3778_v54 }
 0x613   :  { %v4161_v55 = vmul.f32 1.442695, %v3906_v27 }
 0x614   :  { %v4408_v46 = vpop.xlane.xlu0 %4407 }
 0x615   :  { %9286 = vpow2.f32 %v4161_v55 }
 0x618   :  { %v4432_v37 = vpop.xlane.xlu0 %4431 }
 0x61b   :  { %v12749_v5 = vpop.eup %9284 }
 0x61c   :  { %v4414_v17 = vpop.xlane.xlu0 %4413  ;;  %v4520_v47 = vsel %vm3394_vm2, %v12749_v5, 0.0 }
 0x61d   :  { %4521 = vadd.xlane.f32.xlu0 %v4520_v47 }
 0x61f   :  { %v12753_v26 = vpop.eup %9286  ;;  %v3751_v28 = vpop.xlane.xlu1 %3750 }
 0x620   :  { %v3897_v63 = vsub.f32 %v12406_v35, %v3751_v28  ;;  %v4438_v9 = vpop.xlane.xlu0 %4437  ;;  %v4544_v48 = vsel %vm3394_vm2, %v12753_v26, 0.0 }
 0x621   :  { %4545 = vadd.xlane.f32.xlu0 %v4544_v48 }
 0x622   :  { %v4143_v3 = vmul.f32 1.442695, %v3897_v63 }
 0x623   :  { %v3775_v41 = vpop.xlane.xlu1 %3774 }
 0x624   :  { %9288 = vpow2.f32 %v4143_v3  ;;  %v3905_v61 = vsub.f32 %v12425_v32, %v3775_v41  ;;  %v4420_v11 = vpop.xlane.xlu0 %4419 }
 0x625   :  { %9290 = vrcp.f32 %v4408_v46 }
 0x626   :  { %v4159_v62 = vmul.f32 1.442695, %v3905_v61 }
 0x627   :  { %v4405_v50 = vpop.xlane.xlu1 %4404 }
 0x628   :  { %9292 = vpow2.f32 %v4159_v62  ;;  %v4444_v54 = vpop.xlane.xlu0 %4443 }
 0x629   :  { %9294 = vrcp.f32 %v4405_v50 }
 0x62a   :  { %9296 = vrcp.f32 %v4432_v37 }
 0x62b   :  { %v4429_v27 = vpop.xlane.xlu1 %4428 }
 0x62c   :  { %9298 = vrcp.f32 %v4429_v27  ;;  %v4426_v35 = vpop.xlane.xlu0 %4425 }
 0x62d   :  { %9300 = vrcp.f32 %v4414_v17 }
 0x62e   :  { %v12759_v55 = vpop.eup %9288 }
 0x62f   :  { %v4411_v47 = vpop.xlane.xlu1 %4410  ;;  %v4517_v28 = vsel %vm3394_vm2, %v12759_v55, 0.0  ;;  %v9291_v63 = vpop.eup %9290 }
 0x630   :  { %9302 = vrcp.f32 %v4411_v47  ;;  %v4450_v32 = vpop.xlane.xlu0 %4449  ;;  %4518 = vadd.xlane.f32.xlu1 %v4517_v28  ;;  %v4710_v61 = vmul.f32 %v9291_v63, %v12373_v15 }
 0x631   :  { %9304 = vrcp.f32 %v4438_v9 }
 0x632   :  { %v12763_v46 = vpop.eup %9292 }
 0x633   :  { %v9295_v48 = vpop.eup %9294  ;;  %v4435_v3 = vpop.xlane.xlu1 %4434  ;;  %v4541_v37 = vsel %vm3394_vm2, %v12763_v46, 0.0 }
 0x634   :  { %v9297_v41 = vpop.eup %9296  ;;  %v4708_v17 = vmul.f32 %v9295_v48, %v12444_v13  ;;  %9306 = vrcp.f32 %v4435_v3  ;;  %4542 = vadd.xlane.f32.xlu1 %v4541_v37  ;;  %v4456_v62 = vpop.xlane.xlu0 %4455 }
 0x635   :  { %9308 = vrcp.f32 %v4420_v11  ;;  %v4726_v47 = vmul.f32 %v9297_v41, %v12385_v39 }
 0x636   :  { %v9299_v50 = vpop.eup %9298  ;;  %v8667_v27 = vpack.c.bf16 %v4710_v61, %v4708_v17 }
 0x637   :  { %v4724_v9 = vmul.f32 %v9299_v50, %v12459_v38  ;;  %6069 = vrot.lane.b32.xlu0 %v12725_v25, %s9525_s24  ;;  %v4417_v28 = vpop.xlane.xlu1 %4416  ;;  %v9301_v34 = vpop.eup %9300 }
 0x638   :  { %9310 = vrcp.f32 %v4417_v28  ;;  %8669 = vmatpush3.bf16.xpose.msk.msra.mxu1 %vm11328_vm3, %v8667_v27  ;;  %v4714_v11 = vmul.f32 %v9301_v34, %v12400_v58  ;;  %v4480_v63 = vpop.xlane.xlu0 %4479  ;;  %v14207_v28 = vld [vmem:[#allocation15_spill] sm:$0xff] }
 0x639   :  { %v8683_v15 = vpack.c.bf16 %v4726_v47, %v4724_v9  ;;  %8670 = vmatprep.subr.bf16.mxu1 %v13934_v10  ;;  %9312 = vrcp.f32 %v4444_v54 }
 0x63a   :  { %v9303_v13 = vpop.eup %9302 }
 0x63b   :  { %v4712_v39 = vmul.f32 %v9303_v13, %v12471_v7  ;;  %v4441_v38 = vpop.xlane.xlu1 %4440  ;;  %8685 = vmatpush3.bf16.xpose.msk.msra.mxu0 %vm11328_vm3, %v8683_v15  ;;  %v9305_v25 = vpop.eup %9304 }
 0x63c   :  { %9314 = vrcp.f32 %v4441_v38  ;;  %8686 = vmatprep.subr.bf16.mxu0 %v13934_v10  ;;  %v4730_v54 = vmul.f32 %v9305_v25, %v12411_v0  ;;  %v4462_v61 = vpop.xlane.xlu0 %4461  ;;  %v14209_v38 = vld [vmem:[#allocation17_spill] sm:$0xff]  ;;  %v14210_v25 = vld [vmem:[#allocation12_spill] sm:$0xff] }
 0x63d   :  { %v8671_v48 = vpack.c.bf16 %v4714_v11, %v4712_v39  ;;  %9316 = vrcp.f32 %v4426_v35 }
 0x63e   :  { %v9307_v3 = vpop.eup %9306  ;;  %v12781_v37 = vpop.f32.mrb[76].mxu0 }
 0x63f   :  { %v4728_v58 = vmul.f32 %v9307_v3, %v12483_v12  ;;  %v8299_v34 = vpop.f32.mrb[77].mxu0  ;;  %v4423_v7 = vpop.xlane.xlu1 %4422 }
 0x640   :  { %v9309_v41 = vpop.eup %9308  ;;  %9318 = vrcp.f32 %v4423_v7  ;;  %8673 = vmatpush3.bf16.xpose.msk.msra.mxu1 %vm11328_vm3, %v8671_v48  ;;  %v4486_v13 = vpop.xlane.xlu0 %4485  ;;  %v592_v48 = vadd.f32 %v14210_v25, %v14209_v38 }
 0x641   :  { %v8687_v17 = vpack.c.bf16 %v4730_v54, %v4728_v58  ;;  %8674 = vmatprep.subr.bf16.mxu1 %v13934_v10  ;;  %9320 = vrcp.f32 %v4450_v32  ;;  %v4718_v35 = vmul.f32 %v9309_v41, %v12435_v56  ;;  %v14208_v32 = vld [vmem:[#allocation33_spill] sm:$0xff] }
 0x642   :  { %v9311_v50 = vpop.eup %9310  ;;  %v590_v15 = vadd.f32 %v14208_v32, %v14207_v28 }
 0x643   :  { %v4716_v27 = vmul.f32 %v9311_v50, %v12497_v43  ;;  %v4447_v0 = vpop.xlane.xlu1 %4446  ;;  %8689 = vmatpush3.bf16.xpose.msk.msra.mxu0 %vm11328_vm3, %v8687_v17  ;;  %v9313_v12 = vpop.eup %9312 }
 0x644   :  { %9322 = vrcp.f32 %v4447_v0  ;;  %8690 = vmatprep.subr.bf16.mxu0 %v13934_v10  ;;  %v4734_v56 = vmul.f32 %v9313_v12, %v12448_v16  ;;  %v4468_v58 = vpop.xlane.xlu0 %4467 }
 0x645   :  { %5971 = vrot.lane.b32.xlu1 %v12741_v21, %s9525_s24  ;;  %v8675_v47 = vpack.c.bf16 %v4718_v35, %v4716_v27  ;;  %9324 = vrcp.f32 %v4456_v62 }
 0x646   :  { %v9315_v9 = vpop.eup %9314 }
 0x647   :  { %v4732_v43 = vmul.f32 %v9315_v9, %v12510_v24  ;;  %v4453_v11 = vpop.xlane.xlu1 %4452  ;;  %v9317_v39 = vpop.eup %9316 }
 0x648   :  { %9326 = vrcp.f32 %v4453_v11  ;;  %8677 = vmatpush3.bf16.xpose.msk.msra.mxu1 %vm11328_vm3, %v8675_v47  ;;  %v4722_v16 = vmul.f32 %v9317_v39, %v12463_v53 }
 0x649   :  { %6167 = vrot.lane.b32.xlu1 %v590_v15, %s9525_s24  ;;  %v8691_v21 = vpack.c.bf16 %v4734_v56, %v4732_v43  ;;  %8678 = vmatprep.subr.bf16.mxu1 %v13934_v10  ;;  %9328 = vrcp.f32 %v4480_v63 }
 0x64a   :  { %v9319_v62 = vpop.eup %9318 }
 0x64b   :  { %v4720_v24 = vmul.f32 %v9319_v62, %v12521_v59  ;;  %v4477_v3 = vpop.xlane.xlu1 %4476  ;;  %8693 = vmatpush3.bf16.xpose.msk.msra.mxu0 %vm11328_vm3, %v8691_v21  ;;  %v9321_v54 = vpop.eup %9320 }
 0x64c   :  { %9330 = vrcp.f32 %v4477_v3  ;;  %8694 = vmatprep.subr.bf16.mxu0 %v13934_v10  ;;  %v4738_v7 = vmul.f32 %v9321_v54, %v12475_v45 }
 0x64d   :  { %6265 = vrot.lane.b32.xlu1 %v592_v48, %s9525_s24  ;;  %v8679_v34 = vpack.c.bf16 %v4722_v16, %v4720_v24  ;;  %9332 = vrcp.f32 %v4462_v61 }
 0x64e   :  { %v9323_v63 = vpop.eup %9322 }
 0x64f   :  { %v4736_v53 = vmul.f32 %v9323_v63, %v12532_v33  ;;  %v4459_v41 = vpop.xlane.xlu1 %4458  ;;  %v9325_v59 = vpop.eup %9324 }
 0x650   :  { %9334 = vrcp.f32 %v4459_v41  ;;  %8681 = vmatpush3.bf16.xpose.msk.msra.mxu1 %vm11328_vm3, %v8679_v34  ;;  %v4742_v61 = vmul.f32 %v9325_v59, %v12487_v30  ;;  %v4492_v33 = vpop.xlane.xlu0 %4491 }
 0x651   :  { %v5285_v17 = vpop.f32.mrb[84].mxu1  ;;  %v8695_v50 = vpack.c.bf16 %v4738_v7, %v4736_v53  ;;  %8698 = vmatprep.subr.bf16.mxu1 %v13934_v10  ;;  %9336 = vrcp.f32 %v4486_v13 }
 0x652   :  { %v9327_v35 = vpop.eup %9326  ;;  %v8841_v27 = vpack.i.bf16 %v12781_v37, %v5285_v17  ;;  %v8280_v0 = vpop.f32.mrb[85].mxu1 }
 0x653   :  { %v4740_v45 = vmul.f32 %v9327_v35, %v12547_v1  ;;  %v4483_v12 = vpop.xlane.xlu1 %4482  ;;  %8697 = vmatpush3.bf16.xpose.msk.msra.mxu0 %vm11328_vm3, %v8695_v50  ;;  %v9329_v47 = vpop.eup %9328 }
 0x654   :  { %9338 = vrcp.f32 %v4483_v12  ;;  %8842 = vrot.lane.b32.xlu1 %v8841_v27, %s9525_s24  ;;  %8714 = vmatprep.subr.bf16.mxu0 %v13934_v10  ;;  %v4758_v37 = vmul.f32 %v9329_v47, %v12501_v20  ;;  %v4474_v56 = vpop.xlane.xlu0 %4473 }
 0x655   :  { %v8699_v9 = vpack.c.bf16 %v4742_v61, %v4740_v45  ;;  %9340 = vrcp.f32 %v4468_v58 }
 0x656   :  { %v9331_v28 = vpop.eup %9330 }
 0x657   :  { %v4756_v30 = vmul.f32 %v9331_v28, %v12561_v52  ;;  %8393 = vmatmul.mubr.msk.f32.vlgmr.msra.gmra.mrb[90].mxu1 %vm3394_vm2, %v590_v15  ;;  %v4465_v1 = vpop.xlane.xlu1 %4464  ;;  %v9333_v32 = vpop.eup %9332 }
 0x658   :  { %9342 = vrcp.f32 %v4465_v1  ;;  %8701 = vmatpush3.bf16.xpose.msk.msra.mxu1 %vm11328_vm3, %v8699_v9  ;;  %8430 = vmatprep.mubr.msk.f32.mxu1 %vm9528_vm4, %v13960_v49  ;;  %v4746_v20 = vmul.f32 %v9333_v32, %v12514_v4  ;;  %v4498_v38 = vpop.xlane.xlu0 %4497 }
 0x659   :  { %v8715_v43 = vpack.c.bf16 %v4758_v37, %v4756_v30  ;;  %8702 = vmatprep.subr.bf16.mxu1 %v13934_v10  ;;  %9344 = vrcp.f32 %v4492_v33 }
 0x65a   :  { %v9335_v13 = vpop.eup %9334  ;;  %8412 = vmatmul.mubr.msk.f32.vlgmr.msra.gmra.mrb[82].mxu0 %vm3394_vm2, %v592_v48 }
 0x65b   :  { %v4744_v52 = vmul.f32 %v9335_v13, %v12571_v22  ;;  %v4489_v15 = vpop.xlane.xlu1 %4488  ;;  %8717 = vmatpush3.bf16.xpose.msk.msra.mxu0 %vm11328_vm3, %v8715_v43  ;;  %8449 = vmatprep.mubr.msk.f32.mxu0 %vm9528_vm4, %v13960_v49  ;;  %v9337_v11 = vpop.eup %9336  ;;  %v14211_v43 = vld [vmem:[#allocation51_spill] sm:$0xff] }
 0x65c   :  { %9346 = vrcp.f32 %v4489_v15  ;;  %8718 = vmatprep.subr.bf16.mxu0 %v13934_v10  ;;  %v4762_v62 = vmul.f32 %v9337_v11, %v12525_v23 }
 0x65d   :  { %v8703_v39 = vpack.c.bf16 %v4746_v20, %v4744_v52  ;;  %9348 = vrcp.f32 %v4474_v56 }
 0x65e   :  { %v9339_v21 = vpop.eup %9338 }
 0x65f   :  { %v4760_v4 = vmul.f32 %v9339_v21, %v12584_v31  ;;  %v4471_v22 = vpop.xlane.xlu1 %4470  ;;  %v9341_v25 = vpop.eup %9340  ;;  %v14212_v21 = vld [vmem:[#allocation63_spill] sm:$0xff] }
 0x660   :  { %9350 = vrcp.f32 %v4471_v22  ;;  %8705 = vmatpush3.bf16.xpose.msk.msra.mxu1 %vm11328_vm3, %v8703_v39  ;;  %v4750_v24 = vmul.f32 %v9341_v25, %v12538_v19 }
 0x661   :  { %v8719_v48 = vpack.c.bf16 %v4762_v62, %v4760_v4  ;;  %8706 = vmatprep.subr.bf16.mxu1 %v13934_v10  ;;  %9352 = vrcp.f32 %v4498_v38 }
 0x662   :  { %v9343_v16 = vpop.eup %9342 }
 0x663   :  { %v4748_v3 = vmul.f32 %v9343_v16, %v12595_v6  ;;  %v4495_v54 = vpop.xlane.xlu1 %4494  ;;  %8721 = vmatpush3.bf16.xpose.msk.msra.mxu0 %vm11328_vm3, %v8719_v48  ;;  %v9345_v23 = vpop.eup %9344 }
 0x664   :  { %9354 = vrcp.f32 %v4495_v54  ;;  %8722 = vmatprep.subr.bf16.mxu0 %v13934_v10  ;;  %v4766_v34 = vmul.f32 %v9345_v23, %v12553_v36 }
 0x665   :  { %v8707_v31 = vpack.c.bf16 %v4750_v24, %v4748_v3 }
 0x666   :  { %v9347_v58 = vpop.eup %9346 }
 0x667   :  { %v4764_v63 = vmul.f32 %v9347_v58, %v12606_v42  ;;  %v9349_v7 = vpop.eup %9348  ;;  %v4501_v27 = vpop.xlane.xlu1 %4500 }
 0x668   :  { %8709 = vmatpush3.bf16.xpose.msk.msra.mxu1 %vm11328_vm3, %v8707_v31  ;;  %v4754_v53 = vmul.f32 %v9349_v7, %v12565_v8  ;;  %v4504_v8 = vpop.xlane.xlu0 %4503 }
 0x669   :  { %v8723_v19 = vpack.c.bf16 %v4766_v34, %v4764_v63  ;;  %8710 = vmatprep.subr.bf16.mxu1 %v13934_v10  ;;  %v14214_v34 = vld [vmem:[#allocation114_spill] sm:$0xff] }
 0x66a   :  { %v9351_v6 = vpop.eup %9350 }
 0x66b   :  { %v4752_v41 = vmul.f32 %v9351_v6, %v12616_v57  ;;  %8725 = vmatpush3.bf16.xpose.msk.msra.mxu0 %vm11328_vm3, %v8723_v19  ;;  %v9353_v59 = vpop.eup %9352  ;;  %v4525_v61 = vpop.xlane.xlu1 %4524 }
 0x66c   :  { %8726 = vmatprep.subr.bf16.mxu0 %v13934_v10  ;;  %v4770_v17 = vmul.f32 %v9353_v59, %v12575_v14  ;;  %v4528_v57 = vpop.xlane.xlu0 %4527  ;;  %9356 = vrcp.f32 %v4525_v61 }
 0x66d   :  { %v8711_v36 = vpack.c.bf16 %v4754_v53, %v4752_v41  ;;  %9358 = vrcp.f32 %v4528_v57  ;;  %v14215_v41 = vld [vmem:[#allocation94_spill] sm:$0xff] }
 0x66e   :  { %v9355_v42 = vpop.eup %9354 }
 0x66f   :  { %v4768_v50 = vmul.f32 %v9355_v42, %v12629_v2  ;;  %v4507_v14 = vpop.xlane.xlu1 %4506 }
 0x670   :  { %8713 = vmatpush3.bf16.xpose.msk.msra.mxu1 %vm11328_vm3, %v8711_v36  ;;  %v4510_v0 = vpop.xlane.xlu0 %4509 }
 0x671   :  { %v8727_v35 = vpack.c.bf16 %v4770_v17, %v4768_v50  ;;  %8730 = vmatprep.subr.bf16.mxu1 %v13934_v10  ;;  %v14216_v17 = vld [vmem:[#allocation29_spill] sm:$0xff] }
 0x673   :  { %8729 = vmatpush3.bf16.xpose.msk.msra.mxu0 %vm11328_vm3, %v8727_v35  ;;  %v4531_v2 = vpop.xlane.xlu1 %4530 }
 0x674   :  { %8746 = vmatprep.subr.bf16.mxu0 %v13934_v10  ;;  %v4534_v45 = vpop.xlane.xlu0 %4533  ;;  %9360 = vrcp.f32 %v4531_v2 }
 0x675   :  { %9362 = vrcp.f32 %v4534_v45 }
 0x676   :  { %v9357_v28 = vpop.eup %9356 }
 0x677   :  { %v9359_v37 = vpop.eup %9358  ;;  %v4788_v30 = vmul.f32 %v9357_v28, %v12643_v40  ;;  %v14218_v28 = vld [vmem:[#allocation93_spill] sm:$0xff] }
 0x678   :  { %v4516_v33 = vpop.xlane.xlu0 %4515  ;;  %v4790_v13 = vmul.f32 %v9359_v37, %v14211_v43  ;;  %v14219_v37 = vld [vmem:[#allocation60_spill] sm:$0xff] }
 0x67a   :  { %v8747_v15 = vpack.c.bf16 %v4790_v13, %v4788_v30 }
 0x67c   :  { %v4540_v12 = vpop.xlane.xlu0 %4539  ;;  %v4513_v47 = vpop.xlane.xlu1 %4512 }
 0x67e   :  { %v9361_v11 = vpop.eup %9360 }
 0x67f   :  { %v9363_v40 = vpop.eup %9362  ;;  %v4792_v39 = vmul.f32 %v9361_v11, %v12675_v51  ;;  %v14213_v51 = vld [vmem:[#allocation77_spill] sm:$0xff] }
 0x680   :  { %v4537_v1 = vpop.xlane.xlu1 %4536  ;;  %v4794_v62 = vmul.f32 %v9363_v40, %v14212_v21 }
 0x681   :  { %9364 = vrcp.f32 %v4537_v1 }
 0x682   :  { %9366 = vrcp.f32 %v4540_v12  ;;  %v8751_v38 = vpack.c.bf16 %v4794_v62, %v4792_v39  ;;  %v14217_v12 = vld [vmem:[#allocation119_spill] sm:$0xff] }
 0x683   :  { %9368 = vrcp.f32 %v4501_v27 }
 0x684   :  { %9370 = vrcp.f32 %v4504_v8 }
 0x685   :  { %9372 = vrcp.f32 %v4507_v14 }
 0x686   :  { %9374 = vrcp.f32 %v4510_v0 }
 0x68b   :  { %v9365_v4 = vpop.eup %9364 }
 0x68c   :  { %v9367_v22 = vpop.eup %9366  ;;  %v4796_v16 = vmul.f32 %v9365_v4, %v12705_v60 }
 0x68d   :  { %v9369_v48 = vpop.eup %9368  ;;  %v4798_v3 = vmul.f32 %v9367_v22, %v12662_v44  ;;  %v14220_v22 = vld [vmem:[#allocation117_spill] sm:$0xff] }
 0x68e   :  { %v9371_v24 = vpop.eup %9370  ;;  %v4772_v54 = vmul.f32 %v9369_v48, %v14213_v51 }
 0x68f   :  { %v8755_v58 = vpack.c.bf16 %v4798_v3, %v4796_v16  ;;  %v4774_v63 = vmul.f32 %v9371_v24, %v14214_v34  ;;  %v9373_v44 = vpop.eup %9372 }
 0x690   :  { %v9375_v53 = vpop.eup %9374  ;;  %v4776_v59 = vmul.f32 %v9373_v44, %v14215_v41  ;;  %v12958_v44 = vld [vmem:[%s13545_s4 + $0x18] sm:$0xff]  ;;  %v9531_v41 = vmov 3  }
 0x691   :  { %v8731_v60 = vpack.c.bf16 %v4774_v63, %v4772_v54  ;;  %v4778_v50 = vmul.f32 %v9375_v53, %v14216_v17  ;;  %v9530_v53 = vmov 2  }
 0x693   :  { %v8735_v0 = vpack.c.bf16 %v4778_v50, %v4776_v59 }
 0x6aa   :  { %v12867_v9 = vpop.xlane.xlu0 %4521 }
 0x6ae   :  { %v4546_v32 = vpop.xlane.xlu0 %4545 }
 0x6af   :  { %v5579_v56 = vpop.f32.mrb[78].mxu0  ;;  %9376 = vrcp.f32 %v4546_v32 }
 0x6b0   :  { %v8337_v20 = vpop.f32.mrb[79].mxu0 }
 0x6b2   :  { %v6070_v52 = vpop.permute.xlu0 %6069 }
 0x6b3   :  { %8450 = vmatmul.mubr.msk.f32.vlgmr.msra.gmra.mrb[84].mxu0 %vm3394_vm2, %v6070_v52 }
 0x6b4   :  { %8749 = vmatpush3.bf16.xpose.msk.msra.mxu0 %vm11328_vm3, %v8747_v15  ;;  %8487 = vmatprep.mubr.msk.f32.mxu0 %vm9528_vm4, %v13960_v49 }
 0x6b5   :  { %8750 = vmatprep.subr.bf16.mxu0 %v13934_v10 }
 0x6b9   :  { %v9377_v42 = vpop.eup %9376 }
 0x6ba   :  { %v4802_v8 = vmul.f32 %v9377_v42, %v12753_v26 }
 0x6bc   :  { %8753 = vmatpush3.bf16.xpose.msk.msra.mxu0 %vm11328_vm3, %v8751_v38 }
 0x6bd   :  { %v4519_v25 = vpop.xlane.xlu1 %4518  ;;  %8754 = vmatprep.subr.bf16.mxu0 %v13934_v10 }
 0x6c1   :  { %v4543_v23 = vpop.xlane.xlu1 %4542 }
 0x6c2   :  { %9378 = vrcp.f32 %v4543_v23  ;;  %v5481_v31 = vpop.f32.mrb[86].mxu1 }
 0x6c3   :  { %v8851_v7 = vpack.i.bf16 %v5579_v56, %v5481_v31  ;;  %v8318_v19 = vpop.f32.mrb[87].mxu1  ;;  %9380 = vrcp.f32 %v4513_v47 }
 0x6c4   :  { %8757 = vmatpush3.bf16.xpose.msk.msra.mxu0 %vm11328_vm3, %v8755_v58  ;;  %9382 = vrcp.f32 %v4516_v33  ;;  %v12940_v19 = vld [vmem:[%s13545_s4] sm:$0xff] }
 0x6c5   :  { %v5972_v6 = vpop.permute.xlu1 %5971  ;;  %8852 = vrot.lane.b32.xlu1 %v8851_v7, %s9525_s24  ;;  %8758 = vmatprep.subr.bf16.mxu0 %v13934_v10  ;;  %9384 = vrcp.f32 %v4519_v25  ;;  %v14221_v25 = vld [vmem:[#allocation46_spill] sm:$0xff]  ;;  %v9529_v7 = vmov 7  }
 0x6c6   :  { %8431 = vmatmul.mubr.msk.f32.vlgmr.msra.gmra.mrb[92].mxu1 %vm3394_vm2, %v5972_v6  ;;  %9386 = vrcp.f32 %v12867_v9  ;;  %8856 = vset.pattern.permute.xlu0 %v9529_v7  ;;  %v12946_v6 = vld [vmem:[%s13545_s4 + $0x8] sm:$0xff] }
 0x6c7   :  { %8733 = vmatpush3.bf16.xpose.msk.msra.mxu1 %vm11328_vm3, %v8731_v60  ;;  %8468 = vmatprep.mubr.msk.f32.mxu1 %vm9528_vm4, %v13960_v49  ;;  %v12952_v60 = vld [vmem:[%s13545_s4 + $0x10] sm:$0xff] }
 0x6c8   :  { %8734 = vmatprep.subr.bf16.mxu1 %v13934_v10  ;;  %8857 = vset.pattern.permute.xlu1 %v9529_v7 }
 0x6c9   :  { %v6168_v36 = vpop.permute.xlu1 %6167  ;;  %6408 = vperm.xlu1 %8857, %v12946_v6  }
 0x6cc   :  { %v9379_v35 = vpop.eup %9378 }
 0x6cd   :  { %v4800_v57 = vmul.f32 %v9379_v35, %v12763_v46  ;;  %v6266_v27 = vpop.permute.xlu1 %6265  ;;  %v9381_v61 = vpop.eup %9380  ;;  %6412 = vperm.xlu1 %8857, %v12952_v60  }
 0x6ce   :  { %v9383_v14 = vpop.eup %9382  ;;  %v4780_v33 = vmul.f32 %v9381_v61, %v12689_v18 }
 0x6cf   :  { %8737 = vmatpush3.bf16.xpose.msk.msra.mxu1 %vm11328_vm3, %v8735_v0  ;;  %v8759_v45 = vpack.c.bf16 %v4802_v8, %v4800_v57  ;;  %v4782_v47 = vmul.f32 %v9383_v14, %v14217_v12  ;;  %v9385_v43 = vpop.eup %9384  ;;  %v270_v14 = vld [vmem:[%s13547_s2 + $0x60] sm:$0xff] }
 0x6d0   :  { %8738 = vmatprep.subr.bf16.mxu1 %v13934_v10  ;;  %v9387_v13 = vpop.eup %9386  ;;  %v4784_v20 = vmul.f32 %v9385_v43, %v12759_v55  ;;  %v14222_v43 = vld [vmem:[#allocation3_spill] sm:$0xff] }
 0x6d1   :  { %v8843_v2 = vpop.permute.xlu1 %8842  ;;  %8761 = vmatpush3.bf16.xpose.msk.msra.mxu0 %vm11328_vm3, %v8759_v45  ;;  %v8739_v56 = vpack.c.bf16 %v4782_v47, %v4780_v33  ;;  %v4786_v52 = vmul.f32 %v9387_v13, %v12749_v5  ;;  %8858 = vset.pattern.permute.xlu1 %v9530_v53  ;;  %v271_v33 = vld [vmem:[%s13547_s2 + $0x68] sm:$0xff] }
 0x6d2   :  { %v8845_v26 = vunpack.i.h.bf16 %v8843_v2  ;;  %v8844_v46 = vunpack.i.l.bf16 %v8843_v2  ;;  %6605 = vperm.xlu1 %8858, %v12940_v19   ;;  %v272_v2 = vld [vmem:[%s13547_s2 + $0x70] sm:$0xff] }
 0x6d3   :  { %v8743_v15 = vpack.c.bf16 %v4786_v52, %v4784_v20  ;;  %v14223_v20 = vld [vmem:[#allocation2_spill] sm:$0xff] }
 0x6d4   :  { %v12910_v9 = vsel %vm3394_vm2, %v14218_v28, %v8845_v26  ;;  %v12914_v30 = vsel %vm3394_vm2, %v14219_v37, %v8844_v46  ;;  %v12916_v1 = vpop.f32.mrb[80].mxu0  ;;  %v273_v26 = vld [vmem:[%s13547_s2 + $0x78] sm:$0xff] }
 0x6d5   :  { %v8764_v18 = vpack.c.bf16 %v12910_v9, %v12914_v30  ;;  %v8375_v32 = vpop.f32.mrb[81].mxu0 }
 0x6d6   :  { %8860 = vset.pattern.permute.xlu1 %v9531_v41 }
 0x6d7   :  { %8741 = vmatpush3.bf16.xpose.msk.msra.mxu1 %vm11328_vm3, %v8739_v56  ;;  %6629 = vperm.xlu1 %8860, %v12940_v19  }
 0x6d8   :  { %8488 = vmatmul.mubr.msk.f32.vlgmr.msra.gmra.mrb[86].mxu0 %vm3394_vm2, %v6266_v27  ;;  %8742 = vmatprep.subr.bf16.mxu1 %v13934_v10 }
 0x6d9   :  { %6840 = vmatprep.mubr.f32.mxu0 %v13960_v49 }
 0x6db   :  { %6633 = vperm.xlu1 %8860, %v12946_v6  }
 0x6df   :  { %8745 = vmatpush3.bf16.xpose.msk.msra.mxu1 %vm11328_vm3, %v8743_v15  ;;  %8861 = vset.pattern.permute.xlu1 %v9530_v53 }
 0x6e0   :  { %6617 = vperm.xlu1 %8861, %v12958_v44  }
 0x6e2   :  { %v5676_v11 = vpop.f32.mrb[88].mxu1 }
 0x6e3   :  { %v8356_v40 = vpop.f32.mrb[89].mxu1 }
 0x6e4   :  { %8863 = vset.pattern.permute.xlu1 %v9531_v41 }
 0x6e5   :  { %6641 = vperm.xlu1 %8863, %v12958_v44  }
 0x6e6   :  { %8469 = vmatmul.mubr.msk.f32.vlgmr.msra.gmra.mrb[94].mxu1 %vm3394_vm2, %v6168_v36 }
 0x6e7   :  { %6495 = vmatprep.mubr.f32.mxu1 %v13960_v49 }
 0x72a   :  { %v5870_v39 = vpop.f32.mrb[90].mxu1 }
 0x72b   :  { %v8394_v21 = vpop.f32.mrb[91].mxu1 }
 0x72d   :  { %v5967_v62 = vpop.f32.mrb[82].mxu0 }
 0x72e   :  { %v8413_v10 = vpop.f32.mrb[83].mxu0 }
 0x737   :  { %v8853_v38 = vpop.permute.xlu1 %8852 }
 0x738   :  { %v8855_v55 = vunpack.i.h.bf16 %v8853_v38  ;;  %v8854_v4 = vunpack.i.l.bf16 %v8853_v38 }
 0x73a   :  { %v6398_v5 = vsel %vm3394_vm2, %v14220_v22, %v8855_v55  ;;  %v6397_v29 = vsel %vm3394_vm2, %v14221_v25, %v8854_v4  ;;  %v9512_v55 = vld [vmem:[%s13546_s0 + $0x10] sm:$0xff]  ;;  %v14226_v22 = vld [vmem:[#allocation7_spill] sm:$0xff]  ;;  %v9513_v25 = vld [vmem:[%s13546_s0 + $0x18] sm:$0xff] }
 0x73b   :  { %v8768_v48 = vpack.c.bf16 %v6398_v5, %v6397_v29 }
 0x748   :  { %v6409_v12 = vpop.permute.xlu1 %6408 }
 0x74c   :  { %v6413_v56 = vpop.permute.xlu1 %6412 }
 0x786   :  { %v6163_v16 = vpop.f32.mrb[84].mxu0 }
 0x787   :  { %v8451_v24 = vpop.f32.mrb[85].mxu0 }
 0x799   :  { %v6065_v3 = vpop.f32.mrb[92].mxu1 }
 0x79a   :  { %v8836_v51 = vpack.i.bf16 %v6163_v16, %v6065_v3  ;;  %v8432_v54 = vpop.f32.mrb[93].mxu1 }
 0x79c   :  { %8837 = vrot.lane.b32.xlu0 %v8836_v51, %s9525_s24  ;;  %v9514_v51 = vld [vmem:[%s13546_s0] sm:$0xff] }
 0x7ab   :  { %v6359_v23 = vpop.f32.mrb[86].mxu0 }
 0x7ac   :  { %v8489_v31 = vpop.f32.mrb[87].mxu0 }
 0x7b9   :  { %v6261_v58 = vpop.f32.mrb[94].mxu1 }
 0x7ba   :  { %v8846_v34 = vpack.i.bf16 %v6359_v23, %v6261_v58  ;;  %v8470_v63 = vpop.f32.mrb[95].mxu1  ;;  %v9515_v23 = vld [vmem:[%s13546_s0 + $0x20] sm:$0xff] }
 0x7bb   :  { %v9516_v63 = vld [vmem:[%s13546_s0 + $0x8] sm:$0xff] }
 0x7bc   :  { %8847 = vrot.lane.b32.xlu0 %v8846_v34, %s9525_s24 }
 0x7c0   :  { %6404 = vperm.xlu0 %8856, %v12940_v19  }
 0x7c4   :  { %6416 = vperm.xlu0 %8856, %v12958_v44  }
 0x7c8   :  { %8859 = vset.pattern.permute.xlu0 %v9530_v53  ;;  %v9517_v53 = vld [vmem:[%s13546_s0 + $0x28] sm:$0xff] }
 0x7c9   :  { %6609 = vperm.xlu0 %8859, %v12946_v6  }
 0x7cd   :  { %6613 = vperm.xlu0 %8859, %v12952_v60  }
 0x7d1   :  { %8862 = vset.pattern.permute.xlu0 %v9531_v41 }
 0x7d2   :  { %6637 = vperm.xlu0 %8862, %v12952_v60  }
 0x80e   :  { %v8838_v59 = vpop.permute.xlu0 %8837 }
 0x80f   :  { %v8840_v36 = vunpack.i.h.bf16 %v8838_v59  ;;  %v8839_v42 = vunpack.i.l.bf16 %v8838_v59 }
 0x811   :  { %v6399_v17 = vsel %vm3394_vm2, %v5676_v11, %v8839_v42  ;;  %v6400_v50 = vsel %vm3394_vm2, %v12916_v1, %v8840_v36  ;;  %v14224_v11 = vld [vmem:[#allocation5_spill] sm:$0xff]  ;;  %v14228_v42 = vld [vmem:[#allocation8_spill] sm:$0xff] }
 0x812   :  { %v8762_v35 = vpack.c.bf16 %v6400_v50, %v6399_v17 }
 0x814   :  { %8763 = vmatprep.subr.bf16.mxu1 %v8762_v35  ;;  %v14229_v35 = vld [vmem:[#allocation9_spill] sm:$0xff] }
 0x815   :  { %8765 = vmatpush1.bf16.msra.mxu1 %v8764_v18 }
 0x82e   :  { %v8848_v8 = vpop.permute.xlu0 %8847 }
 0x82f   :  { %v8850_v57 = vunpack.i.h.bf16 %v8848_v8  ;;  %v8849_v27 = vunpack.i.l.bf16 %v8848_v8 }
 0x831   :  { %v6401_v0 = vsel %vm3394_vm2, %v5870_v39, %v8849_v27  ;;  %v6402_v61 = vsel %vm3394_vm2, %v5967_v62, %v8850_v57  ;;  %v14225_v62 = vld [vmem:[#allocation4_spill] sm:$0xff] }
 0x832   :  { %v8766_v45 = vpack.c.bf16 %v6402_v61, %v6401_v0  ;;  %v9518_v27 = vld [vmem:[%s13546_s0 + $0x30] sm:$0xff] }
 0x834   :  { %8767 = vmatprep.subr.bf16.mxu1 %v8766_v45  ;;  %v9519_v45 = vld [vmem:[%s13546_s0 + $0x38] sm:$0xff] }
 0x835   :  { %8769 = vmatpush1.bf16.msra.mxu1 %v8768_v48  ;;  %v14227_v48 = vld [vmem:[#allocation6_spill] sm:$0xff] }
 0x838   :  { %7654 = vmatmul.mubr.msk.f32.vlgmr.msra.gmra.mrb[96].mxu1 %vm306_vm0, %v270_v14 }
 0x839   :  { %6501 = vmatprep.mubr.f32.mxu1 %v13960_v49 }
 0x83c   :  { %7655 = vmatmul.mubr.msk.f32.gmra.mrb[98].mxu1 %vm306_vm0, %v271_v33 }
 0x83d   :  { %6507 = vmatprep.mubr.f32.mxu1 %v13960_v49 }
 0x83f   :  { %v6405_v28 = vpop.permute.xlu0 %6404 }
 0x840   :  { %7656 = vmatmul.mubr.msk.f32.gmra.mrb[100].mxu1 %vm306_vm0, %v272_v2 }
 0x841   :  { %6513 = vmatprep.mubr.f32.mxu1 %v13960_v49 }
 0x843   :  { %v6417_v24 = vpop.permute.xlu0 %6416 }
 0x844   :  { %7657 = vmatmul.mubr.msk.f32.gmra.mrb[102].mxu1 %vm306_vm0, %v273_v26 }
 0x845   :  { %7293 = vmatprep.mubr.f32.mxu1 %v13960_v49 }
 0x90b   :  { %v6497_v46 = vpop.f32.mrb[96].mxu1 }
 0x90c   :  { %v6499_v47 = vpop.f32.mrb[97].mxu1  ;;  %v6498_v37 = vadd.f32 %v6497_v46, %v6405_v28 }
 0x90d   :  { %v6500_v18 = vadd.f32 %v6499_v47, %v6405_v28 }
 0x90e   :  { %v6520_v40 = vadd.f32 %v6498_v37, %v14224_v11  ;;  %v28_v11 = vld [vmem:[%s13545_s4 + $0x40] sm:$0xff] }
 0x90f   :  { %v6503_v9 = vpop.f32.mrb[98].mxu1  ;;  %v6521_v10 = vadd.f32 %v6500_v18, %v14225_v62 }
 0x910   :  { %v6504_v30 = vadd.f32 %v6503_v9, %v6409_v12  ;;  %v6505_v1 = vpop.f32.mrb[99].mxu1  ;;  %v13016_v54 = vadd.f32 %v9514_v51, %v6520_v40  ;;  %v24_v9 = vld [vmem:[%s13545_s4 + $0x20] sm:$0xff] }
 0x911   :  { %v6506_v32 = vadd.f32 %v6505_v1, %v6409_v12  ;;  %v13026_v7 = vadd.f32 %v9516_v63, %v6521_v10  ;;  %v9532_v12 = vmov 9  }
 0x912   :  { %v6522_v13 = vadd.f32 %v6504_v30, %v14222_v43  ;;  %8864 = vset.pattern.permute.xlu1 %v9532_v12  ;;  %8865 = vset.pattern.permute.xlu0 %v9532_v12  ;;  %v6606_v12 = vpop.permute.xlu1 %6605 }
 0x913   :  { %v6523_v52 = vadd.f32 %v6506_v32, %v14223_v20  ;;  %v6509_v15 = vpop.f32.mrb[100].mxu1  ;;  %6653 = vperm.xlu1 %8864, %v12940_v19   ;;  %6657 = vperm.xlu0 %8865, %v12946_v6   ;;  %v26_v32 = vld [vmem:[%s13545_s4 + $0x30] sm:$0xff] }
 0x914   :  { %v6510_v39 = vadd.f32 %v6509_v15, %v6413_v56  ;;  %v6511_v21 = vpop.f32.mrb[101].mxu1  ;;  %v13004_v4 = vadd.f32 %v9512_v55, %v6522_v13 }
 0x915   :  { %v6512_v38 = vadd.f32 %v6511_v21, %v6413_v56  ;;  %v13010_v29 = vadd.f32 %v9513_v25, %v6523_v52  ;;  %v25_v52 = vld [vmem:[%s13545_s4 + $0x28] sm:$0xff] }
 0x916   :  { %v6524_v5 = vadd.f32 %v6510_v39, %v14226_v22  ;;  %v6536_v36 = vadd.f32 %v13004_v4, %v13016_v54  ;;  %v27_v22 = vld [vmem:[%s13545_s4 + $0x38] sm:$0xff] }
 0x917   :  { %v6525_v16 = vadd.f32 %v6512_v38, %v14227_v48  ;;  %v6515_v3 = vpop.f32.mrb[102].mxu1  ;;  %v6545_v50 = vadd.f32 %v13010_v29, %v13026_v7  ;;  %6661 = vperm.xlu1 %8864, %v12952_v60   ;;  %6670 = vperm.xlu0 %8865, %v24_v9  }
 0x918   :  { %v13021_v31 = vadd.f32 %v9515_v23, %v6524_v5  ;;  %v6516_v58 = vadd.f32 %v6515_v3, %v6417_v24  ;;  %v6517_v34 = vpop.f32.mrb[103].mxu1 }
 0x919   :  { %v13031_v41 = vadd.f32 %v9517_v53, %v6525_v16  ;;  %v6518_v59 = vadd.f32 %v6517_v34, %v6417_v24  ;;  %v30_v16 = vld [vmem:[%s13545_s4 + $0x50] sm:$0xff]  ;;  %v29_v53 = vld [vmem:[%s13545_s4 + $0x48] sm:$0xff] }
 0x91a   :  { %v6526_v17 = vadd.f32 %v6516_v58, %v14228_v42  ;;  %v6537_v57 = vadd.f32 %v6536_v36, %v13021_v31  ;;  %v32_v42 = vld [vmem:[%s13545_s4 + $0x60] sm:$0xff] }
 0x91b   :  { %v6527_v8 = vadd.f32 %v6518_v59, %v14229_v35  ;;  %v6546_v61 = vadd.f32 %v6545_v50, %v13031_v41  ;;  %6665 = vperm.xlu1 %8864, %v12958_v44   ;;  %6680 = vperm.xlu0 %8865, %v26_v32  }
 0x91c   :  { %v13043_v0 = vadd.f32 %v9518_v27, %v6526_v17 }
 0x91d   :  { %v13049_v14 = vadd.f32 %v9519_v45, %v6527_v8 }
 0x91e   :  { %v6538_v33 = vadd.f32 %v6537_v57, %v13043_v0  ;;  %v31_v57 = vld [vmem:[%s13545_s4 + $0x58] sm:$0xff] }
 0x91f   :  { %v6547_v2 = vadd.f32 %v6546_v61, %v13049_v14  ;;  %6675 = vperm.xlu1 %8864, %v25_v52   ;;  %6690 = vperm.xlu0 %8865, %v28_v11   ;;  %v34_v61 = vld [vmem:[%s13545_s4 + $0x70] sm:$0xff]  ;;  %v6610_v11 = vpop.permute.xlu0 %6609 }
 0x920   :  { %v6539_v26 = vrot.slane %v6538_v33, 4 }
 0x921   :  { %v6548_v46 = vrot.slane %v6547_v2, 4 }
 0x922   :  { %v6540_v47 = vadd.f32 %v6539_v26, %v6538_v33  ;;  %v33_v26 = vld [vmem:[%s13545_s4 + $0x68] sm:$0xff] }
 0x923   :  { %v6549_v28 = vadd.f32 %v6548_v46, %v6547_v2  ;;  %6685 = vperm.xlu1 %8864, %v27_v22   ;;  %6700 = vperm.xlu0 %8865, %v30_v16   ;;  %v6614_v22 = vpop.permute.xlu0 %6613 }
 0x924   :  { %v6541_v37 = vrot.slane %v6540_v47, 2 }
 0x925   :  { %v6550_v30 = vrot.slane %v6549_v28, 2 }
 0x926   :  { %v6542_v1 = vadd.f32 %v6541_v37, %v6540_v47  ;;  %v35_v37 = vld [vmem:[%s13545_s4 + $0x78] sm:$0xff] }
 0x927   :  { %v6551_v18 = vadd.f32 %v6550_v30, %v6549_v28  ;;  %6695 = vperm.xlu1 %8864, %v29_v53   ;;  %6710 = vperm.xlu0 %8865, %v32_v42  }
 0x928   :  { %v6543_v56 = vrot.slane %v6542_v1, 1 }
 0x929   :  { %v6552_v43 = vrot.slane %v6551_v18, 1 }
 0x92a   :  { %v6544_v13 = vadd.f32 %v6543_v56, %v6542_v1  ;;  %v6630_v56 = vpop.permute.xlu1 %6629 }
 0x92b   :  { %v6553_v20 = vadd.f32 %v6552_v43, %v6551_v18  ;;  %6705 = vperm.xlu1 %8864, %v31_v57   ;;  %6720 = vperm.xlu0 %8865, %v34_v61  }
 0x92c   :  { %v6554_v15 = vmul.f32 0.03125, %v6544_v13 }
 0x92d   :  { %v6555_v40 = vmul.f32 0.03125, %v6553_v20 }
 0x92e   :  { %v13070_v39 = vsub.f32 %v13016_v54, %v6554_v15  ;;  %v13073_v21 = vsub.f32 %v13004_v4, %v6554_v15  ;;  %v13076_v62 = vsub.f32 %v13021_v31, %v6554_v15  ;;  %v6562_v5 = vsub.f32 %v13043_v0, %v6554_v15  ;;  %v6634_v15 = vpop.permute.xlu1 %6633 }
 0x92f   :  { %v13079_v10 = vsub.f32 %v13026_v7, %v6555_v40  ;;  %v13082_v38 = vsub.f32 %v13010_v29, %v6555_v40  ;;  %v13085_v55 = vsub.f32 %v13031_v41, %v6555_v40  ;;  %v6563_v24 = vsub.f32 %v13049_v14, %v6555_v40  ;;  %6715 = vperm.xlu1 %8864, %v33_v26  }
 0x930   :  { %v6564_v25 = vmul.f32 %v13070_v39, %v13070_v39  ;;  %v6566_v48 = vmul.f32 %v13073_v21, %v13073_v21  ;;  %v6568_v23 = vmul.f32 %v13076_v62, %v13076_v62  ;;  %v6570_v59 = vmul.f32 %v6562_v5, %v6562_v5 }
 0x931   :  { %v6565_v3 = vmul.f32 %v13079_v10, %v13079_v10  ;;  %v6567_v51 = vmul.f32 %v13082_v38, %v13082_v38  ;;  %v6569_v34 = vmul.f32 %v13085_v55, %v13085_v55  ;;  %v6571_v17 = vmul.f32 %v6563_v24, %v6563_v24 }
 0x932   :  { %v6572_v58 = vadd.f32 %v6566_v48, %v6564_v25  ;;  %v6618_v40 = vpop.permute.xlu1 %6617 }
 0x933   :  { %v6581_v63 = vadd.f32 %v6567_v51, %v6565_v3  ;;  %6725 = vperm.xlu1 %8864, %v35_v37   ;;  %v279_v37 = vld [vmem:[%s13547_s2 + $0xa8] sm:$0xff] }
 0x934   :  { %v6573_v36 = vadd.f32 %v6572_v58, %v6568_v23 }
 0x935   :  { %v6582_v50 = vadd.f32 %v6581_v63, %v6569_v34 }
 0x936   :  { %v6574_v35 = vadd.f32 %v6573_v36, %v6570_v59  ;;  %v6642_v42 = vpop.permute.xlu1 %6641 }
 0x937   :  { %v6583_v8 = vadd.f32 %v6582_v50, %v6571_v17  ;;  %v6638_v17 = vpop.permute.xlu0 %6637 }
 0x938   :  { %v6575_v27 = vrot.slane %v6574_v35, 4 }
 0x939   :  { %v6584_v45 = vrot.slane %v6583_v8, 4 }
 0x93a   :  { %v6576_v33 = vadd.f32 %v6575_v27, %v6574_v35 }
 0x93b   :  { %v6585_v2 = vadd.f32 %v6584_v45, %v6583_v8 }
 0x93c   :  { %v6577_v46 = vrot.slane %v6576_v33, 2 }
 0x93d   :  { %v6586_v47 = vrot.slane %v6585_v2, 2 }
 0x93e   :  { %v6578_v28 = vadd.f32 %v6577_v46, %v6576_v33  ;;  %v274_v46 = vld [vmem:[%s13547_s2 + $0x80] sm:$0xff] }
 0x93f   :  { %v6587_v9 = vadd.f32 %v6586_v47, %v6585_v2  ;;  %v276_v47 = vld [vmem:[%s13547_s2 + $0x90] sm:$0xff] }
 0x940   :  { %v6579_v30 = vrot.slane %v6578_v28, 1 }
 0x941   :  { %v6588_v1 = vrot.slane %v6587_v9, 1 }
 0x942   :  { %v6580_v18 = vadd.f32 %v6579_v30, %v6578_v28  ;;  %v277_v28 = vld [vmem:[%s13547_s2 + $0x98] sm:$0xff]  ;;  %v280_v30 = vld [vmem:[%s13547_s2 + $0xb0] sm:$0xff] }
 0x943   :  { %v6589_v32 = vadd.f32 %v6588_v1, %v6587_v9  ;;  %v278_v9 = vld [vmem:[%s13547_s2 + $0xa0] sm:$0xff]  ;;  %v281_v1 = vld [vmem:[%s13547_s2 + $0xb8] sm:$0xff] }
 0x944   :  { %v6590_v43 = vmul.f32 0.03125, %v6580_v18  ;;  %v282_v18 = vld [vmem:[%s13547_s2 + $0xc0] sm:$0xff] }
 0x945   :  { %v6591_v13 = vmul.f32 0.03125, %v6589_v32  ;;  %v283_v32 = vld [vmem:[%s13547_s2 + $0xc8] sm:$0xff] }
 0x946   :  { %v6592_v20 = vadd.f32 1e-05, %v6590_v43  ;;  %v285_v43 = vld [vmem:[%s13547_s2 + $0xd8] sm:$0xff] }
 0x947   :  { %v6593_v52 = vadd.f32 1e-05, %v6591_v13  ;;  %v286_v13 = vld [vmem:[%s13547_s2 + $0xe0] sm:$0xff] }
 0x948   :  { %9388 = vrsqrt.f32 %v6592_v20  ;;  %v287_v20 = vld [vmem:[%s13547_s2 + $0xe8] sm:$0xff] }
 0x949   :  { %9390 = vrsqrt.f32 %v6593_v52  ;;  %v288_v52 = vld [vmem:[%s13547_s2 + $0xf0] sm:$0xff] }
 0x952   :  { %v9389_v25 = vpop.eup %9388 }
 0x953   :  { %v9391_v48 = vpop.eup %9390  ;;  %v6596_v16 = vmul.f32 %v9389_v25, %v13070_v39  ;;  %v6598_v3 = vmul.f32 %v9389_v25, %v13073_v21  ;;  %v6602_v51 = vmul.f32 %v9389_v25, %v6562_v5  ;;  %v6600_v23 = vmul.f32 %v9389_v25, %v13076_v62 }
 0x954   :  { %v6597_v58 = vmul.f32 %v9391_v48, %v13079_v10  ;;  %v6599_v34 = vmul.f32 %v9391_v48, %v13082_v38  ;;  %v6603_v63 = vmul.f32 %v9391_v48, %v6563_v24  ;;  %v6601_v53 = vmul.f32 %v9391_v48, %v13085_v55 }
 0x955   :  { %v6620_v59 = vmul.f32 %v6606_v12, %v6596_v16  ;;  %v6622_v36 = vmul.f32 %v6610_v11, %v6598_v3  ;;  %v6626_v5 = vmul.f32 %v6618_v40, %v6602_v51  ;;  %v6624_v27 = vmul.f32 %v6614_v22, %v6600_v23 }
 0x956   :  { %v6621_v50 = vmul.f32 %v6606_v12, %v6597_v58  ;;  %v6623_v35 = vmul.f32 %v6610_v11, %v6599_v34  ;;  %v6627_v8 = vmul.f32 %v6618_v40, %v6603_v63  ;;  %v6625_v39 = vmul.f32 %v6614_v22, %v6601_v53  ;;  %v275_v12 = vld [vmem:[%s13547_s2 + $0x88] sm:$0xff] }
 0x957   :  { %v6644_v57 = vadd.f32 %v6630_v56, %v6620_v59  ;;  %v6646_v21 = vadd.f32 %v6634_v15, %v6622_v36  ;;  %v6650_v33 = vadd.f32 %v6642_v42, %v6626_v5  ;;  %v6648_v55 = vadd.f32 %v6638_v17, %v6624_v27 }
 0x958   :  { %v6645_v62 = vadd.f32 %v6630_v56, %v6621_v50  ;;  %v6647_v61 = vadd.f32 %v6634_v15, %v6623_v35  ;;  %v6651_v10 = vadd.f32 %v6642_v42, %v6627_v8  ;;  %v6649_v45 = vadd.f32 %v6638_v17, %v6625_v39  ;;  %v284_v56 = vld [vmem:[%s13547_s2 + $0xd0] sm:$0xff]  ;;  %v289_v15 = vld [vmem:[%s13547_s2 + $0xf8] sm:$0xff] }
 0x959   :  { %v8772_v24 = vpack.c.bf16 %v6646_v21, %v6644_v57  ;;  %v8776_v26 = vpack.c.bf16 %v6650_v33, %v6648_v55  ;;  %v9533_v11 = vmov 8  }
 0x95a   :  { %v8770_v38 = vpack.c.bf16 %v6647_v61, %v6645_v62  ;;  %v8774_v2 = vpack.c.bf16 %v6651_v10, %v6649_v45  ;;  %8866 = vset.pattern.permute.xlu0 %v9533_v11  ;;  %8867 = vset.pattern.permute.xlu1 %v9533_v11 }
 0x95b   :  { %7327 = vperm.xlu0 %8866, %v12940_v19   ;;  %7331 = vperm.xlu1 %8867, %v12946_v6  }
 0x95c   :  { %8771 = vmatprep.subr.bf16.mxu0 %v8770_v38 }
 0x95d   :  { %8773 = vmatpush1.bf16.msra.mxu0 %v8772_v24 }
 0x95e   :  { %8775 = vmatprep.subr.bf16.mxu0 %v8774_v2 }
 0x95f   :  { %7335 = vperm.xlu1 %8867, %v12952_v60   ;;  %7339 = vperm.xlu0 %8866, %v12958_v44  }
 0x961   :  { %8777 = vmatpush1.bf16.msra.mxu0 %v8776_v26 }
 0x964   :  { %7658 = vmatmul.mubr.msk.f32.vlgmr.msra.gmra.mrb[88].mxu0 %vm306_vm0, %v274_v46 }
 0x965   :  { %6846 = vmatprep.mubr.f32.mxu0 %v13960_v49 }
 0x968   :  { %7659 = vmatmul.mubr.msk.f32.gmra.mrb[90].mxu0 %vm306_vm0, %v275_v12 }
 0x969   :  { %6852 = vmatprep.mubr.f32.mxu0 %v13960_v49 }
 0x96c   :  { %7660 = vmatmul.mubr.msk.f32.gmra.mrb[92].mxu0 %vm306_vm0, %v276_v47 }
 0x96d   :  { %6858 = vmatprep.mubr.f32.mxu0 %v13960_v49 }
 0x970   :  { %7661 = vmatmul.mubr.msk.f32.gmra.mrb[94].mxu0 %vm306_vm0, %v277_v28 }
 0x971   :  { %6864 = vmatprep.mubr.f32.mxu0 %v13960_v49 }
 0x974   :  { %7662 = vmatmul.mubr.msk.f32.gmra.mrb[96].mxu0 %vm306_vm0, %v278_v9 }
 0x975   :  { %6870 = vmatprep.mubr.f32.mxu0 %v13960_v49 }
 0x978   :  { %7663 = vmatmul.mubr.msk.f32.gmra.mrb[98].mxu0 %vm306_vm0, %v279_v37 }
 0x979   :  { %6876 = vmatprep.mubr.f32.mxu0 %v13960_v49 }
 0x97c   :  { %7664 = vmatmul.mubr.msk.f32.gmra.mrb[100].mxu0 %vm306_vm0, %v280_v30 }
 0x97d   :  { %6882 = vmatprep.mubr.f32.mxu0 %v13960_v49 }
 0x980   :  { %7665 = vmatmul.mubr.msk.f32.gmra.mrb[102].mxu0 %vm306_vm0, %v281_v1 }
 0x981   :  { %6888 = vmatprep.mubr.f32.mxu0 %v13960_v49 }
 0x984   :  { %7666 = vmatmul.mubr.msk.f32.gmra.mrb[104].mxu0 %vm306_vm0, %v282_v18 }
 0x985   :  { %6894 = vmatprep.mubr.f32.mxu0 %v13960_v49 }
 0x988   :  { %7667 = vmatmul.mubr.msk.f32.gmra.mrb[106].mxu0 %vm306_vm0, %v283_v32 }
 0x989   :  { %6900 = vmatprep.mubr.f32.mxu0 %v13960_v49 }
 0x98c   :  { %7668 = vmatmul.mubr.msk.f32.gmra.mrb[108].mxu0 %vm306_vm0, %v284_v56 }
 0x98d   :  { %6906 = vmatprep.mubr.f32.mxu0 %v13960_v49 }
 0x990   :  { %7669 = vmatmul.mubr.msk.f32.gmra.mrb[110].mxu0 %vm306_vm0, %v285_v43 }
 0x991   :  { %6912 = vmatprep.mubr.f32.mxu0 %v13960_v49 }
 0x992   :  { %v6654_v40 = vpop.permute.xlu1 %6653  ;;  %v6658_v3 = vpop.permute.xlu0 %6657 }
 0x994   :  { %7670 = vmatmul.mubr.msk.f32.gmra.mrb[112].mxu0 %vm306_vm0, %v286_v13 }
 0x995   :  { %6918 = vmatprep.mubr.f32.mxu0 %v13960_v49 }
 0x996   :  { %v6662_v34 = vpop.permute.xlu1 %6661  ;;  %v6671_v32 = vpop.permute.xlu0 %6670 }
 0x998   :  { %7671 = vmatmul.mubr.msk.f32.gmra.mrb[114].mxu0 %vm306_vm0, %v287_v20 }
 0x999   :  { %6924 = vmatprep.mubr.f32.mxu0 %v13960_v49 }
 0x99a   :  { %v6666_v45 = vpop.permute.xlu1 %6665 }
 0x99c   :  { %7672 = vmatmul.mubr.msk.f32.gmra.mrb[116].mxu0 %vm306_vm0, %v288_v52 }
 0x99d   :  { %6930 = vmatprep.mubr.f32.mxu0 %v13960_v49 }
 0x9a0   :  { %7673 = vmatmul.mubr.msk.f32.gmra.mrb[118].mxu0 %vm306_vm0, %v289_v15 }
 0xa37   :  { %v6842_v22 = vpop.f32.mrb[88].mxu0 }
 0xa38   :  { %v13214_v25 = vadd.f32 %v6842_v22, %v6654_v40  ;;  %v6844_v48 = vpop.f32.mrb[89].mxu0 }
 0xa39   :  { %v13216_v16 = vadd.f32 %v6844_v48, %v6654_v40 }
 0xa3a   :  { %v6937_v51 = vmul.f32 %v13214_v25, %v13214_v25 }
 0xa3b   :  { %v6938_v19 = vmul.f32 %v13216_v16, %v13216_v16  ;;  %v6848_v23 = vpop.f32.mrb[90].mxu0 }
 0xa3c   :  { %v6969_v6 = vmul.f32 %v6937_v51, %v13214_v25  ;;  %v13223_v60 = vadd.f32 %v6848_v23, %v6658_v3  ;;  %v6850_v44 = vpop.f32.mrb[91].mxu0 }
 0xa3d   :  { %v6970_v58 = vmul.f32 %v6938_v19, %v13216_v16  ;;  %v13226_v63 = vadd.f32 %v6850_v44, %v6658_v3  ;;  %v6676_v19 = vpop.permute.xlu1 %6675 }
 0xa3e   :  { %v7001_v53 = vmul.f32 0.044715, %v6969_v6  ;;  %v6939_v59 = vmul.f32 %v13223_v60, %v13223_v60 }
 0xa3f   :  { %v7002_v36 = vmul.f32 0.044715, %v6970_v58  ;;  %v6940_v42 = vmul.f32 %v13226_v63, %v13226_v63  ;;  %v6854_v17 = vpop.f32.mrb[92].mxu0 }
 0xa40   :  { %v7033_v50 = vadd.f32 %v7001_v53, %v13214_v25  ;;  %v6971_v35 = vmul.f32 %v6939_v59, %v13223_v60  ;;  %v13234_v8 = vadd.f32 %v6854_v17, %v6662_v34  ;;  %v6856_v39 = vpop.f32.mrb[93].mxu0 }
 0xa41   :  { %v6972_v57 = vmul.f32 %v6940_v42, %v13226_v63  ;;  %v13237_v21 = vadd.f32 %v6856_v39, %v6662_v34  ;;  %v7034_v61 = vadd.f32 %v7002_v36, %v13216_v16 }
 0xa42   :  { %v7065_v5 = vmul.f32 0.7978846, %v7033_v50  ;;  %v7003_v27 = vmul.f32 0.044715, %v6971_v35  ;;  %v6941_v62 = vmul.f32 %v13234_v8, %v13234_v8 }
 0xa43   :  { %v7004_v10 = vmul.f32 0.044715, %v6972_v57  ;;  %v6942_v38 = vmul.f32 %v13237_v21, %v13237_v21  ;;  %v6860_v24 = vpop.f32.mrb[94].mxu0  ;;  %v7066_v30 = vmul.f32 0.7978846, %v7034_v61 }
 0xa44   :  { %9392 = vtanh.f32 %v7065_v5  ;;  %v7035_v33 = vadd.f32 %v7003_v27, %v13223_v60  ;;  %v6973_v55 = vmul.f32 %v6941_v62, %v13234_v8  ;;  %v13246_v2 = vadd.f32 %v6860_v24, %v6666_v45  ;;  %v6862_v26 = vpop.f32.mrb[95].mxu0 }
 0xa45   :  { %v6974_v46 = vmul.f32 %v6942_v38, %v13237_v21  ;;  %v13249_v12 = vadd.f32 %v6862_v26, %v6666_v45  ;;  %v7036_v28 = vadd.f32 %v7004_v10, %v13226_v63  ;;  %v6681_v10 = vpop.permute.xlu0 %6680 }
 0xa46   :  { %v7067_v47 = vmul.f32 0.7978846, %v7035_v33  ;;  %v7005_v9 = vmul.f32 0.044715, %v6973_v55  ;;  %v6943_v37 = vmul.f32 %v13246_v2, %v13246_v2 }
 0xa47   :  { %v7006_v1 = vmul.f32 0.044715, %v6974_v46  ;;  %v6944_v18 = vmul.f32 %v13249_v12, %v13249_v12  ;;  %v6866_v56 = vpop.f32.mrb[96].mxu0  ;;  %v7068_v22 = vmul.f32 0.7978846, %v7036_v28 }
 0xa48   :  { %9394 = vtanh.f32 %v7067_v47  ;;  %v7037_v43 = vadd.f32 %v7005_v9, %v13234_v8  ;;  %v6975_v13 = vmul.f32 %v6943_v37, %v13246_v2  ;;  %v13258_v20 = vadd.f32 %v6866_v56, %v6671_v32  ;;  %v6868_v52 = vpop.f32.mrb[97].mxu0 }
 0xa49   :  { %v7038_v15 = vadd.f32 %v7006_v1, %v13237_v21  ;;  %v6976_v11 = vmul.f32 %v6944_v18, %v13249_v12  ;;  %v13262_v40 = vadd.f32 %v6868_v52, %v6671_v32  ;;  %9396 = vtanh.f32 %v7066_v30  ;;  %v6686_v52 = vpop.permute.xlu1 %6685 }
 0xa4a   :  { %v7069_v48 = vmul.f32 0.7978846, %v7037_v43  ;;  %v7007_v3 = vmul.f32 0.044715, %v6975_v13  ;;  %v6945_v51 = vmul.f32 %v13258_v20, %v13258_v20 }
 0xa4b   :  { %v7008_v23 = vmul.f32 0.044715, %v6976_v11  ;;  %v6946_v6 = vmul.f32 %v13262_v40, %v13262_v40  ;;  %v6872_v44 = vpop.f32.mrb[98].mxu0  ;;  %v7070_v36 = vmul.f32 0.7978846, %v7038_v15 }
 0xa4c   :  { %9398 = vtanh.f32 %v7069_v48  ;;  %v7039_v58 = vadd.f32 %v7007_v3, %v13246_v2  ;;  %v6977_v34 = vmul.f32 %v6945_v51, %v13258_v20  ;;  %v13270_v53 = vadd.f32 %v6872_v44, %v6676_v19  ;;  %v6874_v59 = vpop.f32.mrb[99].mxu0 }
 0xa4d   :  { %v7040_v42 = vadd.f32 %v7008_v23, %v13249_v12  ;;  %v6978_v17 = vmul.f32 %v6946_v6, %v13262_v40  ;;  %v13274_v50 = vadd.f32 %v6874_v59, %v6676_v19  ;;  %9400 = vtanh.f32 %v7068_v22 }
 0xa4e   :  { %v9393_v35 = vpop.eup %9392  ;;  %v7071_v39 = vmul.f32 0.7978846, %v7039_v58  ;;  %v7009_v57 = vmul.f32 0.044715, %v6977_v34  ;;  %v6947_v5 = vmul.f32 %v13270_v53, %v13270_v53 }
 0xa4f   :  { %v7129_v27 = vadd.f32 1.0, %v9393_v35  ;;  %v7072_v62 = vmul.f32 0.7978846, %v7040_v42  ;;  %v7010_v61 = vmul.f32 0.044715, %v6978_v17  ;;  %v6948_v45 = vmul.f32 %v13274_v50, %v13274_v50  ;;  %v6878_v38 = vpop.f32.mrb[100].mxu0 }
 0xa50   :  { %9402 = vtanh.f32 %v7071_v39  ;;  %v7041_v24 = vadd.f32 %v7009_v57, %v13258_v20  ;;  %v6979_v33 = vmul.f32 %v6947_v5, %v13270_v53  ;;  %v13282_v55 = vadd.f32 %v6878_v38, %v6681_v10  ;;  %v6880_v26 = vpop.f32.mrb[101].mxu0  ;;  %v6691_v57 = vpop.permute.xlu0 %6690 }
 0xa51   :  { %v7161_v46 = vmul.f32 0.5, %v7129_v27  ;;  %9404 = vtanh.f32 %v7070_v36  ;;  %v7042_v47 = vadd.f32 %v7010_v61, %v13262_v40  ;;  %v6980_v28 = vmul.f32 %v6948_v45, %v13274_v50 }
 0xa52   :  { %v9395_v9 = vpop.eup %9394  ;;  %v7073_v37 = vmul.f32 0.7978846, %v7041_v24  ;;  %v7011_v30 = vmul.f32 0.044715, %v6979_v33  ;;  %v6949_v1 = vmul.f32 %v13282_v55, %v13282_v55  ;;  %v13288_v18 = vadd.f32 %v6880_v26, %v6681_v10 }
 0xa53   :  { %v7131_v32 = vadd.f32 1.0, %v9395_v9  ;;  %9406 = vtanh.f32 %v7072_v62  ;;  %v7074_v56 = vmul.f32 0.7978846, %v7042_v47  ;;  %v7012_v43 = vmul.f32 0.044715, %v6980_v28  ;;  %v6884_v13 = vpop.f32.mrb[102].mxu0  ;;  %v13294_v3 = vpop.eup %9396 }
 0xa54   :  { %9408 = vtanh.f32 %v7073_v37  ;;  %v7043_v15 = vadd.f32 %v7011_v30, %v13270_v53  ;;  %v6981_v11 = vmul.f32 %v6949_v1, %v13282_v55  ;;  %v6950_v22 = vmul.f32 %v13288_v18, %v13288_v18  ;;  %v6886_v48 = vpop.f32.mrb[103].mxu0 }
 0xa55   :  { %v13297_v51 = vmul.f32 %v7161_v46, %v13214_v25  ;;  %v7163_v19 = vmul.f32 0.5, %v7131_v32  ;;  %v7044_v23 = vadd.f32 %v7012_v43, %v13274_v50  ;;  %v13300_v6 = vadd.f32 %v6884_v13, %v6686_v52  ;;  %v6696_v32 = vpop.permute.xlu1 %6695 }
 0xa56   :  { %v9399_v44 = vpop.eup %9398  ;;  %v7075_v58 = vmul.f32 0.7978846, %v7043_v15  ;;  %v7013_v34 = vmul.f32 0.044715, %v6981_v11  ;;  %v6982_v59 = vmul.f32 %v6950_v22, %v13288_v18  ;;  %v13303_v36 = vadd.f32 %v6886_v48, %v6686_v52 }
 0xa57   :  { %v7133_v42 = vadd.f32 1.0, %v9399_v44  ;;  %9410 = vtanh.f32 %v7074_v56  ;;  %v7076_v17 = vmul.f32 0.7978846, %v7044_v23  ;;  %v6951_v35 = vmul.f32 %v13300_v6, %v13300_v6  ;;  %v6890_v25 = vpop.f32.mrb[104].mxu0  ;;  %v9401_v39 = vpop.eup %9400 }
 0xa58   :  { %9412 = vtanh.f32 %v7075_v58  ;;  %v7045_v5 = vadd.f32 %v7013_v34, %v13282_v55  ;;  %v7014_v27 = vmul.f32 0.044715, %v6982_v59  ;;  %v6952_v62 = vmul.f32 %v13303_v36, %v13303_v36  ;;  %v6892_v61 = vpop.f32.mrb[105].mxu0 }
 0xa59   :  { %v13311_v10 = vmul.f32 %v7163_v19, %v13223_v60  ;;  %v7165_v45 = vmul.f32 0.5, %v7133_v42  ;;  %v6983_v38 = vmul.f32 %v6951_v35, %v13300_v6  ;;  %v13314_v24 = vadd.f32 %v6890_v25, %v6691_v57 }
 0xa5a   :  { %v9403_v33 = vpop.eup %9402  ;;  %v7077_v26 = vmul.f32 0.7978846, %v7045_v5  ;;  %v7046_v46 = vadd.f32 %v7014_v27, %v13288_v18  ;;  %v6984_v47 = vmul.f32 %v6952_v62, %v13303_v36  ;;  %v13318_v28 = vadd.f32 %v6892_v61, %v6691_v57 }
 0xa5b   :  { %v13320_v9 = vpop.eup %9404  ;;  %v7135_v37 = vadd.f32 1.0, %v9403_v33  ;;  %9414 = vtanh.f32 %v7076_v17  ;;  %v7015_v30 = vmul.f32 0.044715, %v6983_v38  ;;  %v6953_v60 = vmul.f32 %v13314_v24, %v13314_v24  ;;  %v6896_v1 = vpop.f32.mrb[106].mxu0 }
 0xa5c   :  { %9416 = vtanh.f32 %v7077_v26  ;;  %v7078_v56 = vmul.f32 0.7978846, %v7046_v46  ;;  %v7016_v43 = vmul.f32 0.044715, %v6984_v47  ;;  %v6954_v13 = vmul.f32 %v13318_v28, %v13318_v28  ;;  %v6898_v52 = vpop.f32.mrb[107].mxu0 }
 0xa5d   :  { %v13326_v15 = vpop.eup %9406  ;;  %v13329_v11 = vmul.f32 %v7165_v45, %v13234_v8  ;;  %v7047_v22 = vadd.f32 %v7015_v30, %v13300_v6  ;;  %v6985_v48 = vmul.f32 %v6953_v60, %v13314_v24  ;;  %v13333_v19 = vadd.f32 %v6896_v1, %v6696_v32 }
 0xa5e   :  { %v9409_v23 = vpop.eup %9408  ;;  %v7167_v44 = vmul.f32 0.5, %v7135_v37  ;;  %v7048_v58 = vadd.f32 %v7016_v43, %v13303_v36  ;;  %v6986_v34 = vmul.f32 %v6954_v13, %v13318_v28  ;;  %v13337_v59 = vadd.f32 %v6898_v52, %v6696_v32 }
 0xa5f   :  { %v7137_v42 = vadd.f32 1.0, %v9409_v23  ;;  %9418 = vtanh.f32 %v7078_v56  ;;  %v7079_v17 = vmul.f32 0.7978846, %v7047_v22  ;;  %v7017_v35 = vmul.f32 0.044715, %v6985_v48  ;;  %v6902_v8 = vpop.f32.mrb[108].mxu0  ;;  %v6701_v48 = vpop.permute.xlu0 %6700 }
 0xa60   :  { %v7080_v25 = vmul.f32 0.7978846, %v7048_v58  ;;  %v7018_v57 = vmul.f32 0.044715, %v6986_v34  ;;  %v6955_v5 = vmul.f32 %v13333_v19, %v13333_v19  ;;  %v6956_v27 = vmul.f32 %v13337_v59, %v13337_v59  ;;  %v6904_v62 = vpop.f32.mrb[109].mxu0 }
 0xa61   :  { %v13343_v61 = vpop.eup %9410  ;;  %v7169_v45 = vmul.f32 0.5, %v7137_v42  ;;  %9420 = vtanh.f32 %v7079_v17  ;;  %v7049_v38 = vadd.f32 %v7017_v35, %v13314_v24  ;;  %v7130_v33 = vadd.f32 1.0, %v13294_v3 }
 0xa62   :  { %v9413_v26 = vpop.eup %9412  ;;  %v13348_v46 = vmul.f32 %v7167_v44, %v13246_v2  ;;  %v7050_v47 = vadd.f32 %v7018_v57, %v13318_v28  ;;  %v6987_v37 = vmul.f32 %v6955_v5, %v13333_v19  ;;  %v6988_v30 = vmul.f32 %v6956_v27, %v13337_v59  ;;  %v6706_v57 = vpop.permute.xlu1 %6705 }
 0xa63   :  { %v7139_v60 = vadd.f32 1.0, %v9413_v26  ;;  %9422 = vtanh.f32 %v7080_v25  ;;  %v7081_v1 = vmul.f32 0.7978846, %v7049_v38  ;;  %v7132_v32 = vadd.f32 1.0, %v9401_v39  ;;  %v6908_v56 = vpop.f32.mrb[110].mxu0 }
 0xa64   :  { %v7082_v43 = vmul.f32 0.7978846, %v7050_v47  ;;  %v7019_v13 = vmul.f32 0.044715, %v6987_v37  ;;  %v7020_v52 = vmul.f32 0.044715, %v6988_v30  ;;  %v8780_v3 = vpack.c.bf16 %v13311_v10, %v13297_v51 }
 0xa65   :  { %v13355_v22 = vpop.eup %9414  ;;  %v13358_v2 = vmul.f32 %v7169_v45, %v13258_v20  ;;  %9424 = vtanh.f32 %v7081_v1  ;;  %v7162_v23 = vmul.f32 0.5, %v7130_v33  ;;  %v7164_v44 = vmul.f32 0.5, %v7132_v32  ;;  %v6910_v58 = vpop.f32.mrb[111].mxu0 }
 0xa66   :  { %v9417_v34 = vpop.eup %9416  ;;  %v7171_v42 = vmul.f32 0.5, %v7139_v60  ;;  %v7051_v39 = vadd.f32 %v7019_v13, %v13333_v19  ;;  %v7052_v17 = vadd.f32 %v7020_v52, %v13337_v59  ;;  %v13362_v35 = vadd.f32 %v6902_v8, %v6701_v48 }
 0xa67   :  { %v7141_v25 = vadd.f32 1.0, %v9417_v34  ;;  %9426 = vtanh.f32 %v7082_v43  ;;  %v7194_v51 = vmul.f32 %v7162_v23, %v13216_v16  ;;  %v7196_v20 = vmul.f32 %v7164_v44, %v13226_v63  ;;  %v6914_v10 = vpop.f32.mrb[112].mxu0 }
 0xa68   :  { %v7083_v5 = vmul.f32 0.7978846, %v7051_v39  ;;  %v7084_v27 = vmul.f32 0.7978846, %v7052_v17  ;;  %v6957_v45 = vmul.f32 %v13362_v35, %v13362_v35  ;;  %v13368_v38 = vadd.f32 %v6904_v62, %v6701_v48  ;;  %v6916_v33 = vpop.f32.mrb[113].mxu0  ;;  %v6711_v39 = vpop.permute.xlu0 %6710 }
 0xa69   :  { %v13370_v26 = vpop.eup %9418  ;;  %v7173_v8 = vmul.f32 0.5, %v7141_v25  ;;  %v8778_v47 = vpack.c.bf16 %v7196_v20, %v7194_v51  ;;  %v13372_v37 = vadd.f32 %v6908_v56, %v6706_v57  ;;  %v13374_v30 = vadd.f32 %v6910_v58, %v6706_v57 }
 0xa6a   :  { %9428 = vtanh.f32 %v7083_v5  ;;  %v6989_v16 = vmul.f32 %v6957_v45, %v13362_v35  ;;  %v6958_v63 = vmul.f32 %v13368_v38, %v13368_v38  ;;  %v7134_v60 = vadd.f32 1.0, %v13320_v9 }
 0xa6b   :  { %v9421_v1 = vpop.eup %9420  ;;  %v13381_v62 = vmul.f32 %v7171_v42, %v13270_v53  ;;  %v13384_v32 = vmul.f32 %v7173_v8, %v13282_v55  ;;  %8779 = vmatprep.subr.bf16.mxu1 %v8778_v47  ;;  %v6959_v56 = vmul.f32 %v13372_v37, %v13372_v37  ;;  %v6960_v43 = vmul.f32 %v13374_v30, %v13374_v30  ;;  %v6920_v13 = vpop.f32.mrb[114].mxu0 }
 0xa6c   :  { %v7143_v52 = vadd.f32 1.0, %v9421_v1  ;;  %8781 = vmatpush1.bf16.msra.mxu1 %v8780_v3  ;;  %v7021_v48 = vmul.f32 0.044715, %v6989_v16  ;;  %v6990_v9 = vmul.f32 %v6958_v63, %v13368_v38  ;;  %v7136_v23 = vadd.f32 1.0, %v13326_v15  ;;  %v6922_v53 = vpop.f32.mrb[115].mxu0 }
 0xa6d   :  { %v13392_v44 = vpop.eup %9422  ;;  %v6991_v55 = vmul.f32 %v6959_v56, %v13372_v37  ;;  %v6992_v58 = vmul.f32 %v6960_v43, %v13374_v30  ;;  %v7166_v34 = vmul.f32 0.5, %v7134_v60  ;;  %v8784_v42 = vpack.c.bf16 %v13348_v46, %v13329_v11 }
 0xa6e   :  { %9430 = vtanh.f32 %v7084_v27  ;;  %v7053_v3 = vadd.f32 %v7021_v48, %v13362_v35  ;;  %v7022_v17 = vmul.f32 0.044715, %v6990_v9  ;;  %v7168_v25 = vmul.f32 0.5, %v7136_v23  ;;  %v6716_v48 = vpop.permute.xlu1 %6715 }
 0xa6f   :  { %v9425_v51 = vpop.eup %9424  ;;  %v7175_v20 = vmul.f32 0.5, %v7143_v52  ;;  %v7023_v15 = vmul.f32 0.044715, %v6991_v55  ;;  %v7024_v57 = vmul.f32 0.044715, %v6992_v58  ;;  %v13399_v5 = vadd.f32 %v6914_v10, %v6711_v39  ;;  %v6926_v45 = vpop.f32.mrb[116].mxu0 }
 0xa70   :  { %v7145_v8 = vadd.f32 1.0, %v9425_v51  ;;  %v7085_v47 = vmul.f32 0.7978846, %v7053_v3  ;;  %v7054_v16 = vadd.f32 %v7022_v17, %v13368_v38  ;;  %v7198_v63 = vmul.f32 %v7166_v34, %v13237_v21  ;;  %v6928_v11 = vpop.f32.mrb[117].mxu0 }
 0xa71   :  { %v13403_v46 = vpop.eup %9426  ;;  %v7055_v27 = vadd.f32 %v7023_v15, %v13372_v37  ;;  %v7056_v60 = vadd.f32 %v7024_v57, %v13374_v30  ;;  %v7200_v1 = vmul.f32 %v7168_v25, %v13249_v12  ;;  %v6961_v10 = vmul.f32 %v13399_v5, %v13399_v5 }
 0xa72   :  { %v7177_v56 = vmul.f32 0.5, %v7145_v8  ;;  %9432 = vtanh.f32 %v7085_v47  ;;  %v7086_v43 = vmul.f32 0.7978846, %v7054_v16  ;;  %v13410_v52 = vadd.f32 %v6916_v33, %v6711_v39 }
 0xa73   :  { %v7087_v9 = vmul.f32 0.7978846, %v7055_v27  ;;  %v7088_v21 = vmul.f32 0.7978846, %v7056_v60  ;;  %v8782_v23 = vpack.c.bf16 %v7200_v1, %v7198_v63  ;;  %v6993_v55 = vmul.f32 %v6961_v10, %v13399_v5  ;;  %v6932_v58 = vpop.f32.mrb[118].mxu0  ;;  %v6721_v27 = vpop.permute.xlu0 %6720 }
 0xa74   :  { %v9429_v34 = vpop.eup %9428  ;;  %v13414_v3 = vmul.f32 %v7175_v20, %v13300_v6  ;;  %v13417_v12 = vmul.f32 %v7177_v56, %v13314_v24  ;;  %v6962_v17 = vmul.f32 %v13410_v52, %v13410_v52  ;;  %v13421_v25 = vadd.f32 %v6920_v13, %v6716_v48  ;;  %v6934_v33 = vpop.f32.mrb[119].mxu0 }
 0xa75   :  { %v7147_v39 = vadd.f32 1.0, %v9429_v34  ;;  %9434 = vtanh.f32 %v7087_v9  ;;  %8783 = vmatprep.subr.bf16.mxu1 %v8782_v23  ;;  %v7025_v51 = vmul.f32 0.044715, %v6993_v55  ;;  %v13423_v15 = vadd.f32 %v6922_v53, %v6716_v48  ;;  %v6726_v9 = vpop.permute.xlu1 %6725 }
 0xa76   :  { %9436 = vtanh.f32 %v7086_v43  ;;  %8785 = vmatpush1.bf16.msra.mxu1 %v8784_v42  ;;  %v6994_v6 = vmul.f32 %v6962_v17, %v13410_v52  ;;  %v6963_v24 = vmul.f32 %v13421_v25, %v13421_v25  ;;  %v7138_v20 = vadd.f32 1.0, %v13343_v61 }
 0xa77   :  { %9438 = vtanh.f32 %v7088_v21  ;;  %v7057_v13 = vadd.f32 %v7025_v51, %v13399_v5  ;;  %v6964_v57 = vmul.f32 %v13423_v15, %v13423_v15  ;;  %v7140_v8 = vadd.f32 1.0, %v13355_v22 }
 0xa78   :  { %v13433_v47 = vpop.eup %9430  ;;  %v7026_v53 = vmul.f32 0.044715, %v6994_v6  ;;  %v6995_v42 = vmul.f32 %v6963_v24, %v13421_v25  ;;  %v7170_v16 = vmul.f32 0.5, %v7138_v20  ;;  %v8788_v63 = vpack.c.bf16 %v13381_v62, %v13358_v2 }
 0xa79   :  { %v7179_v60 = vmul.f32 0.5, %v7147_v39  ;;  %v7089_v61 = vmul.f32 0.7978846, %v7057_v13  ;;  %v6996_v1 = vmul.f32 %v6964_v57, %v13423_v15  ;;  %v7172_v10 = vmul.f32 0.5, %v7140_v8 }
 0xa7a   :  { %v7058_v56 = vadd.f32 %v7026_v53, %v13410_v52  ;;  %v7027_v43 = vmul.f32 0.044715, %v6995_v42  ;;  %v7202_v22 = vmul.f32 %v7170_v16, %v13262_v40  ;;  %v13441_v48 = vadd.f32 %v6926_v45, %v6721_v27 }
 0xa7b   :  { %9440 = vtanh.f32 %v7089_v61  ;;  %v7028_v21 = vmul.f32 0.044715, %v6996_v1  ;;  %v7204_v23 = vmul.f32 %v7172_v10, %v13274_v50  ;;  %v13444_v55 = vadd.f32 %v6928_v11, %v6721_v27 }
 0xa7c   :  { %v9433_v2 = vpop.eup %9432  ;;  %v7090_v62 = vmul.f32 0.7978846, %v7058_v56  ;;  %v7059_v34 = vadd.f32 %v7027_v43, %v13421_v25  ;;  %v6965_v17 = vmul.f32 %v13441_v48, %v13441_v48  ;;  %v13449_v39 = vadd.f32 %v6932_v58, %v6726_v9 }
 0xa7d   :  { %v7149_v51 = vadd.f32 1.0, %v9433_v2  ;;  %v7060_v40 = vadd.f32 %v7028_v21, %v13423_v15  ;;  %v8786_v45 = vpack.c.bf16 %v7204_v23, %v7202_v22  ;;  %v6966_v6 = vmul.f32 %v13444_v55, %v13444_v55 }
 0xa7e   :  { %v13455_v50 = vmul.f32 %v7179_v60, %v13333_v19  ;;  %v7091_v11 = vmul.f32 0.7978846, %v7059_v34  ;;  %v6997_v24 = vmul.f32 %v6965_v17, %v13441_v48  ;;  %v6967_v20 = vmul.f32 %v13449_v39, %v13449_v39 }
 0xa7f   :  { %v9435_v13 = vpop.eup %9434  ;;  %9442 = vtanh.f32 %v7090_v62  ;;  %v7092_v58 = vmul.f32 0.7978846, %v7060_v40  ;;  %8787 = vmatprep.subr.bf16.mxu1 %v8786_v45  ;;  %v6998_v57 = vmul.f32 %v6966_v6, %v13444_v55  ;;  %v13461_v8 = vadd.f32 %v6934_v33, %v6726_v9 }
 0xa80   :  { %v9437_v53 = vpop.eup %9436  ;;  %v7151_v42 = vadd.f32 1.0, %v9435_v13  ;;  %9444 = vtanh.f32 %v7091_v11  ;;  %8789 = vmatpush1.bf16.msra.mxu1 %v8788_v63  ;;  %v7029_v19 = vmul.f32 0.044715, %v6997_v24  ;;  %v6999_v16 = vmul.f32 %v6967_v20, %v13449_v39 }
 0xa81   :  { %v9439_v27 = vpop.eup %9438  ;;  %v7181_v60 = vmul.f32 0.5, %v7149_v51  ;;  %9446 = vtanh.f32 %v7092_v58  ;;  %v7030_v61 = vmul.f32 0.044715, %v6998_v57  ;;  %v6968_v1 = vmul.f32 %v13461_v8, %v13461_v8 }
 0xa82   :  { %v7183_v10 = vmul.f32 0.5, %v7151_v42  ;;  %v7061_v56 = vadd.f32 %v7029_v19, %v13441_v48  ;;  %v7031_v43 = vmul.f32 0.044715, %v6999_v16  ;;  %v7142_v33 = vadd.f32 1.0, %v13370_v26 }
 0xa83   :  { %v7062_v22 = vadd.f32 %v7030_v61, %v13444_v55  ;;  %v7000_v63 = vmul.f32 %v6968_v1, %v13461_v8  ;;  %v7144_v9 = vadd.f32 1.0, %v13392_v44  ;;  %v8792_v21 = vpack.c.bf16 %v13414_v3, %v13384_v32 }
 0xa84   :  { %v13474_v23 = vmul.f32 %v7183_v10, %v13372_v37  ;;  %v7093_v2 = vmul.f32 0.7978846, %v7061_v56  ;;  %v7063_v62 = vadd.f32 %v7031_v43, %v13449_v39  ;;  %v7174_v34 = vmul.f32 0.5, %v7142_v33 }
 0xa85   :  { %v9441_v17 = vpop.eup %9440  ;;  %v7094_v51 = vmul.f32 0.7978846, %v7062_v22  ;;  %v7032_v40 = vmul.f32 0.044715, %v7000_v63  ;;  %v7176_v26 = vmul.f32 0.5, %v7144_v9  ;;  %v7146_v45 = vadd.f32 1.0, %v13403_v46 }
 0xa86   :  { %v7153_v6 = vadd.f32 1.0, %v9441_v17  ;;  %9448 = vtanh.f32 %v7093_v2  ;;  %v7095_v11 = vmul.f32 0.7978846, %v7063_v62  ;;  %v7206_v44 = vmul.f32 %v7174_v34, %v13288_v18 }
 0xa87   :  { %9450 = vtanh.f32 %v7094_v51  ;;  %v7064_v32 = vadd.f32 %v7032_v40, %v13461_v8  ;;  %v7208_v37 = vmul.f32 %v7176_v26, %v13303_v36  ;;  %v7148_v3 = vadd.f32 1.0, %v13433_v47 }
 0xa88   :  { %v7213_v24 = vmul.f32 %v7181_v60, %v13362_v35  ;;  %9452 = vtanh.f32 %v7095_v11  ;;  %v7178_v20 = vmul.f32 0.5, %v7146_v45  ;;  %v8796_v13 = vpack.c.bf16 %v13455_v50, %v13417_v12 }
 0xa89   :  { %v9443_v46 = vpop.eup %9442  ;;  %v7096_v58 = vmul.f32 0.7978846, %v7064_v32  ;;  %v8790_v57 = vpack.c.bf16 %v7208_v37, %v7206_v44  ;;  %v7180_v42 = vmul.f32 0.5, %v7148_v3  ;;  %v7150_v19 = vadd.f32 1.0, %v9437_v53 }
 0xa8a   :  { %v9445_v18 = vpop.eup %9444  ;;  %v7185_v16 = vmul.f32 0.5, %v7153_v6  ;;  %v7210_v61 = vmul.f32 %v7178_v20, %v13318_v28  ;;  %v7152_v1 = vadd.f32 1.0, %v9439_v27  ;;  %v8800_v36 = vpack.c.bf16 %v13474_v23, %v7213_v24  ;;  %v7225_v24 = vld [vmem:[%s13549_s3] sm:$0xff]  ;;  %v7328_v20 = vpop.permute.xlu0 %7327 }
 0xa8b   :  { %v9447_v47 = vpop.eup %9446  ;;  %v7155_v10 = vadd.f32 1.0, %v9445_v18  ;;  %9454 = vtanh.f32 %v7096_v58  ;;  %8791 = vmatprep.subr.bf16.mxu1 %v8790_v57  ;;  %v7212_v35 = vmul.f32 %v7180_v42, %v13337_v59  ;;  %v7182_v60 = vmul.f32 0.5, %v7150_v19  ;;  %v7332_v57 = vpop.permute.xlu1 %7331 }
 0xa8c   :  { %8793 = vmatpush1.bf16.msra.mxu1 %v8792_v21  ;;  %v7184_v12 = vmul.f32 0.5, %v7152_v1  ;;  %v7154_v50 = vadd.f32 1.0, %v9443_v46  ;;  %v7156_v56 = vadd.f32 1.0, %v9447_v47  ;;  %v7217_v63 = vmul.f32 %v7185_v16, %v13399_v5 }
 0xa8d   :  { %v7187_v43 = vmul.f32 0.5, %v7155_v10  ;;  %v8794_v53 = vpack.c.bf16 %v7212_v35, %v7210_v61  ;;  %v7214_v33 = vmul.f32 %v7182_v60, %v13368_v38 }
 0xa8e   :  { %v7216_v28 = vmul.f32 %v7184_v12, %v13374_v30  ;;  %v7186_v27 = vmul.f32 0.5, %v7154_v50  ;;  %v7188_v22 = vmul.f32 0.5, %v7156_v56 }
 0xa8f   :  { %v7219_v9 = vmul.f32 %v7187_v43, %v13421_v25  ;;  %8795 = vmatprep.subr.bf16.mxu1 %v8794_v53 }
 0xa90   :  { %v9449_v23 = vpop.eup %9448  ;;  %8797 = vmatpush1.bf16.msra.mxu1 %v8796_v13  ;;  %v8798_v59 = vpack.c.bf16 %v7216_v28, %v7214_v33  ;;  %v7218_v21 = vmul.f32 %v7186_v27, %v13410_v52  ;;  %v7220_v2 = vmul.f32 %v7188_v22, %v13423_v15 }
 0xa91   :  { %v9451_v62 = vpop.eup %9450  ;;  %v7157_v34 = vadd.f32 1.0, %v9449_v23  ;;  %v8804_v17 = vpack.c.bf16 %v7219_v9, %v7217_v63 }
 0xa92   :  { %v9453_v38 = vpop.eup %9452  ;;  %8799 = vmatprep.subr.bf16.mxu1 %v8798_v59  ;;  %v8802_v30 = vpack.c.bf16 %v7220_v2, %v7218_v21  ;;  %v7158_v51 = vadd.f32 1.0, %v9451_v62 }
 0xa93   :  { %v7189_v40 = vmul.f32 0.5, %v7157_v34  ;;  %v7159_v26 = vadd.f32 1.0, %v9453_v38 }
 0xa94   :  { %8801 = vmatpush1.bf16.msra.mxu1 %v8800_v36  ;;  %v7190_v6 = vmul.f32 0.5, %v7158_v51  ;;  %v7336_v36 = vpop.permute.xlu1 %7335 }
 0xa95   :  { %v9455_v5 = vpop.eup %9454  ;;  %v7191_v25 = vmul.f32 0.5, %v7159_v26  ;;  %8803 = vmatprep.subr.bf16.mxu1 %v8802_v30  ;;  %v7221_v11 = vmul.f32 %v7189_v40, %v13441_v48  ;;  %v7226_v48 = vld [vmem:[%s13549_s3 + $0x8] sm:$0xff] }
 0xa96   :  { %v7160_v45 = vadd.f32 1.0, %v9455_v5  ;;  %v7222_v32 = vmul.f32 %v7190_v6, %v13444_v55  ;;  %v7227_v55 = vld [vmem:[%s13549_s3 + $0x10] sm:$0xff] }
 0xa97   :  { %v7223_v52 = vmul.f32 %v7191_v25, %v13449_v39  ;;  %v7228_v39 = vld [vmem:[%s13549_s3 + $0x18] sm:$0xff] }
 0xa98   :  { %8805 = vmatpush1.bf16.msra.mxu1 %v8804_v17  ;;  %v7192_v15 = vmul.f32 0.5, %v7160_v45 }
 0xa99   :  { %v8808_v44 = vpack.c.bf16 %v7223_v52, %v7221_v11 }
 0xa9a   :  { %v7224_v37 = vmul.f32 %v7192_v15, %v13461_v8 }
 0xa9c   :  { %v8806_v3 = vpack.c.bf16 %v7224_v37, %v7222_v32 }
 0xa9e   :  { %8807 = vmatprep.subr.bf16.mxu1 %v8806_v3 }
 0xa9f   :  { %8809 = vmatpush1.bf16.msra.mxu1 %v8808_v44 }
 0xaa2   :  { %7294 = vmatmul.mubr.f32.vlgmr.msra.gmra.mrb[104].mxu1 %v7225_v24 }
 0xaa3   :  { %7299 = vmatprep.mubr.f32.mxu1 %v13960_v49 }
 0xaa6   :  { %7300 = vmatmul.mubr.f32.gmra.mrb[106].mxu1 %v7226_v48 }
 0xaa7   :  { %7305 = vmatprep.mubr.f32.mxu1 %v13960_v49 }
 0xaaa   :  { %7306 = vmatmul.mubr.f32.gmra.mrb[108].mxu1 %v7227_v55 }
 0xaab   :  { %7311 = vmatprep.mubr.f32.mxu1 %v13960_v49 }
 0xaae   :  { %7312 = vmatmul.mubr.f32.gmra.mrb[110].mxu1 %v7228_v39 }
 0xb75   :  { %v7295_v8 = vpop.f32.mrb[104].mxu1 }
 0xb76   :  { %v7318_v13 = vadd.f32 %v7295_v8, %v13016_v54  ;;  %v7297_v46 = vpop.f32.mrb[105].mxu1 }
 0xb77   :  { %v7319_v58 = vadd.f32 %v7297_v46, %v13026_v7 }
 0xb78   :  { %v7342_v42 = vadd.f32 %v7328_v20, %v7318_v13 }
 0xb79   :  { %v7343_v19 = vadd.f32 %v7328_v20, %v7319_v58  ;;  %v7301_v18 = vpop.f32.mrb[106].mxu1 }
 0xb7a   :  { %7350 = vst [vmem:[%s13550_s5] sm:$0xff] %v7342_v42  ;;  %v7320_v49 = vadd.f32 %v7301_v18, %v13004_v4  ;;  %v7303_v16 = vpop.f32.mrb[107].mxu1 }
 0xb7b   :  { %7351 = vst [vmem:[%s13550_s5 + $0x8] sm:$0xff] %v7343_v19  ;;  %v7321_v54 = vadd.f32 %v7303_v16, %v13010_v29 }
 0xb7c   :  { %v7344_v61 = vadd.f32 %v7332_v57, %v7320_v49 }
 0xb7d   :  { %v7345_v1 = vadd.f32 %v7332_v57, %v7321_v54  ;;  %v7307_v7 = vpop.f32.mrb[108].mxu1 }
 0xb7e   :  { %7352 = vst [vmem:[%s13550_s5 + $0x10] sm:$0xff] %v7344_v61  ;;  %v7322_v47 = vadd.f32 %v7307_v7, %v13021_v31  ;;  %v7309_v10 = vpop.f32.mrb[109].mxu1  ;;  %v7340_v31 = vpop.permute.xlu0 %7339 }
 0xb7f   :  { %7353 = vst [vmem:[%s13550_s5 + $0x18] sm:$0xff] %v7345_v1  ;;  %v7323_v4 = vadd.f32 %v7309_v10, %v13031_v41 }
 0xb80   :  { %v7346_v35 = vadd.f32 %v7336_v36, %v7322_v47 }
 0xb81   :  { %v7347_v60 = vadd.f32 %v7336_v36, %v7323_v4  ;;  %v7313_v29 = vpop.f32.mrb[110].mxu1 }
 0xb82   :  { %7354 = vst [vmem:[%s13550_s5 + $0x20] sm:$0xff] %v7346_v35  ;;  %v7324_v12 = vadd.f32 %v7313_v29, %v13043_v0  ;;  %v7315_v50 = vpop.f32.mrb[111].mxu1 }
 0xb83   :  { %7355 = vst [vmem:[%s13550_s5 + $0x28] sm:$0xff] %v7347_v60  ;;  %v7325_v56 = vadd.f32 %v7315_v50, %v13049_v14 }
 0xb84   :  { %v7348_v43 = vadd.f32 %v7340_v31, %v7324_v12 }
 0xb85   :  { %v7349_v53 = vadd.f32 %v7340_v31, %v7325_v56 }
 0xb86   :  { %7356 = vst [vmem:[%s13550_s5 + $0x30] sm:$0xff] %v7348_v43 }
 0xb87   :  { %7357 = vst [vmem:[%s13550_s5 + $0x38] sm:$0xff] %v7349_v53 }

</bundles_post_ra>
